<compile_context>
chip_gen: v7x
topology: tpu7x:2x2x1
jax: 0.10.0
libtpu: 0.0.40
codegen_flags: <defaults>
</compile_context>

<pallas_src>
import functools

import numpy as np
import jax
import jax.numpy as jnp
from jax.experimental import pallas as pl
from jax.experimental.pallas import tpu as pltpu

LRELU_SLOPE = 0.2
IN_EPS = 1e-5
VMEM_LIMIT = 32 * 1024 * 1024

_VMEM = pl.BlockSpec(memory_space=pltpu.MemorySpace.VMEM)


# ----------------------------- Pallas kernels ------------------------------

def _conv_row_kernel(x_ref, w_ref, b_ref, o_ref, *, kh, kw, wo, do_in):
    """One output row of a stride-1 (kh x kw) conv (+bias); for do_in layers the
    InstanceNorm + LeakyReLU epilogue runs once at the last row of each sample.

    x_ref: (1, Hs, Ws, Cin)   bf16 padded per-sample input (VMEM resident)
    w_ref: (kh*kw, Cin, Cout) bf16 tap-major weights (resident)
    b_ref: (1, Cout)          f32 bias (resident)
    o_ref: do_in: (1, Ho, Wo, Cout) bf16, resident across the row axis
           else : (1, 1,  Wo, Cout) bf16, one row per grid step
    """
    p = pl.program_id(1)

    cout = w_ref.shape[2]
    acc = jnp.zeros((wo, cout), jnp.float32)
    t = 0
    for a in range(kh):
        row = x_ref[0, p + a, :, :]                       # (Ws, Cin) bf16
        for b in range(kw):
            acc = acc + jnp.dot(row[b:b + wo, :], w_ref[t, :, :],
                                preferred_element_type=jnp.float32)
            t += 1
    acc = acc + b_ref[...]                                # f32 bias add

    if not do_in:
        # Layer 0: LeakyReLU only, row streamed straight out.
        acc = jnp.where(acc >= 0, acc, LRELU_SLOPE * acc)
        o_ref[0, 0, :, :] = acc.astype(o_ref.dtype)
    else:
        o_ref[0, p, :, :] = acc.astype(o_ref.dtype)

        # Fused InstanceNorm2d(affine=False, eps=1e-5) + LeakyReLU once all
        # rows of this sample are resident in the output block.
        @pl.when(p == pl.num_programs(1) - 1)
        def _():
            y = o_ref[0, :, :, :].astype(jnp.float32)     # (Ho, Wo, Cout)
            inv_n = 1.0 / (y.shape[0] * y.shape[1])
            mean = jnp.sum(jnp.sum(y, axis=0), axis=0, keepdims=True) * inv_n
            msq = jnp.sum(jnp.sum(y * y, axis=0), axis=0, keepdims=True) * inv_n
            var = jnp.maximum(msq - mean * mean, 0.0)     # single-pass variance
            yn = (y - mean) * jax.lax.rsqrt(var + IN_EPS)
            yn = jnp.where(yn >= 0, yn, LRELU_SLOPE * yn)
            o_ref[0, :, :, :] = yn.astype(o_ref.dtype)


def conv_layer(x, w_taps, bias, *, kh, kw, do_in):
    """x: (B, Hs, Ws, Cin) bf16, already padded (and space-to-depth'ed for the
    stride-2 layers).  w_taps: (kh*kw, Cin, Cout) bf16.  bias: (1, Cout) f32.
    Returns (B, Ho, Wo, Cout) bf16 with Ho = Hs-kh+1, Wo = Ws-kw+1."""
    B, Hs, Ws, Cin = x.shape
    T, _, Cout = w_taps.shape
    ho, wo = Hs - kh + 1, Ws - kw + 1

    if do_in:
        out_spec = pl.BlockSpec((1, ho, wo, Cout), lambda bb, pp: (bb, 0, 0, 0))
        semantics = ("parallel", "arbitrary")   # output revisited along rows
    else:
        out_spec = pl.BlockSpec((1, 1, wo, Cout), lambda bb, pp: (bb, pp, 0, 0))
        semantics = ("parallel", "parallel")

    kernel = functools.partial(_conv_row_kernel, kh=kh, kw=kw, wo=wo, do_in=do_in)
    return pl.pallas_call(
        kernel,
        out_shape=jax.ShapeDtypeStruct((B, ho, wo, Cout), jnp.bfloat16),
        grid=(B, ho),
        in_specs=[
            pl.BlockSpec((1, Hs, Ws, Cin), lambda bb, pp: (bb, 0, 0, 0)),
            pl.BlockSpec((T, Cin, Cout), lambda bb, pp: (0, 0, 0)),
            pl.BlockSpec((1, Cout), lambda bb, pp: (0, 0)),
        ],
        out_specs=out_spec,
        compiler_params=pltpu.CompilerParams(
            dimension_semantics=semantics,
            vmem_limit_bytes=VMEM_LIMIT,
        ),
    )(x, w_taps, bias)


def _final_pool_kernel(x_ref, w_ref, b_ref, o_ref, *, kh, kw, ho, wo):
    """Fused Conv2d(C->1, 4x4, padding pre-applied) + global avg-pool + sigmoid.
    pool(conv(x)) = sum_taps (spatial-mean of tap window) . w_tap + bias, so it
    is pure reductions (no wasteful N=1 MXU matmul).

    x_ref: (B, Hs, Ws, C) bf16;  w_ref: (kh*kw, C) f32;  b_ref: (1, 1) f32
    o_ref: (B, 1) f32
    """
    Bn, _, _, C = x_ref.shape
    acc = jnp.zeros((Bn, C), jnp.float32)
    t = 0
    for a in range(kh):
        for b in range(kw):
            patch = x_ref[:, a:a + ho, b:b + wo, :].astype(jnp.float32)
            s = jnp.sum(jnp.sum(patch, axis=1), axis=1)          # (B, C)
            acc = acc + s * w_ref[t:t + 1, :]
            t += 1
    val = jnp.sum(acc, axis=1, keepdims=True) * (1.0 / (ho * wo)) + b_ref[...]
    o_ref[...] = 1.0 / (1.0 + jnp.exp(-val))


def final_conv_pool_sigmoid(x, w_taps, bias, *, kh, kw):
    B, Hs, Ws, _ = x.shape
    ho, wo = Hs - kh + 1, Ws - kw + 1
    kernel = functools.partial(_final_pool_kernel, kh=kh, kw=kw, ho=ho, wo=wo)
    return pl.pallas_call(
        kernel,
        out_shape=jax.ShapeDtypeStruct((B, 1), jnp.float32),
        in_specs=[_VMEM, _VMEM, _VMEM],
        out_specs=_VMEM,
        compiler_params=pltpu.CompilerParams(vmem_limit_bytes=VMEM_LIMIT),
    )(x, w_taps, bias)


# ------------------------------- JAX glue ----------------------------------

def _pad1(x):
    return jnp.pad(x, ((0, 0), (1, 1), (1, 1), (0, 0)))


def _space_to_depth(xp):
    # (B, Hp, Wp, C) -> (B, Hp//2, Wp//2, 4*C) with channel order (di, dj, c).
    B, Hp, Wp, C = xp.shape
    x = xp.reshape(B, Hp // 2, 2, Wp // 2, 2, C)
    x = x.transpose(0, 1, 3, 2, 4, 5)
    return x.reshape(B, Hp // 2, Wp // 2, 4 * C)


def _s2d_weight(w):
    # (4, 4, Cin, Cout) -> (2*2 taps, 4*Cin, Cout) matching _space_to_depth.
    _, _, cin, cout = w.shape
    w6 = w.reshape(2, 2, 2, 2, cin, cout)        # (a, di, b, dj, cin, cout)
    w6 = w6.transpose(0, 2, 1, 3, 4, 5)          # (a, b, di, dj, cin, cout)
    return w6.reshape(4, 4 * cin, cout)


def _flat_weight(w):
    kh, kw, cin, cout = w.shape
    return w.reshape(kh * kw, cin, cout)


def init_params(key, input_nc=3):
    specs = [
        (4, 4, input_nc, 64),
        (4, 4, 64, 128),
        (4, 4, 128, 256),
        (4, 4, 256, 512),
        (4, 4, 512, 1),
    ]
    params = []
    for i, (kh, kw, cin, cout) in enumerate(specs):
        wkey, bkey = jax.random.split(jax.random.fold_in(key, i))
        fan_in = kh * kw * cin
        bound = 1.0 / np.sqrt(fan_in)
        w = jax.random.uniform(wkey, (kh, kw, cin, cout), jnp.float32, -bound, bound)
        b = jax.random.uniform(bkey, (1, cout), jnp.float32, -bound, bound)
        params.append((w, b))
    return params


def dis_forward(x_nchw, params):
    """Forward pass of Dis; x_nchw: (B, C, H, W) float32 -> (B, 1) float32."""
    x = jnp.transpose(x_nchw, (0, 2, 3, 1)).astype(jnp.bfloat16)   # NHWC bf16
    B, H, W, _ = x.shape
    assert H % 8 == 0 and W % 8 == 0 and H >= 24 and W >= 24

    strides = [2, 2, 2, 1]
    for li in range(4):
        w, b = params[li]
        if strides[li] == 2:
            xs = _space_to_depth(_pad1(x))     # stride-2 conv -> stride-1 2x2 conv
            wk = _s2d_weight(w)
            kh = kw = 2
        else:
            xs = _pad1(x)
            wk = _flat_weight(w)
            kh = kw = 4
        x = conv_layer(xs, wk.astype(jnp.bfloat16), b.astype(jnp.float32),
                       kh=kh, kw=kw, do_in=(li != 0))

    # Final Conv2d(512 -> 1) + global average pool + sigmoid, fused.
    w, b = params[4]
    xp = _pad1(x)
    wf = w.reshape(16, w.shape[2]).astype(jnp.float32)
    return final_conv_pool_sigmoid(xp, wf, b.reshape(1, 1).astype(jnp.float32),
                                   kh=4, kw=4)


# Pure-JAX reference (for a sanity check only).
def dis_forward_ref(x_nchw, params):
    x = jnp.transpose(x_nchw, (0, 2, 3, 1)).astype(jnp.float32)
    strides = [2, 2, 2, 1, 1]
    for li, ((w, b), s) in enumerate(zip(params, strides)):
        y = jax.lax.conv_general_dilated(
            x, w, (s, s), [(1, 1), (1, 1)],
            dimension_numbers=("NHWC", "HWIO", "NHWC")) + b.reshape(1, 1, 1, -1)
        if li in (1, 2, 3):
            mean = jnp.mean(y, axis=(1, 2), keepdims=True)
            var = jnp.mean((y - mean) ** 2, axis=(1, 2), keepdims=True)
            y = (y - mean) * jax.lax.rsqrt(var + IN_EPS)
        if li != 4:
            y = jnp.where(y >= 0, y, LRELU_SLOPE * y)
        x = y
    pooled = jnp.mean(x, axis=(1, 2, 3))
    return jax.nn.sigmoid(pooled)[:, None]


if __name__ == "__main__":
    key = jax.random.PRNGKey(0)
    pkey, xkey = jax.random.split(key)
    params = init_params(pkey, input_nc=3)
    # Smallest spatial size for which the 5-conv stack is valid is 24; use 32.
    x = jax.random.normal(xkey, (2, 3, 32, 32), jnp.float32)

    out = jax.jit(dis_forward)(x, params)
    out = jax.block_until_ready(out)
    assert out.shape == (2, 1), out.shape

    ref = dis_forward_ref(x, params)
    np.testing.assert_allclose(np.asarray(out, dtype=np.float32),
                               np.asarray(ref), atol=2e-2, rtol=2e-2)

    print("KERNEL_OK")
</pallas_src>

<mosaic_0001>
module attributes {stable_mosaic.version = 11 : i64} {
  func.func @_conv_row_kernel(%arg0: i32, %arg1: i32, %arg2: memref<1x17x17x12xbf16, #tpu.memory_space<vmem>>, %arg3: memref<4x12x64xbf16, #tpu.memory_space<vmem>>, %arg4: memref<1x64xf32, #tpu.memory_space<vmem>>, %arg5: memref<1x1x16x64xbf16, #tpu.memory_space<vmem>>) attributes {dimension_semantics = [#tpu.dimension_semantics<parallel>, #tpu.dimension_semantics<parallel>], iteration_bounds = array<i64: 2, 16>, scalar_prefetch = 0 : i64, scratch_operands = 0 : i64, tpu.core_type = #tpu.core_type<tc>, window_params = [{transform_indices = @transform_0, window_bounds = array<i64: 1, 17, 17, 12>}, {pipeline_mode = #tpu.pipeline_mode<synchronous>, transform_indices = @transform_1, window_bounds = array<i64: 4, 12, 64>}, {pipeline_mode = #tpu.pipeline_mode<synchronous>, transform_indices = @transform_2, window_bounds = array<i64: 1, 64>}, {transform_indices = @transform_3, window_bounds = array<i64: 1, 1, 16, 64>}]} {
    %cst = arith.constant 0.000000e+00 : f32
    %0 = vector.broadcast %cst : f32 to vector<16x64xf32>
    %c0_i32 = arith.constant 0 : i32
    %1 = arith.addi %arg1, %c0_i32 : i32
    %c0 = arith.constant 0 : index
    %2 = arith.index_cast %1 : i32 to index
    %c0_0 = arith.constant 0 : index
    %c0_1 = arith.constant 0 : index
    %3 = vector.load %arg2[%c0, %2, %c0_0, %c0_1] : memref<1x17x17x12xbf16, #tpu.memory_space<vmem>>, vector<1x1x17x12xbf16>
    %4 = vector.shape_cast %3 : vector<1x1x17x12xbf16> to vector<17x12xbf16>
    %5 = vector.extract_strided_slice %4 {offsets = [0, 0], sizes = [16, 12], strides = [1, 1]} : vector<17x12xbf16> to vector<16x12xbf16>
    %c0_2 = arith.constant 0 : index
    %c0_3 = arith.constant 0 : index
    %c0_4 = arith.constant 0 : index
    %6 = vector.load %arg3[%c0_2, %c0_3, %c0_4] : memref<4x12x64xbf16, #tpu.memory_space<vmem>>, vector<1x12x64xbf16>
    %7 = vector.shape_cast %6 : vector<1x12x64xbf16> to vector<12x64xbf16>
    %cst_5 = arith.constant dense<0.000000e+00> : vector<16x64xf32>
    %8 = tpu.matmul %5, %7, %cst_5 {dimension_numbers = #tpu.dot_dimension_numbers<[1], [0], [0], [1], [0, 0, 1, 1], [], []>} : vector<16x12xbf16>, vector<12x64xbf16>, vector<16x64xf32> -> vector<16x64xf32>
    %9 = arith.addf %0, %8 : vector<16x64xf32>
    %10 = vector.extract_strided_slice %4 {offsets = [1, 0], sizes = [16, 12], strides = [1, 1]} : vector<17x12xbf16> to vector<16x12xbf16>
    %c1 = arith.constant 1 : index
    %c0_6 = arith.constant 0 : index
    %c0_7 = arith.constant 0 : index
    %11 = vector.load %arg3[%c1, %c0_6, %c0_7] : memref<4x12x64xbf16, #tpu.memory_space<vmem>>, vector<1x12x64xbf16>
    %12 = vector.shape_cast %11 : vector<1x12x64xbf16> to vector<12x64xbf16>
    %cst_8 = arith.constant dense<0.000000e+00> : vector<16x64xf32>
    %13 = tpu.matmul %10, %12, %cst_8 {dimension_numbers = #tpu.dot_dimension_numbers<[1], [0], [0], [1], [0, 0, 1, 1], [], []>} : vector<16x12xbf16>, vector<12x64xbf16>, vector<16x64xf32> -> vector<16x64xf32>
    %14 = arith.addf %9, %13 : vector<16x64xf32>
    %c1_i32 = arith.constant 1 : i32
    %15 = arith.addi %arg1, %c1_i32 : i32
    %c0_9 = arith.constant 0 : index
    %16 = arith.index_cast %15 : i32 to index
    %c0_10 = arith.constant 0 : index
    %c0_11 = arith.constant 0 : index
    %17 = vector.load %arg2[%c0_9, %16, %c0_10, %c0_11] : memref<1x17x17x12xbf16, #tpu.memory_space<vmem>>, vector<1x1x17x12xbf16>
    %18 = vector.shape_cast %17 : vector<1x1x17x12xbf16> to vector<17x12xbf16>
    %19 = vector.extract_strided_slice %18 {offsets = [0, 0], sizes = [16, 12], strides = [1, 1]} : vector<17x12xbf16> to vector<16x12xbf16>
    %c2 = arith.constant 2 : index
    %c0_12 = arith.constant 0 : index
    %c0_13 = arith.constant 0 : index
    %20 = vector.load %arg3[%c2, %c0_12, %c0_13] : memref<4x12x64xbf16, #tpu.memory_space<vmem>>, vector<1x12x64xbf16>
    %21 = vector.shape_cast %20 : vector<1x12x64xbf16> to vector<12x64xbf16>
    %cst_14 = arith.constant dense<0.000000e+00> : vector<16x64xf32>
    %22 = tpu.matmul %19, %21, %cst_14 {dimension_numbers = #tpu.dot_dimension_numbers<[1], [0], [0], [1], [0, 0, 1, 1], [], []>} : vector<16x12xbf16>, vector<12x64xbf16>, vector<16x64xf32> -> vector<16x64xf32>
    %23 = arith.addf %14, %22 : vector<16x64xf32>
    %24 = vector.extract_strided_slice %18 {offsets = [1, 0], sizes = [16, 12], strides = [1, 1]} : vector<17x12xbf16> to vector<16x12xbf16>
    %c3 = arith.constant 3 : index
    %c0_15 = arith.constant 0 : index
    %c0_16 = arith.constant 0 : index
    %25 = vector.load %arg3[%c3, %c0_15, %c0_16] : memref<4x12x64xbf16, #tpu.memory_space<vmem>>, vector<1x12x64xbf16>
    %26 = vector.shape_cast %25 : vector<1x12x64xbf16> to vector<12x64xbf16>
    %cst_17 = arith.constant dense<0.000000e+00> : vector<16x64xf32>
    %27 = tpu.matmul %24, %26, %cst_17 {dimension_numbers = #tpu.dot_dimension_numbers<[1], [0], [0], [1], [0, 0, 1, 1], [], []>} : vector<16x12xbf16>, vector<12x64xbf16>, vector<16x64xf32> -> vector<16x64xf32>
    %28 = arith.addf %23, %27 : vector<16x64xf32>
    %c0_18 = arith.constant 0 : index
    %c0_19 = arith.constant 0 : index
    %29 = vector.load %arg4[%c0_18, %c0_19] : memref<1x64xf32, #tpu.memory_space<vmem>>, vector<1x64xf32>
    %30 = vector.broadcast %29 : vector<1x64xf32> to vector<16x64xf32>
    %31 = arith.addf %28, %30 : vector<16x64xf32>
    %cst_20 = arith.constant 0.000000e+00 : f32
    %32 = vector.broadcast %cst_20 : f32 to vector<16x64xf32>
    %33 = arith.cmpf oge, %31, %32 : vector<16x64xf32>
    %cst_21 = arith.constant 2.000000e-01 : f32
    %34 = vector.broadcast %cst_21 : f32 to vector<16x64xf32>
    %35 = arith.mulf %34, %31 : vector<16x64xf32>
    %36 = arith.select %33, %31, %35 : vector<16x64xi1>, vector<16x64xf32>
    %37 = arith.truncf %36 : vector<16x64xf32> to vector<16x64xbf16>
    %c0_22 = arith.constant 0 : index
    %c0_23 = arith.constant 0 : index
    %c0_24 = arith.constant 0 : index
    %c0_25 = arith.constant 0 : index
    %38 = vector.load %arg5[%c0_22, %c0_23, %c0_24, %c0_25] : memref<1x1x16x64xbf16, #tpu.memory_space<vmem>>, vector<1x1x16x64xbf16>
    %39 = vector.shape_cast %38 : vector<1x1x16x64xbf16> to vector<16x64xbf16>
    %40 = vector.shape_cast %37 : vector<16x64xbf16> to vector<1x1x16x64xbf16>
    tpu.vector_store %arg5[%c0_22, %c0_23, %c0_24, %c0_25], %40 {strides = array<i32>} : memref<1x1x16x64xbf16, #tpu.memory_space<vmem>>, vector<1x1x16x64xbf16>,
    return
  }
  func.func @transform_0(%arg0: i32, %arg1: i32) -> (i32, i32, i32, i32) {
    %c0_i32 = arith.constant 0 : i32
    %c0_i32_0 = arith.constant 0 : i32
    %c0_i32_1 = arith.constant 0 : i32
    %c0_i32_2 = arith.constant 0 : i32
    return %arg0, %c0_i32, %c0_i32_0, %c0_i32_1 : i32, i32, i32, i32
  }
  func.func @transform_1(%arg0: i32, %arg1: i32) -> (i32, i32, i32) {
    %c0_i32 = arith.constant 0 : i32
    %c0_i32_0 = arith.constant 0 : i32
    %c0_i32_1 = arith.constant 0 : i32
    %c0_i32_2 = arith.constant 0 : i32
    return %c0_i32, %c0_i32_0, %c0_i32_1 : i32, i32, i32
  }
  func.func @transform_2(%arg0: i32, %arg1: i32) -> (i32, i32) {
    %c0_i32 = arith.constant 0 : i32
    %c0_i32_0 = arith.constant 0 : i32
    %c0_i32_1 = arith.constant 0 : i32
    return %c0_i32, %c0_i32_0 : i32, i32
  }
  func.func @transform_3(%arg0: i32, %arg1: i32) -> (i32, i32, i32, i32) {
    %c0_i32 = arith.constant 0 : i32
    %c0_i32_0 = arith.constant 0 : i32
    %c0_i32_1 = arith.constant 0 : i32
    return %arg0, %arg1, %c0_i32, %c0_i32_0 : i32, i32, i32, i32
  }
}

module attributes {stable_mosaic.version = 11 : i64} {
  func.func @_conv_row_kernel(%arg0: i32, %arg1: i32, %arg2: memref<1x9x9x256xbf16, #tpu.memory_space<vmem>>, %arg3: memref<4x256x128xbf16, #tpu.memory_space<vmem>>, %arg4: memref<1x128xf32, #tpu.memory_space<vmem>>, %arg5: memref<1x8x8x128xbf16, #tpu.memory_space<vmem>>) attributes {dimension_semantics = [#tpu.dimension_semantics<parallel>, #tpu.dimension_semantics<arbitrary>], iteration_bounds = array<i64: 2, 8>, scalar_prefetch = 0 : i64, scratch_operands = 0 : i64, tpu.core_type = #tpu.core_type<tc>, window_params = [{transform_indices = @transform_0, window_bounds = array<i64: 1, 9, 9, 256>}, {pipeline_mode = #tpu.pipeline_mode<synchronous>, transform_indices = @transform_1, window_bounds = array<i64: 4, 256, 128>}, {pipeline_mode = #tpu.pipeline_mode<synchronous>, transform_indices = @transform_2, window_bounds = array<i64: 1, 128>}, {transform_indices = @transform_3, window_bounds = array<i64: 1, 8, 8, 128>}]} {
    %cst = arith.constant 0.000000e+00 : f32
    %0 = vector.broadcast %cst : f32 to vector<8x128xf32>
    %c0_i32 = arith.constant 0 : i32
    %1 = arith.addi %arg1, %c0_i32 : i32
    %c0 = arith.constant 0 : index
    %2 = arith.index_cast %1 : i32 to index
    %c0_0 = arith.constant 0 : index
    %c0_1 = arith.constant 0 : index
    %3 = vector.load %arg2[%c0, %2, %c0_0, %c0_1] : memref<1x9x9x256xbf16, #tpu.memory_space<vmem>>, vector<1x1x9x256xbf16>
    %4 = vector.shape_cast %3 : vector<1x1x9x256xbf16> to vector<9x256xbf16>
    %5 = vector.extract_strided_slice %4 {offsets = [0, 0], sizes = [8, 256], strides = [1, 1]} : vector<9x256xbf16> to vector<8x256xbf16>
    %c0_2 = arith.constant 0 : index
    %c0_3 = arith.constant 0 : index
    %c0_4 = arith.constant 0 : index
    %6 = vector.load %arg3[%c0_2, %c0_3, %c0_4] : memref<4x256x128xbf16, #tpu.memory_space<vmem>>, vector<1x256x128xbf16>
    %7 = vector.shape_cast %6 : vector<1x256x128xbf16> to vector<256x128xbf16>
    %cst_5 = arith.constant dense<0.000000e+00> : vector<8x128xf32>
    %8 = tpu.matmul %5, %7, %cst_5 {dimension_numbers = #tpu.dot_dimension_numbers<[1], [0], [0], [1], [0, 0, 1, 1], [], []>} : vector<8x256xbf16>, vector<256x128xbf16>, vector<8x128xf32> -> vector<8x128xf32>
    %9 = arith.addf %0, %8 : vector<8x128xf32>
    %10 = vector.extract_strided_slice %4 {offsets = [1, 0], sizes = [8, 256], strides = [1, 1]} : vector<9x256xbf16> to vector<8x256xbf16>
    %c1 = arith.constant 1 : index
    %c0_6 = arith.constant 0 : index
    %c0_7 = arith.constant 0 : index
    %11 = vector.load %arg3[%c1, %c0_6, %c0_7] : memref<4x256x128xbf16, #tpu.memory_space<vmem>>, vector<1x256x128xbf16>
    %12 = vector.shape_cast %11 : vector<1x256x128xbf16> to vector<256x128xbf16>
    %cst_8 = arith.constant dense<0.000000e+00> : vector<8x128xf32>
    %13 = tpu.matmul %10, %12, %cst_8 {dimension_numbers = #tpu.dot_dimension_numbers<[1], [0], [0], [1], [0, 0, 1, 1], [], []>} : vector<8x256xbf16>, vector<256x128xbf16>, vector<8x128xf32> -> vector<8x128xf32>
    %14 = arith.addf %9, %13 : vector<8x128xf32>
    %c1_i32 = arith.constant 1 : i32
    %15 = arith.addi %arg1, %c1_i32 : i32
    %c0_9 = arith.constant 0 : index
    %16 = arith.index_cast %15 : i32 to index
    %c0_10 = arith.constant 0 : index
    %c0_11 = arith.constant 0 : index
    %17 = vector.load %arg2[%c0_9, %16, %c0_10, %c0_11] : memref<1x9x9x256xbf16, #tpu.memory_space<vmem>>, vector<1x1x9x256xbf16>
    %18 = vector.shape_cast %17 : vector<1x1x9x256xbf16> to vector<9x256xbf16>
    %19 = vector.extract_strided_slice %18 {offsets = [0, 0], sizes = [8, 256], strides = [1, 1]} : vector<9x256xbf16> to vector<8x256xbf16>
    %c2 = arith.constant 2 : index
    %c0_12 = arith.constant 0 : index
    %c0_13 = arith.constant 0 : index
    %20 = vector.load %arg3[%c2, %c0_12, %c0_13] : memref<4x256x128xbf16, #tpu.memory_space<vmem>>, vector<1x256x128xbf16>
    %21 = vector.shape_cast %20 : vector<1x256x128xbf16> to vector<256x128xbf16>
    %cst_14 = arith.constant dense<0.000000e+00> : vector<8x128xf32>
    %22 = tpu.matmul %19, %21, %cst_14 {dimension_numbers = #tpu.dot_dimension_numbers<[1], [0], [0], [1], [0, 0, 1, 1], [], []>} : vector<8x256xbf16>, vector<256x128xbf16>, vector<8x128xf32> -> vector<8x128xf32>
    %23 = arith.addf %14, %22 : vector<8x128xf32>
    %24 = vector.extract_strided_slice %18 {offsets = [1, 0], sizes = [8, 256], strides = [1, 1]} : vector<9x256xbf16> to vector<8x256xbf16>
    %c3 = arith.constant 3 : index
    %c0_15 = arith.constant 0 : index
    %c0_16 = arith.constant 0 : index
    %25 = vector.load %arg3[%c3, %c0_15, %c0_16] : memref<4x256x128xbf16, #tpu.memory_space<vmem>>, vector<1x256x128xbf16>
    %26 = vector.shape_cast %25 : vector<1x256x128xbf16> to vector<256x128xbf16>
    %cst_17 = arith.constant dense<0.000000e+00> : vector<8x128xf32>
    %27 = tpu.matmul %24, %26, %cst_17 {dimension_numbers = #tpu.dot_dimension_numbers<[1], [0], [0], [1], [0, 0, 1, 1], [], []>} : vector<8x256xbf16>, vector<256x128xbf16>, vector<8x128xf32> -> vector<8x128xf32>
    %28 = arith.addf %23, %27 : vector<8x128xf32>
    %c0_18 = arith.constant 0 : index
    %c0_19 = arith.constant 0 : index
    %29 = vector.load %arg4[%c0_18, %c0_19] : memref<1x128xf32, #tpu.memory_space<vmem>>, vector<1x128xf32>
    %30 = vector.broadcast %29 : vector<1x128xf32> to vector<8x128xf32>
    %31 = arith.addf %28, %30 : vector<8x128xf32>
    %32 = arith.truncf %31 : vector<8x128xf32> to vector<8x128xbf16>
    %c0_20 = arith.constant 0 : index
    %33 = arith.index_cast %arg1 : i32 to index
    %c0_21 = arith.constant 0 : index
    %c0_22 = arith.constant 0 : index
    %34 = vector.load %arg5[%c0_20, %33, %c0_21, %c0_22] : memref<1x8x8x128xbf16, #tpu.memory_space<vmem>>, vector<1x1x8x128xbf16>
    %35 = vector.shape_cast %34 : vector<1x1x8x128xbf16> to vector<8x128xbf16>
    %36 = vector.shape_cast %32 : vector<8x128xbf16> to vector<1x1x8x128xbf16>
    tpu.vector_store %arg5[%c0_20, %33, %c0_21, %c0_22], %36 {strides = array<i32>} : memref<1x8x8x128xbf16, #tpu.memory_space<vmem>>, vector<1x1x8x128xbf16>,
    %c7_i32 = arith.constant 7 : i32
    %37 = arith.cmpi eq, %arg1, %c7_i32 : i32
    %38 = arith.extui %37 : i1 to i32
    %c0_i32_23 = arith.constant 0 : i32
    %39 = arith.cmpi ne, %38, %c0_i32_23 : i32
    scf.if %39 {
      %c0_24 = arith.constant 0 : index
      %c0_25 = arith.constant 0 : index
      %c0_26 = arith.constant 0 : index
      %c0_27 = arith.constant 0 : index
      %40 = vector.load %arg5[%c0_24, %c0_25, %c0_26, %c0_27] : memref<1x8x8x128xbf16, #tpu.memory_space<vmem>>, vector<1x8x8x128xbf16>
      %41 = vector.shape_cast %40 : vector<1x8x8x128xbf16> to vector<8x8x128xbf16>
      %42 = arith.extf %41 : vector<8x8x128xbf16> to vector<8x8x128xf32>
      %cst_28 = arith.constant dense<0.000000e+00> : vector<8x128xf32>
      %43 = vector.multi_reduction <add>, %42, %cst_28 [0] : vector<8x8x128xf32> to vector<8x128xf32>
      %cst_29 = arith.constant dense<0.000000e+00> : vector<128xf32>
      %44 = vector.multi_reduction <add>, %43, %cst_29 [0] : vector<8x128xf32> to vector<128xf32>
      %45 = vector.shape_cast %44 : vector<128xf32> to vector<1x128xf32>
      %cst_30 = arith.constant 1.562500e-02 : f32
      %46 = vector.broadcast %cst_30 : f32 to vector<1x128xf32>
      %47 = arith.mulf %45, %46 : vector<1x128xf32>
      %48 = arith.mulf %42, %42 : vector<8x8x128xf32>
      %cst_31 = arith.constant dense<0.000000e+00> : vector<8x128xf32>
      %49 = vector.multi_reduction <add>, %48, %cst_31 [0] : vector<8x8x128xf32> to vector<8x128xf32>
      %cst_32 = arith.constant dense<0.000000e+00> : vector<128xf32>
      %50 = vector.multi_reduction <add>, %49, %cst_32 [0] : vector<8x128xf32> to vector<128xf32>
      %51 = vector.shape_cast %50 : vector<128xf32> to vector<1x128xf32>
      %cst_33 = arith.constant 1.562500e-02 : f32
      %52 = vector.broadcast %cst_33 : f32 to vector<1x128xf32>
      %53 = arith.mulf %51, %52 : vector<1x128xf32>
      %54 = arith.mulf %47, %47 : vector<1x128xf32>
      %55 = arith.subf %53, %54 : vector<1x128xf32>
      %cst_34 = arith.constant 0.000000e+00 : f32
      %56 = vector.broadcast %cst_34 : f32 to vector<1x128xf32>
      %57 = arith.maximumf %55, %56 : vector<1x128xf32>
      %58 = vector.shape_cast %47 : vector<1x128xf32> to vector<1x1x128xf32>
      %59 = vector.broadcast %58 : vector<1x1x128xf32> to vector<8x8x128xf32>
      %60 = arith.subf %42, %59 : vector<8x8x128xf32>
      %cst_35 = arith.constant 9.99999974E-6 : f32
      %61 = vector.broadcast %cst_35 : f32 to vector<1x128xf32>
      %62 = arith.addf %57, %61 : vector<1x128xf32>
      %63 = math.rsqrt %62 : vector<1x128xf32>
      %64 = vector.shape_cast %63 : vector<1x128xf32> to vector<1x1x128xf32>
      %65 = vector.broadcast %64 : vector<1x1x128xf32> to vector<8x8x128xf32>
      %66 = arith.mulf %60, %65 : vector<8x8x128xf32>
      %cst_36 = arith.constant 0.000000e+00 : f32
      %67 = vector.broadcast %cst_36 : f32 to vector<8x8x128xf32>
      %68 = arith.cmpf oge, %66, %67 : vector<8x8x128xf32>
      %cst_37 = arith.constant 2.000000e-01 : f32
      %69 = vector.broadcast %cst_37 : f32 to vector<8x8x128xf32>
      %70 = arith.mulf %69, %66 : vector<8x8x128xf32>
      %71 = arith.select %68, %66, %70 : vector<8x8x128xi1>, vector<8x8x128xf32>
      %72 = arith.truncf %71 : vector<8x8x128xf32> to vector<8x8x128xbf16>
      %c0_38 = arith.constant 0 : index
      %c0_39 = arith.constant 0 : index
      %c0_40 = arith.constant 0 : index
      %c0_41 = arith.constant 0 : index
      %73 = vector.load %arg5[%c0_38, %c0_39, %c0_40, %c0_41] : memref<1x8x8x128xbf16, #tpu.memory_space<vmem>>, vector<1x8x8x128xbf16>
      %74 = vector.shape_cast %73 : vector<1x8x8x128xbf16> to vector<8x8x128xbf16>
      %75 = vector.shape_cast %72 : vector<8x8x128xbf16> to vector<1x8x8x128xbf16>
      tpu.vector_store %arg5[%c0_38, %c0_39, %c0_40, %c0_41], %75 {strides = array<i32>} : memref<1x8x8x128xbf16, #tpu.memory_space<vmem>>, vector<1x8x8x128xbf16>,
    } else {
    }
    return
  }
  func.func @transform_0(%arg0: i32, %arg1: i32) -> (i32, i32, i32, i32) {
    %c0_i32 = arith.constant 0 : i32
    %c0_i32_0 = arith.constant 0 : i32
    %c0_i32_1 = arith.constant 0 : i32
    %c0_i32_2 = arith.constant 0 : i32
    return %arg0, %c0_i32, %c0_i32_0, %c0_i32_1 : i32, i32, i32, i32
  }
  func.func @transform_1(%arg0: i32, %arg1: i32) -> (i32, i32, i32) {
    %c0_i32 = arith.constant 0 : i32
    %c0_i32_0 = arith.constant 0 : i32
    %c0_i32_1 = arith.constant 0 : i32
    %c0_i32_2 = arith.constant 0 : i32
    return %c0_i32, %c0_i32_0, %c0_i32_1 : i32, i32, i32
  }
  func.func @transform_2(%arg0: i32, %arg1: i32) -> (i32, i32) {
    %c0_i32 = arith.constant 0 : i32
    %c0_i32_0 = arith.constant 0 : i32
    %c0_i32_1 = arith.constant 0 : i32
    return %c0_i32, %c0_i32_0 : i32, i32
  }
  func.func @transform_3(%arg0: i32, %arg1: i32) -> (i32, i32, i32, i32) {
    %c0_i32 = arith.constant 0 : i32
    %c0_i32_0 = arith.constant 0 : i32
    %c0_i32_1 = arith.constant 0 : i32
    %c0_i32_2 = arith.constant 0 : i32
    return %arg0, %c0_i32, %c0_i32_0, %c0_i32_1 : i32, i32, i32, i32
  }
}

module attributes {stable_mosaic.version = 11 : i64} {
  func.func @_conv_row_kernel(%arg0: i32, %arg1: i32, %arg2: memref<1x5x5x512xbf16, #tpu.memory_space<vmem>>, %arg3: memref<4x512x256xbf16, #tpu.memory_space<vmem>>, %arg4: memref<1x256xf32, #tpu.memory_space<vmem>>, %arg5: memref<1x4x4x256xbf16, #tpu.memory_space<vmem>>) attributes {dimension_semantics = [#tpu.dimension_semantics<parallel>, #tpu.dimension_semantics<arbitrary>], iteration_bounds = array<i64: 2, 4>, scalar_prefetch = 0 : i64, scratch_operands = 0 : i64, tpu.core_type = #tpu.core_type<tc>, window_params = [{transform_indices = @transform_0, window_bounds = array<i64: 1, 5, 5, 512>}, {pipeline_mode = #tpu.pipeline_mode<synchronous>, transform_indices = @transform_1, window_bounds = array<i64: 4, 512, 256>}, {pipeline_mode = #tpu.pipeline_mode<synchronous>, transform_indices = @transform_2, window_bounds = array<i64: 1, 256>}, {transform_indices = @transform_3, window_bounds = array<i64: 1, 4, 4, 256>}]} {
    %cst = arith.constant 0.000000e+00 : f32
    %0 = vector.broadcast %cst : f32 to vector<4x256xf32>
    %c0_i32 = arith.constant 0 : i32
    %1 = arith.addi %arg1, %c0_i32 : i32
    %c0 = arith.constant 0 : index
    %2 = arith.index_cast %1 : i32 to index
    %c0_0 = arith.constant 0 : index
    %c0_1 = arith.constant 0 : index
    %3 = vector.load %arg2[%c0, %2, %c0_0, %c0_1] : memref<1x5x5x512xbf16, #tpu.memory_space<vmem>>, vector<1x1x5x512xbf16>
    %4 = vector.shape_cast %3 : vector<1x1x5x512xbf16> to vector<5x512xbf16>
    %5 = vector.extract_strided_slice %4 {offsets = [0, 0], sizes = [4, 512], strides = [1, 1]} : vector<5x512xbf16> to vector<4x512xbf16>
    %c0_2 = arith.constant 0 : index
    %c0_3 = arith.constant 0 : index
    %c0_4 = arith.constant 0 : index
    %6 = vector.load %arg3[%c0_2, %c0_3, %c0_4] : memref<4x512x256xbf16, #tpu.memory_space<vmem>>, vector<1x512x256xbf16>
    %7 = vector.shape_cast %6 : vector<1x512x256xbf16> to vector<512x256xbf16>
    %cst_5 = arith.constant dense<0.000000e+00> : vector<4x256xf32>
    %8 = tpu.matmul %5, %7, %cst_5 {dimension_numbers = #tpu.dot_dimension_numbers<[1], [0], [0], [1], [0, 0, 1, 1], [], []>} : vector<4x512xbf16>, vector<512x256xbf16>, vector<4x256xf32> -> vector<4x256xf32>
    %9 = arith.addf %0, %8 : vector<4x256xf32>
    %10 = vector.extract_strided_slice %4 {offsets = [1, 0], sizes = [4, 512], strides = [1, 1]} : vector<5x512xbf16> to vector<4x512xbf16>
    %c1 = arith.constant 1 : index
    %c0_6 = arith.constant 0 : index
    %c0_7 = arith.constant 0 : index
    %11 = vector.load %arg3[%c1, %c0_6, %c0_7] : memref<4x512x256xbf16, #tpu.memory_space<vmem>>, vector<1x512x256xbf16>
    %12 = vector.shape_cast %11 : vector<1x512x256xbf16> to vector<512x256xbf16>
    %cst_8 = arith.constant dense<0.000000e+00> : vector<4x256xf32>
    %13 = tpu.matmul %10, %12, %cst_8 {dimension_numbers = #tpu.dot_dimension_numbers<[1], [0], [0], [1], [0, 0, 1, 1], [], []>} : vector<4x512xbf16>, vector<512x256xbf16>, vector<4x256xf32> -> vector<4x256xf32>
    %14 = arith.addf %9, %13 : vector<4x256xf32>
    %c1_i32 = arith.constant 1 : i32
    %15 = arith.addi %arg1, %c1_i32 : i32
    %c0_9 = arith.constant 0 : index
    %16 = arith.index_cast %15 : i32 to index
    %c0_10 = arith.constant 0 : index
    %c0_11 = arith.constant 0 : index
    %17 = vector.load %arg2[%c0_9, %16, %c0_10, %c0_11] : memref<1x5x5x512xbf16, #tpu.memory_space<vmem>>, vector<1x1x5x512xbf16>
    %18 = vector.shape_cast %17 : vector<1x1x5x512xbf16> to vector<5x512xbf16>
    %19 = vector.extract_strided_slice %18 {offsets = [0, 0], sizes = [4, 512], strides = [1, 1]} : vector<5x512xbf16> to vector<4x512xbf16>
    %c2 = arith.constant 2 : index
    %c0_12 = arith.constant 0 : index
    %c0_13 = arith.constant 0 : index
    %20 = vector.load %arg3[%c2, %c0_12, %c0_13] : memref<4x512x256xbf16, #tpu.memory_space<vmem>>, vector<1x512x256xbf16>
    %21 = vector.shape_cast %20 : vector<1x512x256xbf16> to vector<512x256xbf16>
    %cst_14 = arith.constant dense<0.000000e+00> : vector<4x256xf32>
    %22 = tpu.matmul %19, %21, %cst_14 {dimension_numbers = #tpu.dot_dimension_numbers<[1], [0], [0], [1], [0, 0, 1, 1], [], []>} : vector<4x512xbf16>, vector<512x256xbf16>, vector<4x256xf32> -> vector<4x256xf32>
    %23 = arith.addf %14, %22 : vector<4x256xf32>
    %24 = vector.extract_strided_slice %18 {offsets = [1, 0], sizes = [4, 512], strides = [1, 1]} : vector<5x512xbf16> to vector<4x512xbf16>
    %c3 = arith.constant 3 : index
    %c0_15 = arith.constant 0 : index
    %c0_16 = arith.constant 0 : index
    %25 = vector.load %arg3[%c3, %c0_15, %c0_16] : memref<4x512x256xbf16, #tpu.memory_space<vmem>>, vector<1x512x256xbf16>
    %26 = vector.shape_cast %25 : vector<1x512x256xbf16> to vector<512x256xbf16>
    %cst_17 = arith.constant dense<0.000000e+00> : vector<4x256xf32>
    %27 = tpu.matmul %24, %26, %cst_17 {dimension_numbers = #tpu.dot_dimension_numbers<[1], [0], [0], [1], [0, 0, 1, 1], [], []>} : vector<4x512xbf16>, vector<512x256xbf16>, vector<4x256xf32> -> vector<4x256xf32>
    %28 = arith.addf %23, %27 : vector<4x256xf32>
    %c0_18 = arith.constant 0 : index
    %c0_19 = arith.constant 0 : index
    %29 = vector.load %arg4[%c0_18, %c0_19] : memref<1x256xf32, #tpu.memory_space<vmem>>, vector<1x256xf32>
    %30 = vector.broadcast %29 : vector<1x256xf32> to vector<4x256xf32>
    %31 = arith.addf %28, %30 : vector<4x256xf32>
    %32 = arith.truncf %31 : vector<4x256xf32> to vector<4x256xbf16>
    %c0_20 = arith.constant 0 : index
    %33 = arith.index_cast %arg1 : i32 to index
    %c0_21 = arith.constant 0 : index
    %c0_22 = arith.constant 0 : index
    %34 = vector.load %arg5[%c0_20, %33, %c0_21, %c0_22] : memref<1x4x4x256xbf16, #tpu.memory_space<vmem>>, vector<1x1x4x256xbf16>
    %35 = vector.shape_cast %34 : vector<1x1x4x256xbf16> to vector<4x256xbf16>
    %36 = vector.shape_cast %32 : vector<4x256xbf16> to vector<1x1x4x256xbf16>
    tpu.vector_store %arg5[%c0_20, %33, %c0_21, %c0_22], %36 {strides = array<i32>} : memref<1x4x4x256xbf16, #tpu.memory_space<vmem>>, vector<1x1x4x256xbf16>,
    %c3_i32 = arith.constant 3 : i32
    %37 = arith.cmpi eq, %arg1, %c3_i32 : i32
    %38 = arith.extui %37 : i1 to i32
    %c0_i32_23 = arith.constant 0 : i32
    %39 = arith.cmpi ne, %38, %c0_i32_23 : i32
    scf.if %39 {
      %c0_24 = arith.constant 0 : index
      %c0_25 = arith.constant 0 : index
      %c0_26 = arith.constant 0 : index
      %c0_27 = arith.constant 0 : index
      %40 = vector.load %arg5[%c0_24, %c0_25, %c0_26, %c0_27] : memref<1x4x4x256xbf16, #tpu.memory_space<vmem>>, vector<1x4x4x256xbf16>
      %41 = vector.shape_cast %40 : vector<1x4x4x256xbf16> to vector<4x4x256xbf16>
      %42 = arith.extf %41 : vector<4x4x256xbf16> to vector<4x4x256xf32>
      %cst_28 = arith.constant dense<0.000000e+00> : vector<4x256xf32>
      %43 = vector.multi_reduction <add>, %42, %cst_28 [0] : vector<4x4x256xf32> to vector<4x256xf32>
      %cst_29 = arith.constant dense<0.000000e+00> : vector<256xf32>
      %44 = vector.multi_reduction <add>, %43, %cst_29 [0] : vector<4x256xf32> to vector<256xf32>
      %45 = vector.shape_cast %44 : vector<256xf32> to vector<1x256xf32>
      %cst_30 = arith.constant 6.250000e-02 : f32
      %46 = vector.broadcast %cst_30 : f32 to vector<1x256xf32>
      %47 = arith.mulf %45, %46 : vector<1x256xf32>
      %48 = arith.mulf %42, %42 : vector<4x4x256xf32>
      %cst_31 = arith.constant dense<0.000000e+00> : vector<4x256xf32>
      %49 = vector.multi_reduction <add>, %48, %cst_31 [0] : vector<4x4x256xf32> to vector<4x256xf32>
      %cst_32 = arith.constant dense<0.000000e+00> : vector<256xf32>
      %50 = vector.multi_reduction <add>, %49, %cst_32 [0] : vector<4x256xf32> to vector<256xf32>
      %51 = vector.shape_cast %50 : vector<256xf32> to vector<1x256xf32>
      %cst_33 = arith.constant 6.250000e-02 : f32
      %52 = vector.broadcast %cst_33 : f32 to vector<1x256xf32>
      %53 = arith.mulf %51, %52 : vector<1x256xf32>
      %54 = arith.mulf %47, %47 : vector<1x256xf32>
      %55 = arith.subf %53, %54 : vector<1x256xf32>
      %cst_34 = arith.constant 0.000000e+00 : f32
      %56 = vector.broadcast %cst_34 : f32 to vector<1x256xf32>
      %57 = arith.maximumf %55, %56 : vector<1x256xf32>
      %58 = vector.shape_cast %47 : vector<1x256xf32> to vector<1x1x256xf32>
      %59 = vector.broadcast %58 : vector<1x1x256xf32> to vector<4x4x256xf32>
      %60 = arith.subf %42, %59 : vector<4x4x256xf32>
      %cst_35 = arith.constant 9.99999974E-6 : f32
      %61 = vector.broadcast %cst_35 : f32 to vector<1x256xf32>
      %62 = arith.addf %57, %61 : vector<1x256xf32>
      %63 = math.rsqrt %62 : vector<1x256xf32>
      %64 = vector.shape_cast %63 : vector<1x256xf32> to vector<1x1x256xf32>
      %65 = vector.broadcast %64 : vector<1x1x256xf32> to vector<4x4x256xf32>
      %66 = arith.mulf %60, %65 : vector<4x4x256xf32>
      %cst_36 = arith.constant 0.000000e+00 : f32
      %67 = vector.broadcast %cst_36 : f32 to vector<4x4x256xf32>
      %68 = arith.cmpf oge, %66, %67 : vector<4x4x256xf32>
      %cst_37 = arith.constant 2.000000e-01 : f32
      %69 = vector.broadcast %cst_37 : f32 to vector<4x4x256xf32>
      %70 = arith.mulf %69, %66 : vector<4x4x256xf32>
      %71 = arith.select %68, %66, %70 : vector<4x4x256xi1>, vector<4x4x256xf32>
      %72 = arith.truncf %71 : vector<4x4x256xf32> to vector<4x4x256xbf16>
      %c0_38 = arith.constant 0 : index
      %c0_39 = arith.constant 0 : index
      %c0_40 = arith.constant 0 : index
      %c0_41 = arith.constant 0 : index
      %73 = vector.load %arg5[%c0_38, %c0_39, %c0_40, %c0_41] : memref<1x4x4x256xbf16, #tpu.memory_space<vmem>>, vector<1x4x4x256xbf16>
      %74 = vector.shape_cast %73 : vector<1x4x4x256xbf16> to vector<4x4x256xbf16>
      %75 = vector.shape_cast %72 : vector<4x4x256xbf16> to vector<1x4x4x256xbf16>
      tpu.vector_store %arg5[%c0_38, %c0_39, %c0_40, %c0_41], %75 {strides = array<i32>} : memref<1x4x4x256xbf16, #tpu.memory_space<vmem>>, vector<1x4x4x256xbf16>,
    } else {
    }
    return
  }
  func.func @transform_0(%arg0: i32, %arg1: i32) -> (i32, i32, i32, i32) {
    %c0_i32 = arith.constant 0 : i32
    %c0_i32_0 = arith.constant 0 : i32
    %c0_i32_1 = arith.constant 0 : i32
    %c0_i32_2 = arith.constant 0 : i32
    return %arg0, %c0_i32, %c0_i32_0, %c0_i32_1 : i32, i32, i32, i32
  }
  func.func @transform_1(%arg0: i32, %arg1: i32) -> (i32, i32, i32) {
    %c0_i32 = arith.constant 0 : i32
    %c0_i32_0 = arith.constant 0 : i32
    %c0_i32_1 = arith.constant 0 : i32
    %c0_i32_2 = arith.constant 0 : i32
    return %c0_i32, %c0_i32_0, %c0_i32_1 : i32, i32, i32
  }
  func.func @transform_2(%arg0: i32, %arg1: i32) -> (i32, i32) {
    %c0_i32 = arith.constant 0 : i32
    %c0_i32_0 = arith.constant 0 : i32
    %c0_i32_1 = arith.constant 0 : i32
    return %c0_i32, %c0_i32_0 : i32, i32
  }
  func.func @transform_3(%arg0: i32, %arg1: i32) -> (i32, i32, i32, i32) {
    %c0_i32 = arith.constant 0 : i32
    %c0_i32_0 = arith.constant 0 : i32
    %c0_i32_1 = arith.constant 0 : i32
    %c0_i32_2 = arith.constant 0 : i32
    return %arg0, %c0_i32, %c0_i32_0, %c0_i32_1 : i32, i32, i32, i32
  }
}

module attributes {stable_mosaic.version = 11 : i64} {
  func.func @_conv_row_kernel(%arg0: i32, %arg1: i32, %arg2: memref<1x6x6x256xbf16, #tpu.memory_space<vmem>>, %arg3: memref<16x256x512xbf16, #tpu.memory_space<vmem>>, %arg4: memref<1x512xf32, #tpu.memory_space<vmem>>, %arg5: memref<1x3x3x512xbf16, #tpu.memory_space<vmem>>) attributes {dimension_semantics = [#tpu.dimension_semantics<parallel>, #tpu.dimension_semantics<arbitrary>], iteration_bounds = array<i64: 2, 3>, scalar_prefetch = 0 : i64, scratch_operands = 0 : i64, tpu.core_type = #tpu.core_type<tc>, window_params = [{transform_indices = @transform_0, window_bounds = array<i64: 1, 6, 6, 256>}, {pipeline_mode = #tpu.pipeline_mode<synchronous>, transform_indices = @transform_1, window_bounds = array<i64: 16, 256, 512>}, {pipeline_mode = #tpu.pipeline_mode<synchronous>, transform_indices = @transform_2, window_bounds = array<i64: 1, 512>}, {transform_indices = @transform_3, window_bounds = array<i64: 1, 3, 3, 512>}]} {
    %cst = arith.constant 0.000000e+00 : f32
    %0 = vector.broadcast %cst : f32 to vector<3x512xf32>
    %c0_i32 = arith.constant 0 : i32
    %1 = arith.addi %arg1, %c0_i32 : i32
    %c0 = arith.constant 0 : index
    %2 = arith.index_cast %1 : i32 to index
    %c0_0 = arith.constant 0 : index
    %c0_1 = arith.constant 0 : index
    %3 = vector.load %arg2[%c0, %2, %c0_0, %c0_1] : memref<1x6x6x256xbf16, #tpu.memory_space<vmem>>, vector<1x1x6x256xbf16>
    %4 = vector.shape_cast %3 : vector<1x1x6x256xbf16> to vector<6x256xbf16>
    %5 = vector.extract_strided_slice %4 {offsets = [0, 0], sizes = [3, 256], strides = [1, 1]} : vector<6x256xbf16> to vector<3x256xbf16>
    %c0_2 = arith.constant 0 : index
    %c0_3 = arith.constant 0 : index
    %c0_4 = arith.constant 0 : index
    %6 = vector.load %arg3[%c0_2, %c0_3, %c0_4] : memref<16x256x512xbf16, #tpu.memory_space<vmem>>, vector<1x256x512xbf16>
    %7 = vector.shape_cast %6 : vector<1x256x512xbf16> to vector<256x512xbf16>
    %cst_5 = arith.constant dense<0.000000e+00> : vector<3x512xf32>
    %8 = tpu.matmul %5, %7, %cst_5 {dimension_numbers = #tpu.dot_dimension_numbers<[1], [0], [0], [1], [0, 0, 1, 1], [], []>} : vector<3x256xbf16>, vector<256x512xbf16>, vector<3x512xf32> -> vector<3x512xf32>
    %9 = arith.addf %0, %8 : vector<3x512xf32>
    %10 = vector.extract_strided_slice %4 {offsets = [1, 0], sizes = [3, 256], strides = [1, 1]} : vector<6x256xbf16> to vector<3x256xbf16>
    %c1 = arith.constant 1 : index
    %c0_6 = arith.constant 0 : index
    %c0_7 = arith.constant 0 : index
    %11 = vector.load %arg3[%c1, %c0_6, %c0_7] : memref<16x256x512xbf16, #tpu.memory_space<vmem>>, vector<1x256x512xbf16>
    %12 = vector.shape_cast %11 : vector<1x256x512xbf16> to vector<256x512xbf16>
    %cst_8 = arith.constant dense<0.000000e+00> : vector<3x512xf32>
    %13 = tpu.matmul %10, %12, %cst_8 {dimension_numbers = #tpu.dot_dimension_numbers<[1], [0], [0], [1], [0, 0, 1, 1], [], []>} : vector<3x256xbf16>, vector<256x512xbf16>, vector<3x512xf32> -> vector<3x512xf32>
    %14 = arith.addf %9, %13 : vector<3x512xf32>
    %15 = vector.extract_strided_slice %4 {offsets = [2, 0], sizes = [3, 256], strides = [1, 1]} : vector<6x256xbf16> to vector<3x256xbf16>
    %c2 = arith.constant 2 : index
    %c0_9 = arith.constant 0 : index
    %c0_10 = arith.constant 0 : index
    %16 = vector.load %arg3[%c2, %c0_9, %c0_10] : memref<16x256x512xbf16, #tpu.memory_space<vmem>>, vector<1x256x512xbf16>
    %17 = vector.shape_cast %16 : vector<1x256x512xbf16> to vector<256x512xbf16>
    %cst_11 = arith.constant dense<0.000000e+00> : vector<3x512xf32>
    %18 = tpu.matmul %15, %17, %cst_11 {dimension_numbers = #tpu.dot_dimension_numbers<[1], [0], [0], [1], [0, 0, 1, 1], [], []>} : vector<3x256xbf16>, vector<256x512xbf16>, vector<3x512xf32> -> vector<3x512xf32>
    %19 = arith.addf %14, %18 : vector<3x512xf32>
    %20 = vector.extract_strided_slice %4 {offsets = [3, 0], sizes = [3, 256], strides = [1, 1]} : vector<6x256xbf16> to vector<3x256xbf16>
    %c3 = arith.constant 3 : index
    %c0_12 = arith.constant 0 : index
    %c0_13 = arith.constant 0 : index
    %21 = vector.load %arg3[%c3, %c0_12, %c0_13] : memref<16x256x512xbf16, #tpu.memory_space<vmem>>, vector<1x256x512xbf16>
    %22 = vector.shape_cast %21 : vector<1x256x512xbf16> to vector<256x512xbf16>
    %cst_14 = arith.constant dense<0.000000e+00> : vector<3x512xf32>
    %23 = tpu.matmul %20, %22, %cst_14 {dimension_numbers = #tpu.dot_dimension_numbers<[1], [0], [0], [1], [0, 0, 1, 1], [], []>} : vector<3x256xbf16>, vector<256x512xbf16>, vector<3x512xf32> -> vector<3x512xf32>
    %24 = arith.addf %19, %23 : vector<3x512xf32>
    %c1_i32 = arith.constant 1 : i32
    %25 = arith.addi %arg1, %c1_i32 : i32
    %c0_15 = arith.constant 0 : index
    %26 = arith.index_cast %25 : i32 to index
    %c0_16 = arith.constant 0 : index
    %c0_17 = arith.constant 0 : index
    %27 = vector.load %arg2[%c0_15, %26, %c0_16, %c0_17] : memref<1x6x6x256xbf16, #tpu.memory_space<vmem>>, vector<1x1x6x256xbf16>
    %28 = vector.shape_cast %27 : vector<1x1x6x256xbf16> to vector<6x256xbf16>
    %29 = vector.extract_strided_slice %28 {offsets = [0, 0], sizes = [3, 256], strides = [1, 1]} : vector<6x256xbf16> to vector<3x256xbf16>
    %c4 = arith.constant 4 : index
    %c0_18 = arith.constant 0 : index
    %c0_19 = arith.constant 0 : index
    %30 = vector.load %arg3[%c4, %c0_18, %c0_19] : memref<16x256x512xbf16, #tpu.memory_space<vmem>>, vector<1x256x512xbf16>
    %31 = vector.shape_cast %30 : vector<1x256x512xbf16> to vector<256x512xbf16>
    %cst_20 = arith.constant dense<0.000000e+00> : vector<3x512xf32>
    %32 = tpu.matmul %29, %31, %cst_20 {dimension_numbers = #tpu.dot_dimension_numbers<[1], [0], [0], [1], [0, 0, 1, 1], [], []>} : vector<3x256xbf16>, vector<256x512xbf16>, vector<3x512xf32> -> vector<3x512xf32>
    %33 = arith.addf %24, %32 : vector<3x512xf32>
    %34 = vector.extract_strided_slice %28 {offsets = [1, 0], sizes = [3, 256], strides = [1, 1]} : vector<6x256xbf16> to vector<3x256xbf16>
    %c5 = arith.constant 5 : index
    %c0_21 = arith.constant 0 : index
    %c0_22 = arith.constant 0 : index
    %35 = vector.load %arg3[%c5, %c0_21, %c0_22] : memref<16x256x512xbf16, #tpu.memory_space<vmem>>, vector<1x256x512xbf16>
    %36 = vector.shape_cast %35 : vector<1x256x512xbf16> to vector<256x512xbf16>
    %cst_23 = arith.constant dense<0.000000e+00> : vector<3x512xf32>
    %37 = tpu.matmul %34, %36, %cst_23 {dimension_numbers = #tpu.dot_dimension_numbers<[1], [0], [0], [1], [0, 0, 1, 1], [], []>} : vector<3x256xbf16>, vector<256x512xbf16>, vector<3x512xf32> -> vector<3x512xf32>
    %38 = arith.addf %33, %37 : vector<3x512xf32>
    %39 = vector.extract_strided_slice %28 {offsets = [2, 0], sizes = [3, 256], strides = [1, 1]} : vector<6x256xbf16> to vector<3x256xbf16>
    %c6 = arith.constant 6 : index
    %c0_24 = arith.constant 0 : index
    %c0_25 = arith.constant 0 : index
    %40 = vector.load %arg3[%c6, %c0_24, %c0_25] : memref<16x256x512xbf16, #tpu.memory_space<vmem>>, vector<1x256x512xbf16>
    %41 = vector.shape_cast %40 : vector<1x256x512xbf16> to vector<256x512xbf16>
    %cst_26 = arith.constant dense<0.000000e+00> : vector<3x512xf32>
    %42 = tpu.matmul %39, %41, %cst_26 {dimension_numbers = #tpu.dot_dimension_numbers<[1], [0], [0], [1], [0, 0, 1, 1], [], []>} : vector<3x256xbf16>, vector<256x512xbf16>, vector<3x512xf32> -> vector<3x512xf32>
    %43 = arith.addf %38, %42 : vector<3x512xf32>
    %44 = vector.extract_strided_slice %28 {offsets = [3, 0], sizes = [3, 256], strides = [1, 1]} : vector<6x256xbf16> to vector<3x256xbf16>
    %c7 = arith.constant 7 : index
    %c0_27 = arith.constant 0 : index
    %c0_28 = arith.constant 0 : index
    %45 = vector.load %arg3[%c7, %c0_27, %c0_28] : memref<16x256x512xbf16, #tpu.memory_space<vmem>>, vector<1x256x512xbf16>
    %46 = vector.shape_cast %45 : vector<1x256x512xbf16> to vector<256x512xbf16>
    %cst_29 = arith.constant dense<0.000000e+00> : vector<3x512xf32>
    %47 = tpu.matmul %44, %46, %cst_29 {dimension_numbers = #tpu.dot_dimension_numbers<[1], [0], [0], [1], [0, 0, 1, 1], [], []>} : vector<3x256xbf16>, vector<256x512xbf16>, vector<3x512xf32> -> vector<3x512xf32>
    %48 = arith.addf %43, %47 : vector<3x512xf32>
    %c2_i32 = arith.constant 2 : i32
    %49 = arith.addi %arg1, %c2_i32 : i32
    %c0_30 = arith.constant 0 : index
    %50 = arith.index_cast %49 : i32 to index
    %c0_31 = arith.constant 0 : index
    %c0_32 = arith.constant 0 : index
    %51 = vector.load %arg2[%c0_30, %50, %c0_31, %c0_32] : memref<1x6x6x256xbf16, #tpu.memory_space<vmem>>, vector<1x1x6x256xbf16>
    %52 = vector.shape_cast %51 : vector<1x1x6x256xbf16> to vector<6x256xbf16>
    %53 = vector.extract_strided_slice %52 {offsets = [0, 0], sizes = [3, 256], strides = [1, 1]} : vector<6x256xbf16> to vector<3x256xbf16>
    %c8 = arith.constant 8 : index
    %c0_33 = arith.constant 0 : index
    %c0_34 = arith.constant 0 : index
    %54 = vector.load %arg3[%c8, %c0_33, %c0_34] : memref<16x256x512xbf16, #tpu.memory_space<vmem>>, vector<1x256x512xbf16>
    %55 = vector.shape_cast %54 : vector<1x256x512xbf16> to vector<256x512xbf16>
    %cst_35 = arith.constant dense<0.000000e+00> : vector<3x512xf32>
    %56 = tpu.matmul %53, %55, %cst_35 {dimension_numbers = #tpu.dot_dimension_numbers<[1], [0], [0], [1], [0, 0, 1, 1], [], []>} : vector<3x256xbf16>, vector<256x512xbf16>, vector<3x512xf32> -> vector<3x512xf32>
    %57 = arith.addf %48, %56 : vector<3x512xf32>
    %58 = vector.extract_strided_slice %52 {offsets = [1, 0], sizes = [3, 256], strides = [1, 1]} : vector<6x256xbf16> to vector<3x256xbf16>
    %c9 = arith.constant 9 : index
    %c0_36 = arith.constant 0 : index
    %c0_37 = arith.constant 0 : index
    %59 = vector.load %arg3[%c9, %c0_36, %c0_37] : memref<16x256x512xbf16, #tpu.memory_space<vmem>>, vector<1x256x512xbf16>
    %60 = vector.shape_cast %59 : vector<1x256x512xbf16> to vector<256x512xbf16>
    %cst_38 = arith.constant dense<0.000000e+00> : vector<3x512xf32>
    %61 = tpu.matmul %58, %60, %cst_38 {dimension_numbers = #tpu.dot_dimension_numbers<[1], [0], [0], [1], [0, 0, 1, 1], [], []>} : vector<3x256xbf16>, vector<256x512xbf16>, vector<3x512xf32> -> vector<3x512xf32>
    %62 = arith.addf %57, %61 : vector<3x512xf32>
    %63 = vector.extract_strided_slice %52 {offsets = [2, 0], sizes = [3, 256], strides = [1, 1]} : vector<6x256xbf16> to vector<3x256xbf16>
    %c10 = arith.constant 10 : index
    %c0_39 = arith.constant 0 : index
    %c0_40 = arith.constant 0 : index
    %64 = vector.load %arg3[%c10, %c0_39, %c0_40] : memref<16x256x512xbf16, #tpu.memory_space<vmem>>, vector<1x256x512xbf16>
    %65 = vector.shape_cast %64 : vector<1x256x512xbf16> to vector<256x512xbf16>
    %cst_41 = arith.constant dense<0.000000e+00> : vector<3x512xf32>
    %66 = tpu.matmul %63, %65, %cst_41 {dimension_numbers = #tpu.dot_dimension_numbers<[1], [0], [0], [1], [0, 0, 1, 1], [], []>} : vector<3x256xbf16>, vector<256x512xbf16>, vector<3x512xf32> -> vector<3x512xf32>
    %67 = arith.addf %62, %66 : vector<3x512xf32>
    %68 = vector.extract_strided_slice %52 {offsets = [3, 0], sizes = [3, 256], strides = [1, 1]} : vector<6x256xbf16> to vector<3x256xbf16>
    %c11 = arith.constant 11 : index
    %c0_42 = arith.constant 0 : index
    %c0_43 = arith.constant 0 : index
    %69 = vector.load %arg3[%c11, %c0_42, %c0_43] : memref<16x256x512xbf16, #tpu.memory_space<vmem>>, vector<1x256x512xbf16>
    %70 = vector.shape_cast %69 : vector<1x256x512xbf16> to vector<256x512xbf16>
    %cst_44 = arith.constant dense<0.000000e+00> : vector<3x512xf32>
    %71 = tpu.matmul %68, %70, %cst_44 {dimension_numbers = #tpu.dot_dimension_numbers<[1], [0], [0], [1], [0, 0, 1, 1], [], []>} : vector<3x256xbf16>, vector<256x512xbf16>, vector<3x512xf32> -> vector<3x512xf32>
    %72 = arith.addf %67, %71 : vector<3x512xf32>
    %c3_i32 = arith.constant 3 : i32
    %73 = arith.addi %arg1, %c3_i32 : i32
    %c0_45 = arith.constant 0 : index
    %74 = arith.index_cast %73 : i32 to index
    %c0_46 = arith.constant 0 : index
    %c0_47 = arith.constant 0 : index
    %75 = vector.load %arg2[%c0_45, %74, %c0_46, %c0_47] : memref<1x6x6x256xbf16, #tpu.memory_space<vmem>>, vector<1x1x6x256xbf16>
    %76 = vector.shape_cast %75 : vector<1x1x6x256xbf16> to vector<6x256xbf16>
    %77 = vector.extract_strided_slice %76 {offsets = [0, 0], sizes = [3, 256], strides = [1, 1]} : vector<6x256xbf16> to vector<3x256xbf16>
    %c12 = arith.constant 12 : index
    %c0_48 = arith.constant 0 : index
    %c0_49 = arith.constant 0 : index
    %78 = vector.load %arg3[%c12, %c0_48, %c0_49] : memref<16x256x512xbf16, #tpu.memory_space<vmem>>, vector<1x256x512xbf16>
    %79 = vector.shape_cast %78 : vector<1x256x512xbf16> to vector<256x512xbf16>
    %cst_50 = arith.constant dense<0.000000e+00> : vector<3x512xf32>
    %80 = tpu.matmul %77, %79, %cst_50 {dimension_numbers = #tpu.dot_dimension_numbers<[1], [0], [0], [1], [0, 0, 1, 1], [], []>} : vector<3x256xbf16>, vector<256x512xbf16>, vector<3x512xf32> -> vector<3x512xf32>
    %81 = arith.addf %72, %80 : vector<3x512xf32>
    %82 = vector.extract_strided_slice %76 {offsets = [1, 0], sizes = [3, 256], strides = [1, 1]} : vector<6x256xbf16> to vector<3x256xbf16>
    %c13 = arith.constant 13 : index
    %c0_51 = arith.constant 0 : index
    %c0_52 = arith.constant 0 : index
    %83 = vector.load %arg3[%c13, %c0_51, %c0_52] : memref<16x256x512xbf16, #tpu.memory_space<vmem>>, vector<1x256x512xbf16>
    %84 = vector.shape_cast %83 : vector<1x256x512xbf16> to vector<256x512xbf16>
    %cst_53 = arith.constant dense<0.000000e+00> : vector<3x512xf32>
    %85 = tpu.matmul %82, %84, %cst_53 {dimension_numbers = #tpu.dot_dimension_numbers<[1], [0], [0], [1], [0, 0, 1, 1], [], []>} : vector<3x256xbf16>, vector<256x512xbf16>, vector<3x512xf32> -> vector<3x512xf32>
    %86 = arith.addf %81, %85 : vector<3x512xf32>
    %87 = vector.extract_strided_slice %76 {offsets = [2, 0], sizes = [3, 256], strides = [1, 1]} : vector<6x256xbf16> to vector<3x256xbf16>
    %c14 = arith.constant 14 : index
    %c0_54 = arith.constant 0 : index
    %c0_55 = arith.constant 0 : index
    %88 = vector.load %arg3[%c14, %c0_54, %c0_55] : memref<16x256x512xbf16, #tpu.memory_space<vmem>>, vector<1x256x512xbf16>
    %89 = vector.shape_cast %88 : vector<1x256x512xbf16> to vector<256x512xbf16>
    %cst_56 = arith.constant dense<0.000000e+00> : vector<3x512xf32>
    %90 = tpu.matmul %87, %89, %cst_56 {dimension_numbers = #tpu.dot_dimension_numbers<[1], [0], [0], [1], [0, 0, 1, 1], [], []>} : vector<3x256xbf16>, vector<256x512xbf16>, vector<3x512xf32> -> vector<3x512xf32>
    %91 = arith.addf %86, %90 : vector<3x512xf32>
    %92 = vector.extract_strided_slice %76 {offsets = [3, 0], sizes = [3, 256], strides = [1, 1]} : vector<6x256xbf16> to vector<3x256xbf16>
    %c15 = arith.constant 15 : index
    %c0_57 = arith.constant 0 : index
    %c0_58 = arith.constant 0 : index
    %93 = vector.load %arg3[%c15, %c0_57, %c0_58] : memref<16x256x512xbf16, #tpu.memory_space<vmem>>, vector<1x256x512xbf16>
    %94 = vector.shape_cast %93 : vector<1x256x512xbf16> to vector<256x512xbf16>
    %cst_59 = arith.constant dense<0.000000e+00> : vector<3x512xf32>
    %95 = tpu.matmul %92, %94, %cst_59 {dimension_numbers = #tpu.dot_dimension_numbers<[1], [0], [0], [1], [0, 0, 1, 1], [], []>} : vector<3x256xbf16>, vector<256x512xbf16>, vector<3x512xf32> -> vector<3x512xf32>
    %96 = arith.addf %91, %95 : vector<3x512xf32>
    %c0_60 = arith.constant 0 : index
    %c0_61 = arith.constant 0 : index
    %97 = vector.load %arg4[%c0_60, %c0_61] : memref<1x512xf32, #tpu.memory_space<vmem>>, vector<1x512xf32>
    %98 = vector.broadcast %97 : vector<1x512xf32> to vector<3x512xf32>
    %99 = arith.addf %96, %98 : vector<3x512xf32>
    %100 = arith.truncf %99 : vector<3x512xf32> to vector<3x512xbf16>
    %c0_62 = arith.constant 0 : index
    %101 = arith.index_cast %arg1 : i32 to index
    %c0_63 = arith.constant 0 : index
    %c0_64 = arith.constant 0 : index
    %102 = vector.load %arg5[%c0_62, %101, %c0_63, %c0_64] : memref<1x3x3x512xbf16, #tpu.memory_space<vmem>>, vector<1x1x3x512xbf16>
    %103 = vector.shape_cast %102 : vector<1x1x3x512xbf16> to vector<3x512xbf16>
    %104 = vector.shape_cast %100 : vector<3x512xbf16> to vector<1x1x3x512xbf16>
    tpu.vector_store %arg5[%c0_62, %101, %c0_63, %c0_64], %104 {strides = array<i32>} : memref<1x3x3x512xbf16, #tpu.memory_space<vmem>>, vector<1x1x3x512xbf16>,
    %c2_i32_65 = arith.constant 2 : i32
    %105 = arith.cmpi eq, %arg1, %c2_i32_65 : i32
    %106 = arith.extui %105 : i1 to i32
    %c0_i32_66 = arith.constant 0 : i32
    %107 = arith.cmpi ne, %106, %c0_i32_66 : i32
    scf.if %107 {
      %c0_67 = arith.constant 0 : index
      %c0_68 = arith.constant 0 : index
      %c0_69 = arith.constant 0 : index
      %c0_70 = arith.constant 0 : index
      %108 = vector.load %arg5[%c0_67, %c0_68, %c0_69, %c0_70] : memref<1x3x3x512xbf16, #tpu.memory_space<vmem>>, vector<1x3x3x512xbf16>
      %109 = vector.shape_cast %108 : vector<1x3x3x512xbf16> to vector<3x3x512xbf16>
      %110 = arith.extf %109 : vector<3x3x512xbf16> to vector<3x3x512xf32>
      %cst_71 = arith.constant dense<0.000000e+00> : vector<3x512xf32>
      %111 = vector.multi_reduction <add>, %110, %cst_71 [0] : vector<3x3x512xf32> to vector<3x512xf32>
      %cst_72 = arith.constant dense<0.000000e+00> : vector<512xf32>
      %112 = vector.multi_reduction <add>, %111, %cst_72 [0] : vector<3x512xf32> to vector<512xf32>
      %113 = vector.shape_cast %112 : vector<512xf32> to vector<1x512xf32>
      %cst_73 = arith.constant 0.111111112 : f32
      %114 = vector.broadcast %cst_73 : f32 to vector<1x512xf32>
      %115 = arith.mulf %113, %114 : vector<1x512xf32>
      %116 = arith.mulf %110, %110 : vector<3x3x512xf32>
      %cst_74 = arith.constant dense<0.000000e+00> : vector<3x512xf32>
      %117 = vector.multi_reduction <add>, %116, %cst_74 [0] : vector<3x3x512xf32> to vector<3x512xf32>
      %cst_75 = arith.constant dense<0.000000e+00> : vector<512xf32>
      %118 = vector.multi_reduction <add>, %117, %cst_75 [0] : vector<3x512xf32> to vector<512xf32>
      %119 = vector.shape_cast %118 : vector<512xf32> to vector<1x512xf32>
      %cst_76 = arith.constant 0.111111112 : f32
      %120 = vector.broadcast %cst_76 : f32 to vector<1x512xf32>
      %121 = arith.mulf %119, %120 : vector<1x512xf32>
      %122 = arith.mulf %115, %115 : vector<1x512xf32>
      %123 = arith.subf %121, %122 : vector<1x512xf32>
      %cst_77 = arith.constant 0.000000e+00 : f32
      %124 = vector.broadcast %cst_77 : f32 to vector<1x512xf32>
      %125 = arith.maximumf %123, %124 : vector<1x512xf32>
      %126 = vector.shape_cast %115 : vector<1x512xf32> to vector<1x1x512xf32>
      %127 = vector.broadcast %126 : vector<1x1x512xf32> to vector<3x3x512xf32>
      %128 = arith.subf %110, %127 : vector<3x3x512xf32>
      %cst_78 = arith.constant 9.99999974E-6 : f32
      %129 = vector.broadcast %cst_78 : f32 to vector<1x512xf32>
      %130 = arith.addf %125, %129 : vector<1x512xf32>
      %131 = math.rsqrt %130 : vector<1x512xf32>
      %132 = vector.shape_cast %131 : vector<1x512xf32> to vector<1x1x512xf32>
      %133 = vector.broadcast %132 : vector<1x1x512xf32> to vector<3x3x512xf32>
      %134 = arith.mulf %128, %133 : vector<3x3x512xf32>
      %cst_79 = arith.constant 0.000000e+00 : f32
      %135 = vector.broadcast %cst_79 : f32 to vector<3x3x512xf32>
      %136 = arith.cmpf oge, %134, %135 : vector<3x3x512xf32>
      %cst_80 = arith.constant 2.000000e-01 : f32
      %137 = vector.broadcast %cst_80 : f32 to vector<3x3x512xf32>
      %138 = arith.mulf %137, %134 : vector<3x3x512xf32>
      %139 = arith.select %136, %134, %138 : vector<3x3x512xi1>, vector<3x3x512xf32>
      %140 = arith.truncf %139 : vector<3x3x512xf32> to vector<3x3x512xbf16>
      %c0_81 = arith.constant 0 : index
      %c0_82 = arith.constant 0 : index
      %c0_83 = arith.constant 0 : index
      %c0_84 = arith.constant 0 : index
      %141 = vector.load %arg5[%c0_81, %c0_82, %c0_83, %c0_84] : memref<1x3x3x512xbf16, #tpu.memory_space<vmem>>, vector<1x3x3x512xbf16>
      %142 = vector.shape_cast %141 : vector<1x3x3x512xbf16> to vector<3x3x512xbf16>
      %143 = vector.shape_cast %140 : vector<3x3x512xbf16> to vector<1x3x3x512xbf16>
      tpu.vector_store %arg5[%c0_81, %c0_82, %c0_83, %c0_84], %143 {strides = array<i32>} : memref<1x3x3x512xbf16, #tpu.memory_space<vmem>>, vector<1x3x3x512xbf16>,
    } else {
    }
    return
  }
  func.func @transform_0(%arg0: i32, %arg1: i32) -> (i32, i32, i32, i32) {
    %c0_i32 = arith.constant 0 : i32
    %c0_i32_0 = arith.constant 0 : i32
    %c0_i32_1 = arith.constant 0 : i32
    %c0_i32_2 = arith.constant 0 : i32
    return %arg0, %c0_i32, %c0_i32_0, %c0_i32_1 : i32, i32, i32, i32
  }
  func.func @transform_1(%arg0: i32, %arg1: i32) -> (i32, i32, i32) {
    %c0_i32 = arith.constant 0 : i32
    %c0_i32_0 = arith.constant 0 : i32
    %c0_i32_1 = arith.constant 0 : i32
    %c0_i32_2 = arith.constant 0 : i32
    return %c0_i32, %c0_i32_0, %c0_i32_1 : i32, i32, i32
  }
  func.func @transform_2(%arg0: i32, %arg1: i32) -> (i32, i32) {
    %c0_i32 = arith.constant 0 : i32
    %c0_i32_0 = arith.constant 0 : i32
    %c0_i32_1 = arith.constant 0 : i32
    return %c0_i32, %c0_i32_0 : i32, i32
  }
  func.func @transform_3(%arg0: i32, %arg1: i32) -> (i32, i32, i32, i32) {
    %c0_i32 = arith.constant 0 : i32
    %c0_i32_0 = arith.constant 0 : i32
    %c0_i32_1 = arith.constant 0 : i32
    %c0_i32_2 = arith.constant 0 : i32
    return %arg0, %c0_i32, %c0_i32_0, %c0_i32_1 : i32, i32, i32, i32
  }
}

module attributes {stable_mosaic.version = 11 : i64} {
  func.func @_final_pool_kernel(%arg0: memref<2x5x5x512xbf16, #tpu.memory_space<vmem>>, %arg1: memref<16x512xf32, #tpu.memory_space<vmem>>, %arg2: memref<1x1xf32, #tpu.memory_space<vmem>>, %arg3: memref<2x1xf32, #tpu.memory_space<vmem>>) attributes {dimension_semantics = [], scalar_prefetch = 0 : i64, scratch_operands = 0 : i64, tpu.core_type = #tpu.core_type<tc>} {
    %cst = arith.constant 0.000000e+00 : f32
    %0 = vector.broadcast %cst : f32 to vector<2x512xf32>
    %c0 = arith.constant 0 : index
    %c0_0 = arith.constant 0 : index
    %c0_1 = arith.constant 0 : index
    %c0_2 = arith.constant 0 : index
    %1 = vector.load %arg0[%c0, %c0_0, %c0_1, %c0_2] : memref<2x5x5x512xbf16, #tpu.memory_space<vmem>>, vector<2x2x2x512xbf16>
    %2 = arith.extf %1 : vector<2x2x2x512xbf16> to vector<2x2x2x512xf32>
    %cst_3 = arith.constant dense<0.000000e+00> : vector<2x2x512xf32>
    %3 = vector.multi_reduction <add>, %2, %cst_3 [1] : vector<2x2x2x512xf32> to vector<2x2x512xf32>
    %cst_4 = arith.constant dense<0.000000e+00> : vector<2x512xf32>
    %4 = vector.multi_reduction <add>, %3, %cst_4 [1] : vector<2x2x512xf32> to vector<2x512xf32>
    %c0_5 = arith.constant 0 : index
    %c0_6 = arith.constant 0 : index
    %5 = vector.load %arg1[%c0_5, %c0_6] : memref<16x512xf32, #tpu.memory_space<vmem>>, vector<1x512xf32>
    %6 = vector.broadcast %5 : vector<1x512xf32> to vector<2x512xf32>
    %7 = arith.mulf %4, %6 : vector<2x512xf32>
    %8 = arith.addf %0, %7 : vector<2x512xf32>
    %c0_7 = arith.constant 0 : index
    %c0_8 = arith.constant 0 : index
    %c1 = arith.constant 1 : index
    %c0_9 = arith.constant 0 : index
    %9 = vector.load %arg0[%c0_7, %c0_8, %c1, %c0_9] : memref<2x5x5x512xbf16, #tpu.memory_space<vmem>>, vector<2x2x2x512xbf16>
    %10 = arith.extf %9 : vector<2x2x2x512xbf16> to vector<2x2x2x512xf32>
    %cst_10 = arith.constant dense<0.000000e+00> : vector<2x2x512xf32>
    %11 = vector.multi_reduction <add>, %10, %cst_10 [1] : vector<2x2x2x512xf32> to vector<2x2x512xf32>
    %cst_11 = arith.constant dense<0.000000e+00> : vector<2x512xf32>
    %12 = vector.multi_reduction <add>, %11, %cst_11 [1] : vector<2x2x512xf32> to vector<2x512xf32>
    %c1_12 = arith.constant 1 : index
    %c0_13 = arith.constant 0 : index
    %13 = vector.load %arg1[%c1_12, %c0_13] : memref<16x512xf32, #tpu.memory_space<vmem>>, vector<1x512xf32>
    %14 = vector.broadcast %13 : vector<1x512xf32> to vector<2x512xf32>
    %15 = arith.mulf %12, %14 : vector<2x512xf32>
    %16 = arith.addf %8, %15 : vector<2x512xf32>
    %c0_14 = arith.constant 0 : index
    %c0_15 = arith.constant 0 : index
    %c2 = arith.constant 2 : index
    %c0_16 = arith.constant 0 : index
    %17 = vector.load %arg0[%c0_14, %c0_15, %c2, %c0_16] : memref<2x5x5x512xbf16, #tpu.memory_space<vmem>>, vector<2x2x2x512xbf16>
    %18 = arith.extf %17 : vector<2x2x2x512xbf16> to vector<2x2x2x512xf32>
    %cst_17 = arith.constant dense<0.000000e+00> : vector<2x2x512xf32>
    %19 = vector.multi_reduction <add>, %18, %cst_17 [1] : vector<2x2x2x512xf32> to vector<2x2x512xf32>
    %cst_18 = arith.constant dense<0.000000e+00> : vector<2x512xf32>
    %20 = vector.multi_reduction <add>, %19, %cst_18 [1] : vector<2x2x512xf32> to vector<2x512xf32>
    %c2_19 = arith.constant 2 : index
    %c0_20 = arith.constant 0 : index
    %21 = vector.load %arg1[%c2_19, %c0_20] : memref<16x512xf32, #tpu.memory_space<vmem>>, vector<1x512xf32>
    %22 = vector.broadcast %21 : vector<1x512xf32> to vector<2x512xf32>
    %23 = arith.mulf %20, %22 : vector<2x512xf32>
    %24 = arith.addf %16, %23 : vector<2x512xf32>
    %c0_21 = arith.constant 0 : index
    %c0_22 = arith.constant 0 : index
    %c3 = arith.constant 3 : index
    %c0_23 = arith.constant 0 : index
    %25 = vector.load %arg0[%c0_21, %c0_22, %c3, %c0_23] : memref<2x5x5x512xbf16, #tpu.memory_space<vmem>>, vector<2x2x2x512xbf16>
    %26 = arith.extf %25 : vector<2x2x2x512xbf16> to vector<2x2x2x512xf32>
    %cst_24 = arith.constant dense<0.000000e+00> : vector<2x2x512xf32>
    %27 = vector.multi_reduction <add>, %26, %cst_24 [1] : vector<2x2x2x512xf32> to vector<2x2x512xf32>
    %cst_25 = arith.constant dense<0.000000e+00> : vector<2x512xf32>
    %28 = vector.multi_reduction <add>, %27, %cst_25 [1] : vector<2x2x512xf32> to vector<2x512xf32>
    %c3_26 = arith.constant 3 : index
    %c0_27 = arith.constant 0 : index
    %29 = vector.load %arg1[%c3_26, %c0_27] : memref<16x512xf32, #tpu.memory_space<vmem>>, vector<1x512xf32>
    %30 = vector.broadcast %29 : vector<1x512xf32> to vector<2x512xf32>
    %31 = arith.mulf %28, %30 : vector<2x512xf32>
    %32 = arith.addf %24, %31 : vector<2x512xf32>
    %c0_28 = arith.constant 0 : index
    %c1_29 = arith.constant 1 : index
    %c0_30 = arith.constant 0 : index
    %c0_31 = arith.constant 0 : index
    %33 = vector.load %arg0[%c0_28, %c1_29, %c0_30, %c0_31] : memref<2x5x5x512xbf16, #tpu.memory_space<vmem>>, vector<2x2x2x512xbf16>
    %34 = arith.extf %33 : vector<2x2x2x512xbf16> to vector<2x2x2x512xf32>
    %cst_32 = arith.constant dense<0.000000e+00> : vector<2x2x512xf32>
    %35 = vector.multi_reduction <add>, %34, %cst_32 [1] : vector<2x2x2x512xf32> to vector<2x2x512xf32>
    %cst_33 = arith.constant dense<0.000000e+00> : vector<2x512xf32>
    %36 = vector.multi_reduction <add>, %35, %cst_33 [1] : vector<2x2x512xf32> to vector<2x512xf32>
    %c4 = arith.constant 4 : index
    %c0_34 = arith.constant 0 : index
    %37 = vector.load %arg1[%c4, %c0_34] : memref<16x512xf32, #tpu.memory_space<vmem>>, vector<1x512xf32>
    %38 = vector.broadcast %37 : vector<1x512xf32> to vector<2x512xf32>
    %39 = arith.mulf %36, %38 : vector<2x512xf32>
    %40 = arith.addf %32, %39 : vector<2x512xf32>
    %c0_35 = arith.constant 0 : index
    %c1_36 = arith.constant 1 : index
    %c1_37 = arith.constant 1 : index
    %c0_38 = arith.constant 0 : index
    %41 = vector.load %arg0[%c0_35, %c1_36, %c1_37, %c0_38] : memref<2x5x5x512xbf16, #tpu.memory_space<vmem>>, vector<2x2x2x512xbf16>
    %42 = arith.extf %41 : vector<2x2x2x512xbf16> to vector<2x2x2x512xf32>
    %cst_39 = arith.constant dense<0.000000e+00> : vector<2x2x512xf32>
    %43 = vector.multi_reduction <add>, %42, %cst_39 [1] : vector<2x2x2x512xf32> to vector<2x2x512xf32>
    %cst_40 = arith.constant dense<0.000000e+00> : vector<2x512xf32>
    %44 = vector.multi_reduction <add>, %43, %cst_40 [1] : vector<2x2x512xf32> to vector<2x512xf32>
    %c5 = arith.constant 5 : index
    %c0_41 = arith.constant 0 : index
    %45 = vector.load %arg1[%c5, %c0_41] : memref<16x512xf32, #tpu.memory_space<vmem>>, vector<1x512xf32>
    %46 = vector.broadcast %45 : vector<1x512xf32> to vector<2x512xf32>
    %47 = arith.mulf %44, %46 : vector<2x512xf32>
    %48 = arith.addf %40, %47 : vector<2x512xf32>
    %c0_42 = arith.constant 0 : index
    %c1_43 = arith.constant 1 : index
    %c2_44 = arith.constant 2 : index
    %c0_45 = arith.constant 0 : index
    %49 = vector.load %arg0[%c0_42, %c1_43, %c2_44, %c0_45] : memref<2x5x5x512xbf16, #tpu.memory_space<vmem>>, vector<2x2x2x512xbf16>
    %50 = arith.extf %49 : vector<2x2x2x512xbf16> to vector<2x2x2x512xf32>
    %cst_46 = arith.constant dense<0.000000e+00> : vector<2x2x512xf32>
    %51 = vector.multi_reduction <add>, %50, %cst_46 [1] : vector<2x2x2x512xf32> to vector<2x2x512xf32>
    %cst_47 = arith.constant dense<0.000000e+00> : vector<2x512xf32>
    %52 = vector.multi_reduction <add>, %51, %cst_47 [1] : vector<2x2x512xf32> to vector<2x512xf32>
    %c6 = arith.constant 6 : index
    %c0_48 = arith.constant 0 : index
    %53 = vector.load %arg1[%c6, %c0_48] : memref<16x512xf32, #tpu.memory_space<vmem>>, vector<1x512xf32>
    %54 = vector.broadcast %53 : vector<1x512xf32> to vector<2x512xf32>
    %55 = arith.mulf %52, %54 : vector<2x512xf32>
    %56 = arith.addf %48, %55 : vector<2x512xf32>
    %c0_49 = arith.constant 0 : index
    %c1_50 = arith.constant 1 : index
    %c3_51 = arith.constant 3 : index
    %c0_52 = arith.constant 0 : index
    %57 = vector.load %arg0[%c0_49, %c1_50, %c3_51, %c0_52] : memref<2x5x5x512xbf16, #tpu.memory_space<vmem>>, vector<2x2x2x512xbf16>
    %58 = arith.extf %57 : vector<2x2x2x512xbf16> to vector<2x2x2x512xf32>
    %cst_53 = arith.constant dense<0.000000e+00> : vector<2x2x512xf32>
    %59 = vector.multi_reduction <add>, %58, %cst_53 [1] : vector<2x2x2x512xf32> to vector<2x2x512xf32>
    %cst_54 = arith.constant dense<0.000000e+00> : vector<2x512xf32>
    %60 = vector.multi_reduction <add>, %59, %cst_54 [1] : vector<2x2x512xf32> to vector<2x512xf32>
    %c7 = arith.constant 7 : index
    %c0_55 = arith.constant 0 : index
    %61 = vector.load %arg1[%c7, %c0_55] : memref<16x512xf32, #tpu.memory_space<vmem>>, vector<1x512xf32>
    %62 = vector.broadcast %61 : vector<1x512xf32> to vector<2x512xf32>
    %63 = arith.mulf %60, %62 : vector<2x512xf32>
    %64 = arith.addf %56, %63 : vector<2x512xf32>
    %c0_56 = arith.constant 0 : index
    %c2_57 = arith.constant 2 : index
    %c0_58 = arith.constant 0 : index
    %c0_59 = arith.constant 0 : index
    %65 = vector.load %arg0[%c0_56, %c2_57, %c0_58, %c0_59] : memref<2x5x5x512xbf16, #tpu.memory_space<vmem>>, vector<2x2x2x512xbf16>
    %66 = arith.extf %65 : vector<2x2x2x512xbf16> to vector<2x2x2x512xf32>
    %cst_60 = arith.constant dense<0.000000e+00> : vector<2x2x512xf32>
    %67 = vector.multi_reduction <add>, %66, %cst_60 [1] : vector<2x2x2x512xf32> to vector<2x2x512xf32>
    %cst_61 = arith.constant dense<0.000000e+00> : vector<2x512xf32>
    %68 = vector.multi_reduction <add>, %67, %cst_61 [1] : vector<2x2x512xf32> to vector<2x512xf32>
    %c8 = arith.constant 8 : index
    %c0_62 = arith.constant 0 : index
    %69 = vector.load %arg1[%c8, %c0_62] : memref<16x512xf32, #tpu.memory_space<vmem>>, vector<1x512xf32>
    %70 = vector.broadcast %69 : vector<1x512xf32> to vector<2x512xf32>
    %71 = arith.mulf %68, %70 : vector<2x512xf32>
    %72 = arith.addf %64, %71 : vector<2x512xf32>
    %c0_63 = arith.constant 0 : index
    %c2_64 = arith.constant 2 : index
    %c1_65 = arith.constant 1 : index
    %c0_66 = arith.constant 0 : index
    %73 = vector.load %arg0[%c0_63, %c2_64, %c1_65, %c0_66] : memref<2x5x5x512xbf16, #tpu.memory_space<vmem>>, vector<2x2x2x512xbf16>
    %74 = arith.extf %73 : vector<2x2x2x512xbf16> to vector<2x2x2x512xf32>
    %cst_67 = arith.constant dense<0.000000e+00> : vector<2x2x512xf32>
    %75 = vector.multi_reduction <add>, %74, %cst_67 [1] : vector<2x2x2x512xf32> to vector<2x2x512xf32>
    %cst_68 = arith.constant dense<0.000000e+00> : vector<2x512xf32>
    %76 = vector.multi_reduction <add>, %75, %cst_68 [1] : vector<2x2x512xf32> to vector<2x512xf32>
    %c9 = arith.constant 9 : index
    %c0_69 = arith.constant 0 : index
    %77 = vector.load %arg1[%c9, %c0_69] : memref<16x512xf32, #tpu.memory_space<vmem>>, vector<1x512xf32>
    %78 = vector.broadcast %77 : vector<1x512xf32> to vector<2x512xf32>
    %79 = arith.mulf %76, %78 : vector<2x512xf32>
    %80 = arith.addf %72, %79 : vector<2x512xf32>
    %c0_70 = arith.constant 0 : index
    %c2_71 = arith.constant 2 : index
    %c2_72 = arith.constant 2 : index
    %c0_73 = arith.constant 0 : index
    %81 = vector.load %arg0[%c0_70, %c2_71, %c2_72, %c0_73] : memref<2x5x5x512xbf16, #tpu.memory_space<vmem>>, vector<2x2x2x512xbf16>
    %82 = arith.extf %81 : vector<2x2x2x512xbf16> to vector<2x2x2x512xf32>
    %cst_74 = arith.constant dense<0.000000e+00> : vector<2x2x512xf32>
    %83 = vector.multi_reduction <add>, %82, %cst_74 [1] : vector<2x2x2x512xf32> to vector<2x2x512xf32>
    %cst_75 = arith.constant dense<0.000000e+00> : vector<2x512xf32>
    %84 = vector.multi_reduction <add>, %83, %cst_75 [1] : vector<2x2x512xf32> to vector<2x512xf32>
    %c10 = arith.constant 10 : index
    %c0_76 = arith.constant 0 : index
    %85 = vector.load %arg1[%c10, %c0_76] : memref<16x512xf32, #tpu.memory_space<vmem>>, vector<1x512xf32>
    %86 = vector.broadcast %85 : vector<1x512xf32> to vector<2x512xf32>
    %87 = arith.mulf %84, %86 : vector<2x512xf32>
    %88 = arith.addf %80, %87 : vector<2x512xf32>
    %c0_77 = arith.constant 0 : index
    %c2_78 = arith.constant 2 : index
    %c3_79 = arith.constant 3 : index
    %c0_80 = arith.constant 0 : index
    %89 = vector.load %arg0[%c0_77, %c2_78, %c3_79, %c0_80] : memref<2x5x5x512xbf16, #tpu.memory_space<vmem>>, vector<2x2x2x512xbf16>
    %90 = arith.extf %89 : vector<2x2x2x512xbf16> to vector<2x2x2x512xf32>
    %cst_81 = arith.constant dense<0.000000e+00> : vector<2x2x512xf32>
    %91 = vector.multi_reduction <add>, %90, %cst_81 [1] : vector<2x2x2x512xf32> to vector<2x2x512xf32>
    %cst_82 = arith.constant dense<0.000000e+00> : vector<2x512xf32>
    %92 = vector.multi_reduction <add>, %91, %cst_82 [1] : vector<2x2x512xf32> to vector<2x512xf32>
    %c11 = arith.constant 11 : index
    %c0_83 = arith.constant 0 : index
    %93 = vector.load %arg1[%c11, %c0_83] : memref<16x512xf32, #tpu.memory_space<vmem>>, vector<1x512xf32>
    %94 = vector.broadcast %93 : vector<1x512xf32> to vector<2x512xf32>
    %95 = arith.mulf %92, %94 : vector<2x512xf32>
    %96 = arith.addf %88, %95 : vector<2x512xf32>
    %c0_84 = arith.constant 0 : index
    %c3_85 = arith.constant 3 : index
    %c0_86 = arith.constant 0 : index
    %c0_87 = arith.constant 0 : index
    %97 = vector.load %arg0[%c0_84, %c3_85, %c0_86, %c0_87] : memref<2x5x5x512xbf16, #tpu.memory_space<vmem>>, vector<2x2x2x512xbf16>
    %98 = arith.extf %97 : vector<2x2x2x512xbf16> to vector<2x2x2x512xf32>
    %cst_88 = arith.constant dense<0.000000e+00> : vector<2x2x512xf32>
    %99 = vector.multi_reduction <add>, %98, %cst_88 [1] : vector<2x2x2x512xf32> to vector<2x2x512xf32>
    %cst_89 = arith.constant dense<0.000000e+00> : vector<2x512xf32>
    %100 = vector.multi_reduction <add>, %99, %cst_89 [1] : vector<2x2x512xf32> to vector<2x512xf32>
    %c12 = arith.constant 12 : index
    %c0_90 = arith.constant 0 : index
    %101 = vector.load %arg1[%c12, %c0_90] : memref<16x512xf32, #tpu.memory_space<vmem>>, vector<1x512xf32>
    %102 = vector.broadcast %101 : vector<1x512xf32> to vector<2x512xf32>
    %103 = arith.mulf %100, %102 : vector<2x512xf32>
    %104 = arith.addf %96, %103 : vector<2x512xf32>
    %c0_91 = arith.constant 0 : index
    %c3_92 = arith.constant 3 : index
    %c1_93 = arith.constant 1 : index
    %c0_94 = arith.constant 0 : index
    %105 = vector.load %arg0[%c0_91, %c3_92, %c1_93, %c0_94] : memref<2x5x5x512xbf16, #tpu.memory_space<vmem>>, vector<2x2x2x512xbf16>
    %106 = arith.extf %105 : vector<2x2x2x512xbf16> to vector<2x2x2x512xf32>
    %cst_95 = arith.constant dense<0.000000e+00> : vector<2x2x512xf32>
    %107 = vector.multi_reduction <add>, %106, %cst_95 [1] : vector<2x2x2x512xf32> to vector<2x2x512xf32>
    %cst_96 = arith.constant dense<0.000000e+00> : vector<2x512xf32>
    %108 = vector.multi_reduction <add>, %107, %cst_96 [1] : vector<2x2x512xf32> to vector<2x512xf32>
    %c13 = arith.constant 13 : index
    %c0_97 = arith.constant 0 : index
    %109 = vector.load %arg1[%c13, %c0_97] : memref<16x512xf32, #tpu.memory_space<vmem>>, vector<1x512xf32>
    %110 = vector.broadcast %109 : vector<1x512xf32> to vector<2x512xf32>
    %111 = arith.mulf %108, %110 : vector<2x512xf32>
    %112 = arith.addf %104, %111 : vector<2x512xf32>
    %c0_98 = arith.constant 0 : index
    %c3_99 = arith.constant 3 : index
    %c2_100 = arith.constant 2 : index
    %c0_101 = arith.constant 0 : index
    %113 = vector.load %arg0[%c0_98, %c3_99, %c2_100, %c0_101] : memref<2x5x5x512xbf16, #tpu.memory_space<vmem>>, vector<2x2x2x512xbf16>
    %114 = arith.extf %113 : vector<2x2x2x512xbf16> to vector<2x2x2x512xf32>
    %cst_102 = arith.constant dense<0.000000e+00> : vector<2x2x512xf32>
    %115 = vector.multi_reduction <add>, %114, %cst_102 [1] : vector<2x2x2x512xf32> to vector<2x2x512xf32>
    %cst_103 = arith.constant dense<0.000000e+00> : vector<2x512xf32>
    %116 = vector.multi_reduction <add>, %115, %cst_103 [1] : vector<2x2x512xf32> to vector<2x512xf32>
    %c14 = arith.constant 14 : index
    %c0_104 = arith.constant 0 : index
    %117 = vector.load %arg1[%c14, %c0_104] : memref<16x512xf32, #tpu.memory_space<vmem>>, vector<1x512xf32>
    %118 = vector.broadcast %117 : vector<1x512xf32> to vector<2x512xf32>
    %119 = arith.mulf %116, %118 : vector<2x512xf32>
    %120 = arith.addf %112, %119 : vector<2x512xf32>
    %c0_105 = arith.constant 0 : index
    %c3_106 = arith.constant 3 : index
    %c3_107 = arith.constant 3 : index
    %c0_108 = arith.constant 0 : index
    %121 = vector.load %arg0[%c0_105, %c3_106, %c3_107, %c0_108] : memref<2x5x5x512xbf16, #tpu.memory_space<vmem>>, vector<2x2x2x512xbf16>
    %122 = arith.extf %121 : vector<2x2x2x512xbf16> to vector<2x2x2x512xf32>
    %cst_109 = arith.constant dense<0.000000e+00> : vector<2x2x512xf32>
    %123 = vector.multi_reduction <add>, %122, %cst_109 [1] : vector<2x2x2x512xf32> to vector<2x2x512xf32>
    %cst_110 = arith.constant dense<0.000000e+00> : vector<2x512xf32>
    %124 = vector.multi_reduction <add>, %123, %cst_110 [1] : vector<2x2x512xf32> to vector<2x512xf32>
    %c15 = arith.constant 15 : index
    %c0_111 = arith.constant 0 : index
    %125 = vector.load %arg1[%c15, %c0_111] : memref<16x512xf32, #tpu.memory_space<vmem>>, vector<1x512xf32>
    %126 = vector.broadcast %125 : vector<1x512xf32> to vector<2x512xf32>
    %127 = arith.mulf %124, %126 : vector<2x512xf32>
    %128 = arith.addf %120, %127 : vector<2x512xf32>
    %cst_112 = arith.constant dense<0.000000e+00> : vector<2xf32>
    %129 = vector.multi_reduction <add>, %128, %cst_112 [1] : vector<2x512xf32> to vector<2xf32>
    %130 = vector.shape_cast %129 : vector<2xf32> to vector<2x1xf32>
    %cst_113 = arith.constant 2.500000e-01 : f32
    %131 = vector.broadcast %cst_113 : f32 to vector<2x1xf32>
    %132 = arith.mulf %130, %131 : vector<2x1xf32>
    %c0_114 = arith.constant 0 : index
    %c0_115 = arith.constant 0 : index
    %133 = vector.load %arg2[%c0_114, %c0_115] : memref<1x1xf32, #tpu.memory_space<vmem>>, vector<1x1xf32>
    %134 = vector.broadcast %133 : vector<1x1xf32> to vector<2x1xf32>
    %135 = arith.addf %132, %134 : vector<2x1xf32>
    %cst_116 = arith.constant 0.000000e+00 : f32
    %136 = vector.broadcast %cst_116 : f32 to vector<2x1xf32>
    %137 = arith.subf %136, %135 : vector<2x1xf32>
    %138 = math.exp %137 : vector<2x1xf32>
    %cst_117 = arith.constant 1.000000e+00 : f32
    %139 = vector.broadcast %cst_117 : f32 to vector<2x1xf32>
    %140 = arith.addf %139, %138 : vector<2x1xf32>
    %cst_118 = arith.constant 1.000000e+00 : f32
    %141 = vector.broadcast %cst_118 : f32 to vector<2x1xf32>
    %142 = arith.divf %141, %140 : vector<2x1xf32>
    %c0_119 = arith.constant 0 : index
    %c0_120 = arith.constant 0 : index
    %143 = vector.load %arg3[%c0_119, %c0_120] : memref<2x1xf32, #tpu.memory_space<vmem>>, vector<2x1xf32>
    tpu.vector_store %arg3[%c0_119, %c0_120], %142 {strides = array<i32>} : memref<2x1xf32, #tpu.memory_space<vmem>>, vector<2x1xf32>,
    return
  }
}

</mosaic_0001>

<bundles_post_ra>
// kernel: dis_forward.5
= control target key start
LH: loop header
LB: loop body
LE: loop exit
PB: predicated region body
PF: predicated region fallthrough
CT: control target
= control target key end

     0   :  { %8 = vsyncpa [#allocation3], 0  ;;  %s844_s12 = smov 0   ;;  %s846_s13 = smov 0   ;;  %s973_s0 = inlined_call_operand.vmem [shape: bf16[2,17,17,12], index: 0, kind: input, shape index: {}]   ;;  %s974_s1 = inlined_call_operand.vmem [shape: bf16[4,12,64], index: 1, kind: input, shape index: {}]   ;;  %s975_s2 = inlined_call_operand.hbm [shape: f32[1,64], index: 2, kind: input, shape index: {}]   ;;  %s976_s3 = inlined_call_operand.vmem [shape: bf16[2,16,16,64], index: 3, kind: output, shape index: {}]  }
   0x1   :  { %s848_s14 = smov 0   ;;  %s850_s15 = smov 0  }
   0x2   :  { %s852_s16 = smov 0  }
   0x3 LB: > { %s614_s17 = sadd.s32 4294967295, %s819_s16   ;;  %s23_s18 = sadd.s32 1, %s811_s14  ;;  %s819_s16 = sphi %s852_s16, %s14_s16   ;;  %s815_s15 = sphi %s850_s15, %s988_s15   ;;  %s811_s14 = sphi %s848_s14, %s987_s14   ;;  %s807_s13 = sphi %s846_s13, %s986_s13   ;;  %s803_s12 = sphi %s844_s12, %s985_s12  }
   0x4   : > { %p24_p0 = scmp.ge.s32.totalorder %s23_s18, 16  ;;  %s26_s19 = sadd.s32 1, %s815_s15 }
   0x5   : > { %p616_p1 = scmp.ge.s32.totalorder %s819_s16, 1  ;;  %p127_p2 = scmp.lt.s32.totalorder %s819_s16, 33 }
   0x6   : > { %s990_s18 = smov (%p24_p0, %s23_s18), 0  ;;  %s992_s19 = smov (!%p24_p0, %s26_s19), %s815_s15 }
   0x7   : > { %p877_p3 = pnand %p616_p1, %p127_p2  ;;  %p28_p4 = scmp.ge.s32.totalorder %s992_s19, 2 }
   0x8   : > { %p881_p5 = scmp.eq.s32.totalorder %s614_s17, 0  ;;  %s821_s22 = smov [#allocation2]  }
   0x9   : > { %s980_s20 = scalar_select %p877_p3, 1, 0 }
   0xa   : > { %s981_s21 = scalar_select %p881_p5, 1, 0 }
   0xb   : > { %p692_p6 = pneg %p877_p3  ;;  %s994_s19 = smov (%p28_p4, %s992_s19), 0 }
   0xc   : > { %s143_s23 = sshll.u32 %s821_s22, 4  ;;  %s749_s27 = scalar_lea.hbm %s975_s2, 16  ;;  %s144_s23 = int_to_ptr.vmem [resolvable:$true] %s143_s23 }
   0xd   : > { %p891_p7 = pnand %p881_p5, %p692_p6  ;;  %p750_p8 = scmp.ne.s32.totalorder %s975_s2, %s749_s27 }
   0xe   : > { %p756_p12 = scmp.lt.u32.totalorder %s749_s27, %s975_s2 }
   0xf   : > { %p751_p9 = pneg %p891_p7 }
  0x11   : > { %p752_p10 = pnand %p751_p9, %p750_p8 }
  0x13   : > { %p753_p11 = pneg %p752_p10 }
  0x15   : > { %p758_p13 = pnand %p756_p12, %p753_p11 }
  0x17   : > { %761 = shalt.err (!%p758_p13)
}
  0x18   : > { %s762_s5 = scalar_lea.vmem %s144_s23, 16  ;;  %s769_s6 = scalar_lea.vmem %s144_s23, 32 }
  0x19   : > { %p763_p0 = scmp.ne.s32.totalorder %s144_s23, %s762_s5  ;;  %p770_p4 = scmp.lt.s32.totalorder %s144_s23, %s144_s23 }
  0x1a   : > { %p771_p6 = scmp.lt.s32.totalorder %s769_s6, %s762_s5 }
  0x1b   : > { %p765_p1 = pnand %p763_p0, %p751_p9 }
  0x1c   : > { %p772_p5 = por %p771_p6, %p770_p4 }
  0x1d   : > { %p766_p2 = pneg %p765_p1 }
  0x1f   : > { %p773_p3 = pnand %p772_p5, %p766_p2 }
  0x21   : > { %776 = shalt.err (!%p773_p3)
}
  0x22   : > { %695 = dma.hbm_to_vmem [thread:$0]  (!%p891_p7), %s975_s2, 16, %s144_s23, [#allocation3]  }
  0x23   : > { %p983_p8 = scmp.ne.s32.totalorder %s980_s20, 0 }
  0x24   : > { %p984_p10 = scmp.ne.s32.totalorder (!%p983_p8), %s981_s21, 0 }
  0x25   : > { %164 = sbr.rel (%p983_p8) target bundleno = 294 (0x126), region = 32 }
  0x2c   : > { %798 = dma.done.wait (%p984_p10), [#allocation3], 16  }
  0x2d   : > { %800 = vsyncadd (%p984_p10), [#allocation3], 4294967280  ;;  %p192_p5 = scmp.lt.s32.totalorder %s807_s13, 1  ;;  %v822_v0 = vmov 0.0   ;;  %vm823_vm0 = vmmov 0   ;;  %s652_s9 = smul.u32 12, %s803_s12 }
  0x2e   : > { %663 = vmatprep.subr.bf16.mxu0 %v822_v0  ;;  %669 = vmatprep.subr.bf16.mxu1 %v822_v0  ;;  %vm248_vm1 = vcmask 1045504   ;;  %vm244_vm2 = vcmask 97280   ;;  %vm226_vm3 = vsmask.f32 7424  ;;  %v741_v1 = vld [vmem:[%s974_s1 + $0x8] sm:$0x3f]  }
  0x2f   : > { %671 = vmatprep.mubr.msk.bf16.mxu1 %vm823_vm0, %v822_v0  ;;  %665 = vmatprep.mubr.msk.bf16.mxu0 %vm823_vm0, %v822_v0  ;;  %s996_s13 = smov (!%p192_p5, %s807_s13), 1  ;;  %v742_v2 = vld [vmem:[%s974_s1] sm:$0x3f]   ;;  %v250_v3 = vsel %vm248_vm1, %v741_v1, 0  ;;  %v745_v10 = vld [vmem:[%s974_s1 + $0x10] sm:$0x3f]  }
  0x30   : > { %s687_s10 = smul.u32 204, %s996_s13  ;;  %664 = vmatpush3.bf16.msra.mxu0 %v250_v3  ;;  %v301_v5 = vsel %vm248_vm1, %v742_v2, 0  ;;  %v746_v13 = vld [vmem:[%s974_s1 + $0x18] sm:$0x3f]   ;;  %v368_v18 = vsel %vm248_vm1, %v745_v10, 0  ;;  %p199_p3 = scmp.lt.s32.totalorder %s803_s12, 15 }
  0x31   : > { %670 = vmatpush3.bf16.msra.mxu1 %v301_v5  ;;  %675 = vmatprep.subr.bf16.mxu0 %v822_v0  ;;  %v439_v16 = vsel %vm248_vm1, %v746_v13, 0  ;;  %s623_s4 = sshll.u32 %s996_s13, 5  ;;  %v647_v44 = vld [vmem:[#allocation2] ss:$0 sm:$0xff]  ;;  %vm507_vm5 = vcmask 519168  }
  0x32   : > { %s196_s20 = scalar_lea.vmem %s973_s0, %s687_s10  ;;  %681 = vmatprep.subr.bf16.mxu1 %v822_v0  ;;  %s998_s12 = smov (!%p199_p3, %s803_s12), 15 }
  0x33   : > { %s209_s23 = scalar_lea.vmem %s196_s20, %s652_s9  ;;  %s622_s30 = sshll.u32 %s998_s12, 1 }
  0x34   : > { %v743_v4 = vld [vmem:[%s209_s23] sm:$0xff]   ;;  %v744_v6 = vld [vmem:[%s209_s23 + $0x8] ss:$0 sps:$4 sm:$0x11]   ;;  %v747_v11 = vld [vmem:[%s209_s23 + $0xc] sm:$0xff]   ;;  %s203_s5 = sadd.s32 %s623_s4, %s622_s30 }
  0x35   : > { %v228_v7 = vshrl.u32 %v743_v4, 16  ;;  %v230_v8 = vshll.u32 %v743_v4, 16  ;;  %v235_v9 = vshll.u32 %v744_v6, 16  ;;  %672 = vmatmul.mubr.msk.bf16.vlgmr.msra.gmra.mrb[0].mxu1 %vm244_vm2, %v743_v4  ;;  %v748_v17 = vld [vmem:[%s209_s23 + $0x14] ss:$0 sps:$4 sm:$0x11]  }
  0x36   : > { %683 = vmatprep.mubr.msk.bf16.mxu1 %vm823_vm0, %v822_v0  ;;  %682 = vmatpush3.bf16.msra.mxu1 %v439_v16  ;;  %v419_v19 = vshrl.u32 %v747_v11, 16  ;;  %v421_v20 = vshll.u32 %v747_v11, 16  ;;  %v426_v22 = vshll.u32 %v748_v17, 16  ;;  %s624_s6 = sshll.u32 %s203_s5, 2 }
  0x37   : > { %v232_v12 = vrot.slane %v230_v8, 1  ;;  %v237_v14 = vrot.slane %v235_v9, 1  ;;  %s205_s12 = scalar_lea.vmem %s976_s3, %s624_s6 }
  0x38   : > { %v423_v23 = vrot.slane %v421_v20, 1  ;;  %v428_v24 = vrot.slane %v426_v22, 1 }
  0x39   : > { %v233_v15 = vor.u32 %v232_v12, %v228_v7 }
  0x3a   : > { %v424_v25 = vor.u32 %v423_v23, %v419_v19 }
  0x3b   : > { %v238_v21 = vsel %vm226_vm3, %v233_v15, %v237_v14 }
  0x3c   : > { %666 = vmatmul.mubr.msk.bf16.vlgmr.msra.gmra.mrb[0].mxu0 %vm244_vm2, %v238_v21  ;;  %v429_v26 = vsel %vm226_vm3, %v424_v25, %v428_v24 }
  0x3d   : > { %676 = vmatpush3.bf16.msra.mxu0 %v368_v18  ;;  %677 = vmatprep.mubr.msk.bf16.mxu0 %vm823_vm0, %v822_v0 }
  0x3e   : > { %684 = vmatmul.mubr.msk.bf16.vlgmr.msra.gmra.mrb[4].mxu1 %vm244_vm2, %v429_v26 }
  0x44   : > { %678 = vmatmul.mubr.msk.bf16.vlgmr.msra.gmra.mrb[4].mxu0 %vm244_vm2, %v747_v11 }
 0x108   : > { %v337_v27 = vpop.f32.mrb[0].mxu1 }
 0x109   : > { %v673_v28 = vpop.f32.mrb[1].mxu1 }
 0x10a   : > { %v340_v29 = vpop.f32.mrb[2].mxu1 }
 0x10b   : > { %v674_v30 = vpop.f32.mrb[3].mxu1 }
 0x10f   : > { %v286_v31 = vpop.f32.mrb[0].mxu0 }
 0x110   : > { %v338_v32 = vadd.f32 %v337_v27, %v286_v31  ;;  %v667_v33 = vpop.f32.mrb[1].mxu0 }
 0x111   : > { %v289_v34 = vpop.f32.mrb[2].mxu0  ;;  %v475_v37 = vpop.f32.mrb[4].mxu1 }
 0x112   : > { %v341_v35 = vadd.f32 %v340_v29, %v289_v34  ;;  %v668_v36 = vpop.f32.mrb[3].mxu0  ;;  %v685_v38 = vpop.f32.mrb[5].mxu1 }
 0x113   : > { %v478_v39 = vpop.f32.mrb[6].mxu1 }
 0x114   : > { %v686_v41 = vpop.f32.mrb[7].mxu1 }
 0x117   : > { %v404_v40 = vpop.f32.mrb[4].mxu0 }
 0x118   : > { %v411_v42 = vadd.f32 %v404_v40, %v338_v32  ;;  %v679_v43 = vpop.f32.mrb[5].mxu0 }
 0x119   : > { %v407_v45 = vpop.f32.mrb[6].mxu0 }
 0x11a   : > { %v482_v46 = vadd.f32 %v475_v37, %v411_v42  ;;  %v412_v47 = vadd.f32 %v407_v45, %v341_v35  ;;  %v680_v48 = vpop.f32.mrb[7].mxu0 }
 0x11c   : > { %v491_v49 = vadd.f32 %v647_v44, %v482_v46  ;;  %v483_v50 = vadd.f32 %v478_v39, %v412_v47 }
 0x11e   : > { %vm493_vm4 = vcmp.ge.f32.partialorder %v491_v49, 0.0  ;;  %v495_v51 = vmul.f32 0.2, %v491_v49  ;;  %v492_v52 = vadd.f32 %v647_v44, %v483_v50 }
 0x120   : > { %v497_v53 = vsel %vm493_vm4, %v491_v49, %v495_v51  ;;  %vm494_vm6 = vcmp.ge.f32.partialorder %v492_v52, 0.0  ;;  %v496_v54 = vmul.f32 0.2, %v492_v52 }
 0x121   : > { %v653_v55 = vpack.c.bf16 %v497_v53, %v497_v53 }
 0x122   : > { %v498_v56 = vsel %vm494_vm6, %v492_v52, %v496_v54 }
 0x123   : > { %508 = vst.msk [vmem:[%s205_s12] sm:$0xf] %vm507_vm5, %v653_v55  ;;  %v654_v57 = vpack.c.bf16 %v498_v56, %v498_v56 }
 0x125   : > { %509 = vst.msk [vmem:[%s205_s12 + $0x4] sm:$0xf] %vm507_vm5, %v654_v57 }
 0x126 PF: > { %s14_s16 = sadd.s32 1, %s819_s16   ;;  %s985_s12 = smov %s811_s14 }
 0x127   : > { %p11_p7 = scmp.ge.s32.totalorder %s14_s16, 34   ;;  %s986_s13 = smov %s815_s15 }
 0x128   : > { %s987_s14 = smov %s990_s18  ;;  %s988_s15 = smov %s994_s19 }
 0x129   :  { %13 = sbr.rel (!%p11_p7) target bundleno = 3 (0x3), region = 72 }
 0x130   :  { %539 = vsyncpa [#allocation3], 1 }
 0x131   :  { %541 = vsyncpa [#allocation3 + $0x1], 1 }

// kernel: dis_forward.6
= control target key start
LH: loop header
LB: loop body
LE: loop exit
PB: predicated region body
PF: predicated region fallthrough
CT: control target
= control target key end

     0   :  { %s1623_s12 = smov 0   ;;  %s1625_s13 = smov 0   ;;  %s1899_s0 = inlined_call_operand.vmem [shape: bf16[2,9,9,256], index: 0, kind: input, shape index: {}]   ;;  %s1900_s1 = inlined_call_operand.vmem [shape: bf16[4,256,128], index: 1, kind: input, shape index: {}]   ;;  %s1901_s2 = inlined_call_operand.vmem [shape: f32[1,128], index: 2, kind: input, shape index: {}]   ;;  %s1902_s3 = inlined_call_operand.vmem [shape: bf16[2,8,8,128], index: 3, kind: output, shape index: {}]  }
   0x1   :  { %s1627_s14 = smov 0   ;;  %s1629_s15 = smov 0  }
   0x2   :  { %s1631_s16 = smov 0  }
   0x3 LB: > { %s22_s17 = sadd.s32 1, %s1593_s14  ;;  %s25_s18 = sadd.s32 1, %s1597_s15  ;;  %s1601_s16 = sphi %s1631_s16, %s13_s16   ;;  %s1597_s15 = sphi %s1629_s15, %s1906_s15   ;;  %s1593_s14 = sphi %s1627_s14, %s1905_s14   ;;  %s1589_s13 = sphi %s1625_s13, %s1904_s13   ;;  %s1585_s12 = sphi %s1623_s12, %s1903_s12  }
   0x4   : > { %p23_p0 = scmp.ge.s32.totalorder %s22_s17, 8  ;;  %p1134_p1 = scmp.ge.s32.totalorder %s1601_s16, 1 }
   0x5   : > { %p149_p2 = scmp.lt.s32.totalorder %s1601_s16, 17 }
   0x6   : > { %s1908_s17 = smov (%p23_p0, %s22_s17), 0  ;;  %s1910_s18 = smov (!%p23_p0, %s25_s18), %s1597_s15 }
   0x7   : > { %p150_p3 = pnand %p1134_p1, %p149_p2  ;;  %p27_p4 = scmp.ge.s32.totalorder %s1910_s18, 2 }
   0x8   : > { %v1489_v0 = vld [vmem:[%s1900_s1 + $0xc0] sm:$0xff] (!%p150_p3)   ;;  %v1493_v4 = vld [vmem:[%s1900_s1 + $0xc8] sm:$0xff] (!%p150_p3)   ;;  %v1497_v8 = vld [vmem:[%s1900_s1 + $0xd0] sm:$0xff] (!%p150_p3)   ;;  %p173_p5 = scmp.lt.s32.totalorder (!%p150_p3), %s1589_s13, 1  ;;  %s1317_s10 = sshll.u32 (!%p150_p3), %s1585_s12, 4 }
   0x9   : > { %s1912_s18 = smov (%p27_p4, %s1910_s18), 0  ;;  %153 = sbr.rel (%p150_p3) target bundleno = 368 (0x170), region = 32 }
   0xa   : > { %v1490_v1 = vld [vmem:[%s1900_s1 + $0x40] sm:$0xff] (!%p150_p3)   ;;  %1360 = vmatprep.subr.bf16.mxu0 (!%p150_p3), %v1489_v0  ;;  %v1494_v5 = vld [vmem:[%s1900_s1 + $0x48] sm:$0xff] (!%p150_p3)   ;;  %v1498_v9 = vld [vmem:[%s1900_s1 + $0x50] sm:$0xff] (!%p150_p3)   ;;  %s1312_s21 = sshll.u32 (!%p150_p3), %s1585_s12, 2  ;;  %p1313_p6 = scmp.ne.s32.totalorder (!%p150_p3), %s1585_s12, 7 }
   0xb   : > { %v1491_v2 = vld [vmem:[%s1900_s1 + $0x80] sm:$0xff] (!%p150_p3)   ;;  %1382 = vmatprep.subr.bf16.mxu1 (!%p150_p3), %v1490_v1  ;;  %v1495_v6 = vld [vmem:[%s1900_s1 + $0x88] sm:$0xff] (!%p150_p3)   ;;  %v1499_v10 = vld [vmem:[%s1900_s1 + $0x90] sm:$0xff] (!%p150_p3)  }
   0xc   : > { %v1492_v3 = vld [vmem:[%s1900_s1] sm:$0xff] (!%p150_p3)   ;;  %1361 = vmatpush3.bf16.msra.mxu0 (!%p150_p3), %v1491_v2  ;;  %v1496_v7 = vld [vmem:[%s1900_s1 + $0x8] sm:$0xff] (!%p150_p3)   ;;  %v1500_v11 = vld [vmem:[%s1900_s1 + $0x10] sm:$0xff] (!%p150_p3)  }
   0xd   : > { %1383 = vmatpush3.bf16.msra.mxu1 (!%p150_p3), %v1492_v3  ;;  %1362 = vmatprep.subr.bf16.mxu0 (!%p150_p3), %v1493_v4  ;;  %v1501_v12 = vld [vmem:[%s1900_s1 + $0xd8] sm:$0xff] (!%p150_p3)   ;;  %v1505_v16 = vld [vmem:[%s1900_s1 + $0xe0] sm:$0xff] (!%p150_p3)   ;;  %v1509_v20 = vld [vmem:[%s1900_s1 + $0xe8] sm:$0xff] (!%p150_p3)  }
   0xe   : > { %1384 = vmatprep.subr.bf16.mxu1 (!%p150_p3), %v1494_v5  ;;  %v1502_v13 = vld [vmem:[%s1900_s1 + $0x58] sm:$0xff] (!%p150_p3)   ;;  %v1506_v17 = vld [vmem:[%s1900_s1 + $0x60] sm:$0xff] (!%p150_p3)   ;;  %v1510_v21 = vld [vmem:[%s1900_s1 + $0x68] sm:$0xff] (!%p150_p3)  }
   0xf   : > { %v1503_v14 = vld [vmem:[%s1900_s1 + $0x98] sm:$0xff] (!%p150_p3)   ;;  %v1507_v18 = vld [vmem:[%s1900_s1 + $0xa0] sm:$0xff] (!%p150_p3)   ;;  %v1511_v22 = vld [vmem:[%s1900_s1 + $0xa8] sm:$0xff] (!%p150_p3)  }
  0x10   : > { %1363 = vmatpush3.bf16.msra.mxu0 %v1495_v6  ;;  %v1504_v15 = vld [vmem:[%s1900_s1 + $0x18] sm:$0xff]   ;;  %s1914_s13 = smov (!%p173_p5, %s1589_s13), 1  ;;  %v1508_v19 = vld [vmem:[%s1900_s1 + $0x20] sm:$0xff]   ;;  %v1512_v23 = vld [vmem:[%s1900_s1 + $0x28] sm:$0xff]  }
  0x11   : > { %1385 = vmatpush3.bf16.msra.mxu1 %v1496_v7  ;;  %1364 = vmatprep.subr.bf16.mxu0 %v1497_v8  ;;  %s1448_s25 = smul.u32 144, %s1914_s13  ;;  %v1513_v24 = vld [vmem:[%s1900_s1 + $0xf0] sm:$0xff]   ;;  %v1517_v28 = vld [vmem:[%s1900_s1 + $0xf8] sm:$0xff]   ;;  %v1525_v38 = vld [vmem:[%s1900_s1 + $0x140] sm:$0xff]  }
  0x12   : > { %1386 = vmatprep.subr.bf16.mxu1 %v1498_v9  ;;  %v1514_v25 = vld [vmem:[%s1900_s1 + $0x70] sm:$0xff]   ;;  %v1518_v29 = vld [vmem:[%s1900_s1 + $0x78] sm:$0xff]   ;;  %v1526_v39 = vld [vmem:[%s1900_s1 + $0x1c0] sm:$0xff]  }
  0x13   : > { %v1515_v26 = vld [vmem:[%s1900_s1 + $0xb0] sm:$0xff]   ;;  %s177_s9 = scalar_lea.vmem %s1899_s0, %s1448_s25  ;;  %v1519_v30 = vld [vmem:[%s1900_s1 + $0xb8] sm:$0xff]   ;;  %v1527_v46 = vld [vmem:[%s1900_s1 + $0x100] sm:$0xff]  }
  0x14   : > { %1365 = vmatpush3.bf16.msra.mxu0 %v1499_v10  ;;  %v1516_v27 = vld [vmem:[%s1900_s1 + $0x30] sm:$0xff]   ;;  %s1756_s24 = scalar_lea.vmem %s177_s9, %s1317_s10  ;;  %v1520_v31 = vld [vmem:[%s1900_s1 + $0x38] sm:$0xff]   ;;  %v1528_v47 = vld [vmem:[%s1900_s1 + $0x180] sm:$0xff]  }
  0x15   : > { %1387 = vmatpush3.bf16.msra.mxu1 %v1500_v11  ;;  %1366 = vmatprep.subr.bf16.mxu0 %v1501_v12  ;;  %v187_v32 = vld [vmem:[%s1756_s24] sm:$0xff]  ;;  %v188_v33 = vld [vmem:[%s1756_s24 + $0x8] sm:$0x11]  ;;  %v1534_v54 = vld [vmem:[%s1900_s1 + $0x1d0] sm:$0xff]  }
  0x16   : > { %1388 = vmatprep.subr.bf16.mxu1 %v1502_v13  ;;  %v1172_v34 = vcombine.low %v187_v32, %v188_v33  ;;  %v1173_v35 = vcombine.high %v187_v32, %v188_v33  ;;  %v1191_v36 = vcombine.high %v187_v32, %v187_v32  ;;  %v1190_v37 = vcombine.low %v187_v32, %v187_v32  ;;  %v1530_v50 = vld [vmem:[%s1900_s1 + $0x1c8] sm:$0xff]   ;;  %v1533_v55 = vld [vmem:[%s1900_s1 + $0x150] sm:$0xff]   ;;  %v1538_v58 = vld [vmem:[%s1900_s1 + $0x1d8] sm:$0xff]  }
  0x17   : > { %v1529_v51 = vld [vmem:[%s1900_s1 + $0x148] sm:$0xff]   ;;  %v1536_v56 = vld [vmem:[%s1900_s1 + $0x190] sm:$0xff]   ;;  %v1537_v59 = vld [vmem:[%s1900_s1 + $0x158] sm:$0xff]  }
  0x18   : > { %1367 = vmatpush3.bf16.msra.mxu0 %v1503_v14  ;;  %v270_v40 = vshrl.u32 %v1173_v35, 16  ;;  %v272_v41 = vshll.u32 %v1173_v35, 16  ;;  %546 = vmatprep.mubr.bf16.mxu1 %v1191_v36  ;;  %v263_v42 = vshrl.u32 %v1172_v34, 16  ;;  %v265_v43 = vshll.u32 %v1172_v34, 16  ;;  %v1532_v52 = vld [vmem:[%s1900_s1 + $0x188] sm:$0xff]   ;;  %v1535_v57 = vld [vmem:[%s1900_s1 + $0x110] sm:$0xff]  }
  0x19   : > { %1389 = vmatpush3.bf16.msra.mxu1 %v1504_v15  ;;  %1368 = vmatprep.subr.bf16.mxu0 %v1505_v16  ;;  %v1531_v53 = vld [vmem:[%s1900_s1 + $0x108] sm:$0xff]   ;;  %v1540_v60 = vld [vmem:[%s1900_s1 + $0x198] sm:$0xff]   ;;  %v1542_v62 = vld [vmem:[%s1900_s1 + $0x1e0] sm:$0xff]  }
  0x1a   : > { %1390 = vmatprep.subr.bf16.mxu1 %v1506_v17  ;;  %v274_v44 = vrot.slane %v272_v41, 1  ;;  %v267_v45 = vrot.slane %v265_v43, 1  ;;  %v1539_v61 = vld [vmem:[%s1900_s1 + $0x118] sm:$0xff]   ;;  %v1541_v63 = vld [vmem:[%s1900_s1 + $0x160] sm:$0xff]   ;;  %v1546_v2 = vld [vmem:[%s1900_s1 + $0x1e8] sm:$0xff]  }
  0x1b   : > { %v1544_v0 = vld [vmem:[%s1900_s1 + $0x1a0] sm:$0xff]   ;;  %v1545_v3 = vld [vmem:[%s1900_s1 + $0x168] sm:$0xff]   ;;  %v1550_v6 = vld [vmem:[%s1900_s1 + $0x1f0] sm:$0xff]  }
  0x1c   : > { %1369 = vmatpush3.bf16.msra.mxu0 %v1507_v18  ;;  %v275_v48 = vor.u32 %v274_v44, %v270_v40  ;;  %v268_v49 = vor.u32 %v267_v45, %v263_v42  ;;  %v1543_v1 = vld [vmem:[%s1900_s1 + $0x120] sm:$0xff]   ;;  %v1548_v4 = vld [vmem:[%s1900_s1 + $0x1a8] sm:$0xff]   ;;  %v1549_v7 = vld [vmem:[%s1900_s1 + $0x170] sm:$0xff]  }
  0x1d   : > { %1391 = vmatpush3.bf16.msra.mxu1 %v1508_v19  ;;  %1370 = vmatprep.subr.bf16.mxu0 %v1509_v20  ;;  %v1547_v5 = vld [vmem:[%s1900_s1 + $0x128] sm:$0xff]   ;;  %v1552_v8 = vld [vmem:[%s1900_s1 + $0x1b0] sm:$0xff]   ;;  %v1554_v10 = vld [vmem:[%s1900_s1 + $0x1f8] sm:$0xff]  }
  0x1e   : > { %1392 = vmatprep.subr.bf16.mxu1 %v1510_v21  ;;  %406 = vmatprep.mubr.bf16.mxu0 %v275_v48  ;;  %v1551_v9 = vld [vmem:[%s1900_s1 + $0x130] sm:$0xff]   ;;  %v1553_v11 = vld [vmem:[%s1900_s1 + $0x178] sm:$0xff]  }
  0x1f   : > { %v1556_v12 = vld [vmem:[%s1900_s1 + $0x1b8] sm:$0xff]   ;;  %v1209_v13 = vld [vmem:[%s1756_s24 + $0x10] sm:$0xff] }
  0x20   : > { %1371 = vmatpush3.bf16.msra.mxu0 %v1511_v22  ;;  %v1210_v14 = vld [vmem:[%s1756_s24 + $0x18] sm:$0x11]  ;;  %v1244_v15 = vcombine.high %v1209_v13, %v1209_v13  ;;  %s1316_s24 = sshll.u32 %s1914_s13, 5 }
  0x21   : > { %1393 = vmatpush3.bf16.msra.mxu1 %v1512_v23  ;;  %1372 = vmatprep.subr.bf16.mxu0 %v1513_v24  ;;  %v1293_v16 = vcombine.low %v1209_v13, %v1210_v14  ;;  %v1294_v17 = vcombine.high %v1209_v13, %v1210_v14  ;;  %v1555_v18 = vld [vmem:[%s1900_s1 + $0x138] sm:$0xff]   ;;  %v1243_v24 = vcombine.low %v1209_v13, %v1209_v13  ;;  %s1871_s20 = scalar_lea.vmem %s1902_s3, %s1316_s24 }
  0x22   : > { %1394 = vmatprep.subr.bf16.mxu1 %v1514_v25  ;;  %s938_s22 = scalar_lea.vmem %s1871_s20, %s1312_s21 }
  0x23   : > { %v783_v19 = vshrl.u32 %v1294_v17, 16  ;;  %v785_v20 = vshll.u32 %v1294_v17, 16  ;;  %v776_v21 = vshrl.u32 %v1293_v16, 16  ;;  %v778_v22 = vshll.u32 %v1293_v16, 16 }
  0x24   : > { %1373 = vmatpush3.bf16.msra.mxu0 %v1515_v26 }
  0x25   : > { %1395 = vmatpush3.bf16.msra.mxu1 %v1516_v27  ;;  %1374 = vmatprep.subr.bf16.mxu0 %v1517_v28  ;;  %v787_v23 = vrot.slane %v785_v20, 1  ;;  %v780_v25 = vrot.slane %v778_v22, 1 }
  0x26   : > { %1396 = vmatprep.subr.bf16.mxu1 %v1518_v29 }
  0x27   : > { %v788_v26 = vor.u32 %v787_v23, %v783_v19  ;;  %v781_v27 = vor.u32 %v780_v25, %v776_v21 }
  0x28   : > { %1375 = vmatpush3.bf16.msra.mxu0 %v1519_v30 }
  0x29   : > { %1397 = vmatpush3.bf16.msra.mxu1 %v1520_v31  ;;  %1404 = vmatprep.subr.bf16.mxu0 %v1525_v38 }
  0x2a   : > { %1426 = vmatprep.subr.bf16.mxu1 %v1526_v39 }
  0x2b   : > { %407 = vmatmul.mubr.bf16.vlgmr.msra.gmra.mrb[0].mxu0 %v268_v49 }
  0x2c   : > { %547 = vmatmul.mubr.bf16.vlgmr.msra.gmra.mrb[0].mxu1 %v1190_v37  ;;  %1405 = vmatpush3.bf16.msra.mxu0 %v1527_v46 }
  0x2d   : > { %1427 = vmatpush3.bf16.msra.mxu1 %v1528_v47  ;;  %1406 = vmatprep.subr.bf16.mxu0 %v1529_v51 }
  0x2e   : > { %1428 = vmatprep.subr.bf16.mxu1 %v1530_v50  ;;  %728 = vmatprep.mubr.bf16.mxu0 %v1244_v15  ;;  %v1311_v50 = vld [vmem:[%s1901_s2] ss:$0 sm:$0xff] }
  0x2f   : > { %919 = vmatprep.mubr.bf16.mxu1 %v788_v26 }
  0x30   : > { %1407 = vmatpush3.bf16.msra.mxu0 %v1531_v53 }
  0x31   : > { %1429 = vmatpush3.bf16.msra.mxu1 %v1532_v52  ;;  %1408 = vmatprep.subr.bf16.mxu0 %v1533_v55 }
  0x32   : > { %1430 = vmatprep.subr.bf16.mxu1 %v1534_v54 }
  0x34   : > { %1409 = vmatpush3.bf16.msra.mxu0 %v1535_v57 }
  0x35   : > { %1431 = vmatpush3.bf16.msra.mxu1 %v1536_v56  ;;  %1410 = vmatprep.subr.bf16.mxu0 %v1537_v59 }
  0x36   : > { %1432 = vmatprep.subr.bf16.mxu1 %v1538_v58 }
  0x38   : > { %1411 = vmatpush3.bf16.msra.mxu0 %v1539_v61 }
  0x39   : > { %1433 = vmatpush3.bf16.msra.mxu1 %v1540_v60  ;;  %1412 = vmatprep.subr.bf16.mxu0 %v1541_v63 }
  0x3a   : > { %1434 = vmatprep.subr.bf16.mxu1 %v1542_v62 }
  0x3c   : > { %1413 = vmatpush3.bf16.msra.mxu0 %v1543_v1 }
  0x3d   : > { %1435 = vmatpush3.bf16.msra.mxu1 %v1544_v0  ;;  %1414 = vmatprep.subr.bf16.mxu0 %v1545_v3 }
  0x3e   : > { %1436 = vmatprep.subr.bf16.mxu1 %v1546_v2 }
  0x40   : > { %1415 = vmatpush3.bf16.msra.mxu0 %v1547_v5 }
  0x41   : > { %1437 = vmatpush3.bf16.msra.mxu1 %v1548_v4  ;;  %1416 = vmatprep.subr.bf16.mxu0 %v1549_v7 }
  0x42   : > { %1438 = vmatprep.subr.bf16.mxu1 %v1550_v6 }
  0x44   : > { %1417 = vmatpush3.bf16.msra.mxu0 %v1551_v9 }
  0x45   : > { %1439 = vmatpush3.bf16.msra.mxu1 %v1552_v8  ;;  %1418 = vmatprep.subr.bf16.mxu0 %v1553_v11 }
  0x46   : > { %1440 = vmatprep.subr.bf16.mxu1 %v1554_v10 }
  0x48   : > { %1419 = vmatpush3.bf16.msra.mxu0 %v1555_v18 }
  0x49   : > { %1441 = vmatpush3.bf16.msra.mxu1 %v1556_v12 }
  0x4b   : > { %729 = vmatmul.mubr.bf16.vlgmr.msra.gmra.mrb[4].mxu0 %v1243_v24 }
  0x4c   : > { %920 = vmatmul.mubr.bf16.vlgmr.msra.gmra.mrb[4].mxu1 %v781_v27 }
  0xfe   : > { %v1376_v33 = vpop.f32.mrb[0].mxu0 }
  0xff   : > { %v1398_v28 = vpop.f32.mrb[0].mxu1  ;;  %v1377_v34 = vpop.f32.mrb[1].mxu0 }
 0x100   : > { %v1399_v29 = vpop.f32.mrb[1].mxu1  ;;  %v1378_v35 = vadd.f32 %v1377_v34, %v1376_v33  ;;  %v1379_v36 = vpop.f32.mrb[2].mxu0 }
 0x101   : > { %v1400_v30 = vadd.f32 %v1399_v29, %v1398_v28  ;;  %v1401_v31 = vpop.f32.mrb[2].mxu1  ;;  %v1380_v37 = vpop.f32.mrb[3].mxu0 }
 0x102   : > { %v1402_v32 = vpop.f32.mrb[3].mxu1 }
 0x103   : > { %v549_v38 = vadd.f32 %v1400_v30, %v1378_v35 }
 0x11e   : > { %v1420_v39 = vpop.f32.mrb[4].mxu0 }
 0x11f   : > { %v1442_v40 = vpop.f32.mrb[4].mxu1  ;;  %v1421_v41 = vpop.f32.mrb[5].mxu0 }
 0x120   : > { %v1422_v42 = vadd.f32 %v1421_v41, %v1420_v39  ;;  %v1443_v43 = vpop.f32.mrb[5].mxu1  ;;  %v1423_v44 = vpop.f32.mrb[6].mxu0 }
 0x121   : > { %v1444_v45 = vadd.f32 %v1443_v43, %v1442_v40  ;;  %v1445_v46 = vpop.f32.mrb[6].mxu1  ;;  %v1424_v47 = vpop.f32.mrb[7].mxu0 }
 0x122   : > { %v736_v48 = vadd.f32 %v1422_v42, %v549_v38  ;;  %v1446_v49 = vpop.f32.mrb[7].mxu1 }
 0x124   : > { %v927_v51 = vadd.f32 %v1444_v45, %v736_v48  ;;  %943 = sbr.rel (%p1313_p6) target bundleno = 368 (0x170), region = 36 }
 0x126   : > { %v935_v52 = vadd.f32 %v1311_v50, %v927_v51 }
 0x128   : > { %v936_v53 = vpack.c.bf16 %v935_v52, %v935_v52 }
 0x12a   : > { %939 = vst [vmem:[%s938_s22] sm:$0xf] %v936_v53 }
 0x131   : > { %v1319_v54 = vld [vmem:[%s1871_s20] sm:$0xff]   ;;  %v1354_v55 = vld [vmem:[%s1871_s20 + $0x8] sm:$0xff]   ;;  %v1355_v56 = vld [vmem:[%s1871_s20 + $0x10] sm:$0xff]  }
 0x132   : > { %v1320_v57 = vunpack.c.l.bf16 %v1319_v54  ;;  %v1321_v58 = vunpack.c.h.bf16 %v1319_v54  ;;  %v1324_v59 = vunpack.c.l.bf16 %v1354_v55  ;;  %v1325_v60 = vunpack.c.h.bf16 %v1354_v55  ;;  %v1356_v2 = vld [vmem:[%s1871_s20 + $0x18] sm:$0xff]  }
 0x133   : > { %v1328_v61 = vunpack.c.l.bf16 %v1355_v56  ;;  %v1329_v3 = vunpack.c.h.bf16 %v1355_v56  ;;  %v1332_v7 = vunpack.c.l.bf16 %v1356_v2  ;;  %v1333_v11 = vunpack.c.h.bf16 %v1356_v2 }
 0x134   : > { %v960_v62 = vadd.f32 %v1321_v58, %v1320_v57  ;;  %v974_v63 = vmul.f32 %v1320_v57, %v1320_v57  ;;  %v975_v0 = vmul.f32 %v1321_v58, %v1321_v58  ;;  %v976_v1 = vmul.f32 %v1324_v59, %v1324_v59 }
 0x135   : > { %v977_v5 = vmul.f32 %v1325_v60, %v1325_v60  ;;  %v978_v9 = vmul.f32 %v1328_v61, %v1328_v61  ;;  %v979_v13 = vmul.f32 %v1329_v3, %v1329_v3  ;;  %v980_v16 = vmul.f32 %v1332_v7, %v1332_v7 }
 0x136   : > { %v961_v4 = vadd.f32 %v1324_v59, %v960_v62  ;;  %v982_v6 = vadd.f32 %v975_v0, %v974_v63  ;;  %v981_v19 = vmul.f32 %v1333_v11, %v1333_v11 }
 0x138   : > { %v962_v8 = vadd.f32 %v1325_v60, %v961_v4  ;;  %v983_v10 = vadd.f32 %v982_v6, %v976_v1 }
 0x13a   : > { %v963_v12 = vadd.f32 %v1328_v61, %v962_v8  ;;  %v984_v14 = vadd.f32 %v983_v10, %v977_v5 }
 0x13c   : > { %v964_v15 = vadd.f32 %v1329_v3, %v963_v12  ;;  %v985_v17 = vadd.f32 %v984_v14, %v978_v9 }
 0x13e   : > { %v965_v18 = vadd.f32 %v1332_v7, %v964_v15  ;;  %v986_v20 = vadd.f32 %v985_v17, %v979_v13 }
 0x140   : > { %v966_v21 = vadd.f32 %v1333_v11, %v965_v18  ;;  %v987_v22 = vadd.f32 %v986_v20, %v980_v16 }
 0x142   : > { %v967_v23 = vrot.slane %v966_v21, 4  ;;  %v988_v24 = vadd.f32 %v987_v22, %v981_v19 }
 0x144   : > { %v968_v25 = vadd.f32 %v967_v23, %v966_v21  ;;  %v989_v26 = vrot.slane %v988_v24, 4 }
 0x146   : > { %v969_v27 = vrot.slane %v968_v25, 2  ;;  %v990_v28 = vadd.f32 %v989_v26, %v988_v24 }
 0x148   : > { %v970_v29 = vadd.f32 %v969_v27, %v968_v25  ;;  %v991_v30 = vrot.slane %v990_v28, 2 }
 0x14a   : > { %v971_v31 = vrot.slane %v970_v29, 1  ;;  %v992_v32 = vadd.f32 %v991_v30, %v990_v28 }
 0x14c   : > { %v972_v33 = vadd.f32 %v971_v31, %v970_v29  ;;  %v993_v34 = vrot.slane %v992_v32, 1 }
 0x14e   : > { %v973_v35 = vmul.f32 0.015625, %v972_v33  ;;  %v994_v36 = vadd.f32 %v993_v34, %v992_v32 }
 0x150   : > { %v995_v37 = vmul.f32 0.015625, %v994_v36  ;;  %v996_v38 = vmul.f32 %v973_v35, %v973_v35  ;;  %v999_v42 = vsub.f32 %v1320_v57, %v973_v35  ;;  %v1000_v43 = vsub.f32 %v1321_v58, %v973_v35 }
 0x151   : > { %v1001_v44 = vsub.f32 %v1324_v59, %v973_v35  ;;  %v1002_v45 = vsub.f32 %v1325_v60, %v973_v35  ;;  %v1003_v46 = vsub.f32 %v1328_v61, %v973_v35  ;;  %v1004_v47 = vsub.f32 %v1329_v3, %v973_v35 }
 0x152   : > { %v997_v39 = vsub.f32 %v995_v37, %v996_v38  ;;  %v1005_v48 = vsub.f32 %v1332_v7, %v973_v35  ;;  %v1006_v49 = vsub.f32 %v1333_v11, %v973_v35 }
 0x154   : > { %v998_v40 = vmax.f32 %v997_v39, 0.0 }
 0x156   : > { %v1007_v41 = vadd.f32 1e-05, %v998_v40 }
 0x158   : > { %1561 = vrsqrt.f32 %v1007_v41 }
 0x162   : > { %v1562_v50 = vpop.eup %1561 }
 0x163   : > { %v1009_v51 = vmul.f32 %v1562_v50, %v999_v42  ;;  %v1010_v52 = vmul.f32 %v1562_v50, %v1000_v43  ;;  %v1011_v53 = vmul.f32 %v1562_v50, %v1001_v44  ;;  %v1012_v54 = vmul.f32 %v1562_v50, %v1002_v45 }
 0x164   : > { %v1013_v55 = vmul.f32 %v1562_v50, %v1003_v46  ;;  %v1014_v56 = vmul.f32 %v1562_v50, %v1004_v47  ;;  %v1015_v62 = vmul.f32 %v1562_v50, %v1005_v48  ;;  %v1016_v63 = vmul.f32 %v1562_v50, %v1006_v49 }
 0x165   : > { %vm1017_vm0 = vcmp.ge.f32.partialorder %v1009_v51, 0.0  ;;  %vm1018_vm1 = vcmp.ge.f32.partialorder %v1010_v52, 0.0  ;;  %v1025_v0 = vmul.f32 0.2, %v1009_v51  ;;  %v1026_v57 = vmul.f32 0.2, %v1010_v52 }
 0x166   : > { %vm1019_vm2 = vcmp.ge.f32.partialorder %v1011_v53, 0.0  ;;  %vm1020_vm3 = vcmp.ge.f32.partialorder %v1012_v54, 0.0  ;;  %v1027_v58 = vmul.f32 0.2, %v1011_v53  ;;  %v1028_v59 = vmul.f32 0.2, %v1012_v54 }
 0x167   : > { %v1033_v60 = vsel %vm1017_vm0, %v1009_v51, %v1025_v0  ;;  %v1034_v61 = vsel %vm1018_vm1, %v1010_v52, %v1026_v57  ;;  %vm1021_vm4 = vcmp.ge.f32.partialorder %v1013_v55, 0.0  ;;  %vm1022_vm5 = vcmp.ge.f32.partialorder %v1014_v56, 0.0 }
 0x168   : > { %v1337_v1 = vpack.c.bf16 %v1034_v61, %v1033_v60  ;;  %v1035_v2 = vsel %vm1019_vm2, %v1011_v53, %v1027_v58  ;;  %v1036_v3 = vsel %vm1020_vm3, %v1012_v54, %v1028_v59  ;;  %v1029_v4 = vmul.f32 0.2, %v1013_v55 }
 0x169   : > { %v1342_v5 = vpack.c.bf16 %v1036_v3, %v1035_v2  ;;  %v1030_v6 = vmul.f32 0.2, %v1014_v56  ;;  %vm1023_vm6 = vcmp.ge.f32.partialorder %v1015_v62, 0.0  ;;  %vm1024_vm7 = vcmp.ge.f32.partialorder %v1016_v63, 0.0 }
 0x16a   : > { %1338 = vst [vmem:[%s1871_s20] sm:$0xff] %v1337_v1   ;;  %v1037_v7 = vsel %vm1021_vm4, %v1013_v55, %v1029_v4  ;;  %v1031_v8 = vmul.f32 0.2, %v1015_v62  ;;  %v1032_v9 = vmul.f32 0.2, %v1016_v63 }
 0x16b   : > { %1357 = vst [vmem:[%s1871_s20 + $0x8] sm:$0xff] %v1342_v5   ;;  %v1038_v10 = vsel %vm1022_vm5, %v1014_v56, %v1030_v6 }
 0x16c   : > { %v1347_v11 = vpack.c.bf16 %v1038_v10, %v1037_v7  ;;  %v1039_v12 = vsel %vm1023_vm6, %v1015_v62, %v1031_v8  ;;  %v1040_v13 = vsel %vm1024_vm7, %v1016_v63, %v1032_v9 }
 0x16d   : > { %v1352_v14 = vpack.c.bf16 %v1040_v13, %v1039_v12 }
 0x16e   : > { %1358 = vst [vmem:[%s1871_s20 + $0x10] sm:$0xff] %v1347_v11  }
 0x16f   : > { %1359 = vst [vmem:[%s1871_s20 + $0x18] sm:$0xff] %v1352_v14  }
 0x170 PF: > { %s13_s16 = sadd.s32 1, %s1601_s16   ;;  %s1903_s12 = smov %s1593_s14 }
 0x171   : > { %p10_p7 = scmp.ge.s32.totalorder %s13_s16, 18   ;;  %s1904_s13 = smov %s1597_s15 }
 0x172   : > { %s1905_s14 = smov %s1908_s17  ;;  %s1906_s15 = smov %s1912_s18 }
 0x173   :  { %12 = sbr.rel (!%p10_p7) target bundleno = 3 (0x3), region = 72 }

// kernel: dis_forward.7
= control target key start
LH: loop header
LB: loop body
LE: loop exit
PB: predicated region body
PF: predicated region fallthrough
CT: control target
= control target key end

     0   :  { %s3461_s12 = smov 0   ;;  %s3463_s13 = smov 0   ;;  %s4415_s0 = inlined_call_operand.vmem [shape: bf16[2,5,5,512], index: 0, kind: input, shape index: {}]   ;;  %s4416_s1 = inlined_call_operand.vmem [shape: bf16[4,512,256], index: 1, kind: input, shape index: {}]   ;;  %s4417_s2 = inlined_call_operand.vmem [shape: f32[1,256], index: 2, kind: input, shape index: {}]   ;;  %s4418_s3 = inlined_call_operand.vmem [shape: bf16[2,4,4,256], index: 3, kind: output, shape index: {}]  }
   0x1   :  { %s3465_s14 = smov 0   ;;  %s3467_s15 = smov 0  }
   0x2   :  { %s3469_s16 = smov 0  }
   0x3 LB: > { %s22_s17 = sadd.s32 1, %s3431_s14  ;;  %s25_s18 = sadd.s32 1, %s3435_s15  ;;  %s3439_s16 = sphi %s3469_s16, %s13_s16   ;;  %s3435_s15 = sphi %s3467_s15, %s4422_s15   ;;  %s3431_s14 = sphi %s3465_s14, %s4421_s14   ;;  %s3427_s13 = sphi %s3463_s13, %s4420_s13   ;;  %s3423_s12 = sphi %s3461_s12, %s4419_s12  }
   0x4   : > { %p23_p0 = scmp.ge.s32.totalorder %s22_s17, 4  ;;  %p2472_p1 = scmp.ge.s32.totalorder %s3439_s16, 1 }
   0x5   : > { %p149_p2 = scmp.lt.s32.totalorder %s3439_s16, 9 }
   0x6   : > { %s4424_s17 = smov (%p23_p0, %s22_s17), 0  ;;  %s4426_s18 = smov (!%p23_p0, %s25_s18), %s3435_s15 }
   0x7   : > { %p150_p3 = pnand %p2472_p1, %p149_p2  ;;  %p27_p4 = scmp.ge.s32.totalorder %s4426_s18, 2 }
   0x8   : > { %v3005_v0 = vld [vmem:[%s4416_s1 + $0x204] ss:$8 sps:$4 sm:$0xff] (!%p150_p3)   ;;  %v3009_v2 = vld [vmem:[%s4416_s1 + $0x200] ss:$8 sps:$4 sm:$0xff] (!%p150_p3)   ;;  %v3011_v4 = vld [vmem:[%s4416_s1 + $0x214] ss:$8 sps:$4 sm:$0xff] (!%p150_p3)  }
   0x9   : > { %s4428_s18 = smov (%p27_p4, %s4426_s18), 0  ;;  %153 = sbr.rel (%p150_p3) target bundleno = 560 (0x230), region = 32 }
   0xa   : > { %v3007_v1 = vld [vmem:[%s4416_s1 + $0x304] ss:$8 sps:$4 sm:$0xff] (!%p150_p3)   ;;  %679 = vmatprep.subr.bf16.mxu0 (!%p150_p3), %v3005_v0  ;;  %v3010_v3 = vld [vmem:[%s4416_s1 + $0x300] ss:$8 sps:$4 sm:$0xff] (!%p150_p3)   ;;  %v3013_v5 = vld [vmem:[%s4416_s1 + $0x314] ss:$8 sps:$4 sm:$0xff] (!%p150_p3)  }
   0xb   : > { %720 = vmatprep.subr.bf16.mxu1 (!%p150_p3), %v3007_v1  ;;  %680 = vmatpush1.bf16.msra.mxu0 (!%p150_p3), %v3009_v2  ;;  %v3015_v6 = vld [vmem:[%s4416_s1 + $0x210] ss:$8 sps:$4 sm:$0xff] (!%p150_p3)   ;;  %v3017_v8 = vld [vmem:[%s4416_s1 + $0x224] ss:$8 sps:$4 sm:$0xff] (!%p150_p3)   ;;  %v3021_v10 = vld [vmem:[%s4416_s1 + $0x220] ss:$8 sps:$4 sm:$0xff] (!%p150_p3)  }
   0xc   : > { %721 = vmatpush1.bf16.msra.mxu1 (!%p150_p3), %v3010_v3  ;;  %681 = vmatprep.subr.bf16.mxu0 (!%p150_p3), %v3011_v4  ;;  %v3016_v7 = vld [vmem:[%s4416_s1 + $0x310] ss:$8 sps:$4 sm:$0xff] (!%p150_p3)   ;;  %v3019_v9 = vld [vmem:[%s4416_s1 + $0x324] ss:$8 sps:$4 sm:$0xff] (!%p150_p3)   ;;  %v3022_v11 = vld [vmem:[%s4416_s1 + $0x320] ss:$8 sps:$4 sm:$0xff] (!%p150_p3)  }
   0xd   : > { %722 = vmatprep.subr.bf16.mxu1 (!%p150_p3), %v3013_v5  ;;  %v3023_v12 = vld [vmem:[%s4416_s1 + $0x234] ss:$8 sps:$4 sm:$0xff] (!%p150_p3)   ;;  %v3027_v14 = vld [vmem:[%s4416_s1 + $0x230] ss:$8 sps:$4 sm:$0xff] (!%p150_p3)   ;;  %v3029_v16 = vld [vmem:[%s4416_s1 + $0x244] ss:$8 sps:$4 sm:$0xff] (!%p150_p3)  }
   0xe   : > { %v3025_v13 = vld [vmem:[%s4416_s1 + $0x334] ss:$8 sps:$4 sm:$0xff] (!%p150_p3)   ;;  %v3028_v15 = vld [vmem:[%s4416_s1 + $0x330] ss:$8 sps:$4 sm:$0xff] (!%p150_p3)   ;;  %v3031_v17 = vld [vmem:[%s4416_s1 + $0x344] ss:$8 sps:$4 sm:$0xff] (!%p150_p3)  }
   0xf   : > { %682 = vmatpush1.bf16.msra.mxu0 (!%p150_p3), %v3015_v6  ;;  %v3033_v18 = vld [vmem:[%s4416_s1 + $0x240] ss:$8 sps:$4 sm:$0xff] (!%p150_p3)   ;;  %v3035_v20 = vld [vmem:[%s4416_s1 + $0x254] ss:$8 sps:$4 sm:$0xff] (!%p150_p3)   ;;  %v3039_v22 = vld [vmem:[%s4416_s1 + $0x250] ss:$8 sps:$4 sm:$0xff] (!%p150_p3)  }
  0x10   : > { %723 = vmatpush1.bf16.msra.mxu1 %v3016_v7  ;;  %683 = vmatprep.subr.bf16.mxu0 %v3017_v8  ;;  %v3034_v19 = vld [vmem:[%s4416_s1 + $0x340] ss:$8 sps:$4 sm:$0xff]   ;;  %v3037_v21 = vld [vmem:[%s4416_s1 + $0x354] ss:$8 sps:$4 sm:$0xff]   ;;  %v3040_v23 = vld [vmem:[%s4416_s1 + $0x350] ss:$8 sps:$4 sm:$0xff]  }
  0x11   : > { %724 = vmatprep.subr.bf16.mxu1 %v3019_v9  ;;  %v3041_v24 = vld [vmem:[%s4416_s1 + $0x264] ss:$8 sps:$4 sm:$0xff]   ;;  %v3045_v26 = vld [vmem:[%s4416_s1 + $0x260] ss:$8 sps:$4 sm:$0xff]   ;;  %v3047_v28 = vld [vmem:[%s4416_s1 + $0x274] ss:$8 sps:$4 sm:$0xff]  }
  0x12   : > { %v3043_v25 = vld [vmem:[%s4416_s1 + $0x364] ss:$8 sps:$4 sm:$0xff]   ;;  %v3046_v27 = vld [vmem:[%s4416_s1 + $0x360] ss:$8 sps:$4 sm:$0xff]   ;;  %p173_p5 = scmp.lt.s32.totalorder %s3427_s13, 1  ;;  %s2953_s25 = sshll.u32 %s3423_s12, 4 }
  0x13   : > { %684 = vmatpush1.bf16.msra.mxu0 %v3021_v10  ;;  %v3049_v29 = vld [vmem:[%s4416_s1 + $0x374] ss:$8 sps:$4 sm:$0xff]   ;;  %v3051_v30 = vld [vmem:[%s4416_s1 + $0x270] ss:$8 sps:$4 sm:$0xff]   ;;  %v3053_v32 = vld [vmem:[%s4416_s1 + $0x284] ss:$8 sps:$4 sm:$0xff]  }
  0x14   : > { %725 = vmatpush1.bf16.msra.mxu1 %v3022_v11  ;;  %685 = vmatprep.subr.bf16.mxu0 %v3023_v12  ;;  %v3052_v31 = vld [vmem:[%s4416_s1 + $0x370] ss:$8 sps:$4 sm:$0xff]   ;;  %s4430_s13 = smov (!%p173_p5, %s3427_s13), 1  ;;  %v3055_v33 = vld [vmem:[%s4416_s1 + $0x384] ss:$8 sps:$4 sm:$0xff]   ;;  %s2954_s4 = sshll.u32 %s3423_s12, 2 }
  0x15   : > { %726 = vmatprep.subr.bf16.mxu1 %v3025_v13  ;;  %v3057_v34 = vld [vmem:[%s4416_s1 + $0x280] ss:$8 sps:$4 sm:$0xff]   ;;  %v3059_v36 = vld [vmem:[%s4416_s1 + $0x294] ss:$8 sps:$4 sm:$0xff]   ;;  %s2964_s6 = smul.u32 80, %s4430_s13  ;;  %s2952_s27 = sshll.u32 %s4430_s13, 4 }
  0x16   : > { %v3058_v35 = vld [vmem:[%s4416_s1 + $0x380] ss:$8 sps:$4 sm:$0xff]   ;;  %v3061_v37 = vld [vmem:[%s4416_s1 + $0x394] ss:$8 sps:$4 sm:$0xff]   ;;  %v3063_v38 = vld [vmem:[%s4416_s1 + $0x290] ss:$8 sps:$4 sm:$0xff]   ;;  %s4337_s30 = scalar_lea.vmem %s4418_s3, %s2952_s27 }
  0x17   : > { %686 = vmatpush1.bf16.msra.mxu0 %v3027_v14  ;;  %v3064_v39 = vld [vmem:[%s4416_s1 + $0x390] ss:$8 sps:$4 sm:$0xff]   ;;  %v3065_v40 = vld [vmem:[%s4416_s1 + $0x2a4] ss:$8 sps:$4 sm:$0xff]   ;;  %s177_s24 = scalar_lea.vmem %s4415_s0, %s2964_s6  ;;  %v3069_v42 = vld [vmem:[%s4416_s1 + $0x2a0] ss:$8 sps:$4 sm:$0xff]   ;;  %s2186_s6 = scalar_lea.vmem %s4337_s30, %s2954_s4 }
  0x18   : > { %727 = vmatpush1.bf16.msra.mxu1 %v3028_v15  ;;  %687 = vmatprep.subr.bf16.mxu0 %v3029_v16  ;;  %v3067_v41 = vld [vmem:[%s4416_s1 + $0x3a4] ss:$8 sps:$4 sm:$0xff]   ;;  %v3070_v43 = vld [vmem:[%s4416_s1 + $0x3a0] ss:$8 sps:$4 sm:$0xff]   ;;  %s3636_s5 = scalar_lea.vmem %s177_s24, %s2953_s25  ;;  %v3071_v44 = vld [vmem:[%s4416_s1 + $0x2b4] ss:$8 sps:$4 sm:$0xff]  }
  0x19   : > { %728 = vmatprep.subr.bf16.mxu1 %v3031_v17  ;;  %v3073_v45 = vld [vmem:[%s4416_s1 + $0x3b4] ss:$8 sps:$4 sm:$0xff]   ;;  %v3075_v46 = vld [vmem:[%s4416_s1 + $0x2b0] ss:$8 sps:$4 sm:$0xff]   ;;  %v186_v47 = vld [vmem:[%s3636_s5] sm:$0x77] }
  0x1a   : > { %v3648_v48 = vcombine.high %v186_v47, %v186_v47  ;;  %v187_v49 = vld [vmem:[%s3636_s5 + $0x8] sm:$0x77]  ;;  %v3076_v50 = vld [vmem:[%s4416_s1 + $0x3b0] ss:$8 sps:$4 sm:$0xff]   ;;  %v3083_v62 = vld [vmem:[%s4416_s1 + $0x2d4] ss:$8 sps:$4 sm:$0xff]   ;;  %v3678_v2 = vcombine.low %v186_v47, %v186_v47 }
  0x1b   : > { %688 = vmatpush1.bf16.msra.mxu0 %v3033_v18  ;;  %v3077_v51 = vld [vmem:[%s4416_s1 + $0x2c4] ss:$8 sps:$4 sm:$0xff]   ;;  %v3657_v52 = vcombine.high %v187_v49, %v187_v49  ;;  %v3081_v59 = vld [vmem:[%s4416_s1 + $0x2c0] ss:$8 sps:$4 sm:$0xff]   ;;  %v3085_v63 = vld [vmem:[%s4416_s1 + $0x3d4] ss:$8 sps:$4 sm:$0xff]   ;;  %v3680_v3 = vcombine.low %v187_v49, %v187_v49 }
  0x1c   : > { %729 = vmatpush1.bf16.msra.mxu1 %v3034_v19  ;;  %689 = vmatprep.subr.bf16.mxu0 %v3035_v20  ;;  %v3079_v53 = vld [vmem:[%s4416_s1 + $0x3c4] ss:$8 sps:$4 sm:$0xff]   ;;  %v335_v54 = vshrl.u32 %v3648_v48, 16  ;;  %v337_v55 = vshll.u32 %v3648_v48, 16  ;;  %v3082_v60 = vld [vmem:[%s4416_s1 + $0x3c0] ss:$8 sps:$4 sm:$0xff]  }
  0x1d   : > { %730 = vmatprep.subr.bf16.mxu1 %v3037_v21  ;;  %v349_v56 = vshrl.u32 %v3657_v52, 16  ;;  %v351_v57 = vshll.u32 %v3657_v52, 16  ;;  %v3087_v4 = vld [vmem:[%s4416_s1 + $0x2d0] ss:$8 sps:$4 sm:$0xff]   ;;  %v3089_v6 = vld [vmem:[%s4416_s1 + $0x2e4] ss:$8 sps:$4 sm:$0xff]  }
  0x1e   : > { %v339_v58 = vrot.slane %v337_v55, 1  ;;  %v3088_v5 = vld [vmem:[%s4416_s1 + $0x3d0] ss:$8 sps:$4 sm:$0xff]   ;;  %v3091_v7 = vld [vmem:[%s4416_s1 + $0x3e4] ss:$8 sps:$4 sm:$0xff]   ;;  %v330_v8 = vshll.u32 %v3678_v2, 16 }
  0x1f   : > { %690 = vmatpush1.bf16.msra.mxu0 %v3039_v22  ;;  %v353_v61 = vrot.slane %v351_v57, 1  ;;  %v344_v9 = vshll.u32 %v3680_v3, 16  ;;  %v3093_v10 = vld [vmem:[%s4416_s1 + $0x2e0] ss:$8 sps:$4 sm:$0xff]   ;;  %v3095_v12 = vld [vmem:[%s4416_s1 + $0x2f4] ss:$8 sps:$4 sm:$0xff]  }
  0x20   : > { %731 = vmatpush1.bf16.msra.mxu1 %v3040_v23  ;;  %691 = vmatprep.subr.bf16.mxu0 %v3041_v24  ;;  %v340_v0 = vor.u32 %v339_v58, %v335_v54  ;;  %v3094_v11 = vld [vmem:[%s4416_s1 + $0x3e0] ss:$8 sps:$4 sm:$0xff]   ;;  %v3097_v13 = vld [vmem:[%s4416_s1 + $0x3f4] ss:$8 sps:$4 sm:$0xff]   ;;  %v328_v14 = vshrl.u32 %v3678_v2, 16  ;;  %v332_v15 = vrot.slane %v330_v8, 1 }
  0x21   : > { %732 = vmatprep.subr.bf16.mxu1 %v3043_v25  ;;  %v354_v1 = vor.u32 %v353_v61, %v349_v56  ;;  %v342_v16 = vshrl.u32 %v3680_v3, 16  ;;  %v346_v17 = vrot.slane %v344_v9, 1  ;;  %v3099_v18 = vld [vmem:[%s4416_s1 + $0x2f0] ss:$8 sps:$4 sm:$0xff]   ;;  %v3107_v20 = vld [vmem:[%s4416_s1 + $0x4] ss:$8 sps:$4 sm:$0xff]  }
  0x22   : > { %711 = vmatprep.mubr.bf16.mxu0 %v340_v0  ;;  %v3100_v19 = vld [vmem:[%s4416_s1 + $0x3f0] ss:$8 sps:$4 sm:$0xff]   ;;  %v3110_v21 = vld [vmem:[%s4416_s1 + $0x104] ss:$8 sps:$4 sm:$0xff]   ;;  %v333_v22 = vor.u32 %v332_v15, %v328_v14  ;;  %v3105_v24 = vld [vmem:[%s4416_s1] ss:$8 sps:$4 sm:$0xff]  }
  0x23   : > { %692 = vmatpush1.bf16.msra.mxu0 %v3045_v26  ;;  %752 = vmatprep.mubr.bf16.mxu1 %v354_v1  ;;  %v347_v23 = vor.u32 %v346_v17, %v342_v16  ;;  %v3108_v25 = vld [vmem:[%s4416_s1 + $0x100] ss:$8 sps:$4 sm:$0xff]   ;;  %v3113_v26 = vld [vmem:[%s4416_s1 + $0x14] ss:$8 sps:$4 sm:$0xff]   ;;  %v3146_v47 = vld [vmem:[%s4416_s1 + $0x164] ss:$8 sps:$4 sm:$0xff]  }
  0x24   : > { %733 = vmatpush1.bf16.msra.mxu1 %v3046_v27  ;;  %693 = vmatprep.subr.bf16.mxu0 %v3047_v28  ;;  %v3116_v27 = vld [vmem:[%s4416_s1 + $0x114] ss:$8 sps:$4 sm:$0xff]   ;;  %v3111_v28 = vld [vmem:[%s4416_s1 + $0x10] ss:$8 sps:$4 sm:$0xff]   ;;  %v3144_v49 = vld [vmem:[%s4416_s1 + $0x160] ss:$8 sps:$4 sm:$0xff]  }
  0x25   : > { %734 = vmatprep.subr.bf16.mxu1 %v3049_v29  ;;  %v3114_v29 = vld [vmem:[%s4416_s1 + $0x110] ss:$8 sps:$4 sm:$0xff]   ;;  %v3155_v54 = vld [vmem:[%s4416_s1 + $0x84] ss:$8 sps:$4 sm:$0xff]   ;;  %v3153_v56 = vld [vmem:[%s4416_s1 + $0x80] ss:$8 sps:$4 sm:$0xff]  }
  0x26   : > { %v3158_v55 = vld [vmem:[%s4416_s1 + $0x184] ss:$8 sps:$4 sm:$0xff]   ;;  %v3156_v57 = vld [vmem:[%s4416_s1 + $0x180] ss:$8 sps:$4 sm:$0xff]   ;;  %v3161_v58 = vld [vmem:[%s4416_s1 + $0x94] ss:$8 sps:$4 sm:$0xff]  }
  0x27   : > { %694 = vmatpush1.bf16.msra.mxu0 %v3051_v30  ;;  %v3119_v30 = vld [vmem:[%s4416_s1 + $0x24] ss:$8 sps:$4 sm:$0xff]   ;;  %v3162_v61 = vld [vmem:[%s4416_s1 + $0x190] ss:$8 sps:$4 sm:$0xff]   ;;  %v3165_v0 = vld [vmem:[%s4416_s1 + $0xa0] ss:$8 sps:$4 sm:$0xff]  }
  0x28   : > { %735 = vmatpush1.bf16.msra.mxu1 %v3052_v31  ;;  %695 = vmatprep.subr.bf16.mxu0 %v3053_v32  ;;  %v3122_v31 = vld [vmem:[%s4416_s1 + $0x124] ss:$8 sps:$4 sm:$0xff]   ;;  %v3117_v32 = vld [vmem:[%s4416_s1 + $0x20] ss:$8 sps:$4 sm:$0xff]   ;;  %v3183_v14 = vld [vmem:[%s4416_s1 + $0xd0] ss:$8 sps:$4 sm:$0xff]  }
  0x29   : > { %736 = vmatprep.subr.bf16.mxu1 %v3055_v33  ;;  %v3120_v33 = vld [vmem:[%s4416_s1 + $0x120] ss:$8 sps:$4 sm:$0xff]   ;;  %v3179_v8 = vld [vmem:[%s4416_s1 + $0xc4] ss:$8 sps:$4 sm:$0xff]   ;;  %v3186_v15 = vld [vmem:[%s4416_s1 + $0x1d0] ss:$8 sps:$4 sm:$0xff]  }
  0x2a   : > { %v3168_v1 = vld [vmem:[%s4416_s1 + $0x1a0] ss:$8 sps:$4 sm:$0xff]   ;;  %v3182_v9 = vld [vmem:[%s4416_s1 + $0x1c4] ss:$8 sps:$4 sm:$0xff]   ;;  %p2941_p6 = scmp.ne.s32.totalorder %s3423_s12, 3 }
  0x2b   : > { %696 = vmatpush1.bf16.msra.mxu0 %v3057_v34  ;;  %v3125_v34 = vld [vmem:[%s4416_s1 + $0x34] ss:$8 sps:$4 sm:$0xff]   ;;  %v3191_v16 = vld [vmem:[%s4416_s1 + $0xe4] ss:$8 sps:$4 sm:$0xff]   ;;  %vm2212_vm0 = vcmask (!%p2941_p6), 1043456  }
  0x2c   : > { %737 = vmatpush1.bf16.msra.mxu1 %v3058_v35  ;;  %697 = vmatprep.subr.bf16.mxu0 %v3059_v36  ;;  %v3128_v35 = vld [vmem:[%s4416_s1 + $0x134] ss:$8 sps:$4 sm:$0xff]   ;;  %v3123_v36 = vld [vmem:[%s4416_s1 + $0x30] ss:$8 sps:$4 sm:$0xff]   ;;  %v3194_v17 = vld [vmem:[%s4416_s1 + $0x1e4] ss:$8 sps:$4 sm:$0xff]  }
  0x2d   : > { %738 = vmatprep.subr.bf16.mxu1 %v3061_v37  ;;  %v3126_v37 = vld [vmem:[%s4416_s1 + $0x130] ss:$8 sps:$4 sm:$0xff]  }
  0x2f   : > { %698 = vmatpush1.bf16.msra.mxu0 %v3063_v38  ;;  %v3131_v38 = vld [vmem:[%s4416_s1 + $0x44] ss:$8 sps:$4 sm:$0xff]  }
  0x30   : > { %739 = vmatpush1.bf16.msra.mxu1 %v3064_v39  ;;  %699 = vmatprep.subr.bf16.mxu0 %v3065_v40  ;;  %v3134_v39 = vld [vmem:[%s4416_s1 + $0x144] ss:$8 sps:$4 sm:$0xff]   ;;  %v3129_v40 = vld [vmem:[%s4416_s1 + $0x40] ss:$8 sps:$4 sm:$0xff]  }
  0x31   : > { %740 = vmatprep.subr.bf16.mxu1 %v3067_v41  ;;  %v3132_v41 = vld [vmem:[%s4416_s1 + $0x140] ss:$8 sps:$4 sm:$0xff]  }
  0x33   : > { %700 = vmatpush1.bf16.msra.mxu0 %v3069_v42  ;;  %v3137_v42 = vld [vmem:[%s4416_s1 + $0x54] ss:$8 sps:$4 sm:$0xff]  }
  0x34   : > { %741 = vmatpush1.bf16.msra.mxu1 %v3070_v43  ;;  %701 = vmatprep.subr.bf16.mxu0 %v3071_v44  ;;  %v3140_v43 = vld [vmem:[%s4416_s1 + $0x154] ss:$8 sps:$4 sm:$0xff]   ;;  %v3135_v44 = vld [vmem:[%s4416_s1 + $0x50] ss:$8 sps:$4 sm:$0xff]  }
  0x35   : > { %742 = vmatprep.subr.bf16.mxu1 %v3073_v45  ;;  %v3138_v45 = vld [vmem:[%s4416_s1 + $0x150] ss:$8 sps:$4 sm:$0xff]  }
  0x37   : > { %702 = vmatpush1.bf16.msra.mxu0 %v3075_v46  ;;  %v3143_v46 = vld [vmem:[%s4416_s1 + $0x64] ss:$8 sps:$4 sm:$0xff]  }
  0x38   : > { %743 = vmatpush1.bf16.msra.mxu1 %v3076_v50  ;;  %703 = vmatprep.subr.bf16.mxu0 %v3077_v51  ;;  %v3149_v50 = vld [vmem:[%s4416_s1 + $0x74] ss:$8 sps:$4 sm:$0xff]  }
  0x39   : > { %744 = vmatprep.subr.bf16.mxu1 %v3079_v53  ;;  %v3152_v51 = vld [vmem:[%s4416_s1 + $0x174] ss:$8 sps:$4 sm:$0xff]   ;;  %v3150_v53 = vld [vmem:[%s4416_s1 + $0x170] ss:$8 sps:$4 sm:$0xff]  }
  0x3b   : > { %704 = vmatpush1.bf16.msra.mxu0 %v3081_v59  ;;  %v3164_v59 = vld [vmem:[%s4416_s1 + $0x194] ss:$8 sps:$4 sm:$0xff]  }
  0x3c   : > { %745 = vmatpush1.bf16.msra.mxu1 %v3082_v60  ;;  %705 = vmatprep.subr.bf16.mxu0 %v3083_v62  ;;  %v3159_v60 = vld [vmem:[%s4416_s1 + $0x90] ss:$8 sps:$4 sm:$0xff]   ;;  %v3167_v62 = vld [vmem:[%s4416_s1 + $0xa4] ss:$8 sps:$4 sm:$0xff]  }
  0x3d   : > { %746 = vmatprep.subr.bf16.mxu1 %v3085_v63  ;;  %v3170_v63 = vld [vmem:[%s4416_s1 + $0x1a4] ss:$8 sps:$4 sm:$0xff]  }
  0x3f   : > { %706 = vmatpush1.bf16.msra.mxu0 %v3087_v4  ;;  %v3173_v4 = vld [vmem:[%s4416_s1 + $0xb4] ss:$8 sps:$4 sm:$0xff]  }
  0x40   : > { %747 = vmatpush1.bf16.msra.mxu1 %v3088_v5  ;;  %707 = vmatprep.subr.bf16.mxu0 %v3089_v6  ;;  %v3176_v5 = vld [vmem:[%s4416_s1 + $0x1b4] ss:$8 sps:$4 sm:$0xff]   ;;  %v3171_v6 = vld [vmem:[%s4416_s1 + $0xb0] ss:$8 sps:$4 sm:$0xff]  }
  0x41   : > { %748 = vmatprep.subr.bf16.mxu1 %v3091_v7  ;;  %v3174_v7 = vld [vmem:[%s4416_s1 + $0x1b0] ss:$8 sps:$4 sm:$0xff]  }
  0x43   : > { %708 = vmatpush1.bf16.msra.mxu0 %v3093_v10  ;;  %v3177_v10 = vld [vmem:[%s4416_s1 + $0xc0] ss:$8 sps:$4 sm:$0xff]  }
  0x44   : > { %749 = vmatpush1.bf16.msra.mxu1 %v3094_v11  ;;  %709 = vmatprep.subr.bf16.mxu0 %v3095_v12  ;;  %v3180_v11 = vld [vmem:[%s4416_s1 + $0x1c0] ss:$8 sps:$4 sm:$0xff]   ;;  %v3185_v12 = vld [vmem:[%s4416_s1 + $0xd4] ss:$8 sps:$4 sm:$0xff]  }
  0x45   : > { %750 = vmatprep.subr.bf16.mxu1 %v3097_v13  ;;  %v3188_v13 = vld [vmem:[%s4416_s1 + $0x1d4] ss:$8 sps:$4 sm:$0xff]  }
  0x47   : > { %710 = vmatpush1.bf16.msra.mxu0 %v3099_v18  ;;  %v3189_v18 = vld [vmem:[%s4416_s1 + $0xe0] ss:$8 sps:$4 sm:$0xff]  }
  0x48   : > { %751 = vmatpush1.bf16.msra.mxu1 %v3100_v19  ;;  %1085 = vmatprep.subr.bf16.mxu0 %v3107_v20  ;;  %v3192_v19 = vld [vmem:[%s4416_s1 + $0x1e0] ss:$8 sps:$4 sm:$0xff]   ;;  %v3197_v20 = vld [vmem:[%s4416_s1 + $0xf4] ss:$8 sps:$4 sm:$0xff]  }
  0x49   : > { %1126 = vmatprep.subr.bf16.mxu1 %v3110_v21  ;;  %v3200_v21 = vld [vmem:[%s4416_s1 + $0x1f4] ss:$8 sps:$4 sm:$0xff]  }
  0x4a   : > { %712 = vmatmul.mubr.bf16.vlgmr.msra.gmra.mrb[0].mxu0 %v333_v22  ;;  %v3195_v22 = vld [vmem:[%s4416_s1 + $0xf0] ss:$8 sps:$4 sm:$0xff]  }
  0x4b   : > { %753 = vmatmul.mubr.bf16.vlgmr.msra.gmra.mrb[0].mxu1 %v347_v23  ;;  %1086 = vmatpush1.bf16.msra.mxu0 %v3105_v24  ;;  %v3198_v23 = vld [vmem:[%s4416_s1 + $0x1f0] ss:$8 sps:$4 sm:$0xff]   ;;  %v3203_v24 = vld [vmem:[%s4416_s1 + $0x404] ss:$8 sps:$4 sm:$0xff]  }
  0x4c   : > { %1127 = vmatpush1.bf16.msra.mxu1 %v3108_v25  ;;  %1087 = vmatprep.subr.bf16.mxu0 %v3113_v26  ;;  %v3206_v25 = vld [vmem:[%s4416_s1 + $0x504] ss:$8 sps:$4 sm:$0xff]   ;;  %v3201_v26 = vld [vmem:[%s4416_s1 + $0x400] ss:$8 sps:$4 sm:$0xff]  }
  0x4d   : > { %1128 = vmatprep.subr.bf16.mxu1 %v3116_v27  ;;  %1117 = vmatprep.mubr.bf16.mxu0 %v3648_v48  ;;  %v3141_v48 = vld [vmem:[%s4416_s1 + $0x60] ss:$8 sps:$4 sm:$0xff]  }
  0x4e   : > { %1158 = vmatprep.mubr.bf16.mxu1 %v3657_v52  ;;  %v3147_v52 = vld [vmem:[%s4416_s1 + $0x70] ss:$8 sps:$4 sm:$0xff]   ;;  %v3204_v27 = vld [vmem:[%s4416_s1 + $0x500] ss:$8 sps:$4 sm:$0xff]  }
  0x4f   : > { %1088 = vmatpush1.bf16.msra.mxu0 %v3111_v28  ;;  %v3209_v28 = vld [vmem:[%s4416_s1 + $0x414] ss:$8 sps:$4 sm:$0xff]  }
  0x50   : > { %1129 = vmatpush1.bf16.msra.mxu1 %v3114_v29  ;;  %1089 = vmatprep.subr.bf16.mxu0 %v3119_v30  ;;  %v3212_v29 = vld [vmem:[%s4416_s1 + $0x514] ss:$8 sps:$4 sm:$0xff]  }
  0x51   : > { %1130 = vmatprep.subr.bf16.mxu1 %v3122_v31  ;;  %v3929_v30 = vld [vmem:[%s3636_s5 + $0x10] sm:$0x77]  ;;  %v3932_v31 = vld [vmem:[%s3636_s5 + $0x18] sm:$0x77] }
  0x53   : > { %1090 = vmatpush1.bf16.msra.mxu0 %v3117_v32  ;;  %v3207_v32 = vld [vmem:[%s4416_s1 + $0x410] ss:$8 sps:$4 sm:$0xff]  }
  0x54   : > { %1131 = vmatpush1.bf16.msra.mxu1 %v3120_v33  ;;  %1091 = vmatprep.subr.bf16.mxu0 %v3125_v34  ;;  %v3210_v33 = vld [vmem:[%s4416_s1 + $0x510] ss:$8 sps:$4 sm:$0xff]   ;;  %v3944_v34 = vcombine.high %v3929_v30, %v3929_v30 }
  0x55   : > { %1132 = vmatprep.subr.bf16.mxu1 %v3128_v35  ;;  %v3218_v35 = vld [vmem:[%s4416_s1 + $0x524] ss:$8 sps:$4 sm:$0xff]  }
  0x57   : > { %1092 = vmatpush1.bf16.msra.mxu0 %v3123_v36  ;;  %v3213_v36 = vld [vmem:[%s4416_s1 + $0x420] ss:$8 sps:$4 sm:$0xff]  }
  0x58   : > { %1133 = vmatpush1.bf16.msra.mxu1 %v3126_v37  ;;  %1093 = vmatprep.subr.bf16.mxu0 %v3131_v38  ;;  %v3216_v37 = vld [vmem:[%s4416_s1 + $0x520] ss:$8 sps:$4 sm:$0xff]   ;;  %v3221_v38 = vld [vmem:[%s4416_s1 + $0x434] ss:$8 sps:$4 sm:$0xff]  }
  0x59   : > { %1134 = vmatprep.subr.bf16.mxu1 %v3134_v39  ;;  %v3224_v39 = vld [vmem:[%s4416_s1 + $0x534] ss:$8 sps:$4 sm:$0xff]  }
  0x5b   : > { %1094 = vmatpush1.bf16.msra.mxu0 %v3129_v40  ;;  %v3219_v40 = vld [vmem:[%s4416_s1 + $0x430] ss:$8 sps:$4 sm:$0xff]  }
  0x5c   : > { %1135 = vmatpush1.bf16.msra.mxu1 %v3132_v41  ;;  %1095 = vmatprep.subr.bf16.mxu0 %v3137_v42  ;;  %v3222_v41 = vld [vmem:[%s4416_s1 + $0x530] ss:$8 sps:$4 sm:$0xff]   ;;  %v3227_v42 = vld [vmem:[%s4416_s1 + $0x444] ss:$8 sps:$4 sm:$0xff]  }
  0x5d   : > { %1136 = vmatprep.subr.bf16.mxu1 %v3140_v43  ;;  %v3230_v43 = vld [vmem:[%s4416_s1 + $0x544] ss:$8 sps:$4 sm:$0xff]  }
  0x5f   : > { %1096 = vmatpush1.bf16.msra.mxu0 %v3135_v44  ;;  %v3225_v44 = vld [vmem:[%s4416_s1 + $0x440] ss:$8 sps:$4 sm:$0xff]  }
  0x60   : > { %1137 = vmatpush1.bf16.msra.mxu1 %v3138_v45  ;;  %1097 = vmatprep.subr.bf16.mxu0 %v3143_v46  ;;  %v3228_v45 = vld [vmem:[%s4416_s1 + $0x540] ss:$8 sps:$4 sm:$0xff]   ;;  %v3233_v46 = vld [vmem:[%s4416_s1 + $0x454] ss:$8 sps:$4 sm:$0xff]  }
  0x61   : > { %1138 = vmatprep.subr.bf16.mxu1 %v3146_v47  ;;  %v3236_v47 = vld [vmem:[%s4416_s1 + $0x554] ss:$8 sps:$4 sm:$0xff]  }
  0x63   : > { %1098 = vmatpush1.bf16.msra.mxu0 %v3141_v48  ;;  %v3231_v48 = vld [vmem:[%s4416_s1 + $0x450] ss:$8 sps:$4 sm:$0xff]  }
  0x64   : > { %1139 = vmatpush1.bf16.msra.mxu1 %v3144_v49  ;;  %1099 = vmatprep.subr.bf16.mxu0 %v3149_v50  ;;  %v3234_v49 = vld [vmem:[%s4416_s1 + $0x550] ss:$8 sps:$4 sm:$0xff]   ;;  %v3239_v50 = vld [vmem:[%s4416_s1 + $0x464] ss:$8 sps:$4 sm:$0xff]  }
  0x65   : > { %1140 = vmatprep.subr.bf16.mxu1 %v3152_v51  ;;  %v3242_v51 = vld [vmem:[%s4416_s1 + $0x564] ss:$8 sps:$4 sm:$0xff]  }
  0x67   : > { %1100 = vmatpush1.bf16.msra.mxu0 %v3147_v52  ;;  %v3237_v52 = vld [vmem:[%s4416_s1 + $0x460] ss:$8 sps:$4 sm:$0xff]  }
  0x68   : > { %1141 = vmatpush1.bf16.msra.mxu1 %v3150_v53  ;;  %1101 = vmatprep.subr.bf16.mxu0 %v3155_v54  ;;  %v3240_v53 = vld [vmem:[%s4416_s1 + $0x560] ss:$8 sps:$4 sm:$0xff]   ;;  %v3245_v54 = vld [vmem:[%s4416_s1 + $0x474] ss:$8 sps:$4 sm:$0xff]  }
  0x69   : > { %1142 = vmatprep.subr.bf16.mxu1 %v3158_v55  ;;  %v3248_v55 = vld [vmem:[%s4416_s1 + $0x574] ss:$8 sps:$4 sm:$0xff]  }
  0x6b   : > { %1102 = vmatpush1.bf16.msra.mxu0 %v3153_v56  ;;  %v3243_v56 = vld [vmem:[%s4416_s1 + $0x470] ss:$8 sps:$4 sm:$0xff]  }
  0x6c   : > { %1143 = vmatpush1.bf16.msra.mxu1 %v3156_v57  ;;  %1103 = vmatprep.subr.bf16.mxu0 %v3161_v58  ;;  %v3246_v57 = vld [vmem:[%s4416_s1 + $0x570] ss:$8 sps:$4 sm:$0xff]   ;;  %v3251_v58 = vld [vmem:[%s4416_s1 + $0x484] ss:$8 sps:$4 sm:$0xff]  }
  0x6d   : > { %1144 = vmatprep.subr.bf16.mxu1 %v3164_v59  ;;  %v3254_v59 = vld [vmem:[%s4416_s1 + $0x584] ss:$8 sps:$4 sm:$0xff]  }
  0x6f   : > { %1104 = vmatpush1.bf16.msra.mxu0 %v3159_v60  ;;  %v3249_v60 = vld [vmem:[%s4416_s1 + $0x480] ss:$8 sps:$4 sm:$0xff]  }
  0x70   : > { %1145 = vmatpush1.bf16.msra.mxu1 %v3162_v61  ;;  %1105 = vmatprep.subr.bf16.mxu0 %v3167_v62  ;;  %v3252_v61 = vld [vmem:[%s4416_s1 + $0x580] ss:$8 sps:$4 sm:$0xff]   ;;  %v3257_v62 = vld [vmem:[%s4416_s1 + $0x494] ss:$8 sps:$4 sm:$0xff]  }
  0x71   : > { %1146 = vmatprep.subr.bf16.mxu1 %v3170_v63  ;;  %v3260_v63 = vld [vmem:[%s4416_s1 + $0x594] ss:$8 sps:$4 sm:$0xff]  }
  0x73   : > { %1106 = vmatpush1.bf16.msra.mxu0 %v3165_v0  ;;  %v3255_v0 = vld [vmem:[%s4416_s1 + $0x490] ss:$8 sps:$4 sm:$0xff]  }
  0x74   : > { %1147 = vmatpush1.bf16.msra.mxu1 %v3168_v1  ;;  %1107 = vmatprep.subr.bf16.mxu0 %v3173_v4  ;;  %v3258_v1 = vld [vmem:[%s4416_s1 + $0x590] ss:$8 sps:$4 sm:$0xff]   ;;  %v3263_v4 = vld [vmem:[%s4416_s1 + $0x4a4] ss:$8 sps:$4 sm:$0xff]  }
  0x75   : > { %1148 = vmatprep.subr.bf16.mxu1 %v3176_v5  ;;  %v3266_v5 = vld [vmem:[%s4416_s1 + $0x5a4] ss:$8 sps:$4 sm:$0xff]  }
  0x77   : > { %1108 = vmatpush1.bf16.msra.mxu0 %v3171_v6  ;;  %v3261_v6 = vld [vmem:[%s4416_s1 + $0x4a0] ss:$8 sps:$4 sm:$0xff]  }
  0x78   : > { %1149 = vmatpush1.bf16.msra.mxu1 %v3174_v7  ;;  %1109 = vmatprep.subr.bf16.mxu0 %v3179_v8  ;;  %v3264_v7 = vld [vmem:[%s4416_s1 + $0x5a0] ss:$8 sps:$4 sm:$0xff]   ;;  %v3269_v8 = vld [vmem:[%s4416_s1 + $0x4b4] ss:$8 sps:$4 sm:$0xff]  }
  0x79   : > { %1150 = vmatprep.subr.bf16.mxu1 %v3182_v9  ;;  %v3272_v9 = vld [vmem:[%s4416_s1 + $0x5b4] ss:$8 sps:$4 sm:$0xff]  }
  0x7b   : > { %1110 = vmatpush1.bf16.msra.mxu0 %v3177_v10  ;;  %v3267_v10 = vld [vmem:[%s4416_s1 + $0x4b0] ss:$8 sps:$4 sm:$0xff]  }
  0x7c   : > { %1151 = vmatpush1.bf16.msra.mxu1 %v3180_v11  ;;  %1111 = vmatprep.subr.bf16.mxu0 %v3185_v12  ;;  %v3270_v11 = vld [vmem:[%s4416_s1 + $0x5b0] ss:$8 sps:$4 sm:$0xff]   ;;  %v3275_v12 = vld [vmem:[%s4416_s1 + $0x4c4] ss:$8 sps:$4 sm:$0xff]  }
  0x7d   : > { %1152 = vmatprep.subr.bf16.mxu1 %v3188_v13  ;;  %v3278_v13 = vld [vmem:[%s4416_s1 + $0x5c4] ss:$8 sps:$4 sm:$0xff]  }
  0x7f   : > { %1112 = vmatpush1.bf16.msra.mxu0 %v3183_v14  ;;  %v3273_v14 = vld [vmem:[%s4416_s1 + $0x4c0] ss:$8 sps:$4 sm:$0xff]  }
  0x80   : > { %1153 = vmatpush1.bf16.msra.mxu1 %v3186_v15  ;;  %1113 = vmatprep.subr.bf16.mxu0 %v3191_v16  ;;  %v3276_v15 = vld [vmem:[%s4416_s1 + $0x5c0] ss:$8 sps:$4 sm:$0xff]   ;;  %v3281_v16 = vld [vmem:[%s4416_s1 + $0x4d4] ss:$8 sps:$4 sm:$0xff]  }
  0x81   : > { %1154 = vmatprep.subr.bf16.mxu1 %v3194_v17  ;;  %v3284_v17 = vld [vmem:[%s4416_s1 + $0x5d4] ss:$8 sps:$4 sm:$0xff]  }
  0x83   : > { %1114 = vmatpush1.bf16.msra.mxu0 %v3189_v18  ;;  %v3279_v18 = vld [vmem:[%s4416_s1 + $0x4d0] ss:$8 sps:$4 sm:$0xff]  }
  0x84   : > { %1155 = vmatpush1.bf16.msra.mxu1 %v3192_v19  ;;  %1115 = vmatprep.subr.bf16.mxu0 %v3197_v20  ;;  %v3282_v19 = vld [vmem:[%s4416_s1 + $0x5d0] ss:$8 sps:$4 sm:$0xff]   ;;  %v3287_v20 = vld [vmem:[%s4416_s1 + $0x4e4] ss:$8 sps:$4 sm:$0xff]  }
  0x85   : > { %1156 = vmatprep.subr.bf16.mxu1 %v3200_v21  ;;  %v3290_v21 = vld [vmem:[%s4416_s1 + $0x5e4] ss:$8 sps:$4 sm:$0xff]  }
  0x87   : > { %1116 = vmatpush1.bf16.msra.mxu0 %v3195_v22  ;;  %v3285_v22 = vld [vmem:[%s4416_s1 + $0x4e0] ss:$8 sps:$4 sm:$0xff]  }
  0x88   : > { %1157 = vmatpush1.bf16.msra.mxu1 %v3198_v23  ;;  %1572 = vmatprep.subr.bf16.mxu0 %v3203_v24  ;;  %v3288_v23 = vld [vmem:[%s4416_s1 + $0x5e0] ss:$8 sps:$4 sm:$0xff]   ;;  %v3293_v24 = vld [vmem:[%s4416_s1 + $0x4f4] ss:$8 sps:$4 sm:$0xff]  }
  0x89   : > { %1613 = vmatprep.subr.bf16.mxu1 %v3206_v25  ;;  %v3296_v25 = vld [vmem:[%s4416_s1 + $0x5f4] ss:$8 sps:$4 sm:$0xff]  }
  0x8a   : > { %1118 = vmatmul.mubr.bf16.vlgmr.msra.gmra.mrb[4].mxu0 %v3678_v2  ;;  %v3215_v2 = vld [vmem:[%s4416_s1 + $0x424] ss:$8 sps:$4 sm:$0xff]  }
  0x8b   : > { %1159 = vmatmul.mubr.bf16.vlgmr.msra.gmra.mrb[4].mxu1 %v3680_v3  ;;  %1573 = vmatpush1.bf16.msra.mxu0 %v3201_v26  ;;  %v3951_v3 = vcombine.high %v3932_v31, %v3932_v31  ;;  %v1731_v26 = vshll.u32 %v3944_v34, 16 }
  0x8c   : > { %1614 = vmatpush1.bf16.msra.mxu1 %v3204_v27  ;;  %1574 = vmatprep.subr.bf16.mxu0 %v3209_v28  ;;  %v3291_v28 = vld [vmem:[%s4416_s1 + $0x4f0] ss:$8 sps:$4 sm:$0xff]  }
  0x8d   : > { %1615 = vmatprep.subr.bf16.mxu1 %v3212_v29  ;;  %1604 = vmatprep.mubr.bf16.mxu0 %v3944_v34  ;;  %v1745_v27 = vshll.u32 %v3951_v3, 16  ;;  %v3294_v29 = vld [vmem:[%s4416_s1 + $0x5f0] ss:$8 sps:$4 sm:$0xff]  }
  0x8e   : > { %1645 = vmatprep.mubr.bf16.mxu1 %v3951_v3 }
  0x8f   : > { %1575 = vmatpush1.bf16.msra.mxu0 %v3207_v32  ;;  %v3303_v32 = vld [vmem:[%s4416_s1 + $0x604] ss:$8 sps:$4 sm:$0xff]  }
  0x90   : > { %1616 = vmatpush1.bf16.msra.mxu1 %v3210_v33  ;;  %1576 = vmatprep.subr.bf16.mxu0 %v3215_v2  ;;  %v3306_v33 = vld [vmem:[%s4416_s1 + $0x704] ss:$8 sps:$4 sm:$0xff]   ;;  %v1729_v2 = vshrl.u32 %v3944_v34, 16  ;;  %v3304_v34 = vld [vmem:[%s4416_s1 + $0x700] ss:$8 sps:$4 sm:$0xff]  }
  0x91   : > { %1617 = vmatprep.subr.bf16.mxu1 %v3218_v35  ;;  %v1733_v35 = vrot.slane %v1731_v26, 1  ;;  %v3381_v26 = vld [vmem:[%s4416_s1 + $0x6d4] ss:$8 sps:$4 sm:$0xff]  }
  0x93   : > { %1577 = vmatpush1.bf16.msra.mxu0 %v3213_v36  ;;  %v1743_v36 = vshrl.u32 %v3951_v3, 16  ;;  %v1734_v3 = vor.u32 %v1733_v35, %v1729_v2 }
  0x94   : > { %1618 = vmatpush1.bf16.msra.mxu1 %v3216_v37  ;;  %1578 = vmatprep.subr.bf16.mxu0 %v3221_v38  ;;  %v1747_v37 = vrot.slane %v1745_v27, 1  ;;  %v4132_v38 = vcombine.low %v3929_v30, %v3929_v30  ;;  %v3309_v30 = vld [vmem:[%s4416_s1 + $0x614] ss:$8 sps:$4 sm:$0xff]  }
  0x95   : > { %1619 = vmatprep.subr.bf16.mxu1 %v3224_v39  ;;  %v4136_v39 = vcombine.low %v3932_v31, %v3932_v31  ;;  %v3312_v31 = vld [vmem:[%s4416_s1 + $0x714] ss:$8 sps:$4 sm:$0xff]  }
  0x96   : > { %v3384_v27 = vld [vmem:[%s4416_s1 + $0x7d4] ss:$8 sps:$4 sm:$0xff]   ;;  %v1724_v2 = vshll.u32 %v4132_v38, 16 }
  0x97   : > { %1579 = vmatpush1.bf16.msra.mxu0 %v3219_v40  ;;  %v3301_v40 = vld [vmem:[%s4416_s1 + $0x600] ss:$8 sps:$4 sm:$0xff]   ;;  %v1738_v35 = vshll.u32 %v4136_v39, 16 }
  0x98   : > { %1620 = vmatpush1.bf16.msra.mxu1 %v3222_v41  ;;  %1580 = vmatprep.subr.bf16.mxu0 %v3227_v42  ;;  %v1748_v41 = vor.u32 %v1747_v37, %v1743_v36  ;;  %v3307_v42 = vld [vmem:[%s4416_s1 + $0x610] ss:$8 sps:$4 sm:$0xff]   ;;  %v3385_v36 = vld [vmem:[%s4416_s1 + $0x6e0] ss:$8 sps:$4 sm:$0xff]  }
  0x99   : > { %1621 = vmatprep.subr.bf16.mxu1 %v3230_v43  ;;  %v3310_v43 = vld [vmem:[%s4416_s1 + $0x710] ss:$8 sps:$4 sm:$0xff]   ;;  %v3388_v37 = vld [vmem:[%s4416_s1 + $0x7e0] ss:$8 sps:$4 sm:$0xff]  }
  0x9b   : > { %1581 = vmatpush1.bf16.msra.mxu0 %v3225_v44  ;;  %v3315_v44 = vld [vmem:[%s4416_s1 + $0x624] ss:$8 sps:$4 sm:$0xff]  }
  0x9c   : > { %1622 = vmatpush1.bf16.msra.mxu1 %v3228_v45  ;;  %1582 = vmatprep.subr.bf16.mxu0 %v3233_v46  ;;  %v3318_v45 = vld [vmem:[%s4416_s1 + $0x724] ss:$8 sps:$4 sm:$0xff]   ;;  %v3313_v46 = vld [vmem:[%s4416_s1 + $0x620] ss:$8 sps:$4 sm:$0xff]  }
  0x9d   : > { %1623 = vmatprep.subr.bf16.mxu1 %v3236_v47  ;;  %v3316_v47 = vld [vmem:[%s4416_s1 + $0x720] ss:$8 sps:$4 sm:$0xff]  }
  0x9f   : > { %1583 = vmatpush1.bf16.msra.mxu0 %v3231_v48  ;;  %v3321_v48 = vld [vmem:[%s4416_s1 + $0x634] ss:$8 sps:$4 sm:$0xff]  }
  0xa0   : > { %1624 = vmatpush1.bf16.msra.mxu1 %v3234_v49  ;;  %1584 = vmatprep.subr.bf16.mxu0 %v3239_v50  ;;  %v3324_v49 = vld [vmem:[%s4416_s1 + $0x734] ss:$8 sps:$4 sm:$0xff]   ;;  %v3319_v50 = vld [vmem:[%s4416_s1 + $0x630] ss:$8 sps:$4 sm:$0xff]  }
  0xa1   : > { %1625 = vmatprep.subr.bf16.mxu1 %v3242_v51  ;;  %v3322_v51 = vld [vmem:[%s4416_s1 + $0x730] ss:$8 sps:$4 sm:$0xff]  }
  0xa3   : > { %1585 = vmatpush1.bf16.msra.mxu0 %v3237_v52  ;;  %v3327_v52 = vld [vmem:[%s4416_s1 + $0x644] ss:$8 sps:$4 sm:$0xff]  }
  0xa4   : > { %1626 = vmatpush1.bf16.msra.mxu1 %v3240_v53  ;;  %1586 = vmatprep.subr.bf16.mxu0 %v3245_v54  ;;  %v3330_v53 = vld [vmem:[%s4416_s1 + $0x744] ss:$8 sps:$4 sm:$0xff]   ;;  %v3325_v54 = vld [vmem:[%s4416_s1 + $0x640] ss:$8 sps:$4 sm:$0xff]  }
  0xa5   : > { %1627 = vmatprep.subr.bf16.mxu1 %v3248_v55  ;;  %v3328_v55 = vld [vmem:[%s4416_s1 + $0x740] ss:$8 sps:$4 sm:$0xff]  }
  0xa7   : > { %1587 = vmatpush1.bf16.msra.mxu0 %v3243_v56  ;;  %v3333_v56 = vld [vmem:[%s4416_s1 + $0x654] ss:$8 sps:$4 sm:$0xff]  }
  0xa8   : > { %1628 = vmatpush1.bf16.msra.mxu1 %v3246_v57  ;;  %1588 = vmatprep.subr.bf16.mxu0 %v3251_v58  ;;  %v3336_v57 = vld [vmem:[%s4416_s1 + $0x754] ss:$8 sps:$4 sm:$0xff]   ;;  %v3331_v58 = vld [vmem:[%s4416_s1 + $0x650] ss:$8 sps:$4 sm:$0xff]  }
  0xa9   : > { %1629 = vmatprep.subr.bf16.mxu1 %v3254_v59  ;;  %v3334_v59 = vld [vmem:[%s4416_s1 + $0x750] ss:$8 sps:$4 sm:$0xff]  }
  0xab   : > { %1589 = vmatpush1.bf16.msra.mxu0 %v3249_v60  ;;  %v3339_v60 = vld [vmem:[%s4416_s1 + $0x664] ss:$8 sps:$4 sm:$0xff]  }
  0xac   : > { %1630 = vmatpush1.bf16.msra.mxu1 %v3252_v61  ;;  %1590 = vmatprep.subr.bf16.mxu0 %v3257_v62  ;;  %v3342_v61 = vld [vmem:[%s4416_s1 + $0x764] ss:$8 sps:$4 sm:$0xff]   ;;  %v3337_v62 = vld [vmem:[%s4416_s1 + $0x660] ss:$8 sps:$4 sm:$0xff]  }
  0xad   : > { %1631 = vmatprep.subr.bf16.mxu1 %v3260_v63  ;;  %v3340_v63 = vld [vmem:[%s4416_s1 + $0x760] ss:$8 sps:$4 sm:$0xff]  }
  0xaf   : > { %1591 = vmatpush1.bf16.msra.mxu0 %v3255_v0  ;;  %v3345_v0 = vld [vmem:[%s4416_s1 + $0x674] ss:$8 sps:$4 sm:$0xff]  }
  0xb0   : > { %1632 = vmatpush1.bf16.msra.mxu1 %v3258_v1  ;;  %1592 = vmatprep.subr.bf16.mxu0 %v3263_v4  ;;  %v3348_v1 = vld [vmem:[%s4416_s1 + $0x774] ss:$8 sps:$4 sm:$0xff]   ;;  %v3343_v4 = vld [vmem:[%s4416_s1 + $0x670] ss:$8 sps:$4 sm:$0xff]  }
  0xb1   : > { %1633 = vmatprep.subr.bf16.mxu1 %v3266_v5  ;;  %v3346_v5 = vld [vmem:[%s4416_s1 + $0x770] ss:$8 sps:$4 sm:$0xff]  }
  0xb3   : > { %1593 = vmatpush1.bf16.msra.mxu0 %v3261_v6  ;;  %v3351_v6 = vld [vmem:[%s4416_s1 + $0x684] ss:$8 sps:$4 sm:$0xff]  }
  0xb4   : > { %1634 = vmatpush1.bf16.msra.mxu1 %v3264_v7  ;;  %1594 = vmatprep.subr.bf16.mxu0 %v3269_v8  ;;  %v3354_v7 = vld [vmem:[%s4416_s1 + $0x784] ss:$8 sps:$4 sm:$0xff]   ;;  %v3349_v8 = vld [vmem:[%s4416_s1 + $0x680] ss:$8 sps:$4 sm:$0xff]  }
  0xb5   : > { %1635 = vmatprep.subr.bf16.mxu1 %v3272_v9  ;;  %v3352_v9 = vld [vmem:[%s4416_s1 + $0x780] ss:$8 sps:$4 sm:$0xff]  }
  0xb7   : > { %1595 = vmatpush1.bf16.msra.mxu0 %v3267_v10  ;;  %v3357_v10 = vld [vmem:[%s4416_s1 + $0x694] ss:$8 sps:$4 sm:$0xff]  }
  0xb8   : > { %1636 = vmatpush1.bf16.msra.mxu1 %v3270_v11  ;;  %1596 = vmatprep.subr.bf16.mxu0 %v3275_v12  ;;  %v3360_v11 = vld [vmem:[%s4416_s1 + $0x794] ss:$8 sps:$4 sm:$0xff]   ;;  %v3355_v12 = vld [vmem:[%s4416_s1 + $0x690] ss:$8 sps:$4 sm:$0xff]  }
  0xb9   : > { %1637 = vmatprep.subr.bf16.mxu1 %v3278_v13  ;;  %v3358_v13 = vld [vmem:[%s4416_s1 + $0x790] ss:$8 sps:$4 sm:$0xff]  }
  0xbb   : > { %1597 = vmatpush1.bf16.msra.mxu0 %v3273_v14  ;;  %v3363_v14 = vld [vmem:[%s4416_s1 + $0x6a4] ss:$8 sps:$4 sm:$0xff]  }
  0xbc   : > { %1638 = vmatpush1.bf16.msra.mxu1 %v3276_v15  ;;  %1598 = vmatprep.subr.bf16.mxu0 %v3281_v16  ;;  %v3366_v15 = vld [vmem:[%s4416_s1 + $0x7a4] ss:$8 sps:$4 sm:$0xff]   ;;  %v3361_v16 = vld [vmem:[%s4416_s1 + $0x6a0] ss:$8 sps:$4 sm:$0xff]  }
  0xbd   : > { %1639 = vmatprep.subr.bf16.mxu1 %v3284_v17  ;;  %v3364_v17 = vld [vmem:[%s4416_s1 + $0x7a0] ss:$8 sps:$4 sm:$0xff]  }
  0xbf   : > { %1599 = vmatpush1.bf16.msra.mxu0 %v3279_v18  ;;  %v3369_v18 = vld [vmem:[%s4416_s1 + $0x6b4] ss:$8 sps:$4 sm:$0xff]  }
  0xc0   : > { %1640 = vmatpush1.bf16.msra.mxu1 %v3282_v19  ;;  %1600 = vmatprep.subr.bf16.mxu0 %v3287_v20  ;;  %v3372_v19 = vld [vmem:[%s4416_s1 + $0x7b4] ss:$8 sps:$4 sm:$0xff]   ;;  %v3367_v20 = vld [vmem:[%s4416_s1 + $0x6b0] ss:$8 sps:$4 sm:$0xff]  }
  0xc1   : > { %1641 = vmatprep.subr.bf16.mxu1 %v3290_v21  ;;  %v3370_v21 = vld [vmem:[%s4416_s1 + $0x7b0] ss:$8 sps:$4 sm:$0xff]  }
  0xc3   : > { %1601 = vmatpush1.bf16.msra.mxu0 %v3285_v22  ;;  %v3375_v22 = vld [vmem:[%s4416_s1 + $0x6c4] ss:$8 sps:$4 sm:$0xff]  }
  0xc4   : > { %1642 = vmatpush1.bf16.msra.mxu1 %v3288_v23  ;;  %1602 = vmatprep.subr.bf16.mxu0 %v3293_v24  ;;  %v3378_v23 = vld [vmem:[%s4416_s1 + $0x7c4] ss:$8 sps:$4 sm:$0xff]   ;;  %v3373_v24 = vld [vmem:[%s4416_s1 + $0x6c0] ss:$8 sps:$4 sm:$0xff]  }
  0xc5   : > { %1643 = vmatprep.subr.bf16.mxu1 %v3296_v25  ;;  %v3376_v25 = vld [vmem:[%s4416_s1 + $0x7c0] ss:$8 sps:$4 sm:$0xff]  }
  0xc7   : > { %1603 = vmatpush1.bf16.msra.mxu0 %v3291_v28  ;;  %v3379_v28 = vld [vmem:[%s4416_s1 + $0x6d0] ss:$8 sps:$4 sm:$0xff]  }
  0xc8   : > { %1644 = vmatpush1.bf16.msra.mxu1 %v3294_v29  ;;  %2073 = vmatprep.subr.bf16.mxu0 %v3303_v32  ;;  %v3382_v29 = vld [vmem:[%s4416_s1 + $0x7d0] ss:$8 sps:$4 sm:$0xff]   ;;  %v3387_v32 = vld [vmem:[%s4416_s1 + $0x6e4] ss:$8 sps:$4 sm:$0xff]  }
  0xc9   : > { %2114 = vmatprep.subr.bf16.mxu1 %v3306_v33  ;;  %v3390_v33 = vld [vmem:[%s4416_s1 + $0x7e4] ss:$8 sps:$4 sm:$0xff]  }
  0xca   : > { %1605 = vmatmul.mubr.bf16.vlgmr.msra.gmra.mrb[8].mxu0 %v4132_v38 }
  0xcb   : > { %1646 = vmatmul.mubr.bf16.vlgmr.msra.gmra.mrb[8].mxu1 %v4136_v39  ;;  %2074 = vmatpush1.bf16.msra.mxu0 %v3301_v40  ;;  %v3393_v40 = vld [vmem:[%s4416_s1 + $0x6f4] ss:$8 sps:$4 sm:$0xff]  }
  0xcc   : > { %2115 = vmatpush1.bf16.msra.mxu1 %v3304_v34  ;;  %2075 = vmatprep.subr.bf16.mxu0 %v3309_v30  ;;  %v3396_v34 = vld [vmem:[%s4416_s1 + $0x7f4] ss:$8 sps:$4 sm:$0xff]   ;;  %v1722_v30 = vshrl.u32 %v4132_v38, 16 }
  0xcd   : > { %2116 = vmatprep.subr.bf16.mxu1 %v3312_v31  ;;  %2105 = vmatprep.mubr.bf16.mxu0 %v1734_v3  ;;  %v1726_v31 = vrot.slane %v1724_v2, 1  ;;  %v1736_v3 = vshrl.u32 %v4136_v39, 16 }
  0xce   : > { %2146 = vmatprep.mubr.bf16.mxu1 %v1748_v41  ;;  %v1740_v41 = vrot.slane %v1738_v35, 1 }
  0xcf   : > { %2076 = vmatpush1.bf16.msra.mxu0 %v3307_v42  ;;  %v3391_v42 = vld [vmem:[%s4416_s1 + $0x6f0] ss:$8 sps:$4 sm:$0xff]  }
  0xd0   : > { %2117 = vmatpush1.bf16.msra.mxu1 %v3310_v43  ;;  %2077 = vmatprep.subr.bf16.mxu0 %v3315_v44  ;;  %v3394_v43 = vld [vmem:[%s4416_s1 + $0x7f0] ss:$8 sps:$4 sm:$0xff]   ;;  %v1727_v44 = vor.u32 %v1726_v31, %v1722_v30 }
  0xd1   : > { %2118 = vmatprep.subr.bf16.mxu1 %v3318_v45  ;;  %v1741_v45 = vor.u32 %v1740_v41, %v1736_v3 }
  0xd3   : > { %2078 = vmatpush1.bf16.msra.mxu0 %v3313_v46 }
  0xd4   : > { %2119 = vmatpush1.bf16.msra.mxu1 %v3316_v47  ;;  %2079 = vmatprep.subr.bf16.mxu0 %v3321_v48 }
  0xd5   : > { %2120 = vmatprep.subr.bf16.mxu1 %v3324_v49 }
  0xd7   : > { %2080 = vmatpush1.bf16.msra.mxu0 %v3319_v50 }
  0xd8   : > { %2121 = vmatpush1.bf16.msra.mxu1 %v3322_v51  ;;  %2081 = vmatprep.subr.bf16.mxu0 %v3327_v52 }
  0xd9   : > { %2122 = vmatprep.subr.bf16.mxu1 %v3330_v53 }
  0xdb   : > { %2082 = vmatpush1.bf16.msra.mxu0 %v3325_v54 }
  0xdc   : > { %2123 = vmatpush1.bf16.msra.mxu1 %v3328_v55  ;;  %2083 = vmatprep.subr.bf16.mxu0 %v3333_v56 }
  0xdd   : > { %2124 = vmatprep.subr.bf16.mxu1 %v3336_v57 }
  0xdf   : > { %2084 = vmatpush1.bf16.msra.mxu0 %v3331_v58 }
  0xe0   : > { %2125 = vmatpush1.bf16.msra.mxu1 %v3334_v59  ;;  %2085 = vmatprep.subr.bf16.mxu0 %v3339_v60 }
  0xe1   : > { %2126 = vmatprep.subr.bf16.mxu1 %v3342_v61 }
  0xe3   : > { %2086 = vmatpush1.bf16.msra.mxu0 %v3337_v62 }
  0xe4   : > { %2127 = vmatpush1.bf16.msra.mxu1 %v3340_v63  ;;  %2087 = vmatprep.subr.bf16.mxu0 %v3345_v0 }
  0xe5   : > { %2128 = vmatprep.subr.bf16.mxu1 %v3348_v1 }
  0xe7   : > { %2088 = vmatpush1.bf16.msra.mxu0 %v3343_v4 }
  0xe8   : > { %2129 = vmatpush1.bf16.msra.mxu1 %v3346_v5  ;;  %2089 = vmatprep.subr.bf16.mxu0 %v3351_v6 }
  0xe9   : > { %2130 = vmatprep.subr.bf16.mxu1 %v3354_v7 }
  0xeb   : > { %2090 = vmatpush1.bf16.msra.mxu0 %v3349_v8 }
  0xec   : > { %2131 = vmatpush1.bf16.msra.mxu1 %v3352_v9  ;;  %2091 = vmatprep.subr.bf16.mxu0 %v3357_v10 }
  0xed   : > { %2132 = vmatprep.subr.bf16.mxu1 %v3360_v11 }
  0xef   : > { %2092 = vmatpush1.bf16.msra.mxu0 %v3355_v12 }
  0xf0   : > { %2133 = vmatpush1.bf16.msra.mxu1 %v3358_v13  ;;  %2093 = vmatprep.subr.bf16.mxu0 %v3363_v14 }
  0xf1   : > { %2134 = vmatprep.subr.bf16.mxu1 %v3366_v15 }
  0xf3   : > { %2094 = vmatpush1.bf16.msra.mxu0 %v3361_v16  ;;  %v2159_v16 = vlaneseq }
  0xf4   : > { %2135 = vmatpush1.bf16.msra.mxu1 %v3364_v17  ;;  %2095 = vmatprep.subr.bf16.mxu0 %v3369_v18 }
  0xf5   : > { %2136 = vmatprep.subr.bf16.mxu1 %v3372_v19  ;;  %v2160_v17 = vshrl.u32 %v2159_v16, 7  ;;  %v2157_v19 = vld [vmem:[%s4417_s2] sm:$0x3] }
  0xf7   : > { %2096 = vmatpush1.bf16.msra.mxu0 %v3367_v20  ;;  %v2161_v18 = vsub.s32 0, %v2160_v17  ;;  %v2165_v20 = vsub.s32 1, %v2160_v17 }
  0xf8   : > { %2137 = vmatpush1.bf16.msra.mxu1 %v3370_v21  ;;  %2097 = vmatprep.subr.bf16.mxu0 %v3375_v22 }
  0xf9   : > { %2138 = vmatprep.subr.bf16.mxu1 %v3378_v23 }
  0xfb   : > { %2098 = vmatpush1.bf16.msra.mxu0 %v3373_v24  ;;  %v2162_v24 = vrot.slane %v2157_v19, %v2161_v18 }
  0xfc   : > { %2139 = vmatpush1.bf16.msra.mxu1 %v3376_v25  ;;  %2099 = vmatprep.subr.bf16.mxu0 %v3381_v26 }
  0xfd   : > { %2140 = vmatprep.subr.bf16.mxu1 %v3384_v27 }
  0xff   : > { %2100 = vmatpush1.bf16.msra.mxu0 %v3379_v28  ;;  %v2166_v28 = vrot.slane %v2157_v19, %v2165_v20 }
 0x100   : > { %2141 = vmatpush1.bf16.msra.mxu1 %v3382_v29  ;;  %2101 = vmatprep.subr.bf16.mxu0 %v3387_v32 }
 0x101   : > { %2142 = vmatprep.subr.bf16.mxu1 %v3390_v33 }
 0x103   : > { %2102 = vmatpush1.bf16.msra.mxu0 %v3385_v36 }
 0x104   : > { %2143 = vmatpush1.bf16.msra.mxu1 %v3388_v37  ;;  %2103 = vmatprep.subr.bf16.mxu0 %v3393_v40 }
 0x105   : > { %2144 = vmatprep.subr.bf16.mxu1 %v3396_v34 }
 0x107   : > { %2104 = vmatpush1.bf16.msra.mxu0 %v3391_v42 }
 0x108   : > { %2145 = vmatpush1.bf16.msra.mxu1 %v3394_v43 }
 0x10a   : > { %2106 = vmatmul.mubr.bf16.vlgmr.msra.gmra.mrb[12].mxu0 %v1727_v44 }
 0x10b   : > { %2147 = vmatmul.mubr.bf16.vlgmr.msra.gmra.mrb[12].mxu1 %v1741_v45 }
 0x11d   : > { %v713_v38 = vpop.f32.mrb[0].mxu0 }
 0x11e   : > { %v754_v39 = vpop.f32.mrb[0].mxu1  ;;  %v715_v47 = vpop.f32.mrb[1].mxu0 }
 0x11f   : > { %v755_v46 = vadd.f32 %v754_v39, %v713_v38  ;;  %v756_v48 = vpop.f32.mrb[1].mxu1  ;;  %v717_v50 = vpop.f32.mrb[2].mxu0 }
 0x120   : > { %v757_v49 = vadd.f32 %v756_v48, %v715_v47  ;;  %v758_v51 = vpop.f32.mrb[2].mxu1  ;;  %v718_v52 = vpop.f32.mrb[3].mxu0 }
 0x121   : > { %v759_v53 = vpop.f32.mrb[3].mxu1 }
 0x15d   : > { %v1119_v54 = vpop.f32.mrb[4].mxu0 }
 0x15e   : > { %v1160_v55 = vpop.f32.mrb[4].mxu1  ;;  %v1120_v56 = vadd.f32 %v1119_v54, %v755_v46  ;;  %v1121_v57 = vpop.f32.mrb[5].mxu0 }
 0x15f   : > { %v1162_v58 = vpop.f32.mrb[5].mxu1  ;;  %v1122_v59 = vadd.f32 %v1121_v57, %v757_v49  ;;  %v1123_v60 = vpop.f32.mrb[6].mxu0 }
 0x160   : > { %v1164_v61 = vpop.f32.mrb[6].mxu1  ;;  %v1161_v62 = vadd.f32 %v1160_v55, %v1120_v56  ;;  %v1124_v63 = vpop.f32.mrb[7].mxu0 }
 0x161   : > { %v1165_v0 = vpop.f32.mrb[7].mxu1  ;;  %v1163_v1 = vadd.f32 %v1162_v58, %v1122_v59 }
 0x19d   : > { %v1606_v4 = vpop.f32.mrb[8].mxu0 }
 0x19e   : > { %v1647_v5 = vpop.f32.mrb[8].mxu1  ;;  %v1608_v7 = vpop.f32.mrb[9].mxu0 }
 0x19f   : > { %v1648_v6 = vadd.f32 %v1647_v5, %v1606_v4  ;;  %v1649_v8 = vpop.f32.mrb[9].mxu1  ;;  %v1610_v10 = vpop.f32.mrb[10].mxu0 }
 0x1a0   : > { %v1650_v9 = vadd.f32 %v1649_v8, %v1608_v7  ;;  %v1651_v11 = vpop.f32.mrb[10].mxu1  ;;  %v1611_v13 = vpop.f32.mrb[11].mxu0 }
 0x1a1   : > { %v1654_v12 = vadd.f32 %v1648_v6, %v1161_v62  ;;  %v1652_v14 = vpop.f32.mrb[11].mxu1 }
 0x1a2   : > { %v1655_v15 = vadd.f32 %v1650_v9, %v1163_v1 }
 0x1dd   : > { %v2107_v21 = vpop.f32.mrb[12].mxu0 }
 0x1de   : > { %v2148_v22 = vpop.f32.mrb[12].mxu1  ;;  %v2109_v25 = vpop.f32.mrb[13].mxu0 }
 0x1df   : > { %v2149_v23 = vadd.f32 %v2148_v22, %v2107_v21  ;;  %v2150_v26 = vpop.f32.mrb[13].mxu1  ;;  %v2111_v29 = vpop.f32.mrb[14].mxu0 }
 0x1e0   : > { %v2151_v27 = vadd.f32 %v2150_v26, %v2109_v25  ;;  %v2152_v32 = vpop.f32.mrb[14].mxu1  ;;  %v2112_v2 = vpop.f32.mrb[15].mxu0 }
 0x1e1   : > { %v2155_v33 = vadd.f32 %v2149_v23, %v1654_v12  ;;  %v2153_v35 = vpop.f32.mrb[15].mxu1 }
 0x1e2   : > { %v2156_v36 = vadd.f32 %v2151_v27, %v1655_v15  ;;  %2191 = sbr.rel (%p2941_p6) target bundleno = 560 (0x230), region = 36 }
 0x1e3   : > { %v2169_v37 = vadd.f32 %v2162_v24, %v2155_v33 }
 0x1e4   : > { %v2170_v40 = vadd.f32 %v2166_v28, %v2156_v36 }
 0x1e6   : > { %v2937_v34 = vpack.c.bf16 %v2170_v40, %v2169_v37 }
 0x1e8   : > { %2940 = vst.sshfl [vmem:[%s2186_s6] sm:$0x33 pattern:$0x76325410] %v2937_v34 }
 0x1ef   : > { %v2956_v30 = vld [vmem:[%s4337_s30] sm:$0xff]   ;;  %v2963_v31 = vld [vmem:[%s4337_s30 + $0x8] sm:$0xff]  }
 0x1f0   : > { %v4344_v3 = vunpack.c.l.bf16 %v2956_v30  ;;  %v4346_v41 = vunpack.c.h.bf16 %v2956_v30  ;;  %v4348_v42 = vunpack.c.l.bf16 %v2963_v31  ;;  %v4350_v43 = vunpack.c.h.bf16 %v2963_v31 }
 0x1f2   : > { %v2204_v44 = vcombine.high %v4344_v3, %v4344_v3  ;;  %v2205_v45 = vcombine.high %v4346_v41, %v4346_v41  ;;  %v2206_v38 = vcombine.high %v4348_v42, %v4348_v42  ;;  %v2207_v39 = vcombine.high %v4350_v43, %v4350_v43 }
 0x1f3   : > { %v2213_v46 = vsel %vm2212_vm0, %v4344_v3, 0.0  ;;  %v2214_v47 = vsel %vm2212_vm0, %v4346_v41, 0.0  ;;  %v2216_v48 = vsel %vm2212_vm0, %v4348_v42, 0.0  ;;  %v2218_v53 = vsel %vm2212_vm0, %v4350_v43, 0.0 }
 0x1f4   : > { %v2215_v49 = vadd.f32 %v2214_v47, %v2213_v46  ;;  %v2220_v50 = vsel %vm2212_vm0, %v2204_v44, 0.0  ;;  %v2221_v51 = vsel %vm2212_vm0, %v2205_v45, 0.0  ;;  %v2223_v52 = vsel %vm2212_vm0, %v2206_v38, 0.0 }
 0x1f5   : > { %v2222_v54 = vadd.f32 %v2221_v51, %v2220_v50  ;;  %v2243_v55 = vmul.f32 %v4344_v3, %v4344_v3  ;;  %v2244_v56 = vmul.f32 %v4346_v41, %v4346_v41  ;;  %v2225_v58 = vsel %vm2212_vm0, %v2207_v39, 0.0 }
 0x1f6   : > { %v2217_v57 = vadd.f32 %v2216_v48, %v2215_v49  ;;  %v2245_v59 = vmul.f32 %v4348_v42, %v4348_v42  ;;  %v2246_v60 = vmul.f32 %v4350_v43, %v4350_v43 }
 0x1f7   : > { %v2224_v61 = vadd.f32 %v2223_v52, %v2222_v54  ;;  %v2251_v62 = vcombine.high %v2243_v55, %v2243_v55  ;;  %v2252_v63 = vcombine.high %v2244_v56, %v2244_v56  ;;  %v2259_v0 = vsel %vm2212_vm0, %v2243_v55, 0.0 }
 0x1f8   : > { %v2219_v1 = vadd.f32 %v2218_v53, %v2217_v57  ;;  %v2253_v4 = vcombine.high %v2245_v59, %v2245_v59  ;;  %v2254_v5 = vcombine.high %v2246_v60, %v2246_v60  ;;  %v2260_v6 = vsel %vm2212_vm0, %v2244_v56, 0.0 }
 0x1f9   : > { %v2226_v7 = vadd.f32 %v2225_v58, %v2224_v61  ;;  %v2261_v8 = vadd.f32 %v2260_v6, %v2259_v0  ;;  %v2262_v9 = vsel %vm2212_vm0, %v2245_v59, 0.0  ;;  %v2264_v10 = vsel %vm2212_vm0, %v2246_v60, 0.0 }
 0x1fa   : > { %v2227_v11 = vsel %vm2212_vm0, %v2219_v1, 0.0  ;;  %v2266_v12 = vsel %vm2212_vm0, %v2251_v62, 0.0  ;;  %v2267_v13 = vsel %vm2212_vm0, %v2252_v63, 0.0  ;;  %v2269_v14 = vsel %vm2212_vm0, %v2253_v4, 0.0 }
 0x1fb   : > { %v2228_v15 = vrot.slane %v2227_v11, 4  ;;  %v2234_v16 = vsel %vm2212_vm0, %v2226_v7, 0.0  ;;  %v2263_v17 = vadd.f32 %v2262_v9, %v2261_v8  ;;  %v2268_v18 = vadd.f32 %v2267_v13, %v2266_v12 }
 0x1fc   : > { %v2235_v19 = vrot.slane %v2234_v16, 4  ;;  %v2271_v20 = vsel %vm2212_vm0, %v2254_v5, 0.0 }
 0x1fd   : > { %v2229_v21 = vadd.f32 %v2228_v15, %v2227_v11  ;;  %v2265_v22 = vadd.f32 %v2264_v10, %v2263_v17  ;;  %v2270_v23 = vadd.f32 %v2269_v14, %v2268_v18 }
 0x1fe   : > { %v2236_v24 = vadd.f32 %v2235_v19, %v2234_v16 }
 0x1ff   : > { %v2230_v25 = vrot.slane %v2229_v21, 2  ;;  %v2272_v26 = vadd.f32 %v2271_v20, %v2270_v23  ;;  %v2273_v27 = vsel %vm2212_vm0, %v2265_v22, 0.0 }
 0x200   : > { %v2237_v28 = vrot.slane %v2236_v24, 2  ;;  %v2274_v29 = vrot.slane %v2273_v27, 4 }
 0x201   : > { %v2231_v32 = vadd.f32 %v2230_v25, %v2229_v21  ;;  %v2280_v33 = vsel %vm2212_vm0, %v2272_v26, 0.0 }
 0x202   : > { %v2238_v2 = vadd.f32 %v2237_v28, %v2236_v24  ;;  %v2275_v35 = vadd.f32 %v2274_v29, %v2273_v27  ;;  %v2281_v36 = vrot.slane %v2280_v33, 4 }
 0x203   : > { %v2232_v37 = vrot.slane %v2231_v32, 1 }
 0x204   : > { %v2239_v40 = vrot.slane %v2238_v2, 1  ;;  %v2276_v34 = vrot.slane %v2275_v35, 2  ;;  %v2282_v30 = vadd.f32 %v2281_v36, %v2280_v33 }
 0x205   : > { %v2233_v31 = vadd.f32 %v2232_v37, %v2231_v32 }
 0x206   : > { %v2240_v44 = vadd.f32 %v2239_v40, %v2238_v2  ;;  %v2277_v45 = vadd.f32 %v2276_v34, %v2275_v35  ;;  %v2283_v38 = vrot.slane %v2282_v30, 2 }
 0x207   : > { %v2241_v39 = vmul.f32 0.0625, %v2233_v31 }
 0x208   : > { %v2242_v46 = vmul.f32 0.0625, %v2240_v44  ;;  %v2278_v47 = vrot.slane %v2277_v45, 1  ;;  %v2284_v48 = vadd.f32 %v2283_v38, %v2282_v30 }
 0x209   : > { %v2289_v51 = vmul.f32 %v2241_v39, %v2241_v39 }
 0x20a   : > { %v2279_v49 = vadd.f32 %v2278_v47, %v2277_v45  ;;  %v2285_v50 = vrot.slane %v2284_v48, 1  ;;  %v2290_v54 = vmul.f32 %v2242_v46, %v2242_v46  ;;  %v2297_v62 = vcombine.low %v2241_v39, %v2242_v46 }
 0x20c   : > { %v2286_v52 = vadd.f32 %v2285_v50, %v2284_v48  ;;  %v2287_v53 = vmul.f32 0.0625, %v2279_v49  ;;  %v2299_v0 = vsub.f32 %v4344_v3, %v2297_v62  ;;  %v2300_v1 = vsub.f32 %v4346_v41, %v2297_v62 }
 0x20d   : > { %v2301_v4 = vsub.f32 %v4348_v42, %v2297_v62  ;;  %v2302_v5 = vsub.f32 %v4350_v43, %v2297_v62 }
 0x20e   : > { %v2288_v55 = vmul.f32 0.0625, %v2286_v52  ;;  %v2291_v56 = vsub.f32 %v2287_v53, %v2289_v51 }
 0x210   : > { %v2292_v57 = vsub.f32 %v2288_v55, %v2290_v54  ;;  %v2293_v58 = vmax.f32 %v2291_v56, 0.0 }
 0x212   : > { %v2294_v59 = vmax.f32 %v2292_v57, 0.0  ;;  %v2303_v60 = vadd.f32 1e-05, %v2293_v58 }
 0x214   : > { %v2304_v61 = vadd.f32 1e-05, %v2294_v59  ;;  %3397 = vrsqrt.f32 %v2303_v60 }
 0x216   : > { %3399 = vrsqrt.f32 %v2304_v61 }
 0x21e   : > { %v3398_v63 = vpop.eup %3397 }
 0x220   : > { %v3400_v6 = vpop.eup %3399 }
 0x221   : > { %v2309_v7 = vcombine.low %v3398_v63, %v3400_v6 }
 0x223   : > { %v2311_v8 = vmul.f32 %v2309_v7, %v2299_v0  ;;  %v2312_v9 = vmul.f32 %v2309_v7, %v2300_v1  ;;  %v2313_v10 = vmul.f32 %v2309_v7, %v2301_v4  ;;  %v2314_v11 = vmul.f32 %v2309_v7, %v2302_v5 }
 0x225   : > { %vm2315_vm1 = vcmp.ge.f32.partialorder %v2311_v8, 0.0  ;;  %v2319_v12 = vmul.f32 0.2, %v2311_v8  ;;  %vm2316_vm2 = vcmp.ge.f32.partialorder %v2312_v9, 0.0  ;;  %v2320_v13 = vmul.f32 0.2, %v2312_v9 }
 0x226   : > { %vm2317_vm3 = vcmp.ge.f32.partialorder %v2313_v10, 0.0  ;;  %v2321_v14 = vmul.f32 0.2, %v2313_v10  ;;  %vm2318_vm4 = vcmp.ge.f32.partialorder %v2314_v11, 0.0  ;;  %v2322_v3 = vmul.f32 0.2, %v2314_v11 }
 0x227   : > { %v2323_v41 = vsel %vm2315_vm1, %v2311_v8, %v2319_v12  ;;  %v2324_v42 = vsel %vm2316_vm2, %v2312_v9, %v2320_v13 }
 0x228   : > { %v2331_v43 = vcombine.high %v2323_v41, %v2323_v41  ;;  %v2332_v15 = vcombine.high %v2324_v42, %v2324_v42  ;;  %v2325_v16 = vsel %vm2317_vm3, %v2313_v10, %v2321_v14  ;;  %v2326_v17 = vsel %vm2318_vm4, %v2314_v11, %v2322_v3 }
 0x229   : > { %v2333_v18 = vcombine.high %v2325_v16, %v2325_v16  ;;  %v2334_v19 = vcombine.high %v2326_v17, %v2326_v17 }
 0x22a   : > { %v2942_v20 = vpack.c.bf16 %v2331_v43, %v2323_v41  ;;  %v2943_v21 = vpack.c.bf16 %v2332_v15, %v2324_v42 }
 0x22b   : > { %v2944_v22 = vpack.c.bf16 %v2333_v18, %v2325_v16  ;;  %v2945_v23 = vpack.c.bf16 %v2334_v19, %v2326_v17 }
 0x22c   : > { %2946 = vst.sshfl [vmem:[%s4337_s30] sm:$0x33 pattern:$0x76325410] %v2942_v20 }
 0x22d   : > { %2947 = vst.sshfl [vmem:[%s4337_s30 + $0x4] sm:$0x33 pattern:$0x76325410] %v2943_v21 }
 0x22e   : > { %2948 = vst.sshfl [vmem:[%s4337_s30 + $0x8] sm:$0x33 pattern:$0x76325410] %v2944_v22 }
 0x22f   : > { %2949 = vst.sshfl [vmem:[%s4337_s30 + $0xc] sm:$0x33 pattern:$0x76325410] %v2945_v23 }
 0x230 PF: > { %s13_s16 = sadd.s32 1, %s3439_s16   ;;  %s4419_s12 = smov %s3431_s14 }
 0x231   : > { %p10_p7 = scmp.ge.s32.totalorder %s13_s16, 10   ;;  %s4420_s13 = smov %s3435_s15 }
 0x232   : > { %s4421_s14 = smov %s4424_s17  ;;  %s4422_s15 = smov %s4428_s18 }
 0x233   :  { %12 = sbr.rel (!%p10_p7) target bundleno = 3 (0x3), region = 72 }

// kernel: dis_forward.9
= control target key start
LH: loop header
LB: loop body
LE: loop exit
PB: predicated region body
PF: predicated region fallthrough
CT: control target
= control target key end

     0   :  { %vm40_vm0 = vcmask 1041408   ;;  %v123_v4 = vlaneseq  ;;  %vm183_vm1 = vcmask 1042433   ;;  %vm351_vm2 = vcmask 1043458   ;;  %s4058_s0 = inlined_call_operand.vmem [shape: bf16[2,5,5,512], index: 0, kind: input, shape index: {}]   ;;  %s4059_s2 = inlined_call_operand.<no memory space> [shape: f32[1,1], index: 2, kind: input, shape index: {}]   ;;  %s4060_s1 = inlined_call_operand.vmem [shape: f32[16,512], index: 1, kind: input, shape index: {}]   ;;  %s4061_s3 = inlined_call_operand.vmem [shape: f32[2,1], index: 3, kind: output, shape index: {}]  }
   0x1   :  { %v8_v0 = vstv %s4059_s2  ;;  %v16_v1 = vld [vmem:[%s4058_s0] sm:$0x11]  ;;  %v17_v2 = vld [vmem:[%s4058_s0 + $0x8] sm:$0x11]  ;;  %v18_v3 = vld [vmem:[%s4058_s0 + $0x10] sm:$0x11] }
   0x2   :  { %9 = vst [vmem:[#allocation2] sm:$0x1] %v8_v0  ;;  %v19_v5 = vld [vmem:[%s4058_s0 + $0x18] sm:$0x11]  ;;  %v20_v6 = vld [vmem:[%s4058_s0 + $0x50] sm:$0x11]  ;;  %v24_v8 = vunpack.c.l.bf16 %v16_v1  ;;  %v25_v9 = vunpack.c.h.bf16 %v16_v1  ;;  %v26_v10 = vunpack.c.l.bf16 %v17_v2  ;;  %v27_v11 = vunpack.c.h.bf16 %v17_v2 }
   0x3   :  { %v21_v7 = vld [vmem:[%s4058_s0 + $0x58] sm:$0x11]  ;;  %v22_v12 = vld [vmem:[%s4058_s0 + $0x60] sm:$0x11]  ;;  %v23_v13 = vld [vmem:[%s4058_s0 + $0x68] sm:$0x11]  ;;  %v28_v14 = vunpack.c.l.bf16 %v18_v3  ;;  %v29_v15 = vunpack.c.h.bf16 %v18_v3  ;;  %v30_v16 = vunpack.c.l.bf16 %v19_v5  ;;  %v31_v17 = vunpack.c.h.bf16 %v19_v5 }
   0x4   :  { %v32_v18 = vunpack.c.l.bf16 %v20_v6  ;;  %v33_v19 = vunpack.c.h.bf16 %v20_v6  ;;  %v34_v20 = vunpack.c.l.bf16 %v21_v7  ;;  %v35_v21 = vunpack.c.h.bf16 %v21_v7 }
   0x5   :  { %v36_v22 = vunpack.c.l.bf16 %v22_v12  ;;  %v37_v23 = vunpack.c.h.bf16 %v22_v12  ;;  %v38_v24 = vunpack.c.l.bf16 %v23_v13  ;;  %v39_v25 = vunpack.c.h.bf16 %v23_v13 }
   0x6   :  { %v41_v26 = vsel %vm40_vm0, %v24_v8, 0.0  ;;  %v42_v27 = vsel %vm40_vm0, %v28_v14, 0.0  ;;  %v44_v28 = vsel %vm40_vm0, %v25_v9, 0.0  ;;  %v45_v29 = vsel %vm40_vm0, %v29_v15, 0.0 }
   0x7   :  { %v43_v30 = vadd.f32 %v42_v27, %v41_v26  ;;  %v46_v31 = vadd.f32 %v45_v29, %v44_v28  ;;  %v47_v32 = vsel %vm40_vm0, %v26_v10, 0.0  ;;  %v48_v33 = vsel %vm40_vm0, %v30_v16, 0.0 }
   0x8   :  { %v49_v34 = vadd.f32 %v48_v33, %v47_v32  ;;  %v50_v35 = vsel %vm40_vm0, %v27_v11, 0.0  ;;  %v51_v36 = vsel %vm40_vm0, %v31_v17, 0.0  ;;  %v53_v37 = vsel %vm40_vm0, %v32_v18, 0.0 }
   0x9   :  { %v52_v38 = vadd.f32 %v51_v36, %v50_v35  ;;  %v54_v39 = vsel %vm40_vm0, %v36_v22, 0.0  ;;  %v56_v40 = vsel %vm40_vm0, %v33_v19, 0.0  ;;  %v57_v41 = vsel %vm40_vm0, %v37_v23, 0.0 }
   0xa   :  { %v55_v42 = vadd.f32 %v54_v39, %v53_v37  ;;  %v58_v43 = vadd.f32 %v57_v41, %v56_v40  ;;  %v59_v44 = vsel %vm40_vm0, %v34_v20, 0.0  ;;  %v60_v45 = vsel %vm40_vm0, %v38_v24, 0.0  ;;  %v160_v40 = vld [vmem:[%s4058_s0 + $0x8] sm:$0x33] }
   0xb   :  { %v61_v46 = vadd.f32 %v60_v45, %v59_v44  ;;  %v62_v47 = vsel %vm40_vm0, %v35_v21, 0.0  ;;  %v63_v48 = vsel %vm40_vm0, %v39_v25, 0.0  ;;  %v65_v49 = vsel %vm40_vm0, %v43_v30, 0.0  ;;  %v161_v44 = vld [vmem:[%s4058_s0 + $0x10] sm:$0x33] }
   0xc   :  { %v64_v50 = vadd.f32 %v63_v48, %v62_v47  ;;  %v66_v51 = vrot.slane %v65_v49, 4  ;;  %v72_v52 = vsel %vm40_vm0, %v46_v31, 0.0  ;;  %v79_v53 = vsel %vm40_vm0, %v49_v34, 0.0  ;;  %v159_v31 = vld [vmem:[%s4058_s0] sm:$0x33] }
   0xd   :  { %v73_v54 = vrot.slane %v72_v52, 4  ;;  %v80_v55 = vrot.slane %v79_v53, 4  ;;  %v86_v56 = vsel %vm40_vm0, %v52_v38, 0.0  ;;  %v93_v57 = vsel %vm40_vm0, %v55_v42, 0.0 }
   0xe   :  { %v67_v58 = vadd.f32 %v66_v51, %v65_v49  ;;  %v87_v59 = vrot.slane %v86_v56, 4  ;;  %v94_v60 = vrot.slane %v93_v57, 4  ;;  %v100_v61 = vsel %vm40_vm0, %v58_v43, 0.0  ;;  %v121_v43 = vld [vmem:[%s4060_s1] ss:$8 sm:$0xf] }
   0xf   :  { %v74_v62 = vadd.f32 %v73_v54, %v72_v52  ;;  %v81_v63 = vadd.f32 %v80_v55, %v79_v53  ;;  %v101_v0 = vrot.slane %v100_v61, 4  ;;  %v107_v1 = vsel %vm40_vm0, %v61_v46, 0.0 }
  0x10   :  { %v68_v2 = vrot.slane %v67_v58, 2  ;;  %v88_v3 = vadd.f32 %v87_v59, %v86_v56  ;;  %v95_v5 = vadd.f32 %v94_v60, %v93_v57  ;;  %v108_v6 = vrot.slane %v107_v1, 4 }
  0x11   :  { %v75_v7 = vrot.slane %v74_v62, 2  ;;  %v82_v8 = vrot.slane %v81_v63, 2  ;;  %v102_v9 = vadd.f32 %v101_v0, %v100_v61  ;;  %v114_v10 = vsel %vm40_vm0, %v64_v50, 0.0  ;;  %v162_v50 = vld [vmem:[%s4058_s0 + $0x18] sm:$0x33] }
  0x12   :  { %v69_v11 = vadd.f32 %v68_v2, %v67_v58  ;;  %v89_v12 = vrot.slane %v88_v3, 2  ;;  %v96_v13 = vrot.slane %v95_v5, 2  ;;  %v109_v14 = vadd.f32 %v108_v6, %v107_v1  ;;  %v163_v61 = vld [vmem:[%s4058_s0 + $0x50] sm:$0x33]  ;;  %v165_v6 = vld [vmem:[%s4058_s0 + $0x60] sm:$0x33] }
  0x13   :  { %v76_v15 = vadd.f32 %v75_v7, %v74_v62  ;;  %v83_v16 = vadd.f32 %v82_v8, %v81_v63  ;;  %v103_v17 = vrot.slane %v102_v9, 2  ;;  %v115_v18 = vrot.slane %v114_v10, 4  ;;  %v164_v62 = vld [vmem:[%s4058_s0 + $0x58] sm:$0x33]  ;;  %v166_v7 = vld [vmem:[%s4058_s0 + $0x68] sm:$0x33] }
  0x14   :  { %v70_v19 = vrot.slane %v69_v11, 1  ;;  %v90_v20 = vadd.f32 %v89_v12, %v88_v3  ;;  %v97_v21 = vadd.f32 %v96_v13, %v95_v5  ;;  %v110_v22 = vrot.slane %v109_v14, 2 }
  0x15   :  { %v77_v23 = vrot.slane %v76_v15, 1  ;;  %v84_v24 = vrot.slane %v83_v16, 1  ;;  %v104_v25 = vadd.f32 %v103_v17, %v102_v9  ;;  %v116_v26 = vadd.f32 %v115_v18, %v114_v10 }
  0x16   :  { %v71_v27 = vadd.f32 %v70_v19, %v69_v11  ;;  %v91_v28 = vrot.slane %v90_v20, 1  ;;  %v98_v29 = vrot.slane %v97_v21, 1  ;;  %v111_v30 = vadd.f32 %v110_v22, %v109_v14 }
  0x17   :  { %v78_v32 = vadd.f32 %v77_v23, %v76_v15  ;;  %v85_v33 = vadd.f32 %v84_v24, %v83_v16  ;;  %v105_v34 = vrot.slane %v104_v25, 1  ;;  %v117_v35 = vrot.slane %v116_v26, 2 }
  0x18   :  { %v92_v36 = vadd.f32 %v91_v28, %v90_v20  ;;  %v99_v37 = vadd.f32 %v98_v29, %v97_v21  ;;  %v112_v38 = vrot.slane %v111_v30, 1  ;;  %v124_v39 = vshrl.u32 %v123_v4, 7 }
  0x19   :  { %v106_v41 = vadd.f32 %v105_v34, %v104_v25  ;;  %v118_v42 = vadd.f32 %v117_v35, %v116_v26  ;;  %v167_v45 = vunpack.c.l.bf16 %v159_v31  ;;  %v168_v46 = vunpack.c.h.bf16 %v159_v31 }
  0x1a   :  { %v113_v47 = vadd.f32 %v112_v38, %v111_v30  ;;  %v2849_v48 = vsub.s32 0, %v124_v39  ;;  %v2851_v4 = vsub.s32 1, %v124_v39  ;;  %v2853_v49 = vsub.s32 2, %v124_v39 }
  0x1b   :  { %v119_v51 = vrot.slane %v118_v42, 1  ;;  %v2858_v52 = vsub.s32 3, %v124_v39  ;;  %v169_v53 = vunpack.c.l.bf16 %v160_v40  ;;  %v170_v54 = vunpack.c.h.bf16 %v160_v40 }
  0x1c   :  { %v126_v55 = vrot.slane %v121_v43, %v2849_v48  ;;  %v130_v56 = vrot.slane %v121_v43, %v2851_v4  ;;  %v134_v57 = vrot.slane %v121_v43, %v2853_v49  ;;  %v171_v58 = vunpack.c.l.bf16 %v161_v44 }
  0x1d   :  { %v120_v59 = vadd.f32 %v119_v51, %v118_v42  ;;  %v138_v60 = vrot.slane %v121_v43, %v2858_v52  ;;  %v172_v63 = vunpack.c.h.bf16 %v161_v44  ;;  %v173_v0 = vunpack.c.l.bf16 %v162_v50 }
  0x1e   :  { %v2870_v1 = vmul.f32 %v126_v55, %v71_v27  ;;  %v2872_v2 = vmul.f32 %v130_v56, %v78_v32  ;;  %v2874_v3 = vmul.f32 %v134_v57, %v85_v33  ;;  %v2876_v5 = vmul.f32 %v126_v55, %v99_v37 }
  0x1f   :  { %v2884_v8 = vmul.f32 %v138_v60, %v92_v36  ;;  %v2886_v9 = vmul.f32 %v130_v56, %v106_v41  ;;  %v2888_v10 = vmul.f32 %v134_v57, %v113_v47  ;;  %v2890_v11 = vmul.f32 %v138_v60, %v120_v59 }
  0x20   :  { %v174_v12 = vunpack.c.h.bf16 %v162_v50  ;;  %v175_v13 = vunpack.c.l.bf16 %v163_v61  ;;  %v176_v14 = vunpack.c.h.bf16 %v163_v61  ;;  %v177_v15 = vunpack.c.l.bf16 %v164_v62 }
  0x21   :  { %v178_v16 = vunpack.c.h.bf16 %v164_v62  ;;  %v179_v17 = vunpack.c.l.bf16 %v165_v6  ;;  %v180_v18 = vunpack.c.h.bf16 %v165_v6  ;;  %v181_v19 = vunpack.c.l.bf16 %v166_v7 }
  0x22   :  { %v182_v20 = vunpack.c.h.bf16 %v166_v7  ;;  %v184_v21 = vsel %vm183_vm1, %v167_v45, 0.0  ;;  %v185_v22 = vsel %vm183_vm1, %v171_v58, 0.0  ;;  %v187_v23 = vsel %vm183_vm1, %v168_v46, 0.0 }
  0x23   :  { %v186_v24 = vadd.f32 %v185_v22, %v184_v21  ;;  %v188_v25 = vsel %vm183_vm1, %v172_v63, 0.0  ;;  %v190_v26 = vsel %vm183_vm1, %v169_v53, 0.0  ;;  %v191_v27 = vsel %vm183_vm1, %v173_v0, 0.0 }
  0x24   :  { %v189_v28 = vadd.f32 %v188_v25, %v187_v23  ;;  %v192_v29 = vadd.f32 %v191_v27, %v190_v26  ;;  %v193_v30 = vsel %vm183_vm1, %v170_v54, 0.0  ;;  %v194_v31 = vsel %vm183_vm1, %v174_v12, 0.0 }
  0x25   :  { %v195_v32 = vadd.f32 %v194_v31, %v193_v30  ;;  %v196_v33 = vsel %vm183_vm1, %v175_v13, 0.0  ;;  %v197_v34 = vsel %vm183_vm1, %v179_v17, 0.0  ;;  %v199_v35 = vsel %vm183_vm1, %v176_v14, 0.0 }
  0x26   :  { %v198_v36 = vadd.f32 %v197_v34, %v196_v33  ;;  %v200_v37 = vsel %vm183_vm1, %v180_v18, 0.0  ;;  %v202_v38 = vsel %vm183_vm1, %v177_v15, 0.0  ;;  %v203_v39 = vsel %vm183_vm1, %v181_v19, 0.0 }
  0x27   :  { %v201_v40 = vadd.f32 %v200_v37, %v199_v35  ;;  %v204_v41 = vadd.f32 %v203_v39, %v202_v38  ;;  %v205_v42 = vsel %vm183_vm1, %v178_v16, 0.0  ;;  %v206_v43 = vsel %vm183_vm1, %v182_v20, 0.0 }
  0x28   :  { %v207_v44 = vadd.f32 %v206_v43, %v205_v42  ;;  %v216_v45 = vrot.slane %v186_v24, 1  ;;  %v217_v46 = vrot.slane %v189_v28, 1  ;;  %v218_v47 = vrot.slane %v192_v29, 1 }
  0x29   :  { %v219_v50 = vrot.slane %v195_v32, 1  ;;  %v220_v51 = vrot.slane %v198_v36, 1  ;;  %v221_v53 = vrot.slane %v201_v40, 1  ;;  %v222_v54 = vrot.slane %v204_v41, 1 }
  0x2a   :  { %v223_v55 = vrot.slane %v207_v44, 1  ;;  %v232_v56 = vsel %vm40_vm0, %v216_v45, 0.0  ;;  %v239_v57 = vsel %vm40_vm0, %v217_v46, 0.0  ;;  %v246_v58 = vsel %vm40_vm0, %v218_v47, 0.0 }
  0x2b   :  { %v233_v59 = vrot.slane %v232_v56, 4  ;;  %v240_v60 = vrot.slane %v239_v57, 4  ;;  %v247_v61 = vrot.slane %v246_v58, 4  ;;  %v253_v62 = vsel %vm40_vm0, %v219_v50, 0.0 }
  0x2c   :  { %v254_v63 = vrot.slane %v253_v62, 4  ;;  %v260_v0 = vsel %vm40_vm0, %v220_v51, 0.0  ;;  %v267_v6 = vsel %vm40_vm0, %v221_v53, 0.0  ;;  %v274_v7 = vsel %vm40_vm0, %v222_v54, 0.0 }
  0x2d   :  { %v234_v12 = vadd.f32 %v233_v59, %v232_v56  ;;  %v241_v13 = vadd.f32 %v240_v60, %v239_v57  ;;  %v248_v14 = vadd.f32 %v247_v61, %v246_v58  ;;  %v261_v15 = vrot.slane %v260_v0, 4  ;;  %v2649_v44 = vld [vmem:[%s4060_s1 + $0x1] ss:$8 sm:$0xf] }
  0x2e   :  { %v255_v16 = vadd.f32 %v254_v63, %v253_v62  ;;  %v268_v17 = vrot.slane %v267_v6, 4  ;;  %v275_v18 = vrot.slane %v274_v7, 4  ;;  %v281_v19 = vsel %vm40_vm0, %v223_v55, 0.0 }
  0x2f   :  { %v235_v20 = vrot.slane %v234_v12, 2  ;;  %v242_v21 = vrot.slane %v241_v13, 2  ;;  %v249_v22 = vrot.slane %v248_v14, 2  ;;  %v262_v23 = vadd.f32 %v261_v15, %v260_v0 }
  0x30   :  { %v256_v24 = vrot.slane %v255_v16, 2  ;;  %v269_v25 = vadd.f32 %v268_v17, %v267_v6  ;;  %v276_v26 = vadd.f32 %v275_v18, %v274_v7  ;;  %v282_v27 = vrot.slane %v281_v19, 4  ;;  %v327_v17 = vld [vmem:[%s4058_s0] sm:$0x22]  ;;  %v328_v18 = vld [vmem:[%s4058_s0 + $0x8] sm:$0x22] }
  0x31   :  { %v236_v28 = vadd.f32 %v235_v20, %v234_v12  ;;  %v243_v29 = vadd.f32 %v242_v21, %v241_v13  ;;  %v250_v30 = vadd.f32 %v249_v22, %v248_v14  ;;  %v263_v31 = vrot.slane %v262_v23, 2 }
  0x32   :  { %v257_v32 = vadd.f32 %v256_v24, %v255_v16  ;;  %v270_v33 = vrot.slane %v269_v25, 2  ;;  %v277_v34 = vrot.slane %v276_v26, 2  ;;  %v283_v35 = vadd.f32 %v282_v27, %v281_v19  ;;  %v330_v24 = vld [vmem:[%s4058_s0 + $0x18] sm:$0x22]  ;;  %v333_v27 = vld [vmem:[%s4058_s0 + $0x60] sm:$0x22] }
  0x33   :  { %v237_v36 = vrot.slane %v236_v28, 1  ;;  %v244_v37 = vrot.slane %v243_v29, 1  ;;  %v251_v38 = vrot.slane %v250_v30, 1  ;;  %v264_v39 = vadd.f32 %v263_v31, %v262_v23  ;;  %v329_v23 = vld [vmem:[%s4058_s0 + $0x10] sm:$0x22] }
  0x34   :  { %v258_v40 = vrot.slane %v257_v32, 1  ;;  %v271_v41 = vadd.f32 %v270_v33, %v269_v25  ;;  %v278_v42 = vadd.f32 %v277_v34, %v276_v26  ;;  %v284_v43 = vrot.slane %v283_v35, 2  ;;  %v332_v26 = vld [vmem:[%s4058_s0 + $0x58] sm:$0x22] }
  0x35   :  { %v238_v45 = vadd.f32 %v237_v36, %v236_v28  ;;  %v245_v46 = vadd.f32 %v244_v37, %v243_v29  ;;  %v252_v47 = vadd.f32 %v251_v38, %v250_v30  ;;  %v265_v50 = vrot.slane %v264_v39, 1 }
  0x36   :  { %v259_v51 = vadd.f32 %v258_v40, %v257_v32  ;;  %v272_v53 = vrot.slane %v271_v41, 1  ;;  %v279_v54 = vrot.slane %v278_v42, 1  ;;  %v285_v55 = vadd.f32 %v284_v43, %v283_v35 }
  0x37   :  { %v266_v56 = vadd.f32 %v265_v50, %v264_v39  ;;  %v294_v57 = vrot.slane %v2649_v44, %v2849_v48  ;;  %v298_v58 = vrot.slane %v2649_v44, %v2851_v4  ;;  %v302_v59 = vrot.slane %v2649_v44, %v2853_v49 }
  0x38   :  { %v273_v60 = vadd.f32 %v272_v53, %v271_v41  ;;  %v280_v61 = vadd.f32 %v279_v54, %v278_v42  ;;  %v286_v62 = vrot.slane %v285_v55, 1  ;;  %v306_v63 = vrot.slane %v2649_v44, %v2858_v52 }
  0x39   :  { %v311_v0 = vmul.f32 %v294_v57, %v238_v45  ;;  %v312_v6 = vmul.f32 %v298_v58, %v245_v46  ;;  %v313_v7 = vmul.f32 %v302_v59, %v252_v47  ;;  %v315_v12 = vmul.f32 %v294_v57, %v266_v56 }
  0x3a   :  { %v287_v13 = vadd.f32 %v286_v62, %v285_v55  ;;  %v314_v14 = vmul.f32 %v306_v63, %v259_v51  ;;  %v316_v15 = vmul.f32 %v298_v58, %v273_v60  ;;  %v317_v16 = vmul.f32 %v302_v59, %v280_v61 }
  0x3b   :  { %v2930_v19 = vadd.f32 %v311_v0, %v2870_v1  ;;  %v2933_v20 = vadd.f32 %v312_v6, %v2872_v2  ;;  %v2936_v21 = vadd.f32 %v313_v7, %v2874_v3  ;;  %v2939_v22 = vadd.f32 %v315_v12, %v2876_v5  ;;  %v331_v5 = vld [vmem:[%s4058_s0 + $0x50] sm:$0x22] }
  0x3c   :  { %v318_v25 = vmul.f32 %v306_v63, %v287_v13  ;;  %v2948_v1 = vadd.f32 %v314_v14, %v2884_v8  ;;  %v2951_v2 = vadd.f32 %v316_v15, %v2886_v9  ;;  %v2954_v3 = vadd.f32 %v317_v16, %v2888_v10  ;;  %v334_v8 = vld [vmem:[%s4058_s0 + $0x68] sm:$0x22] }
  0x3d   :  { %v335_v9 = vunpack.c.l.bf16 %v327_v17  ;;  %v336_v28 = vunpack.c.h.bf16 %v327_v17  ;;  %v337_v10 = vunpack.c.l.bf16 %v328_v18  ;;  %v338_v29 = vunpack.c.h.bf16 %v328_v18 }
  0x3e   :  { %v2969_v30 = vadd.f32 %v318_v25, %v2890_v11  ;;  %v339_v31 = vunpack.c.l.bf16 %v329_v23  ;;  %v340_v32 = vunpack.c.h.bf16 %v329_v23  ;;  %v341_v33 = vunpack.c.l.bf16 %v330_v24 }
  0x3f   :  { %v342_v34 = vunpack.c.h.bf16 %v330_v24  ;;  %v343_v35 = vunpack.c.l.bf16 %v331_v5  ;;  %v344_v36 = vunpack.c.h.bf16 %v331_v5  ;;  %v345_v37 = vunpack.c.l.bf16 %v332_v26 }
  0x40   :  { %v346_v38 = vunpack.c.h.bf16 %v332_v26  ;;  %v347_v39 = vunpack.c.l.bf16 %v333_v27  ;;  %v348_v40 = vunpack.c.h.bf16 %v333_v27  ;;  %v349_v41 = vunpack.c.l.bf16 %v334_v8 }
  0x41   :  { %v350_v42 = vunpack.c.h.bf16 %v334_v8  ;;  %v352_v43 = vsel %vm351_vm2, %v335_v9, 0.0  ;;  %v353_v44 = vsel %vm351_vm2, %v339_v31, 0.0  ;;  %v355_v45 = vsel %vm351_vm2, %v336_v28, 0.0 }
  0x42   :  { %v354_v11 = vadd.f32 %v353_v44, %v352_v43  ;;  %v356_v46 = vsel %vm351_vm2, %v340_v32, 0.0  ;;  %v358_v47 = vsel %vm351_vm2, %v337_v10, 0.0  ;;  %v359_v50 = vsel %vm351_vm2, %v341_v33, 0.0 }
  0x43   :  { %v357_v51 = vadd.f32 %v356_v46, %v355_v45  ;;  %v360_v53 = vadd.f32 %v359_v50, %v358_v47  ;;  %v361_v54 = vsel %vm351_vm2, %v338_v29, 0.0  ;;  %v362_v55 = vsel %vm351_vm2, %v342_v34, 0.0 }
  0x44   :  { %v363_v56 = vadd.f32 %v362_v55, %v361_v54  ;;  %v364_v57 = vsel %vm351_vm2, %v343_v35, 0.0  ;;  %v365_v58 = vsel %vm351_vm2, %v347_v39, 0.0  ;;  %v367_v59 = vsel %vm351_vm2, %v344_v36, 0.0 }
  0x45   :  { %v366_v60 = vadd.f32 %v365_v58, %v364_v57  ;;  %v368_v61 = vsel %vm351_vm2, %v348_v40, 0.0  ;;  %v370_v62 = vsel %vm351_vm2, %v345_v37, 0.0  ;;  %v371_v63 = vsel %vm351_vm2, %v349_v41, 0.0 }
  0x46   :  { %v369_v0 = vadd.f32 %v368_v61, %v367_v59  ;;  %v372_v6 = vadd.f32 %v371_v63, %v370_v62  ;;  %v373_v7 = vsel %vm351_vm2, %v346_v38, 0.0  ;;  %v374_v12 = vsel %vm351_vm2, %v350_v42, 0.0 }
  0x47   :  { %v375_v13 = vadd.f32 %v374_v12, %v373_v7  ;;  %v384_v14 = vrot.slane %v354_v11, 2  ;;  %v385_v15 = vrot.slane %v357_v51, 2  ;;  %v386_v16 = vrot.slane %v360_v53, 2 }
  0x48   :  { %v387_v17 = vrot.slane %v363_v56, 2  ;;  %v388_v18 = vrot.slane %v366_v60, 2  ;;  %v389_v23 = vrot.slane %v369_v0, 2  ;;  %v390_v24 = vrot.slane %v372_v6, 2 }
  0x49   :  { %v391_v25 = vrot.slane %v375_v13, 2  ;;  %v400_v5 = vsel %vm40_vm0, %v384_v14, 0.0  ;;  %v407_v26 = vsel %vm40_vm0, %v385_v15, 0.0  ;;  %v414_v27 = vsel %vm40_vm0, %v386_v16, 0.0 }
  0x4a   :  { %v401_v8 = vrot.slane %v400_v5, 4  ;;  %v408_v9 = vrot.slane %v407_v26, 4  ;;  %v415_v28 = vrot.slane %v414_v27, 4  ;;  %v421_v10 = vsel %vm40_vm0, %v387_v17, 0.0 }
  0x4b   :  { %v422_v29 = vrot.slane %v421_v10, 4  ;;  %v428_v31 = vsel %vm40_vm0, %v388_v18, 0.0  ;;  %v435_v32 = vsel %vm40_vm0, %v389_v23, 0.0  ;;  %v442_v33 = vsel %vm40_vm0, %v390_v24, 0.0 }
  0x4c   :  { %v402_v34 = vadd.f32 %v401_v8, %v400_v5  ;;  %v409_v35 = vadd.f32 %v408_v9, %v407_v26  ;;  %v416_v36 = vadd.f32 %v415_v28, %v414_v27  ;;  %v429_v37 = vrot.slane %v428_v31, 4  ;;  %v2650_v13 = vld [vmem:[%s4060_s1 + $0x2] ss:$8 sm:$0xf] }
  0x4d   :  { %v423_v38 = vadd.f32 %v422_v29, %v421_v10  ;;  %v436_v39 = vrot.slane %v435_v32, 4  ;;  %v443_v40 = vrot.slane %v442_v33, 4  ;;  %v449_v41 = vsel %vm40_vm0, %v391_v25, 0.0 }
  0x4e   :  { %v403_v42 = vrot.slane %v402_v34, 2  ;;  %v410_v43 = vrot.slane %v409_v35, 2  ;;  %v417_v44 = vrot.slane %v416_v36, 2  ;;  %v430_v45 = vadd.f32 %v429_v37, %v428_v31 }
  0x4f   :  { %v424_v11 = vrot.slane %v423_v38, 2  ;;  %v437_v46 = vadd.f32 %v436_v39, %v435_v32  ;;  %v444_v47 = vadd.f32 %v443_v40, %v442_v33  ;;  %v450_v50 = vrot.slane %v449_v41, 4  ;;  %v495_v39 = vld [vmem:[%s4058_s0] sm:$0x66]  ;;  %v496_v40 = vld [vmem:[%s4058_s0 + $0x8] sm:$0x66] }
  0x50   :  { %v404_v51 = vadd.f32 %v403_v42, %v402_v34  ;;  %v411_v53 = vadd.f32 %v410_v43, %v409_v35  ;;  %v418_v54 = vadd.f32 %v417_v44, %v416_v36  ;;  %v431_v55 = vrot.slane %v430_v45, 2 }
  0x51   :  { %v425_v56 = vadd.f32 %v424_v11, %v423_v38  ;;  %v438_v57 = vrot.slane %v437_v46, 2  ;;  %v445_v58 = vrot.slane %v444_v47, 2  ;;  %v451_v59 = vadd.f32 %v450_v50, %v449_v41  ;;  %v498_v11 = vld [vmem:[%s4058_s0 + $0x18] sm:$0x66]  ;;  %v501_v50 = vld [vmem:[%s4058_s0 + $0x60] sm:$0x66] }
  0x52   :  { %v405_v60 = vrot.slane %v404_v51, 1  ;;  %v412_v61 = vrot.slane %v411_v53, 1  ;;  %v419_v62 = vrot.slane %v418_v54, 1  ;;  %v432_v63 = vadd.f32 %v431_v55, %v430_v45  ;;  %v497_v45 = vld [vmem:[%s4058_s0 + $0x10] sm:$0x66] }
  0x53   :  { %v426_v0 = vrot.slane %v425_v56, 1  ;;  %v439_v6 = vadd.f32 %v438_v57, %v437_v46  ;;  %v446_v7 = vadd.f32 %v445_v58, %v444_v47  ;;  %v452_v12 = vrot.slane %v451_v59, 2  ;;  %v500_v47 = vld [vmem:[%s4058_s0 + $0x58] sm:$0x66] }
  0x54   :  { %v406_v14 = vadd.f32 %v405_v60, %v404_v51  ;;  %v413_v15 = vadd.f32 %v412_v61, %v411_v53  ;;  %v420_v16 = vadd.f32 %v419_v62, %v418_v54  ;;  %v433_v17 = vrot.slane %v432_v63, 1  ;;  %v3053_v58 = vld [vmem:[%s4060_s1 + $0x3] ss:$8 sm:$0xf] }
  0x55   :  { %v427_v18 = vadd.f32 %v426_v0, %v425_v56  ;;  %v440_v23 = vrot.slane %v439_v6, 1  ;;  %v447_v24 = vrot.slane %v446_v7, 1  ;;  %v453_v25 = vadd.f32 %v452_v12, %v451_v59 }
  0x56   :  { %v434_v5 = vadd.f32 %v433_v17, %v432_v63  ;;  %v462_v26 = vrot.slane %v2650_v13, %v2849_v48  ;;  %v466_v27 = vrot.slane %v2650_v13, %v2851_v4  ;;  %v470_v8 = vrot.slane %v2650_v13, %v2853_v49 }
  0x57   :  { %v441_v9 = vadd.f32 %v440_v23, %v439_v6  ;;  %v448_v28 = vadd.f32 %v447_v24, %v446_v7  ;;  %v454_v10 = vrot.slane %v453_v25, 1  ;;  %v474_v29 = vrot.slane %v2650_v13, %v2858_v52 }
  0x58   :  { %v479_v31 = vmul.f32 %v462_v26, %v406_v14  ;;  %v480_v32 = vmul.f32 %v466_v27, %v413_v15  ;;  %v481_v33 = vmul.f32 %v470_v8, %v420_v16  ;;  %v483_v34 = vmul.f32 %v462_v26, %v434_v5 }
  0x59   :  { %v455_v35 = vadd.f32 %v454_v10, %v453_v25  ;;  %v482_v36 = vmul.f32 %v474_v29, %v427_v18  ;;  %v484_v37 = vmul.f32 %v466_v27, %v441_v9  ;;  %v485_v38 = vmul.f32 %v470_v8, %v448_v28 }
  0x5a   :  { %v3009_v41 = vadd.f32 %v479_v31, %v2930_v19  ;;  %v3012_v42 = vadd.f32 %v480_v32, %v2933_v20  ;;  %v3015_v43 = vadd.f32 %v481_v33, %v2936_v21  ;;  %v3018_v44 = vadd.f32 %v483_v34, %v2939_v22  ;;  %v499_v22 = vld [vmem:[%s4058_s0 + $0x50] sm:$0x66] }
  0x5b   :  { %v486_v46 = vmul.f32 %v474_v29, %v455_v35  ;;  %v3027_v19 = vadd.f32 %v482_v36, %v2948_v1  ;;  %v3030_v20 = vadd.f32 %v484_v37, %v2951_v2  ;;  %v3033_v21 = vadd.f32 %v485_v38, %v2954_v3  ;;  %v502_v1 = vld [vmem:[%s4058_s0 + $0x68] sm:$0x66] }
  0x5c   :  { %v503_v2 = vunpack.c.l.bf16 %v495_v39  ;;  %v504_v51 = vunpack.c.h.bf16 %v495_v39  ;;  %v505_v3 = vunpack.c.l.bf16 %v496_v40  ;;  %v506_v53 = vunpack.c.h.bf16 %v496_v40 }
  0x5d   :  { %v3048_v54 = vadd.f32 %v486_v46, %v2969_v30  ;;  %v507_v55 = vunpack.c.l.bf16 %v497_v45  ;;  %v508_v56 = vunpack.c.h.bf16 %v497_v45  ;;  %v509_v57 = vunpack.c.l.bf16 %v498_v11 }
  0x5e   :  { %v510_v59 = vunpack.c.h.bf16 %v498_v11  ;;  %v511_v60 = vunpack.c.l.bf16 %v499_v22  ;;  %v512_v61 = vunpack.c.h.bf16 %v499_v22  ;;  %v513_v62 = vunpack.c.l.bf16 %v500_v47 }
  0x5f   :  { %v514_v63 = vunpack.c.h.bf16 %v500_v47  ;;  %v515_v0 = vunpack.c.l.bf16 %v501_v50  ;;  %v516_v6 = vunpack.c.h.bf16 %v501_v50  ;;  %v517_v7 = vunpack.c.l.bf16 %v502_v1 }
  0x60   :  { %v518_v12 = vunpack.c.h.bf16 %v502_v1  ;;  %vm519_vm3 = vcmask 1044483   ;;  %v3057_v30 = vrot.slane %v3053_v58, %v2849_v48  ;;  %v3061_v13 = vrot.slane %v3053_v58, %v2851_v4 }
  0x61   :  { %v520_v14 = vsel %vm519_vm3, %v503_v2, 0.0  ;;  %v521_v15 = vsel %vm519_vm3, %v507_v55, 0.0  ;;  %v523_v16 = vsel %vm519_vm3, %v504_v51, 0.0  ;;  %v524_v17 = vsel %vm519_vm3, %v508_v56, 0.0 }
  0x62   :  { %v522_v18 = vadd.f32 %v521_v15, %v520_v14  ;;  %v525_v23 = vadd.f32 %v524_v17, %v523_v16  ;;  %v526_v24 = vsel %vm519_vm3, %v505_v3, 0.0  ;;  %v527_v25 = vsel %vm519_vm3, %v509_v57, 0.0 }
  0x63   :  { %v528_v5 = vadd.f32 %v527_v25, %v526_v24  ;;  %v529_v26 = vsel %vm519_vm3, %v506_v53, 0.0  ;;  %v530_v27 = vsel %vm519_vm3, %v510_v59, 0.0  ;;  %v532_v8 = vsel %vm519_vm3, %v511_v60, 0.0 }
  0x64   :  { %v531_v9 = vadd.f32 %v530_v27, %v529_v26  ;;  %v533_v28 = vsel %vm519_vm3, %v515_v0, 0.0  ;;  %v535_v10 = vsel %vm519_vm3, %v512_v61, 0.0  ;;  %v536_v29 = vsel %vm519_vm3, %v516_v6, 0.0 }
  0x65   :  { %v534_v31 = vadd.f32 %v533_v28, %v532_v8  ;;  %v537_v32 = vadd.f32 %v536_v29, %v535_v10  ;;  %v538_v33 = vsel %vm519_vm3, %v513_v62, 0.0  ;;  %v539_v34 = vsel %vm519_vm3, %v517_v7, 0.0 }
  0x66   :  { %v540_v35 = vadd.f32 %v539_v34, %v538_v33  ;;  %v541_v36 = vsel %vm519_vm3, %v514_v63, 0.0  ;;  %v542_v37 = vsel %vm519_vm3, %v518_v12, 0.0  ;;  %v552_v38 = vrot.slane %v522_v18, 3 }
  0x67   :  { %v543_v39 = vadd.f32 %v542_v37, %v541_v36  ;;  %v553_v40 = vrot.slane %v525_v23, 3  ;;  %v554_v45 = vrot.slane %v528_v5, 3  ;;  %v555_v11 = vrot.slane %v531_v9, 3 }
  0x68   :  { %v556_v46 = vrot.slane %v534_v31, 3  ;;  %v557_v22 = vrot.slane %v537_v32, 3  ;;  %v558_v47 = vrot.slane %v540_v35, 3  ;;  %v568_v50 = vsel %vm40_vm0, %v552_v38, 0.0 }
  0x69   :  { %v559_v1 = vrot.slane %v543_v39, 3  ;;  %v569_v2 = vrot.slane %v568_v50, 4  ;;  %v575_v51 = vsel %vm40_vm0, %v553_v40, 0.0  ;;  %v582_v3 = vsel %vm40_vm0, %v554_v45, 0.0 }
  0x6a   :  { %v576_v53 = vrot.slane %v575_v51, 4  ;;  %v583_v55 = vrot.slane %v582_v3, 4  ;;  %v589_v56 = vsel %vm40_vm0, %v555_v11, 0.0  ;;  %v596_v57 = vsel %vm40_vm0, %v556_v46, 0.0 }
  0x6b   :  { %v570_v59 = vadd.f32 %v569_v2, %v568_v50  ;;  %v590_v60 = vrot.slane %v589_v56, 4  ;;  %v597_v61 = vrot.slane %v596_v57, 4  ;;  %v603_v62 = vsel %vm40_vm0, %v557_v22, 0.0 }
  0x6c   :  { %v577_v63 = vadd.f32 %v576_v53, %v575_v51  ;;  %v584_v0 = vadd.f32 %v583_v55, %v582_v3  ;;  %v604_v6 = vrot.slane %v603_v62, 4  ;;  %v610_v7 = vsel %vm40_vm0, %v558_v47, 0.0 }
  0x6d   :  { %v571_v12 = vrot.slane %v570_v59, 2  ;;  %v591_v14 = vadd.f32 %v590_v60, %v589_v56  ;;  %v598_v15 = vadd.f32 %v597_v61, %v596_v57  ;;  %v611_v16 = vrot.slane %v610_v7, 4 }
  0x6e   :  { %v578_v17 = vrot.slane %v577_v63, 2  ;;  %v585_v18 = vrot.slane %v584_v0, 2  ;;  %v605_v23 = vadd.f32 %v604_v6, %v603_v62  ;;  %v617_v24 = vsel %vm40_vm0, %v559_v1, 0.0  ;;  %v2652_v62 = vld [vmem:[%s4058_s0 + $0x10] sm:$0x11] }
  0x6f   :  { %v572_v25 = vadd.f32 %v571_v12, %v570_v59  ;;  %v592_v5 = vrot.slane %v591_v14, 2  ;;  %v599_v26 = vrot.slane %v598_v15, 2  ;;  %v612_v27 = vadd.f32 %v611_v16, %v610_v7 }
  0x70   :  { %v579_v8 = vadd.f32 %v578_v17, %v577_v63  ;;  %v586_v9 = vadd.f32 %v585_v18, %v584_v0  ;;  %v606_v28 = vrot.slane %v605_v23, 2  ;;  %v618_v10 = vrot.slane %v617_v24, 4 }
  0x71   :  { %v573_v29 = vrot.slane %v572_v25, 1  ;;  %v593_v31 = vadd.f32 %v592_v5, %v591_v14  ;;  %v600_v32 = vadd.f32 %v599_v26, %v598_v15  ;;  %v613_v33 = vrot.slane %v612_v27, 2  ;;  %v2659_v26 = vld [vmem:[%s4058_s0 + $0x78] sm:$0x11] }
  0x72   :  { %v580_v34 = vrot.slane %v579_v8, 1  ;;  %v587_v35 = vrot.slane %v586_v9, 1  ;;  %v607_v36 = vadd.f32 %v606_v28, %v605_v23  ;;  %v619_v37 = vadd.f32 %v618_v10, %v617_v24 }
  0x73   :  { %v574_v38 = vadd.f32 %v573_v29, %v572_v25  ;;  %v594_v39 = vrot.slane %v593_v31, 1  ;;  %v601_v40 = vrot.slane %v600_v32, 1  ;;  %v614_v45 = vadd.f32 %v613_v33, %v612_v27 }
  0x74   :  { %v581_v11 = vadd.f32 %v580_v34, %v579_v8  ;;  %v588_v46 = vadd.f32 %v587_v35, %v586_v9  ;;  %v608_v22 = vrot.slane %v607_v36, 1  ;;  %v620_v47 = vrot.slane %v619_v37, 2 }
  0x75   :  { %v595_v50 = vadd.f32 %v594_v39, %v593_v31  ;;  %v602_v1 = vadd.f32 %v601_v40, %v600_v32  ;;  %v615_v2 = vrot.slane %v614_v45, 1  ;;  %v638_v51 = vrot.slane %v3053_v58, %v2853_v49 }
  0x76   :  { %v609_v3 = vadd.f32 %v608_v22, %v607_v36  ;;  %v621_v53 = vadd.f32 %v620_v47, %v619_v37  ;;  %v642_v55 = vrot.slane %v3053_v58, %v2858_v52  ;;  %v647_v56 = vmul.f32 %v3057_v30, %v574_v38  ;;  %v2653_v58 = vld [vmem:[%s4058_s0 + $0x18] sm:$0x11] }
  0x77   :  { %v616_v57 = vadd.f32 %v615_v2, %v614_v45  ;;  %v648_v59 = vmul.f32 %v3061_v13, %v581_v11  ;;  %v649_v60 = vmul.f32 %v638_v51, %v588_v46  ;;  %v651_v61 = vmul.f32 %v3057_v30, %v602_v1 }
  0x78   :  { %v622_v63 = vrot.slane %v621_v53, 1  ;;  %v650_v0 = vmul.f32 %v642_v55, %v595_v50  ;;  %v652_v6 = vmul.f32 %v3061_v13, %v609_v3  ;;  %v3099_v7 = vadd.f32 %v647_v56, %v3009_v41  ;;  %v2654_v13 = vld [vmem:[%s4058_s0 + $0x20] sm:$0x11]  ;;  %v2655_v41 = vld [vmem:[%s4058_s0 + $0x28] sm:$0x11] }
  0x79   :  { %v653_v12 = vmul.f32 %v638_v51, %v616_v57  ;;  %v3105_v14 = vadd.f32 %v648_v59, %v3012_v42  ;;  %v3108_v30 = vadd.f32 %v649_v60, %v3015_v43  ;;  %v3111_v15 = vadd.f32 %v651_v61, %v3018_v44  ;;  %v2656_v43 = vld [vmem:[%s4058_s0 + $0x60] sm:$0x11]  ;;  %v2657_v44 = vld [vmem:[%s4058_s0 + $0x68] sm:$0x11] }
  0x7a   :  { %v623_v16 = vadd.f32 %v622_v63, %v621_v53  ;;  %v3120_v17 = vadd.f32 %v650_v0, %v3027_v19  ;;  %v3123_v42 = vadd.f32 %v652_v6, %v3030_v20  ;;  %v672_v18 = vunpack.c.l.bf16 %v2652_v62  ;;  %v2658_v19 = vld [vmem:[%s4058_s0 + $0x70] sm:$0x11] }
  0x7b   :  { %v3132_v23 = vadd.f32 %v653_v12, %v3033_v21  ;;  %v673_v24 = vunpack.c.h.bf16 %v2652_v62  ;;  %v674_v25 = vunpack.c.l.bf16 %v2653_v58  ;;  %v675_v20 = vunpack.c.h.bf16 %v2653_v58 }
  0x7c   :  { %v654_v5 = vmul.f32 %v642_v55, %v623_v16  ;;  %v676_v27 = vunpack.c.l.bf16 %v2654_v13  ;;  %v677_v8 = vunpack.c.h.bf16 %v2654_v13  ;;  %v678_v9 = vunpack.c.l.bf16 %v2655_v41 }
  0x7d   :  { %v679_v28 = vunpack.c.h.bf16 %v2655_v41  ;;  %v680_v10 = vunpack.c.l.bf16 %v2656_v43  ;;  %v681_v29 = vunpack.c.h.bf16 %v2656_v43  ;;  %v682_v21 = vunpack.c.l.bf16 %v2657_v44 }
  0x7e   :  { %v3141_v31 = vadd.f32 %v654_v5, %v3048_v54  ;;  %v683_v32 = vunpack.c.h.bf16 %v2657_v44  ;;  %v684_v33 = vunpack.c.l.bf16 %v2658_v19  ;;  %v685_v34 = vunpack.c.h.bf16 %v2658_v19 }
  0x7f   :  { %v686_v35 = vunpack.c.l.bf16 %v2659_v26  ;;  %v687_v36 = vunpack.c.h.bf16 %v2659_v26  ;;  %v688_v37 = vsel %vm40_vm0, %v672_v18, 0.0  ;;  %v689_v38 = vsel %vm40_vm0, %v676_v27, 0.0 }
  0x80   :  { %v690_v39 = vadd.f32 %v689_v38, %v688_v37  ;;  %v691_v40 = vsel %vm40_vm0, %v673_v24, 0.0  ;;  %v692_v45 = vsel %vm40_vm0, %v677_v8, 0.0  ;;  %v694_v11 = vsel %vm40_vm0, %v674_v25, 0.0 }
  0x81   :  { %v693_v46 = vadd.f32 %v692_v45, %v691_v40  ;;  %v695_v54 = vsel %vm40_vm0, %v678_v9, 0.0  ;;  %v697_v22 = vsel %vm40_vm0, %v675_v20, 0.0  ;;  %v698_v47 = vsel %vm40_vm0, %v679_v28, 0.0 }
  0x82   :  { %v696_v50 = vadd.f32 %v695_v54, %v694_v11  ;;  %v699_v1 = vadd.f32 %v698_v47, %v697_v22  ;;  %v700_v2 = vsel %vm40_vm0, %v680_v10, 0.0  ;;  %v701_v51 = vsel %vm40_vm0, %v684_v33, 0.0 }
  0x83   :  { %v702_v3 = vadd.f32 %v701_v51, %v700_v2  ;;  %v703_v53 = vsel %vm40_vm0, %v681_v29, 0.0  ;;  %v704_v55 = vsel %vm40_vm0, %v685_v34, 0.0  ;;  %v706_v56 = vsel %vm40_vm0, %v682_v21, 0.0 }
  0x84   :  { %v705_v57 = vadd.f32 %v704_v55, %v703_v53  ;;  %v707_v59 = vsel %vm40_vm0, %v686_v35, 0.0  ;;  %v709_v60 = vsel %vm40_vm0, %v683_v32, 0.0  ;;  %v710_v61 = vsel %vm40_vm0, %v687_v36, 0.0 }
  0x85   :  { %v708_v62 = vadd.f32 %v707_v59, %v706_v56  ;;  %v711_v63 = vadd.f32 %v710_v61, %v709_v60  ;;  %v712_v0 = vsel %vm40_vm0, %v690_v39, 0.0  ;;  %v719_v6 = vsel %vm40_vm0, %v693_v46, 0.0 }
  0x86   :  { %v713_v58 = vrot.slane %v712_v0, 4  ;;  %v720_v12 = vrot.slane %v719_v6, 4  ;;  %v726_v13 = vsel %vm40_vm0, %v696_v50, 0.0  ;;  %v733_v41 = vsel %vm40_vm0, %v699_v1, 0.0 }
  0x87   :  { %v727_v16 = vrot.slane %v726_v13, 4  ;;  %v734_v43 = vrot.slane %v733_v41, 4  ;;  %v740_v44 = vsel %vm40_vm0, %v702_v3, 0.0  ;;  %v747_v18 = vsel %vm40_vm0, %v705_v57, 0.0 }
  0x88   :  { %v714_v19 = vadd.f32 %v713_v58, %v712_v0  ;;  %v721_v24 = vadd.f32 %v720_v12, %v719_v6  ;;  %v741_v25 = vrot.slane %v740_v44, 4  ;;  %v748_v20 = vrot.slane %v747_v18, 4  ;;  %v2660_v50 = vld [vmem:[%s4060_s1 + $0x4] ss:$8 sm:$0xf] }
  0x89   :  { %v728_v5 = vadd.f32 %v727_v16, %v726_v13  ;;  %v735_v26 = vadd.f32 %v734_v43, %v733_v41  ;;  %v754_v27 = vsel %vm40_vm0, %v708_v62, 0.0  ;;  %v761_v8 = vsel %vm40_vm0, %v711_v63, 0.0 }
  0x8a   :  { %v715_v9 = vrot.slane %v714_v19, 2  ;;  %v722_v28 = vrot.slane %v721_v24, 2  ;;  %v742_v10 = vadd.f32 %v741_v25, %v740_v44  ;;  %v749_v29 = vadd.f32 %v748_v20, %v747_v18 }
  0x8b   :  { %v729_v21 = vrot.slane %v728_v5, 2  ;;  %v736_v32 = vrot.slane %v735_v26, 2  ;;  %v755_v33 = vrot.slane %v754_v27, 4  ;;  %v762_v34 = vrot.slane %v761_v8, 4 }
  0x8c   :  { %v716_v35 = vadd.f32 %v715_v9, %v714_v19  ;;  %v723_v36 = vadd.f32 %v722_v28, %v721_v24  ;;  %v743_v37 = vrot.slane %v742_v10, 2  ;;  %v750_v38 = vrot.slane %v749_v29, 2 }
  0x8d   :  { %v730_v39 = vadd.f32 %v729_v21, %v728_v5  ;;  %v737_v40 = vadd.f32 %v736_v32, %v735_v26  ;;  %v756_v45 = vadd.f32 %v755_v33, %v754_v27  ;;  %v763_v11 = vadd.f32 %v762_v34, %v761_v8  ;;  %v2661_v26 = vld [vmem:[%s4058_s0 + $0x10] sm:$0x33]  ;;  %v2662_v27 = vld [vmem:[%s4058_s0 + $0x18] sm:$0x33] }
  0x8e   :  { %v717_v46 = vrot.slane %v716_v35, 1  ;;  %v724_v54 = vrot.slane %v723_v36, 1  ;;  %v744_v22 = vadd.f32 %v743_v37, %v742_v10  ;;  %v751_v47 = vadd.f32 %v750_v38, %v749_v29  ;;  %v2663_v29 = vld [vmem:[%s4058_s0 + $0x20] sm:$0x33] }
  0x8f   :  { %v731_v1 = vrot.slane %v730_v39, 1  ;;  %v738_v2 = vrot.slane %v737_v40, 1  ;;  %v757_v51 = vrot.slane %v756_v45, 2  ;;  %v764_v3 = vrot.slane %v763_v11, 2 }
  0x90   :  { %v718_v53 = vadd.f32 %v717_v46, %v716_v35  ;;  %v725_v55 = vadd.f32 %v724_v54, %v723_v36  ;;  %v745_v56 = vrot.slane %v744_v22, 1  ;;  %v752_v57 = vrot.slane %v751_v47, 1 }
  0x91   :  { %v732_v59 = vadd.f32 %v731_v1, %v730_v39  ;;  %v739_v60 = vadd.f32 %v738_v2, %v737_v40  ;;  %v758_v61 = vadd.f32 %v757_v51, %v756_v45  ;;  %v765_v62 = vadd.f32 %v764_v3, %v763_v11  ;;  %v2668_v39 = vld [vmem:[%s4058_s0 + $0x78] sm:$0x33] }
  0x92   :  { %v746_v63 = vadd.f32 %v745_v56, %v744_v22  ;;  %v753_v0 = vadd.f32 %v752_v57, %v751_v47  ;;  %v774_v6 = vrot.slane %v2660_v50, %v2849_v48  ;;  %v778_v58 = vrot.slane %v2660_v50, %v2851_v4 }
  0x93   :  { %v759_v12 = vrot.slane %v758_v61, 1  ;;  %v766_v13 = vrot.slane %v765_v62, 1  ;;  %v782_v41 = vrot.slane %v2660_v50, %v2853_v49  ;;  %v786_v16 = vrot.slane %v2660_v50, %v2858_v52 }
  0x94   :  { %v791_v43 = vmul.f32 %v774_v6, %v718_v53  ;;  %v792_v44 = vmul.f32 %v778_v58, %v725_v55  ;;  %v795_v18 = vmul.f32 %v774_v6, %v746_v63  ;;  %v796_v19 = vmul.f32 %v778_v58, %v753_v0 }
  0x95   :  { %v760_v24 = vadd.f32 %v759_v12, %v758_v61  ;;  %v767_v25 = vadd.f32 %v766_v13, %v765_v62  ;;  %v793_v20 = vmul.f32 %v782_v41, %v732_v59  ;;  %v794_v5 = vmul.f32 %v786_v16, %v739_v60 }
  0x96   :  { %v3181_v8 = vadd.f32 %v791_v43, %v3099_v7  ;;  %v3184_v9 = vadd.f32 %v792_v44, %v3105_v14  ;;  %v3187_v28 = vadd.f32 %v795_v18, %v3111_v15  ;;  %v3190_v10 = vadd.f32 %v796_v19, %v3123_v42  ;;  %v2664_v14 = vld [vmem:[%s4058_s0 + $0x28] sm:$0x33]  ;;  %v2665_v15 = vld [vmem:[%s4058_s0 + $0x60] sm:$0x33] }
  0x97   :  { %v797_v21 = vmul.f32 %v782_v41, %v760_v24  ;;  %v798_v32 = vmul.f32 %v786_v16, %v767_v25  ;;  %v3196_v33 = vadd.f32 %v793_v20, %v3108_v30  ;;  %v3199_v7 = vadd.f32 %v794_v5, %v3120_v17  ;;  %v2666_v42 = vld [vmem:[%s4058_s0 + $0x68] sm:$0x33]  ;;  %v2667_v30 = vld [vmem:[%s4058_s0 + $0x70] sm:$0x33] }
  0x98   :  { %v815_v34 = vunpack.c.l.bf16 %v2661_v26  ;;  %v816_v35 = vunpack.c.h.bf16 %v2661_v26  ;;  %v817_v17 = vunpack.c.l.bf16 %v2662_v27  ;;  %v818_v36 = vunpack.c.h.bf16 %v2662_v27 }
  0x99   :  { %v3214_v37 = vadd.f32 %v797_v21, %v3132_v23  ;;  %v3217_v38 = vadd.f32 %v798_v32, %v3141_v31  ;;  %v819_v40 = vunpack.c.l.bf16 %v2663_v29  ;;  %v820_v45 = vunpack.c.h.bf16 %v2663_v29 }
  0x9a   :  { %v821_v11 = vunpack.c.l.bf16 %v2664_v14  ;;  %v822_v46 = vunpack.c.h.bf16 %v2664_v14  ;;  %v823_v54 = vunpack.c.l.bf16 %v2665_v15  ;;  %v824_v22 = vunpack.c.h.bf16 %v2665_v15 }
  0x9b   :  { %v825_v47 = vunpack.c.l.bf16 %v2666_v42  ;;  %v826_v50 = vunpack.c.h.bf16 %v2666_v42  ;;  %v827_v1 = vunpack.c.l.bf16 %v2667_v30  ;;  %v828_v2 = vunpack.c.h.bf16 %v2667_v30 }
  0x9c   :  { %v829_v51 = vunpack.c.l.bf16 %v2668_v39  ;;  %v830_v23 = vunpack.c.h.bf16 %v2668_v39  ;;  %v831_v3 = vsel %vm183_vm1, %v815_v34, 0.0  ;;  %v832_v31 = vsel %vm183_vm1, %v819_v40, 0.0 }
  0x9d   :  { %v833_v53 = vadd.f32 %v832_v31, %v831_v3  ;;  %v834_v55 = vsel %vm183_vm1, %v816_v35, 0.0  ;;  %v835_v56 = vsel %vm183_vm1, %v820_v45, 0.0  ;;  %v837_v57 = vsel %vm183_vm1, %v817_v17, 0.0 }
  0x9e   :  { %v836_v59 = vadd.f32 %v835_v56, %v834_v55  ;;  %v838_v60 = vsel %vm183_vm1, %v821_v11, 0.0  ;;  %v840_v61 = vsel %vm183_vm1, %v818_v36, 0.0  ;;  %v841_v62 = vsel %vm183_vm1, %v822_v46, 0.0 }
  0x9f   :  { %v839_v63 = vadd.f32 %v838_v60, %v837_v57  ;;  %v842_v0 = vadd.f32 %v841_v62, %v840_v61  ;;  %v843_v6 = vsel %vm183_vm1, %v823_v54, 0.0  ;;  %v844_v58 = vsel %vm183_vm1, %v827_v1, 0.0 }
  0xa0   :  { %v845_v12 = vadd.f32 %v844_v58, %v843_v6  ;;  %v846_v13 = vsel %vm183_vm1, %v824_v22, 0.0  ;;  %v847_v41 = vsel %vm183_vm1, %v828_v2, 0.0  ;;  %v849_v16 = vsel %vm183_vm1, %v825_v47, 0.0 }
  0xa1   :  { %v848_v43 = vadd.f32 %v847_v41, %v846_v13  ;;  %v850_v44 = vsel %vm183_vm1, %v829_v51, 0.0  ;;  %v852_v18 = vsel %vm183_vm1, %v826_v50, 0.0  ;;  %v853_v19 = vsel %vm183_vm1, %v830_v23, 0.0 }
  0xa2   :  { %v851_v24 = vadd.f32 %v850_v44, %v849_v16  ;;  %v854_v25 = vadd.f32 %v853_v19, %v852_v18  ;;  %v863_v20 = vrot.slane %v833_v53, 1  ;;  %v864_v5 = vrot.slane %v836_v59, 1 }
  0xa3   :  { %v865_v26 = vrot.slane %v839_v63, 1  ;;  %v866_v27 = vrot.slane %v842_v0, 1  ;;  %v867_v29 = vrot.slane %v845_v12, 1  ;;  %v868_v21 = vrot.slane %v848_v43, 1 }
  0xa4   :  { %v869_v32 = vrot.slane %v851_v24, 1  ;;  %v870_v14 = vrot.slane %v854_v25, 1  ;;  %v879_v15 = vsel %vm40_vm0, %v863_v20, 0.0  ;;  %v886_v42 = vsel %vm40_vm0, %v864_v5, 0.0 }
  0xa5   :  { %v880_v30 = vrot.slane %v879_v15, 4  ;;  %v887_v34 = vrot.slane %v886_v42, 4  ;;  %v893_v35 = vsel %vm40_vm0, %v865_v26, 0.0  ;;  %v900_v17 = vsel %vm40_vm0, %v866_v27, 0.0 }
  0xa6   :  { %v894_v36 = vrot.slane %v893_v35, 4  ;;  %v901_v39 = vrot.slane %v900_v17, 4  ;;  %v907_v40 = vsel %vm40_vm0, %v867_v29, 0.0  ;;  %v914_v45 = vsel %vm40_vm0, %v868_v21, 0.0 }
  0xa7   :  { %v881_v11 = vadd.f32 %v880_v30, %v879_v15  ;;  %v888_v46 = vadd.f32 %v887_v34, %v886_v42  ;;  %v908_v54 = vrot.slane %v907_v40, 4  ;;  %v915_v22 = vrot.slane %v914_v45, 4  ;;  %v2669_v43 = vld [vmem:[%s4060_s1 + $0x5] ss:$8 sm:$0xf] }
  0xa8   :  { %v895_v47 = vadd.f32 %v894_v36, %v893_v35  ;;  %v902_v50 = vadd.f32 %v901_v39, %v900_v17  ;;  %v921_v1 = vsel %vm40_vm0, %v869_v32, 0.0  ;;  %v928_v2 = vsel %vm40_vm0, %v870_v14, 0.0 }
  0xa9   :  { %v882_v51 = vrot.slane %v881_v11, 2  ;;  %v889_v23 = vrot.slane %v888_v46, 2  ;;  %v909_v3 = vadd.f32 %v908_v54, %v907_v40  ;;  %v916_v31 = vadd.f32 %v915_v22, %v914_v45 }
  0xaa   :  { %v896_v53 = vrot.slane %v895_v47, 2  ;;  %v903_v55 = vrot.slane %v902_v50, 2  ;;  %v922_v56 = vrot.slane %v921_v1, 4  ;;  %v929_v57 = vrot.slane %v928_v2, 4 }
  0xab   :  { %v883_v59 = vadd.f32 %v882_v51, %v881_v11  ;;  %v890_v60 = vadd.f32 %v889_v23, %v888_v46  ;;  %v910_v61 = vrot.slane %v909_v3, 2  ;;  %v917_v62 = vrot.slane %v916_v31, 2 }
  0xac   :  { %v897_v63 = vadd.f32 %v896_v53, %v895_v47  ;;  %v904_v0 = vadd.f32 %v903_v55, %v902_v50  ;;  %v923_v6 = vadd.f32 %v922_v56, %v921_v1  ;;  %v930_v58 = vadd.f32 %v929_v57, %v928_v2  ;;  %v2670_v50 = vld [vmem:[%s4058_s0 + $0x10] sm:$0x22]  ;;  %v2671_v1 = vld [vmem:[%s4058_s0 + $0x18] sm:$0x22] }
  0xad   :  { %v884_v12 = vrot.slane %v883_v59, 1  ;;  %v891_v13 = vrot.slane %v890_v60, 1  ;;  %v911_v41 = vadd.f32 %v910_v61, %v909_v3  ;;  %v918_v16 = vadd.f32 %v917_v62, %v916_v31  ;;  %v2672_v31 = vld [vmem:[%s4058_s0 + $0x20] sm:$0x22] }
  0xae   :  { %v898_v44 = vrot.slane %v897_v63, 1  ;;  %v905_v18 = vrot.slane %v904_v0, 1  ;;  %v924_v19 = vrot.slane %v923_v6, 2  ;;  %v931_v24 = vrot.slane %v930_v58, 2 }
  0xaf   :  { %v885_v25 = vadd.f32 %v884_v12, %v883_v59  ;;  %v892_v20 = vadd.f32 %v891_v13, %v890_v60  ;;  %v912_v5 = vrot.slane %v911_v41, 1  ;;  %v919_v26 = vrot.slane %v918_v16, 1 }
  0xb0   :  { %v899_v27 = vadd.f32 %v898_v44, %v897_v63  ;;  %v906_v29 = vadd.f32 %v905_v18, %v904_v0  ;;  %v925_v21 = vadd.f32 %v924_v19, %v923_v6  ;;  %v932_v32 = vadd.f32 %v931_v24, %v930_v58  ;;  %v2677_v63 = vld [vmem:[%s4058_s0 + $0x78] sm:$0x22] }
  0xb1   :  { %v913_v14 = vadd.f32 %v912_v5, %v911_v41  ;;  %v920_v15 = vadd.f32 %v919_v26, %v918_v16  ;;  %v941_v42 = vrot.slane %v2669_v43, %v2849_v48  ;;  %v945_v30 = vrot.slane %v2669_v43, %v2851_v4 }
  0xb2   :  { %v926_v34 = vrot.slane %v925_v21, 1  ;;  %v933_v35 = vrot.slane %v932_v32, 1  ;;  %v949_v17 = vrot.slane %v2669_v43, %v2853_v49  ;;  %v953_v36 = vrot.slane %v2669_v43, %v2858_v52 }
  0xb3   :  { %v958_v39 = vmul.f32 %v941_v42, %v885_v25  ;;  %v959_v40 = vmul.f32 %v945_v30, %v892_v20  ;;  %v962_v45 = vmul.f32 %v941_v42, %v913_v14  ;;  %v963_v11 = vmul.f32 %v945_v30, %v920_v15 }
  0xb4   :  { %v927_v46 = vadd.f32 %v926_v34, %v925_v21  ;;  %v934_v54 = vadd.f32 %v933_v35, %v932_v32  ;;  %v960_v22 = vmul.f32 %v949_v17, %v899_v27  ;;  %v961_v47 = vmul.f32 %v953_v36, %v906_v29 }
  0xb5   :  { %v3260_v2 = vadd.f32 %v958_v39, %v3181_v8  ;;  %v3263_v51 = vadd.f32 %v959_v40, %v3184_v9  ;;  %v3266_v23 = vadd.f32 %v962_v45, %v3187_v28  ;;  %v3269_v3 = vadd.f32 %v963_v11, %v3190_v10  ;;  %v2673_v9 = vld [vmem:[%s4058_s0 + $0x28] sm:$0x22]  ;;  %v2674_v28 = vld [vmem:[%s4058_s0 + $0x60] sm:$0x22] }
  0xb6   :  { %v964_v53 = vmul.f32 %v949_v17, %v927_v46  ;;  %v965_v55 = vmul.f32 %v953_v36, %v934_v54  ;;  %v3275_v56 = vadd.f32 %v960_v22, %v3196_v33  ;;  %v3278_v8 = vadd.f32 %v961_v47, %v3199_v7  ;;  %v2675_v10 = vld [vmem:[%s4058_s0 + $0x68] sm:$0x22]  ;;  %v2676_v33 = vld [vmem:[%s4058_s0 + $0x70] sm:$0x22] }
  0xb7   :  { %v982_v57 = vunpack.c.l.bf16 %v2670_v50  ;;  %v983_v59 = vunpack.c.h.bf16 %v2670_v50  ;;  %v984_v7 = vunpack.c.l.bf16 %v2671_v1  ;;  %v985_v60 = vunpack.c.h.bf16 %v2671_v1 }
  0xb8   :  { %v3293_v61 = vadd.f32 %v964_v53, %v3214_v37  ;;  %v3296_v62 = vadd.f32 %v965_v55, %v3217_v38  ;;  %v986_v0 = vunpack.c.l.bf16 %v2672_v31  ;;  %v987_v6 = vunpack.c.h.bf16 %v2672_v31 }
  0xb9   :  { %v988_v58 = vunpack.c.l.bf16 %v2673_v9  ;;  %v989_v12 = vunpack.c.h.bf16 %v2673_v9  ;;  %v990_v13 = vunpack.c.l.bf16 %v2674_v28  ;;  %v991_v41 = vunpack.c.h.bf16 %v2674_v28 }
  0xba   :  { %v992_v16 = vunpack.c.l.bf16 %v2675_v10  ;;  %v993_v43 = vunpack.c.h.bf16 %v2675_v10  ;;  %v994_v44 = vunpack.c.l.bf16 %v2676_v33  ;;  %v995_v18 = vunpack.c.h.bf16 %v2676_v33 }
  0xbb   :  { %v996_v19 = vunpack.c.l.bf16 %v2677_v63  ;;  %v997_v37 = vunpack.c.h.bf16 %v2677_v63  ;;  %v998_v24 = vsel %vm351_vm2, %v982_v57, 0.0  ;;  %v999_v38 = vsel %vm351_vm2, %v986_v0, 0.0 }
  0xbc   :  { %v1000_v25 = vadd.f32 %v999_v38, %v998_v24  ;;  %v1001_v20 = vsel %vm351_vm2, %v983_v59, 0.0  ;;  %v1002_v5 = vsel %vm351_vm2, %v987_v6, 0.0  ;;  %v1004_v26 = vsel %vm351_vm2, %v984_v7, 0.0 }
  0xbd   :  { %v1003_v27 = vadd.f32 %v1002_v5, %v1001_v20  ;;  %v1005_v29 = vsel %vm351_vm2, %v988_v58, 0.0  ;;  %v1007_v21 = vsel %vm351_vm2, %v985_v60, 0.0  ;;  %v1008_v32 = vsel %vm351_vm2, %v989_v12, 0.0 }
  0xbe   :  { %v1006_v14 = vadd.f32 %v1005_v29, %v1004_v26  ;;  %v1009_v15 = vadd.f32 %v1008_v32, %v1007_v21  ;;  %v1010_v42 = vsel %vm351_vm2, %v990_v13, 0.0  ;;  %v1011_v30 = vsel %vm351_vm2, %v994_v44, 0.0 }
  0xbf   :  { %v1012_v34 = vadd.f32 %v1011_v30, %v1010_v42  ;;  %v1013_v35 = vsel %vm351_vm2, %v991_v41, 0.0  ;;  %v1014_v17 = vsel %vm351_vm2, %v995_v18, 0.0  ;;  %v1016_v36 = vsel %vm351_vm2, %v992_v16, 0.0 }
  0xc0   :  { %v1015_v39 = vadd.f32 %v1014_v17, %v1013_v35  ;;  %v1017_v40 = vsel %vm351_vm2, %v996_v19, 0.0  ;;  %v1019_v45 = vsel %vm351_vm2, %v993_v43, 0.0  ;;  %v1020_v11 = vsel %vm351_vm2, %v997_v37, 0.0 }
  0xc1   :  { %v1018_v46 = vadd.f32 %v1017_v40, %v1016_v36  ;;  %v1021_v54 = vadd.f32 %v1020_v11, %v1019_v45  ;;  %v1030_v22 = vrot.slane %v1000_v25, 2  ;;  %v1031_v47 = vrot.slane %v1003_v27, 2 }
  0xc2   :  { %v1032_v50 = vrot.slane %v1006_v14, 2  ;;  %v1033_v1 = vrot.slane %v1009_v15, 2  ;;  %v1034_v31 = vrot.slane %v1012_v34, 2  ;;  %v1035_v53 = vrot.slane %v1015_v39, 2 }
  0xc3   :  { %v1036_v55 = vrot.slane %v1018_v46, 2  ;;  %v1037_v9 = vrot.slane %v1021_v54, 2  ;;  %v1046_v28 = vsel %vm40_vm0, %v1030_v22, 0.0  ;;  %v1053_v10 = vsel %vm40_vm0, %v1031_v47, 0.0 }
  0xc4   :  { %v1047_v33 = vrot.slane %v1046_v28, 4  ;;  %v1054_v57 = vrot.slane %v1053_v10, 4  ;;  %v1060_v59 = vsel %vm40_vm0, %v1032_v50, 0.0  ;;  %v1067_v7 = vsel %vm40_vm0, %v1033_v1, 0.0 }
  0xc5   :  { %v1061_v60 = vrot.slane %v1060_v59, 4  ;;  %v1068_v63 = vrot.slane %v1067_v7, 4  ;;  %v1074_v0 = vsel %vm40_vm0, %v1034_v31, 0.0  ;;  %v1081_v6 = vsel %vm40_vm0, %v1035_v53, 0.0 }
  0xc6   :  { %v1048_v58 = vadd.f32 %v1047_v33, %v1046_v28  ;;  %v1055_v12 = vadd.f32 %v1054_v57, %v1053_v10  ;;  %v1075_v13 = vrot.slane %v1074_v0, 4  ;;  %v1082_v41 = vrot.slane %v1081_v6, 4  ;;  %v2678_v39 = vld [vmem:[%s4060_s1 + $0x6] ss:$8 sm:$0xf] }
  0xc7   :  { %v1062_v16 = vadd.f32 %v1061_v60, %v1060_v59  ;;  %v1069_v43 = vadd.f32 %v1068_v63, %v1067_v7  ;;  %v1088_v44 = vsel %vm40_vm0, %v1036_v55, 0.0  ;;  %v1095_v18 = vsel %vm40_vm0, %v1037_v9, 0.0 }
  0xc8   :  { %v1049_v19 = vrot.slane %v1048_v58, 2  ;;  %v1056_v37 = vrot.slane %v1055_v12, 2  ;;  %v1076_v24 = vadd.f32 %v1075_v13, %v1074_v0  ;;  %v1083_v38 = vadd.f32 %v1082_v41, %v1081_v6 }
  0xc9   :  { %v1063_v25 = vrot.slane %v1062_v16, 2  ;;  %v1070_v20 = vrot.slane %v1069_v43, 2  ;;  %v1089_v5 = vrot.slane %v1088_v44, 4  ;;  %v1096_v26 = vrot.slane %v1095_v18, 4 }
  0xca   :  { %v1050_v27 = vadd.f32 %v1049_v19, %v1048_v58  ;;  %v1057_v29 = vadd.f32 %v1056_v37, %v1055_v12  ;;  %v1077_v21 = vrot.slane %v1076_v24, 2  ;;  %v1084_v32 = vrot.slane %v1083_v38, 2 }
  0xcb   :  { %v1064_v14 = vadd.f32 %v1063_v25, %v1062_v16  ;;  %v1071_v15 = vadd.f32 %v1070_v20, %v1069_v43  ;;  %v1090_v42 = vadd.f32 %v1089_v5, %v1088_v44  ;;  %v1097_v30 = vadd.f32 %v1096_v26, %v1095_v18  ;;  %v2679_v43 = vld [vmem:[%s4058_s0 + $0x10] sm:$0x66]  ;;  %v2680_v44 = vld [vmem:[%s4058_s0 + $0x18] sm:$0x66] }
  0xcc   :  { %v1051_v34 = vrot.slane %v1050_v27, 1  ;;  %v1058_v35 = vrot.slane %v1057_v29, 1  ;;  %v1078_v17 = vadd.f32 %v1077_v21, %v1076_v24  ;;  %v1085_v36 = vadd.f32 %v1084_v32, %v1083_v38  ;;  %v2681_v38 = vld [vmem:[%s4058_s0 + $0x20] sm:$0x66] }
  0xcd   :  { %v1065_v40 = vrot.slane %v1064_v14, 1  ;;  %v1072_v45 = vrot.slane %v1071_v15, 1  ;;  %v1091_v11 = vrot.slane %v1090_v42, 2  ;;  %v1098_v46 = vrot.slane %v1097_v30, 2 }
  0xce   :  { %v1052_v54 = vadd.f32 %v1051_v34, %v1050_v27  ;;  %v1059_v22 = vadd.f32 %v1058_v35, %v1057_v29  ;;  %v1079_v47 = vrot.slane %v1078_v17, 1  ;;  %v1086_v50 = vrot.slane %v1085_v36, 1 }
  0xcf   :  { %v1066_v1 = vadd.f32 %v1065_v40, %v1064_v14  ;;  %v1073_v31 = vadd.f32 %v1072_v45, %v1071_v15  ;;  %v1092_v53 = vadd.f32 %v1091_v11, %v1090_v42  ;;  %v1099_v55 = vadd.f32 %v1098_v46, %v1097_v30  ;;  %v2686_v14 = vld [vmem:[%s4058_s0 + $0x78] sm:$0x66] }
  0xd0   :  { %v1080_v9 = vadd.f32 %v1079_v47, %v1078_v17  ;;  %v1087_v28 = vadd.f32 %v1086_v50, %v1085_v36  ;;  %v1108_v10 = vrot.slane %v2678_v39, %v2849_v48  ;;  %v1112_v33 = vrot.slane %v2678_v39, %v2851_v4 }
  0xd1   :  { %v1093_v57 = vrot.slane %v1092_v53, 1  ;;  %v1100_v59 = vrot.slane %v1099_v55, 1  ;;  %v1116_v7 = vrot.slane %v2678_v39, %v2853_v49  ;;  %v1120_v60 = vrot.slane %v2678_v39, %v2858_v52 }
  0xd2   :  { %v1125_v63 = vmul.f32 %v1108_v10, %v1052_v54  ;;  %v1126_v0 = vmul.f32 %v1112_v33, %v1059_v22  ;;  %v1129_v6 = vmul.f32 %v1108_v10, %v1080_v9  ;;  %v1130_v58 = vmul.f32 %v1112_v33, %v1087_v28 }
  0xd3   :  { %v1094_v12 = vadd.f32 %v1093_v57, %v1092_v53  ;;  %v1101_v13 = vadd.f32 %v1100_v59, %v1099_v55  ;;  %v1127_v41 = vmul.f32 %v1116_v7, %v1066_v1  ;;  %v1128_v16 = vmul.f32 %v1120_v60, %v1073_v31 }
  0xd4   :  { %v3339_v18 = vadd.f32 %v1125_v63, %v3260_v2  ;;  %v3342_v19 = vadd.f32 %v1126_v0, %v3263_v51  ;;  %v3345_v37 = vadd.f32 %v1129_v6, %v3266_v23  ;;  %v3348_v24 = vadd.f32 %v1130_v58, %v3269_v3  ;;  %v2682_v51 = vld [vmem:[%s4058_s0 + $0x28] sm:$0x66]  ;;  %v2683_v23 = vld [vmem:[%s4058_s0 + $0x60] sm:$0x66] }
  0xd5   :  { %v1131_v25 = vmul.f32 %v1116_v7, %v1094_v12  ;;  %v1132_v20 = vmul.f32 %v1120_v60, %v1101_v13  ;;  %v3354_v5 = vadd.f32 %v1127_v41, %v3275_v56  ;;  %v3357_v2 = vadd.f32 %v1128_v16, %v3278_v8  ;;  %v2684_v3 = vld [vmem:[%s4058_s0 + $0x68] sm:$0x66]  ;;  %v2685_v56 = vld [vmem:[%s4058_s0 + $0x70] sm:$0x66] }
  0xd6   :  { %v1149_v26 = vunpack.c.l.bf16 %v2679_v43  ;;  %v1150_v27 = vunpack.c.h.bf16 %v2679_v43  ;;  %v1151_v8 = vunpack.c.l.bf16 %v2680_v44  ;;  %v1152_v29 = vunpack.c.h.bf16 %v2680_v44 }
  0xd7   :  { %v3372_v21 = vadd.f32 %v1131_v25, %v3293_v61  ;;  %v3375_v32 = vadd.f32 %v1132_v20, %v3296_v62  ;;  %v1153_v15 = vunpack.c.l.bf16 %v2681_v38  ;;  %v1154_v42 = vunpack.c.h.bf16 %v2681_v38 }
  0xd8   :  { %v1155_v30 = vunpack.c.l.bf16 %v2682_v51  ;;  %v1156_v34 = vunpack.c.h.bf16 %v2682_v51  ;;  %v1157_v35 = vunpack.c.l.bf16 %v2683_v23  ;;  %v1158_v17 = vunpack.c.h.bf16 %v2683_v23 }
  0xd9   :  { %v1159_v36 = vunpack.c.l.bf16 %v2684_v3  ;;  %v1160_v39 = vunpack.c.h.bf16 %v2684_v3  ;;  %v1161_v40 = vunpack.c.l.bf16 %v2685_v56  ;;  %v1162_v45 = vunpack.c.h.bf16 %v2685_v56 }
  0xda   :  { %v1163_v11 = vunpack.c.l.bf16 %v2686_v14  ;;  %v1164_v61 = vunpack.c.h.bf16 %v2686_v14  ;;  %v1165_v46 = vsel %vm519_vm3, %v1149_v26, 0.0  ;;  %v1166_v62 = vsel %vm519_vm3, %v1153_v15, 0.0 }
  0xdb   :  { %v1167_v54 = vadd.f32 %v1166_v62, %v1165_v46  ;;  %v1168_v22 = vsel %vm519_vm3, %v1150_v27, 0.0  ;;  %v1169_v47 = vsel %vm519_vm3, %v1154_v42, 0.0  ;;  %v1171_v50 = vsel %vm519_vm3, %v1151_v8, 0.0 }
  0xdc   :  { %v1170_v1 = vadd.f32 %v1169_v47, %v1168_v22  ;;  %v1172_v31 = vsel %vm519_vm3, %v1155_v30, 0.0  ;;  %v1174_v53 = vsel %vm519_vm3, %v1152_v29, 0.0  ;;  %v1175_v55 = vsel %vm519_vm3, %v1156_v34, 0.0 }
  0xdd   :  { %v1173_v9 = vadd.f32 %v1172_v31, %v1171_v50  ;;  %v1176_v28 = vadd.f32 %v1175_v55, %v1174_v53  ;;  %v1177_v10 = vsel %vm519_vm3, %v1157_v35, 0.0  ;;  %v1178_v33 = vsel %vm519_vm3, %v1161_v40, 0.0 }
  0xde   :  { %v1179_v57 = vadd.f32 %v1178_v33, %v1177_v10  ;;  %v1180_v59 = vsel %vm519_vm3, %v1158_v17, 0.0  ;;  %v1181_v7 = vsel %vm519_vm3, %v1162_v45, 0.0  ;;  %v1183_v60 = vsel %vm519_vm3, %v1159_v36, 0.0 }
  0xdf   :  { %v1182_v63 = vadd.f32 %v1181_v7, %v1180_v59  ;;  %v1184_v0 = vsel %vm519_vm3, %v1163_v11, 0.0  ;;  %v1186_v6 = vsel %vm519_vm3, %v1160_v39, 0.0  ;;  %v1187_v58 = vsel %vm519_vm3, %v1164_v61, 0.0 }
  0xe0   :  { %v1185_v12 = vadd.f32 %v1184_v0, %v1183_v60  ;;  %v1188_v13 = vadd.f32 %v1187_v58, %v1186_v6  ;;  %v1197_v41 = vrot.slane %v1167_v54, 3  ;;  %v1198_v16 = vrot.slane %v1170_v1, 3 }
  0xe1   :  { %v1199_v43 = vrot.slane %v1173_v9, 3  ;;  %v1200_v44 = vrot.slane %v1176_v28, 3  ;;  %v1201_v38 = vrot.slane %v1179_v57, 3  ;;  %v1202_v25 = vrot.slane %v1182_v63, 3 }
  0xe2   :  { %v1203_v20 = vrot.slane %v1185_v12, 3  ;;  %v1204_v51 = vrot.slane %v1188_v13, 3  ;;  %v1213_v23 = vsel %vm40_vm0, %v1197_v41, 0.0  ;;  %v1220_v3 = vsel %vm40_vm0, %v1198_v16, 0.0 }
  0xe3   :  { %v1214_v56 = vrot.slane %v1213_v23, 4  ;;  %v1221_v26 = vrot.slane %v1220_v3, 4  ;;  %v1227_v27 = vsel %vm40_vm0, %v1199_v43, 0.0  ;;  %v1234_v8 = vsel %vm40_vm0, %v1200_v44, 0.0 }
  0xe4   :  { %v1228_v29 = vrot.slane %v1227_v27, 4  ;;  %v1235_v14 = vrot.slane %v1234_v8, 4  ;;  %v1241_v15 = vsel %vm40_vm0, %v1201_v38, 0.0  ;;  %v1248_v42 = vsel %vm40_vm0, %v1202_v25, 0.0 }
  0xe5   :  { %v1215_v30 = vadd.f32 %v1214_v56, %v1213_v23  ;;  %v1222_v34 = vadd.f32 %v1221_v26, %v1220_v3  ;;  %v1242_v35 = vrot.slane %v1241_v15, 4  ;;  %v1249_v17 = vrot.slane %v1248_v42, 4  ;;  %v2687_v63 = vld [vmem:[%s4060_s1 + $0x7] ss:$8 sm:$0xf] }
  0xe6   :  { %v1229_v36 = vadd.f32 %v1228_v29, %v1227_v27  ;;  %v1236_v39 = vadd.f32 %v1235_v14, %v1234_v8  ;;  %v1255_v40 = vsel %vm40_vm0, %v1203_v20, 0.0  ;;  %v1262_v45 = vsel %vm40_vm0, %v1204_v51, 0.0 }
  0xe7   :  { %v1216_v11 = vrot.slane %v1215_v30, 2  ;;  %v1223_v61 = vrot.slane %v1222_v34, 2  ;;  %v1243_v46 = vadd.f32 %v1242_v35, %v1241_v15  ;;  %v1250_v62 = vadd.f32 %v1249_v17, %v1248_v42 }
  0xe8   :  { %v1230_v54 = vrot.slane %v1229_v36, 2  ;;  %v1237_v22 = vrot.slane %v1236_v39, 2  ;;  %v1256_v47 = vrot.slane %v1255_v40, 4  ;;  %v1263_v50 = vrot.slane %v1262_v45, 4 }
  0xe9   :  { %v1217_v1 = vadd.f32 %v1216_v11, %v1215_v30  ;;  %v1224_v31 = vadd.f32 %v1223_v61, %v1222_v34  ;;  %v1244_v53 = vrot.slane %v1243_v46, 2  ;;  %v1251_v55 = vrot.slane %v1250_v62, 2 }
  0xea   :  { %v1231_v9 = vadd.f32 %v1230_v54, %v1229_v36  ;;  %v1238_v28 = vadd.f32 %v1237_v22, %v1236_v39  ;;  %v1257_v10 = vadd.f32 %v1256_v47, %v1255_v40  ;;  %v1264_v33 = vadd.f32 %v1263_v50, %v1262_v45  ;;  %v2688_v39 = vld [vmem:[%s4058_s0 + $0x20] sm:$0x11]  ;;  %v2689_v40 = vld [vmem:[%s4058_s0 + $0x28] sm:$0x11] }
  0xeb   :  { %v1218_v57 = vrot.slane %v1217_v1, 1  ;;  %v1225_v59 = vrot.slane %v1224_v31, 1  ;;  %v1245_v7 = vadd.f32 %v1244_v53, %v1243_v46  ;;  %v1252_v60 = vadd.f32 %v1251_v55, %v1250_v62  ;;  %v2690_v62 = vld [vmem:[%s4058_s0 + $0x30] sm:$0x11] }
  0xec   :  { %v1232_v0 = vrot.slane %v1231_v9, 1  ;;  %v1239_v6 = vrot.slane %v1238_v28, 1  ;;  %v1258_v58 = vrot.slane %v1257_v10, 2  ;;  %v1265_v12 = vrot.slane %v1264_v33, 2 }
  0xed   :  { %v1219_v13 = vadd.f32 %v1218_v57, %v1217_v1  ;;  %v1226_v41 = vadd.f32 %v1225_v59, %v1224_v31  ;;  %v1246_v16 = vrot.slane %v1245_v7, 1  ;;  %v1253_v43 = vrot.slane %v1252_v60, 1 }
  0xee   :  { %v1233_v44 = vadd.f32 %v1232_v0, %v1231_v9  ;;  %v1240_v38 = vadd.f32 %v1239_v6, %v1238_v28  ;;  %v1259_v25 = vadd.f32 %v1258_v58, %v1257_v10  ;;  %v1266_v20 = vadd.f32 %v1265_v12, %v1264_v33  ;;  %v2695_v9 = vld [vmem:[%s4058_s0 + $0x88] sm:$0x11] }
  0xef   :  { %v1247_v51 = vadd.f32 %v1246_v16, %v1245_v7  ;;  %v1254_v23 = vadd.f32 %v1253_v43, %v1252_v60  ;;  %v1275_v3 = vrot.slane %v2687_v63, %v2849_v48  ;;  %v1279_v56 = vrot.slane %v2687_v63, %v2851_v4 }
  0xf0   :  { %v1260_v26 = vrot.slane %v1259_v25, 1  ;;  %v1267_v27 = vrot.slane %v1266_v20, 1  ;;  %v1283_v8 = vrot.slane %v2687_v63, %v2853_v49  ;;  %v1287_v29 = vrot.slane %v2687_v63, %v2858_v52 }
  0xf1   :  { %v1292_v14 = vmul.f32 %v1275_v3, %v1219_v13  ;;  %v1293_v15 = vmul.f32 %v1279_v56, %v1226_v41  ;;  %v1296_v42 = vmul.f32 %v1275_v3, %v1247_v51  ;;  %v1297_v30 = vmul.f32 %v1279_v56, %v1254_v23 }
  0xf2   :  { %v1261_v34 = vadd.f32 %v1260_v26, %v1259_v25  ;;  %v1268_v35 = vadd.f32 %v1267_v27, %v1266_v20  ;;  %v1294_v17 = vmul.f32 %v1283_v8, %v1233_v44  ;;  %v1295_v36 = vmul.f32 %v1287_v29, %v1240_v38 }
  0xf3   :  { %v3418_v45 = vadd.f32 %v1292_v14, %v3339_v18  ;;  %v3421_v11 = vadd.f32 %v1293_v15, %v3342_v19  ;;  %v3424_v61 = vadd.f32 %v1296_v42, %v3345_v37  ;;  %v3427_v46 = vadd.f32 %v1297_v30, %v3348_v24  ;;  %v2691_v19 = vld [vmem:[%s4058_s0 + $0x38] sm:$0x11]  ;;  %v2692_v37 = vld [vmem:[%s4058_s0 + $0x70] sm:$0x11] }
  0xf4   :  { %v1298_v54 = vmul.f32 %v1283_v8, %v1261_v34  ;;  %v1299_v22 = vmul.f32 %v1287_v29, %v1268_v35  ;;  %v3433_v47 = vadd.f32 %v1294_v17, %v3354_v5  ;;  %v3436_v18 = vadd.f32 %v1295_v36, %v3357_v2  ;;  %v2693_v24 = vld [vmem:[%s4058_s0 + $0x78] sm:$0x11]  ;;  %v2694_v5 = vld [vmem:[%s4058_s0 + $0x80] sm:$0x11] }
  0xf5   :  { %v1317_v50 = vunpack.c.l.bf16 %v2688_v39  ;;  %v1318_v1 = vunpack.c.h.bf16 %v2688_v39  ;;  %v1319_v2 = vunpack.c.l.bf16 %v2689_v40  ;;  %v1320_v31 = vunpack.c.h.bf16 %v2689_v40 }
  0xf6   :  { %v3451_v53 = vadd.f32 %v1298_v54, %v3372_v21  ;;  %v3454_v55 = vadd.f32 %v1299_v22, %v3375_v32  ;;  %v1321_v28 = vunpack.c.l.bf16 %v2690_v62  ;;  %v1322_v10 = vunpack.c.h.bf16 %v2690_v62 }
  0xf7   :  { %v1323_v33 = vunpack.c.l.bf16 %v2691_v19  ;;  %v1324_v57 = vunpack.c.h.bf16 %v2691_v19  ;;  %v1325_v59 = vunpack.c.l.bf16 %v2692_v37  ;;  %v1326_v7 = vunpack.c.h.bf16 %v2692_v37 }
  0xf8   :  { %v1327_v60 = vunpack.c.l.bf16 %v2693_v24  ;;  %v1328_v63 = vunpack.c.h.bf16 %v2693_v24  ;;  %v1329_v0 = vunpack.c.l.bf16 %v2694_v5  ;;  %v1330_v6 = vunpack.c.h.bf16 %v2694_v5 }
  0xf9   :  { %v1331_v58 = vunpack.c.l.bf16 %v2695_v9  ;;  %v1332_v21 = vunpack.c.h.bf16 %v2695_v9  ;;  %v1333_v12 = vsel %vm40_vm0, %v1317_v50, 0.0  ;;  %v1334_v32 = vsel %vm40_vm0, %v1321_v28, 0.0 }
  0xfa   :  { %v1335_v13 = vadd.f32 %v1334_v32, %v1333_v12  ;;  %v1336_v41 = vsel %vm40_vm0, %v1318_v1, 0.0  ;;  %v1337_v16 = vsel %vm40_vm0, %v1322_v10, 0.0  ;;  %v1339_v43 = vsel %vm40_vm0, %v1319_v2, 0.0 }
  0xfb   :  { %v1338_v44 = vadd.f32 %v1337_v16, %v1336_v41  ;;  %v1340_v38 = vsel %vm40_vm0, %v1323_v33, 0.0  ;;  %v1342_v25 = vsel %vm40_vm0, %v1320_v31, 0.0  ;;  %v1343_v20 = vsel %vm40_vm0, %v1324_v57, 0.0 }
  0xfc   :  { %v1341_v51 = vadd.f32 %v1340_v38, %v1339_v43  ;;  %v1344_v23 = vadd.f32 %v1343_v20, %v1342_v25  ;;  %v1345_v3 = vsel %vm40_vm0, %v1325_v59, 0.0  ;;  %v1346_v56 = vsel %vm40_vm0, %v1329_v0, 0.0 }
  0xfd   :  { %v1347_v26 = vadd.f32 %v1346_v56, %v1345_v3  ;;  %v1348_v27 = vsel %vm40_vm0, %v1326_v7, 0.0  ;;  %v1349_v8 = vsel %vm40_vm0, %v1330_v6, 0.0  ;;  %v1351_v29 = vsel %vm40_vm0, %v1327_v60, 0.0 }
  0xfe   :  { %v1350_v14 = vadd.f32 %v1349_v8, %v1348_v27  ;;  %v1352_v15 = vsel %vm40_vm0, %v1331_v58, 0.0  ;;  %v1354_v42 = vsel %vm40_vm0, %v1328_v63, 0.0  ;;  %v1355_v30 = vsel %vm40_vm0, %v1332_v21, 0.0 }
  0xff   :  { %v1353_v34 = vadd.f32 %v1352_v15, %v1351_v29  ;;  %v1356_v35 = vadd.f32 %v1355_v30, %v1354_v42  ;;  %v1357_v17 = vsel %vm40_vm0, %v1335_v13, 0.0  ;;  %v1364_v36 = vsel %vm40_vm0, %v1338_v44, 0.0 }
 0x100   :  { %v1358_v39 = vrot.slane %v1357_v17, 4  ;;  %v1365_v40 = vrot.slane %v1364_v36, 4  ;;  %v1371_v62 = vsel %vm40_vm0, %v1341_v51, 0.0  ;;  %v1378_v54 = vsel %vm40_vm0, %v1344_v23, 0.0 }
 0x101   :  { %v1372_v22 = vrot.slane %v1371_v62, 4  ;;  %v1379_v19 = vrot.slane %v1378_v54, 4  ;;  %v1385_v37 = vsel %vm40_vm0, %v1347_v26, 0.0  ;;  %v1392_v24 = vsel %vm40_vm0, %v1350_v14, 0.0 }
 0x102   :  { %v1359_v5 = vadd.f32 %v1358_v39, %v1357_v17  ;;  %v1366_v50 = vadd.f32 %v1365_v40, %v1364_v36  ;;  %v1386_v1 = vrot.slane %v1385_v37, 4  ;;  %v1393_v2 = vrot.slane %v1392_v24, 4  ;;  %v2696_v51 = vld [vmem:[%s4060_s1 + $0x20] ss:$8 sm:$0xf] }
 0x103   :  { %v1373_v31 = vadd.f32 %v1372_v22, %v1371_v62  ;;  %v1380_v9 = vadd.f32 %v1379_v19, %v1378_v54  ;;  %v1399_v28 = vsel %vm40_vm0, %v1353_v34, 0.0  ;;  %v1406_v10 = vsel %vm40_vm0, %v1356_v35, 0.0 }
 0x104   :  { %v1360_v33 = vrot.slane %v1359_v5, 2  ;;  %v1367_v57 = vrot.slane %v1366_v50, 2  ;;  %v1387_v59 = vadd.f32 %v1386_v1, %v1385_v37  ;;  %v1394_v7 = vadd.f32 %v1393_v2, %v1392_v24 }
 0x105   :  { %v1374_v60 = vrot.slane %v1373_v31, 2  ;;  %v1381_v63 = vrot.slane %v1380_v9, 2  ;;  %v1400_v0 = vrot.slane %v1399_v28, 4  ;;  %v1407_v6 = vrot.slane %v1406_v10, 4 }
 0x106   :  { %v1361_v58 = vadd.f32 %v1360_v33, %v1359_v5  ;;  %v1368_v21 = vadd.f32 %v1367_v57, %v1366_v50  ;;  %v1388_v12 = vrot.slane %v1387_v59, 2  ;;  %v1395_v32 = vrot.slane %v1394_v7, 2 }
 0x107   :  { %v1375_v13 = vadd.f32 %v1374_v60, %v1373_v31  ;;  %v1382_v41 = vadd.f32 %v1381_v63, %v1380_v9  ;;  %v1401_v16 = vadd.f32 %v1400_v0, %v1399_v28  ;;  %v1408_v43 = vadd.f32 %v1407_v6, %v1406_v10  ;;  %v2697_v9 = vld [vmem:[%s4058_s0 + $0x20] sm:$0x33]  ;;  %v2698_v28 = vld [vmem:[%s4058_s0 + $0x28] sm:$0x33] }
 0x108   :  { %v1362_v44 = vrot.slane %v1361_v58, 1  ;;  %v1369_v38 = vrot.slane %v1368_v21, 1  ;;  %v1389_v25 = vadd.f32 %v1388_v12, %v1387_v59  ;;  %v1396_v20 = vadd.f32 %v1395_v32, %v1394_v7  ;;  %v2699_v7 = vld [vmem:[%s4058_s0 + $0x30] sm:$0x33] }
 0x109   :  { %v1376_v23 = vrot.slane %v1375_v13, 1  ;;  %v1383_v3 = vrot.slane %v1382_v41, 1  ;;  %v1402_v56 = vrot.slane %v1401_v16, 2  ;;  %v1409_v26 = vrot.slane %v1408_v43, 2 }
 0x10a   :  { %v1363_v27 = vadd.f32 %v1362_v44, %v1361_v58  ;;  %v1370_v8 = vadd.f32 %v1369_v38, %v1368_v21  ;;  %v1390_v29 = vrot.slane %v1389_v25, 1  ;;  %v1397_v14 = vrot.slane %v1396_v20, 1 }
 0x10b   :  { %v1377_v15 = vadd.f32 %v1376_v23, %v1375_v13  ;;  %v1384_v42 = vadd.f32 %v1383_v3, %v1382_v41  ;;  %v1403_v30 = vadd.f32 %v1402_v56, %v1401_v16  ;;  %v1410_v34 = vadd.f32 %v1409_v26, %v1408_v43  ;;  %v2704_v13 = vld [vmem:[%s4058_s0 + $0x88] sm:$0x33] }
 0x10c   :  { %v1391_v35 = vadd.f32 %v1390_v29, %v1389_v25  ;;  %v1398_v17 = vadd.f32 %v1397_v14, %v1396_v20  ;;  %v1419_v36 = vrot.slane %v2696_v51, %v2849_v48  ;;  %v1423_v39 = vrot.slane %v2696_v51, %v2851_v4 }
 0x10d   :  { %v1404_v40 = vrot.slane %v1403_v30, 1  ;;  %v1411_v62 = vrot.slane %v1410_v34, 1  ;;  %v1427_v54 = vrot.slane %v2696_v51, %v2853_v49  ;;  %v1431_v22 = vrot.slane %v2696_v51, %v2858_v52 }
 0x10e   :  { %v1436_v19 = vmul.f32 %v1419_v36, %v1363_v27  ;;  %v1437_v37 = vmul.f32 %v1423_v39, %v1370_v8  ;;  %v1440_v24 = vmul.f32 %v1419_v36, %v1391_v35  ;;  %v1441_v5 = vmul.f32 %v1423_v39, %v1398_v17 }
 0x10f   :  { %v1405_v50 = vadd.f32 %v1404_v40, %v1403_v30  ;;  %v1412_v1 = vadd.f32 %v1411_v62, %v1410_v34  ;;  %v1438_v2 = vmul.f32 %v1427_v54, %v1377_v15  ;;  %v1439_v31 = vmul.f32 %v1431_v22, %v1384_v42 }
 0x110   :  { %v3497_v10 = vadd.f32 %v1436_v19, %v3418_v45  ;;  %v3500_v33 = vadd.f32 %v1437_v37, %v3421_v11  ;;  %v3503_v57 = vadd.f32 %v1440_v24, %v3424_v61  ;;  %v3506_v59 = vadd.f32 %v1441_v5, %v3427_v46  ;;  %v2700_v11 = vld [vmem:[%s4058_s0 + $0x38] sm:$0x33]  ;;  %v2701_v61 = vld [vmem:[%s4058_s0 + $0x70] sm:$0x33] }
 0x111   :  { %v1442_v60 = vmul.f32 %v1427_v54, %v1405_v50  ;;  %v1443_v63 = vmul.f32 %v1431_v22, %v1412_v1  ;;  %v3512_v0 = vadd.f32 %v1438_v2, %v3433_v47  ;;  %v3515_v45 = vadd.f32 %v1439_v31, %v3436_v18  ;;  %v2702_v46 = vld [vmem:[%s4058_s0 + $0x78] sm:$0x33]  ;;  %v2703_v47 = vld [vmem:[%s4058_s0 + $0x80] sm:$0x33] }
 0x112   :  { %v1460_v6 = vunpack.c.l.bf16 %v2697_v9  ;;  %v1461_v58 = vunpack.c.h.bf16 %v2697_v9  ;;  %v1462_v18 = vunpack.c.l.bf16 %v2698_v28  ;;  %v1463_v21 = vunpack.c.h.bf16 %v2698_v28 }
 0x113   :  { %v3530_v12 = vadd.f32 %v1442_v60, %v3451_v53  ;;  %v3533_v32 = vadd.f32 %v1443_v63, %v3454_v55  ;;  %v1464_v41 = vunpack.c.l.bf16 %v2699_v7  ;;  %v1465_v16 = vunpack.c.h.bf16 %v2699_v7 }
 0x114   :  { %v1466_v43 = vunpack.c.l.bf16 %v2700_v11  ;;  %v1467_v44 = vunpack.c.h.bf16 %v2700_v11  ;;  %v1468_v38 = vunpack.c.l.bf16 %v2701_v61  ;;  %v1469_v25 = vunpack.c.h.bf16 %v2701_v61 }
 0x115   :  { %v1470_v20 = vunpack.c.l.bf16 %v2702_v46  ;;  %v1471_v51 = vunpack.c.h.bf16 %v2702_v46  ;;  %v1472_v23 = vunpack.c.l.bf16 %v2703_v47  ;;  %v1473_v3 = vunpack.c.h.bf16 %v2703_v47 }
 0x116   :  { %v1474_v56 = vunpack.c.l.bf16 %v2704_v13  ;;  %v1475_v53 = vunpack.c.h.bf16 %v2704_v13  ;;  %v1476_v26 = vsel %vm183_vm1, %v1460_v6, 0.0  ;;  %v1477_v55 = vsel %vm183_vm1, %v1464_v41, 0.0 }
 0x117   :  { %v1478_v27 = vadd.f32 %v1477_v55, %v1476_v26  ;;  %v1479_v8 = vsel %vm183_vm1, %v1461_v58, 0.0  ;;  %v1480_v29 = vsel %vm183_vm1, %v1465_v16, 0.0  ;;  %v1482_v14 = vsel %vm183_vm1, %v1462_v18, 0.0 }
 0x118   :  { %v1481_v15 = vadd.f32 %v1480_v29, %v1479_v8  ;;  %v1483_v42 = vsel %vm183_vm1, %v1466_v43, 0.0  ;;  %v1485_v30 = vsel %vm183_vm1, %v1463_v21, 0.0  ;;  %v1486_v34 = vsel %vm183_vm1, %v1467_v44, 0.0 }
 0x119   :  { %v1484_v35 = vadd.f32 %v1483_v42, %v1482_v14  ;;  %v1487_v17 = vadd.f32 %v1486_v34, %v1485_v30  ;;  %v1488_v36 = vsel %vm183_vm1, %v1468_v38, 0.0  ;;  %v1489_v39 = vsel %vm183_vm1, %v1472_v23, 0.0 }
 0x11a   :  { %v1490_v40 = vadd.f32 %v1489_v39, %v1488_v36  ;;  %v1491_v62 = vsel %vm183_vm1, %v1469_v25, 0.0  ;;  %v1492_v54 = vsel %vm183_vm1, %v1473_v3, 0.0  ;;  %v1494_v22 = vsel %vm183_vm1, %v1470_v20, 0.0 }
 0x11b   :  { %v1493_v19 = vadd.f32 %v1492_v54, %v1491_v62  ;;  %v1495_v37 = vsel %vm183_vm1, %v1474_v56, 0.0  ;;  %v1497_v24 = vsel %vm183_vm1, %v1471_v51, 0.0  ;;  %v1498_v5 = vsel %vm183_vm1, %v1475_v53, 0.0 }
 0x11c   :  { %v1496_v50 = vadd.f32 %v1495_v37, %v1494_v22  ;;  %v1499_v1 = vadd.f32 %v1498_v5, %v1497_v24  ;;  %v1508_v2 = vrot.slane %v1478_v27, 1  ;;  %v1509_v31 = vrot.slane %v1481_v15, 1 }
 0x11d   :  { %v1510_v9 = vrot.slane %v1484_v35, 1  ;;  %v1511_v28 = vrot.slane %v1487_v17, 1  ;;  %v1512_v7 = vrot.slane %v1490_v40, 1  ;;  %v1513_v60 = vrot.slane %v1493_v19, 1 }
 0x11e   :  { %v1514_v63 = vrot.slane %v1496_v50, 1  ;;  %v1515_v11 = vrot.slane %v1499_v1, 1  ;;  %v1524_v61 = vsel %vm40_vm0, %v1508_v2, 0.0  ;;  %v1531_v46 = vsel %vm40_vm0, %v1509_v31, 0.0 }
 0x11f   :  { %v1525_v47 = vrot.slane %v1524_v61, 4  ;;  %v1532_v6 = vrot.slane %v1531_v46, 4  ;;  %v1538_v58 = vsel %vm40_vm0, %v1510_v9, 0.0  ;;  %v1545_v18 = vsel %vm40_vm0, %v1511_v28, 0.0 }
 0x120   :  { %v1539_v21 = vrot.slane %v1538_v58, 4  ;;  %v1546_v13 = vrot.slane %v1545_v18, 4  ;;  %v1552_v41 = vsel %vm40_vm0, %v1512_v7, 0.0  ;;  %v1559_v16 = vsel %vm40_vm0, %v1513_v60, 0.0 }
 0x121   :  { %v1526_v43 = vadd.f32 %v1525_v47, %v1524_v61  ;;  %v1533_v44 = vadd.f32 %v1532_v6, %v1531_v46  ;;  %v1553_v38 = vrot.slane %v1552_v41, 4  ;;  %v1560_v25 = vrot.slane %v1559_v16, 4  ;;  %v2705_v19 = vld [vmem:[%s4060_s1 + $0x21] ss:$8 sm:$0xf] }
 0x122   :  { %v1540_v20 = vadd.f32 %v1539_v21, %v1538_v58  ;;  %v1547_v51 = vadd.f32 %v1546_v13, %v1545_v18  ;;  %v1566_v23 = vsel %vm40_vm0, %v1514_v63, 0.0  ;;  %v1573_v3 = vsel %vm40_vm0, %v1515_v11, 0.0 }
 0x123   :  { %v1527_v56 = vrot.slane %v1526_v43, 2  ;;  %v1534_v53 = vrot.slane %v1533_v44, 2  ;;  %v1554_v26 = vadd.f32 %v1553_v38, %v1552_v41  ;;  %v1561_v55 = vadd.f32 %v1560_v25, %v1559_v16 }
 0x124   :  { %v1541_v27 = vrot.slane %v1540_v20, 2  ;;  %v1548_v8 = vrot.slane %v1547_v51, 2  ;;  %v1567_v29 = vrot.slane %v1566_v23, 4  ;;  %v1574_v14 = vrot.slane %v1573_v3, 4 }
 0x125   :  { %v1528_v15 = vadd.f32 %v1527_v56, %v1526_v43  ;;  %v1535_v42 = vadd.f32 %v1534_v53, %v1533_v44  ;;  %v1555_v30 = vrot.slane %v1554_v26, 2  ;;  %v1562_v34 = vrot.slane %v1561_v55, 2 }
 0x126   :  { %v1542_v35 = vadd.f32 %v1541_v27, %v1540_v20  ;;  %v1549_v17 = vadd.f32 %v1548_v8, %v1547_v51  ;;  %v1568_v36 = vadd.f32 %v1567_v29, %v1566_v23  ;;  %v1575_v39 = vadd.f32 %v1574_v14, %v1573_v3  ;;  %v2706_v51 = vld [vmem:[%s4058_s0 + $0x20] sm:$0x22]  ;;  %v2707_v23 = vld [vmem:[%s4058_s0 + $0x28] sm:$0x22] }
 0x127   :  { %v1529_v40 = vrot.slane %v1528_v15, 1  ;;  %v1536_v62 = vrot.slane %v1535_v42, 1  ;;  %v1556_v54 = vadd.f32 %v1555_v30, %v1554_v26  ;;  %v1563_v22 = vadd.f32 %v1562_v34, %v1561_v55  ;;  %v2708_v55 = vld [vmem:[%s4058_s0 + $0x30] sm:$0x22] }
 0x128   :  { %v1543_v37 = vrot.slane %v1542_v35, 1  ;;  %v1550_v24 = vrot.slane %v1549_v17, 1  ;;  %v1569_v5 = vrot.slane %v1568_v36, 2  ;;  %v1576_v50 = vrot.slane %v1575_v39, 2 }
 0x129   :  { %v1530_v1 = vadd.f32 %v1529_v40, %v1528_v15  ;;  %v1537_v2 = vadd.f32 %v1536_v62, %v1535_v42  ;;  %v1557_v31 = vrot.slane %v1556_v54, 1  ;;  %v1564_v9 = vrot.slane %v1563_v22, 1 }
 0x12a   :  { %v1544_v28 = vadd.f32 %v1543_v37, %v1542_v35  ;;  %v1551_v7 = vadd.f32 %v1550_v24, %v1549_v17  ;;  %v1570_v60 = vadd.f32 %v1569_v5, %v1568_v36  ;;  %v1577_v63 = vadd.f32 %v1576_v50, %v1575_v39  ;;  %v2713_v35 = vld [vmem:[%s4058_s0 + $0x88] sm:$0x22] }
 0x12b   :  { %v1558_v11 = vadd.f32 %v1557_v31, %v1556_v54  ;;  %v1565_v61 = vadd.f32 %v1564_v9, %v1563_v22  ;;  %v1586_v46 = vrot.slane %v2705_v19, %v2849_v48  ;;  %v1590_v47 = vrot.slane %v2705_v19, %v2851_v4 }
 0x12c   :  { %v1571_v6 = vrot.slane %v1570_v60, 1  ;;  %v1578_v58 = vrot.slane %v1577_v63, 1  ;;  %v1594_v18 = vrot.slane %v2705_v19, %v2853_v49  ;;  %v1598_v21 = vrot.slane %v2705_v19, %v2858_v52 }
 0x12d   :  { %v1603_v13 = vmul.f32 %v1586_v46, %v1530_v1  ;;  %v1604_v41 = vmul.f32 %v1590_v47, %v1537_v2  ;;  %v1607_v16 = vmul.f32 %v1586_v46, %v1558_v11  ;;  %v1608_v43 = vmul.f32 %v1590_v47, %v1565_v61 }
 0x12e   :  { %v1572_v44 = vadd.f32 %v1571_v6, %v1570_v60  ;;  %v1579_v38 = vadd.f32 %v1578_v58, %v1577_v63  ;;  %v1605_v25 = vmul.f32 %v1594_v18, %v1544_v28  ;;  %v1606_v20 = vmul.f32 %v1598_v21, %v1551_v7 }
 0x12f   :  { %v3576_v3 = vadd.f32 %v1603_v13, %v3497_v10  ;;  %v3579_v56 = vadd.f32 %v1604_v41, %v3500_v33  ;;  %v3582_v53 = vadd.f32 %v1607_v16, %v3503_v57  ;;  %v3585_v26 = vadd.f32 %v1608_v43, %v3506_v59  ;;  %v2709_v33 = vld [vmem:[%s4058_s0 + $0x38] sm:$0x22]  ;;  %v2710_v57 = vld [vmem:[%s4058_s0 + $0x70] sm:$0x22] }
 0x130   :  { %v1609_v27 = vmul.f32 %v1594_v18, %v1572_v44  ;;  %v1610_v8 = vmul.f32 %v1598_v21, %v1579_v38  ;;  %v3591_v29 = vadd.f32 %v1605_v25, %v3512_v0  ;;  %v3594_v10 = vadd.f32 %v1606_v20, %v3515_v45  ;;  %v2711_v59 = vld [vmem:[%s4058_s0 + $0x78] sm:$0x22]  ;;  %v2712_v0 = vld [vmem:[%s4058_s0 + $0x80] sm:$0x22] }
 0x131   :  { %v1627_v14 = vunpack.c.l.bf16 %v2706_v51  ;;  %v1628_v15 = vunpack.c.h.bf16 %v2706_v51  ;;  %v1629_v45 = vunpack.c.l.bf16 %v2707_v23  ;;  %v1630_v42 = vunpack.c.h.bf16 %v2707_v23 }
 0x132   :  { %v3609_v30 = vadd.f32 %v1609_v27, %v3530_v12  ;;  %v3612_v34 = vadd.f32 %v1610_v8, %v3533_v32  ;;  %v1631_v17 = vunpack.c.l.bf16 %v2708_v55  ;;  %v1632_v36 = vunpack.c.h.bf16 %v2708_v55 }
 0x133   :  { %v1633_v39 = vunpack.c.l.bf16 %v2709_v33  ;;  %v1634_v40 = vunpack.c.h.bf16 %v2709_v33  ;;  %v1635_v62 = vunpack.c.l.bf16 %v2710_v57  ;;  %v1636_v54 = vunpack.c.h.bf16 %v2710_v57 }
 0x134   :  { %v1637_v22 = vunpack.c.l.bf16 %v2711_v59  ;;  %v1638_v19 = vunpack.c.h.bf16 %v2711_v59  ;;  %v1639_v37 = vunpack.c.l.bf16 %v2712_v0  ;;  %v1640_v24 = vunpack.c.h.bf16 %v2712_v0 }
 0x135   :  { %v1641_v5 = vunpack.c.l.bf16 %v2713_v35  ;;  %v1642_v12 = vunpack.c.h.bf16 %v2713_v35  ;;  %v1643_v50 = vsel %vm351_vm2, %v1627_v14, 0.0  ;;  %v1644_v32 = vsel %vm351_vm2, %v1631_v17, 0.0 }
 0x136   :  { %v1645_v1 = vadd.f32 %v1644_v32, %v1643_v50  ;;  %v1646_v2 = vsel %vm351_vm2, %v1628_v15, 0.0  ;;  %v1647_v31 = vsel %vm351_vm2, %v1632_v36, 0.0  ;;  %v1649_v9 = vsel %vm351_vm2, %v1629_v45, 0.0 }
 0x137   :  { %v1648_v28 = vadd.f32 %v1647_v31, %v1646_v2  ;;  %v1650_v7 = vsel %vm351_vm2, %v1633_v39, 0.0  ;;  %v1652_v60 = vsel %vm351_vm2, %v1630_v42, 0.0  ;;  %v1653_v63 = vsel %vm351_vm2, %v1634_v40, 0.0 }
 0x138   :  { %v1651_v11 = vadd.f32 %v1650_v7, %v1649_v9  ;;  %v1654_v61 = vadd.f32 %v1653_v63, %v1652_v60  ;;  %v1655_v46 = vsel %vm351_vm2, %v1635_v62, 0.0  ;;  %v1656_v47 = vsel %vm351_vm2, %v1639_v37, 0.0 }
 0x139   :  { %v1657_v6 = vadd.f32 %v1656_v47, %v1655_v46  ;;  %v1658_v58 = vsel %vm351_vm2, %v1636_v54, 0.0  ;;  %v1659_v18 = vsel %vm351_vm2, %v1640_v24, 0.0  ;;  %v1661_v21 = vsel %vm351_vm2, %v1637_v22, 0.0 }
 0x13a   :  { %v1660_v13 = vadd.f32 %v1659_v18, %v1658_v58  ;;  %v1662_v41 = vsel %vm351_vm2, %v1641_v5, 0.0  ;;  %v1664_v16 = vsel %vm351_vm2, %v1638_v19, 0.0  ;;  %v1665_v43 = vsel %vm351_vm2, %v1642_v12, 0.0 }
 0x13b   :  { %v1663_v44 = vadd.f32 %v1662_v41, %v1661_v21  ;;  %v1666_v38 = vadd.f32 %v1665_v43, %v1664_v16  ;;  %v1675_v25 = vrot.slane %v1645_v1, 2  ;;  %v1676_v20 = vrot.slane %v1648_v28, 2 }
 0x13c   :  { %v1677_v51 = vrot.slane %v1651_v11, 2  ;;  %v1678_v23 = vrot.slane %v1654_v61, 2  ;;  %v1679_v55 = vrot.slane %v1657_v6, 2  ;;  %v1680_v27 = vrot.slane %v1660_v13, 2 }
 0x13d   :  { %v1681_v8 = vrot.slane %v1663_v44, 2  ;;  %v1682_v33 = vrot.slane %v1666_v38, 2  ;;  %v1691_v57 = vsel %vm40_vm0, %v1675_v25, 0.0  ;;  %v1698_v59 = vsel %vm40_vm0, %v1676_v20, 0.0 }
 0x13e   :  { %v1692_v0 = vrot.slane %v1691_v57, 4  ;;  %v1699_v14 = vrot.slane %v1698_v59, 4  ;;  %v1705_v15 = vsel %vm40_vm0, %v1677_v51, 0.0  ;;  %v1712_v45 = vsel %vm40_vm0, %v1678_v23, 0.0 }
 0x13f   :  { %v1706_v42 = vrot.slane %v1705_v15, 4  ;;  %v1713_v35 = vrot.slane %v1712_v45, 4  ;;  %v1719_v17 = vsel %vm40_vm0, %v1679_v55, 0.0  ;;  %v1726_v36 = vsel %vm40_vm0, %v1680_v27, 0.0 }
 0x140   :  { %v1693_v39 = vadd.f32 %v1692_v0, %v1691_v57  ;;  %v1700_v40 = vadd.f32 %v1699_v14, %v1698_v59  ;;  %v1720_v62 = vrot.slane %v1719_v17, 4  ;;  %v1727_v54 = vrot.slane %v1726_v36, 4  ;;  %v2714_v13 = vld [vmem:[%s4060_s1 + $0x22] ss:$8 sm:$0xf] }
 0x141   :  { %v1707_v22 = vadd.f32 %v1706_v42, %v1705_v15  ;;  %v1714_v19 = vadd.f32 %v1713_v35, %v1712_v45  ;;  %v1733_v37 = vsel %vm40_vm0, %v1681_v8, 0.0  ;;  %v1740_v24 = vsel %vm40_vm0, %v1682_v33, 0.0 }
 0x142   :  { %v1694_v5 = vrot.slane %v1693_v39, 2  ;;  %v1701_v12 = vrot.slane %v1700_v40, 2  ;;  %v1721_v50 = vadd.f32 %v1720_v62, %v1719_v17  ;;  %v1728_v32 = vadd.f32 %v1727_v54, %v1726_v36 }
 0x143   :  { %v1708_v1 = vrot.slane %v1707_v22, 2  ;;  %v1715_v2 = vrot.slane %v1714_v19, 2  ;;  %v1734_v31 = vrot.slane %v1733_v37, 4  ;;  %v1741_v9 = vrot.slane %v1740_v24, 4 }
 0x144   :  { %v1695_v28 = vadd.f32 %v1694_v5, %v1693_v39  ;;  %v1702_v7 = vadd.f32 %v1701_v12, %v1700_v40  ;;  %v1722_v60 = vrot.slane %v1721_v50, 2  ;;  %v1729_v63 = vrot.slane %v1728_v32, 2 }
 0x145   :  { %v1709_v11 = vadd.f32 %v1708_v1, %v1707_v22  ;;  %v1716_v61 = vadd.f32 %v1715_v2, %v1714_v19  ;;  %v1735_v46 = vadd.f32 %v1734_v31, %v1733_v37  ;;  %v1742_v47 = vadd.f32 %v1741_v9, %v1740_v24  ;;  %v2715_v19 = vld [vmem:[%s4058_s0 + $0x20] sm:$0x66]  ;;  %v2716_v37 = vld [vmem:[%s4058_s0 + $0x28] sm:$0x66] }
 0x146   :  { %v1696_v6 = vrot.slane %v1695_v28, 1  ;;  %v1703_v58 = vrot.slane %v1702_v7, 1  ;;  %v1723_v18 = vadd.f32 %v1722_v60, %v1721_v50  ;;  %v1730_v21 = vadd.f32 %v1729_v63, %v1728_v32  ;;  %v2717_v32 = vld [vmem:[%s4058_s0 + $0x30] sm:$0x66] }
 0x147   :  { %v1710_v41 = vrot.slane %v1709_v11, 1  ;;  %v1717_v16 = vrot.slane %v1716_v61, 1  ;;  %v1736_v43 = vrot.slane %v1735_v46, 2  ;;  %v1743_v44 = vrot.slane %v1742_v47, 2 }
 0x148   :  { %v1697_v38 = vadd.f32 %v1696_v6, %v1695_v28  ;;  %v1704_v25 = vadd.f32 %v1703_v58, %v1702_v7  ;;  %v1724_v20 = vrot.slane %v1723_v18, 1  ;;  %v1731_v51 = vrot.slane %v1730_v21, 1 }
 0x149   :  { %v1711_v23 = vadd.f32 %v1710_v41, %v1709_v11  ;;  %v1718_v55 = vadd.f32 %v1717_v16, %v1716_v61  ;;  %v1737_v27 = vadd.f32 %v1736_v43, %v1735_v46  ;;  %v1744_v8 = vadd.f32 %v1743_v44, %v1742_v47  ;;  %v2722_v11 = vld [vmem:[%s4058_s0 + $0x88] sm:$0x66] }
 0x14a   :  { %v1725_v33 = vadd.f32 %v1724_v20, %v1723_v18  ;;  %v1732_v57 = vadd.f32 %v1731_v51, %v1730_v21  ;;  %v1753_v59 = vrot.slane %v2714_v13, %v2849_v48  ;;  %v1757_v0 = vrot.slane %v2714_v13, %v2851_v4 }
 0x14b   :  { %v1738_v14 = vrot.slane %v1737_v27, 1  ;;  %v1745_v15 = vrot.slane %v1744_v8, 1  ;;  %v1761_v45 = vrot.slane %v2714_v13, %v2853_v49  ;;  %v1765_v42 = vrot.slane %v2714_v13, %v2858_v52 }
 0x14c   :  { %v1770_v35 = vmul.f32 %v1753_v59, %v1697_v38  ;;  %v1771_v17 = vmul.f32 %v1757_v0, %v1704_v25  ;;  %v1774_v36 = vmul.f32 %v1753_v59, %v1725_v33  ;;  %v1775_v39 = vmul.f32 %v1757_v0, %v1732_v57 }
 0x14d   :  { %v1739_v40 = vadd.f32 %v1738_v14, %v1737_v27  ;;  %v1746_v62 = vadd.f32 %v1745_v15, %v1744_v8  ;;  %v1772_v54 = vmul.f32 %v1761_v45, %v1711_v23  ;;  %v1773_v22 = vmul.f32 %v1765_v42, %v1718_v55 }
 0x14e   :  { %v3655_v24 = vadd.f32 %v1770_v35, %v3576_v3  ;;  %v3658_v5 = vadd.f32 %v1771_v17, %v3579_v56  ;;  %v3661_v12 = vadd.f32 %v1774_v36, %v3582_v53  ;;  %v3664_v50 = vadd.f32 %v1775_v39, %v3585_v26  ;;  %v2718_v56 = vld [vmem:[%s4058_s0 + $0x38] sm:$0x66]  ;;  %v2719_v53 = vld [vmem:[%s4058_s0 + $0x70] sm:$0x66] }
 0x14f   :  { %v1776_v1 = vmul.f32 %v1761_v45, %v1739_v40  ;;  %v1777_v2 = vmul.f32 %v1765_v42, %v1746_v62  ;;  %v3670_v31 = vadd.f32 %v1772_v54, %v3591_v29  ;;  %v3673_v3 = vadd.f32 %v1773_v22, %v3594_v10  ;;  %v2720_v26 = vld [vmem:[%s4058_s0 + $0x78] sm:$0x66]  ;;  %v2721_v29 = vld [vmem:[%s4058_s0 + $0x80] sm:$0x66] }
 0x150   :  { %v1794_v9 = vunpack.c.l.bf16 %v2715_v19  ;;  %v1795_v28 = vunpack.c.h.bf16 %v2715_v19  ;;  %v1796_v10 = vunpack.c.l.bf16 %v2716_v37  ;;  %v1797_v7 = vunpack.c.h.bf16 %v2716_v37 }
 0x151   :  { %v3688_v60 = vadd.f32 %v1776_v1, %v3609_v30  ;;  %v3691_v63 = vadd.f32 %v1777_v2, %v3612_v34  ;;  %v1798_v61 = vunpack.c.l.bf16 %v2717_v32  ;;  %v1799_v46 = vunpack.c.h.bf16 %v2717_v32 }
 0x152   :  { %v1800_v47 = vunpack.c.l.bf16 %v2718_v56  ;;  %v1801_v6 = vunpack.c.h.bf16 %v2718_v56  ;;  %v1802_v58 = vunpack.c.l.bf16 %v2719_v53  ;;  %v1803_v18 = vunpack.c.h.bf16 %v2719_v53 }
 0x153   :  { %v1804_v21 = vunpack.c.l.bf16 %v2720_v26  ;;  %v1805_v13 = vunpack.c.h.bf16 %v2720_v26  ;;  %v1806_v41 = vunpack.c.l.bf16 %v2721_v29  ;;  %v1807_v16 = vunpack.c.h.bf16 %v2721_v29 }
 0x154   :  { %v1808_v43 = vunpack.c.l.bf16 %v2722_v11  ;;  %v1809_v30 = vunpack.c.h.bf16 %v2722_v11  ;;  %v1810_v44 = vsel %vm519_vm3, %v1794_v9, 0.0  ;;  %v1811_v34 = vsel %vm519_vm3, %v1798_v61, 0.0 }
 0x155   :  { %v1812_v38 = vadd.f32 %v1811_v34, %v1810_v44  ;;  %v1813_v25 = vsel %vm519_vm3, %v1795_v28, 0.0  ;;  %v1814_v20 = vsel %vm519_vm3, %v1799_v46, 0.0  ;;  %v1816_v51 = vsel %vm519_vm3, %v1796_v10, 0.0 }
 0x156   :  { %v1815_v23 = vadd.f32 %v1814_v20, %v1813_v25  ;;  %v1817_v55 = vsel %vm519_vm3, %v1800_v47, 0.0  ;;  %v1819_v27 = vsel %vm519_vm3, %v1797_v7, 0.0  ;;  %v1820_v8 = vsel %vm519_vm3, %v1801_v6, 0.0 }
 0x157   :  { %v1818_v33 = vadd.f32 %v1817_v55, %v1816_v51  ;;  %v1821_v57 = vadd.f32 %v1820_v8, %v1819_v27  ;;  %v1822_v59 = vsel %vm519_vm3, %v1802_v58, 0.0  ;;  %v1823_v0 = vsel %vm519_vm3, %v1806_v41, 0.0 }
 0x158   :  { %v1824_v14 = vadd.f32 %v1823_v0, %v1822_v59  ;;  %v1825_v15 = vsel %vm519_vm3, %v1803_v18, 0.0  ;;  %v1826_v45 = vsel %vm519_vm3, %v1807_v16, 0.0  ;;  %v1828_v42 = vsel %vm519_vm3, %v1804_v21, 0.0 }
 0x159   :  { %v1827_v35 = vadd.f32 %v1826_v45, %v1825_v15  ;;  %v1829_v17 = vsel %vm519_vm3, %v1808_v43, 0.0  ;;  %v1831_v36 = vsel %vm519_vm3, %v1805_v13, 0.0  ;;  %v1832_v39 = vsel %vm519_vm3, %v1809_v30, 0.0 }
 0x15a   :  { %v1830_v40 = vadd.f32 %v1829_v17, %v1828_v42  ;;  %v1833_v62 = vadd.f32 %v1832_v39, %v1831_v36  ;;  %v1842_v54 = vrot.slane %v1812_v38, 3  ;;  %v1843_v22 = vrot.slane %v1815_v23, 3 }
 0x15b   :  { %v1844_v19 = vrot.slane %v1818_v33, 3  ;;  %v1845_v37 = vrot.slane %v1821_v57, 3  ;;  %v1846_v32 = vrot.slane %v1824_v14, 3  ;;  %v1847_v1 = vrot.slane %v1827_v35, 3 }
 0x15c   :  { %v1848_v2 = vrot.slane %v1830_v40, 3  ;;  %v1849_v56 = vrot.slane %v1833_v62, 3  ;;  %v1858_v53 = vsel %vm40_vm0, %v1842_v54, 0.0  ;;  %v1865_v26 = vsel %vm40_vm0, %v1843_v22, 0.0 }
 0x15d   :  { %v1859_v29 = vrot.slane %v1858_v53, 4  ;;  %v1866_v9 = vrot.slane %v1865_v26, 4  ;;  %v1872_v28 = vsel %vm40_vm0, %v1844_v19, 0.0  ;;  %v1879_v10 = vsel %vm40_vm0, %v1845_v37, 0.0 }
 0x15e   :  { %v1873_v7 = vrot.slane %v1872_v28, 4  ;;  %v1880_v11 = vrot.slane %v1879_v10, 4  ;;  %v1886_v61 = vsel %vm40_vm0, %v1846_v32, 0.0  ;;  %v1893_v46 = vsel %vm40_vm0, %v1847_v1, 0.0 }
 0x15f   :  { %v1860_v47 = vadd.f32 %v1859_v29, %v1858_v53  ;;  %v1867_v6 = vadd.f32 %v1866_v9, %v1865_v26  ;;  %v1887_v58 = vrot.slane %v1886_v61, 4  ;;  %v1894_v18 = vrot.slane %v1893_v46, 4  ;;  %v2723_v35 = vld [vmem:[%s4060_s1 + $0x23] ss:$8 sm:$0xf] }
 0x160   :  { %v1874_v21 = vadd.f32 %v1873_v7, %v1872_v28  ;;  %v1881_v13 = vadd.f32 %v1880_v11, %v1879_v10  ;;  %v1900_v41 = vsel %vm40_vm0, %v1848_v2, 0.0  ;;  %v1907_v16 = vsel %vm40_vm0, %v1849_v56, 0.0 }
 0x161   :  { %v1861_v43 = vrot.slane %v1860_v47, 2  ;;  %v1868_v30 = vrot.slane %v1867_v6, 2  ;;  %v1888_v44 = vadd.f32 %v1887_v58, %v1886_v61  ;;  %v1895_v34 = vadd.f32 %v1894_v18, %v1893_v46 }
 0x162   :  { %v1875_v38 = vrot.slane %v1874_v21, 2  ;;  %v1882_v25 = vrot.slane %v1881_v13, 2  ;;  %v1901_v20 = vrot.slane %v1900_v41, 4  ;;  %v1908_v51 = vrot.slane %v1907_v16, 4 }
 0x163   :  { %v1862_v23 = vadd.f32 %v1861_v43, %v1860_v47  ;;  %v1869_v55 = vadd.f32 %v1868_v30, %v1867_v6  ;;  %v1889_v27 = vrot.slane %v1888_v44, 2  ;;  %v1896_v8 = vrot.slane %v1895_v34, 2 }
 0x164   :  { %v1876_v33 = vadd.f32 %v1875_v38, %v1874_v21  ;;  %v1883_v57 = vadd.f32 %v1882_v25, %v1881_v13  ;;  %v1902_v59 = vadd.f32 %v1901_v20, %v1900_v41  ;;  %v1909_v0 = vadd.f32 %v1908_v51, %v1907_v16  ;;  %v2724_v13 = vld [vmem:[%s4058_s0 + $0x30] sm:$0x11]  ;;  %v2725_v41 = vld [vmem:[%s4058_s0 + $0x38] sm:$0x11] }
 0x165   :  { %v1863_v14 = vrot.slane %v1862_v23, 1  ;;  %v1870_v15 = vrot.slane %v1869_v55, 1  ;;  %v1890_v45 = vadd.f32 %v1889_v27, %v1888_v44  ;;  %v1897_v42 = vadd.f32 %v1896_v8, %v1895_v34  ;;  %v2726_v34 = vld [vmem:[%s4058_s0 + $0x40] sm:$0x11] }
 0x166   :  { %v1877_v17 = vrot.slane %v1876_v33, 1  ;;  %v1884_v36 = vrot.slane %v1883_v57, 1  ;;  %v1903_v39 = vrot.slane %v1902_v59, 2  ;;  %v1910_v40 = vrot.slane %v1909_v0, 2 }
 0x167   :  { %v1864_v62 = vadd.f32 %v1863_v14, %v1862_v23  ;;  %v1871_v54 = vadd.f32 %v1870_v15, %v1869_v55  ;;  %v1891_v22 = vrot.slane %v1890_v45, 1  ;;  %v1898_v19 = vrot.slane %v1897_v42, 1 }
 0x168   :  { %v1878_v37 = vadd.f32 %v1877_v17, %v1876_v33  ;;  %v1885_v32 = vadd.f32 %v1884_v36, %v1883_v57  ;;  %v1904_v1 = vadd.f32 %v1903_v39, %v1902_v59  ;;  %v1911_v2 = vadd.f32 %v1910_v40, %v1909_v0  ;;  %v2731_v33 = vld [vmem:[%s4058_s0 + $0x98] sm:$0x11] }
 0x169   :  { %v1892_v56 = vadd.f32 %v1891_v22, %v1890_v45  ;;  %v1899_v53 = vadd.f32 %v1898_v19, %v1897_v42  ;;  %v1920_v26 = vrot.slane %v2723_v35, %v2849_v48  ;;  %v1924_v29 = vrot.slane %v2723_v35, %v2851_v4 }
 0x16a   :  { %v1905_v9 = vrot.slane %v1904_v1, 1  ;;  %v1912_v28 = vrot.slane %v1911_v2, 1  ;;  %v1928_v10 = vrot.slane %v2723_v35, %v2853_v49  ;;  %v1932_v7 = vrot.slane %v2723_v35, %v2858_v52 }
 0x16b   :  { %v1937_v11 = vmul.f32 %v1920_v26, %v1864_v62  ;;  %v1938_v61 = vmul.f32 %v1924_v29, %v1871_v54  ;;  %v1941_v46 = vmul.f32 %v1920_v26, %v1892_v56  ;;  %v1942_v47 = vmul.f32 %v1924_v29, %v1899_v53 }
 0x16c   :  { %v1906_v6 = vadd.f32 %v1905_v9, %v1904_v1  ;;  %v1913_v58 = vadd.f32 %v1912_v28, %v1911_v2  ;;  %v1939_v18 = vmul.f32 %v1928_v10, %v1878_v37  ;;  %v1940_v21 = vmul.f32 %v1932_v7, %v1885_v32 }
 0x16d   :  { %v3734_v16 = vadd.f32 %v1937_v11, %v3655_v24  ;;  %v3737_v43 = vadd.f32 %v1938_v61, %v3658_v5  ;;  %v3740_v30 = vadd.f32 %v1941_v46, %v3661_v12  ;;  %v3743_v44 = vadd.f32 %v1942_v47, %v3664_v50  ;;  %v2727_v5 = vld [vmem:[%s4058_s0 + $0x48] sm:$0x11]  ;;  %v2728_v12 = vld [vmem:[%s4058_s0 + $0x80] sm:$0x11] }
 0x16e   :  { %v1943_v38 = vmul.f32 %v1928_v10, %v1906_v6  ;;  %v1944_v25 = vmul.f32 %v1932_v7, %v1913_v58  ;;  %v3749_v20 = vadd.f32 %v1939_v18, %v3670_v31  ;;  %v3752_v24 = vadd.f32 %v1940_v21, %v3673_v3  ;;  %v2729_v50 = vld [vmem:[%s4058_s0 + $0x88] sm:$0x11]  ;;  %v2730_v31 = vld [vmem:[%s4058_s0 + $0x90] sm:$0x11] }
 0x16f   :  { %v1962_v51 = vunpack.c.l.bf16 %v2724_v13  ;;  %v1963_v23 = vunpack.c.h.bf16 %v2724_v13  ;;  %v1964_v3 = vunpack.c.l.bf16 %v2725_v41  ;;  %v1965_v55 = vunpack.c.h.bf16 %v2725_v41 }
 0x170   :  { %v3767_v27 = vadd.f32 %v1943_v38, %v3688_v60  ;;  %v3770_v8 = vadd.f32 %v1944_v25, %v3691_v63  ;;  %v1966_v57 = vunpack.c.l.bf16 %v2726_v34  ;;  %v1967_v59 = vunpack.c.h.bf16 %v2726_v34 }
 0x171   :  { %v1968_v0 = vunpack.c.l.bf16 %v2727_v5  ;;  %v1969_v14 = vunpack.c.h.bf16 %v2727_v5  ;;  %v1970_v15 = vunpack.c.l.bf16 %v2728_v12  ;;  %v1971_v45 = vunpack.c.h.bf16 %v2728_v12 }
 0x172   :  { %v1972_v42 = vunpack.c.l.bf16 %v2729_v50  ;;  %v1973_v35 = vunpack.c.h.bf16 %v2729_v50  ;;  %v1974_v17 = vunpack.c.l.bf16 %v2730_v31  ;;  %v1975_v36 = vunpack.c.h.bf16 %v2730_v31 }
 0x173   :  { %v1976_v39 = vunpack.c.l.bf16 %v2731_v33  ;;  %v1977_v60 = vunpack.c.h.bf16 %v2731_v33  ;;  %v1978_v40 = vsel %vm40_vm0, %v1962_v51, 0.0  ;;  %v1979_v63 = vsel %vm40_vm0, %v1966_v57, 0.0 }
 0x174   :  { %v1980_v62 = vadd.f32 %v1979_v63, %v1978_v40  ;;  %v1981_v54 = vsel %vm40_vm0, %v1963_v23, 0.0  ;;  %v1982_v22 = vsel %vm40_vm0, %v1967_v59, 0.0  ;;  %v1984_v19 = vsel %vm40_vm0, %v1964_v3, 0.0 }
 0x175   :  { %v1983_v37 = vadd.f32 %v1982_v22, %v1981_v54  ;;  %v1985_v32 = vsel %vm40_vm0, %v1968_v0, 0.0  ;;  %v1987_v1 = vsel %vm40_vm0, %v1965_v55, 0.0  ;;  %v1988_v2 = vsel %vm40_vm0, %v1969_v14, 0.0 }
 0x176   :  { %v1986_v56 = vadd.f32 %v1985_v32, %v1984_v19  ;;  %v1989_v53 = vadd.f32 %v1988_v2, %v1987_v1  ;;  %v1990_v26 = vsel %vm40_vm0, %v1970_v15, 0.0  ;;  %v1991_v29 = vsel %vm40_vm0, %v1974_v17, 0.0 }
 0x177   :  { %v1992_v9 = vadd.f32 %v1991_v29, %v1990_v26  ;;  %v1993_v28 = vsel %vm40_vm0, %v1971_v45, 0.0  ;;  %v1994_v10 = vsel %vm40_vm0, %v1975_v36, 0.0  ;;  %v1996_v7 = vsel %vm40_vm0, %v1972_v42, 0.0 }
 0x178   :  { %v1995_v11 = vadd.f32 %v1994_v10, %v1993_v28  ;;  %v1997_v61 = vsel %vm40_vm0, %v1976_v39, 0.0  ;;  %v1999_v46 = vsel %vm40_vm0, %v1973_v35, 0.0  ;;  %v2000_v47 = vsel %vm40_vm0, %v1977_v60, 0.0 }
 0x179   :  { %v1998_v6 = vadd.f32 %v1997_v61, %v1996_v7  ;;  %v2001_v58 = vadd.f32 %v2000_v47, %v1999_v46  ;;  %v2002_v18 = vsel %vm40_vm0, %v1980_v62, 0.0  ;;  %v2009_v21 = vsel %vm40_vm0, %v1983_v37, 0.0 }
 0x17a   :  { %v2003_v13 = vrot.slane %v2002_v18, 4  ;;  %v2010_v41 = vrot.slane %v2009_v21, 4  ;;  %v2016_v34 = vsel %vm40_vm0, %v1986_v56, 0.0  ;;  %v2023_v38 = vsel %vm40_vm0, %v1989_v53, 0.0 }
 0x17b   :  { %v2017_v25 = vrot.slane %v2016_v34, 4  ;;  %v2024_v5 = vrot.slane %v2023_v38, 4  ;;  %v2030_v12 = vsel %vm40_vm0, %v1992_v9, 0.0  ;;  %v2037_v50 = vsel %vm40_vm0, %v1995_v11, 0.0 }
 0x17c   :  { %v2004_v31 = vadd.f32 %v2003_v13, %v2002_v18  ;;  %v2011_v51 = vadd.f32 %v2010_v41, %v2009_v21  ;;  %v2031_v23 = vrot.slane %v2030_v12, 4  ;;  %v2038_v3 = vrot.slane %v2037_v50, 4  ;;  %v2732_v56 = vld [vmem:[%s4060_s1 + $0x24] ss:$8 sm:$0xf] }
 0x17d   :  { %v2018_v55 = vadd.f32 %v2017_v25, %v2016_v34  ;;  %v2025_v33 = vadd.f32 %v2024_v5, %v2023_v38  ;;  %v2044_v57 = vsel %vm40_vm0, %v1998_v6, 0.0  ;;  %v2051_v59 = vsel %vm40_vm0, %v2001_v58, 0.0 }
 0x17e   :  { %v2005_v0 = vrot.slane %v2004_v31, 2  ;;  %v2012_v14 = vrot.slane %v2011_v51, 2  ;;  %v2032_v15 = vadd.f32 %v2031_v23, %v2030_v12  ;;  %v2039_v45 = vadd.f32 %v2038_v3, %v2037_v50 }
 0x17f   :  { %v2019_v42 = vrot.slane %v2018_v55, 2  ;;  %v2026_v35 = vrot.slane %v2025_v33, 2  ;;  %v2045_v17 = vrot.slane %v2044_v57, 4  ;;  %v2052_v36 = vrot.slane %v2051_v59, 4 }
 0x180   :  { %v2006_v39 = vadd.f32 %v2005_v0, %v2004_v31  ;;  %v2013_v60 = vadd.f32 %v2012_v14, %v2011_v51  ;;  %v2033_v40 = vrot.slane %v2032_v15, 2  ;;  %v2040_v63 = vrot.slane %v2039_v45, 2 }
 0x181   :  { %v2020_v62 = vadd.f32 %v2019_v42, %v2018_v55  ;;  %v2027_v54 = vadd.f32 %v2026_v35, %v2025_v33  ;;  %v2046_v22 = vadd.f32 %v2045_v17, %v2044_v57  ;;  %v2053_v19 = vadd.f32 %v2052_v36, %v2051_v59  ;;  %v2733_v33 = vld [vmem:[%s4058_s0 + $0x30] sm:$0x33]  ;;  %v2734_v57 = vld [vmem:[%s4058_s0 + $0x38] sm:$0x33] }
 0x182   :  { %v2007_v37 = vrot.slane %v2006_v39, 1  ;;  %v2014_v32 = vrot.slane %v2013_v60, 1  ;;  %v2034_v1 = vadd.f32 %v2033_v40, %v2032_v15  ;;  %v2041_v2 = vadd.f32 %v2040_v63, %v2039_v45  ;;  %v2735_v45 = vld [vmem:[%s4058_s0 + $0x40] sm:$0x33] }
 0x183   :  { %v2021_v53 = vrot.slane %v2020_v62, 1  ;;  %v2028_v26 = vrot.slane %v2027_v54, 1  ;;  %v2047_v29 = vrot.slane %v2046_v22, 2  ;;  %v2054_v9 = vrot.slane %v2053_v19, 2 }
 0x184   :  { %v2008_v28 = vadd.f32 %v2007_v37, %v2006_v39  ;;  %v2015_v10 = vadd.f32 %v2014_v32, %v2013_v60  ;;  %v2035_v7 = vrot.slane %v2034_v1, 1  ;;  %v2042_v11 = vrot.slane %v2041_v2, 1 }
 0x185   :  { %v2022_v61 = vadd.f32 %v2021_v53, %v2020_v62  ;;  %v2029_v46 = vadd.f32 %v2028_v26, %v2027_v54  ;;  %v2048_v47 = vadd.f32 %v2047_v29, %v2046_v22  ;;  %v2055_v6 = vadd.f32 %v2054_v9, %v2053_v19  ;;  %v2740_v62 = vld [vmem:[%s4058_s0 + $0x98] sm:$0x33] }
 0x186   :  { %v2036_v58 = vadd.f32 %v2035_v7, %v2034_v1  ;;  %v2043_v18 = vadd.f32 %v2042_v11, %v2041_v2  ;;  %v2064_v21 = vrot.slane %v2732_v56, %v2849_v48  ;;  %v2068_v13 = vrot.slane %v2732_v56, %v2851_v4 }
 0x187   :  { %v2049_v41 = vrot.slane %v2048_v47, 1  ;;  %v2056_v34 = vrot.slane %v2055_v6, 1  ;;  %v2072_v38 = vrot.slane %v2732_v56, %v2853_v49  ;;  %v2076_v25 = vrot.slane %v2732_v56, %v2858_v52 }
 0x188   :  { %v2081_v5 = vmul.f32 %v2064_v21, %v2008_v28  ;;  %v2082_v12 = vmul.f32 %v2068_v13, %v2015_v10  ;;  %v2085_v50 = vmul.f32 %v2064_v21, %v2036_v58  ;;  %v2086_v31 = vmul.f32 %v2068_v13, %v2043_v18 }
 0x189   :  { %v2050_v51 = vadd.f32 %v2049_v41, %v2048_v47  ;;  %v2057_v23 = vadd.f32 %v2056_v34, %v2055_v6  ;;  %v2083_v3 = vmul.f32 %v2072_v38, %v2022_v61  ;;  %v2084_v55 = vmul.f32 %v2076_v25, %v2029_v46 }
 0x18a   :  { %v3813_v59 = vadd.f32 %v2081_v5, %v3734_v16  ;;  %v3816_v0 = vadd.f32 %v2082_v12, %v3737_v43  ;;  %v3819_v14 = vadd.f32 %v2085_v50, %v3740_v30  ;;  %v3822_v15 = vadd.f32 %v2086_v31, %v3743_v44  ;;  %v2736_v43 = vld [vmem:[%s4058_s0 + $0x48] sm:$0x33]  ;;  %v2737_v30 = vld [vmem:[%s4058_s0 + $0x80] sm:$0x33] }
 0x18b   :  { %v2087_v42 = vmul.f32 %v2072_v38, %v2050_v51  ;;  %v2088_v35 = vmul.f32 %v2076_v25, %v2057_v23  ;;  %v3828_v17 = vadd.f32 %v2083_v3, %v3749_v20  ;;  %v3831_v16 = vadd.f32 %v2084_v55, %v3752_v24  ;;  %v2738_v44 = vld [vmem:[%s4058_s0 + $0x88] sm:$0x33]  ;;  %v2739_v20 = vld [vmem:[%s4058_s0 + $0x90] sm:$0x33] }
 0x18c   :  { %v2105_v36 = vunpack.c.l.bf16 %v2733_v33  ;;  %v2106_v39 = vunpack.c.h.bf16 %v2733_v33  ;;  %v2107_v24 = vunpack.c.l.bf16 %v2734_v57  ;;  %v2108_v60 = vunpack.c.h.bf16 %v2734_v57 }
 0x18d   :  { %v3846_v40 = vadd.f32 %v2087_v42, %v3767_v27  ;;  %v3849_v63 = vadd.f32 %v2088_v35, %v3770_v8  ;;  %v2109_v54 = vunpack.c.l.bf16 %v2735_v45  ;;  %v2110_v22 = vunpack.c.h.bf16 %v2735_v45 }
 0x18e   :  { %v2111_v19 = vunpack.c.l.bf16 %v2736_v43  ;;  %v2112_v37 = vunpack.c.h.bf16 %v2736_v43  ;;  %v2113_v32 = vunpack.c.l.bf16 %v2737_v30  ;;  %v2114_v1 = vunpack.c.h.bf16 %v2737_v30 }
 0x18f   :  { %v2115_v2 = vunpack.c.l.bf16 %v2738_v44  ;;  %v2116_v56 = vunpack.c.h.bf16 %v2738_v44  ;;  %v2117_v53 = vunpack.c.l.bf16 %v2739_v20  ;;  %v2118_v26 = vunpack.c.h.bf16 %v2739_v20 }
 0x190   :  { %v2119_v29 = vunpack.c.l.bf16 %v2740_v62  ;;  %v2120_v27 = vunpack.c.h.bf16 %v2740_v62  ;;  %v2121_v9 = vsel %vm183_vm1, %v2105_v36, 0.0  ;;  %v2122_v8 = vsel %vm183_vm1, %v2109_v54, 0.0 }
 0x191   :  { %v2123_v28 = vadd.f32 %v2122_v8, %v2121_v9  ;;  %v2124_v10 = vsel %vm183_vm1, %v2106_v39, 0.0  ;;  %v2125_v7 = vsel %vm183_vm1, %v2110_v22, 0.0  ;;  %v2127_v11 = vsel %vm183_vm1, %v2107_v24, 0.0 }
 0x192   :  { %v2126_v61 = vadd.f32 %v2125_v7, %v2124_v10  ;;  %v2128_v46 = vsel %vm183_vm1, %v2111_v19, 0.0  ;;  %v2130_v47 = vsel %vm183_vm1, %v2108_v60, 0.0  ;;  %v2131_v6 = vsel %vm183_vm1, %v2112_v37, 0.0 }
 0x193   :  { %v2129_v58 = vadd.f32 %v2128_v46, %v2127_v11  ;;  %v2132_v18 = vadd.f32 %v2131_v6, %v2130_v47  ;;  %v2133_v21 = vsel %vm183_vm1, %v2113_v32, 0.0  ;;  %v2134_v13 = vsel %vm183_vm1, %v2117_v53, 0.0 }
 0x194   :  { %v2135_v41 = vadd.f32 %v2134_v13, %v2133_v21  ;;  %v2136_v34 = vsel %vm183_vm1, %v2114_v1, 0.0  ;;  %v2137_v38 = vsel %vm183_vm1, %v2118_v26, 0.0  ;;  %v2139_v25 = vsel %vm183_vm1, %v2115_v2, 0.0 }
 0x195   :  { %v2138_v5 = vadd.f32 %v2137_v38, %v2136_v34  ;;  %v2140_v12 = vsel %vm183_vm1, %v2119_v29, 0.0  ;;  %v2142_v50 = vsel %vm183_vm1, %v2116_v56, 0.0  ;;  %v2143_v31 = vsel %vm183_vm1, %v2120_v27, 0.0 }
 0x196   :  { %v2141_v51 = vadd.f32 %v2140_v12, %v2139_v25  ;;  %v2144_v23 = vadd.f32 %v2143_v31, %v2142_v50  ;;  %v2153_v3 = vrot.slane %v2123_v28, 1  ;;  %v2154_v55 = vrot.slane %v2126_v61, 1 }
 0x197   :  { %v2155_v33 = vrot.slane %v2129_v58, 1  ;;  %v2156_v57 = vrot.slane %v2132_v18, 1  ;;  %v2157_v45 = vrot.slane %v2135_v41, 1  ;;  %v2158_v42 = vrot.slane %v2138_v5, 1 }
 0x198   :  { %v2159_v35 = vrot.slane %v2141_v51, 1  ;;  %v2160_v43 = vrot.slane %v2144_v23, 1  ;;  %v2169_v30 = vsel %vm40_vm0, %v2153_v3, 0.0  ;;  %v2176_v44 = vsel %vm40_vm0, %v2154_v55, 0.0 }
 0x199   :  { %v2170_v20 = vrot.slane %v2169_v30, 4  ;;  %v2177_v36 = vrot.slane %v2176_v44, 4  ;;  %v2183_v39 = vsel %vm40_vm0, %v2155_v33, 0.0  ;;  %v2190_v24 = vsel %vm40_vm0, %v2156_v57, 0.0 }
 0x19a   :  { %v2184_v60 = vrot.slane %v2183_v39, 4  ;;  %v2191_v62 = vrot.slane %v2190_v24, 4  ;;  %v2197_v54 = vsel %vm40_vm0, %v2157_v45, 0.0  ;;  %v2204_v22 = vsel %vm40_vm0, %v2158_v42, 0.0 }
 0x19b   :  { %v2171_v19 = vadd.f32 %v2170_v20, %v2169_v30  ;;  %v2178_v37 = vadd.f32 %v2177_v36, %v2176_v44  ;;  %v2198_v32 = vrot.slane %v2197_v54, 4  ;;  %v2205_v1 = vrot.slane %v2204_v22, 4  ;;  %v2741_v5 = vld [vmem:[%s4060_s1 + $0x25] ss:$8 sm:$0xf] }
 0x19c   :  { %v2185_v2 = vadd.f32 %v2184_v60, %v2183_v39  ;;  %v2192_v56 = vadd.f32 %v2191_v62, %v2190_v24  ;;  %v2211_v53 = vsel %vm40_vm0, %v2159_v35, 0.0  ;;  %v2218_v26 = vsel %vm40_vm0, %v2160_v43, 0.0 }
 0x19d   :  { %v2172_v29 = vrot.slane %v2171_v19, 2  ;;  %v2179_v27 = vrot.slane %v2178_v37, 2  ;;  %v2199_v9 = vadd.f32 %v2198_v32, %v2197_v54  ;;  %v2206_v8 = vadd.f32 %v2205_v1, %v2204_v22 }
 0x19e   :  { %v2186_v28 = vrot.slane %v2185_v2, 2  ;;  %v2193_v10 = vrot.slane %v2192_v56, 2  ;;  %v2212_v7 = vrot.slane %v2211_v53, 4  ;;  %v2219_v11 = vrot.slane %v2218_v26, 4 }
 0x19f   :  { %v2173_v61 = vadd.f32 %v2172_v29, %v2171_v19  ;;  %v2180_v46 = vadd.f32 %v2179_v27, %v2178_v37  ;;  %v2200_v47 = vrot.slane %v2199_v9, 2  ;;  %v2207_v6 = vrot.slane %v2206_v8, 2 }
 0x1a0   :  { %v2187_v58 = vadd.f32 %v2186_v28, %v2185_v2  ;;  %v2194_v18 = vadd.f32 %v2193_v10, %v2192_v56  ;;  %v2213_v21 = vadd.f32 %v2212_v7, %v2211_v53  ;;  %v2220_v13 = vadd.f32 %v2219_v11, %v2218_v26  ;;  %v2742_v56 = vld [vmem:[%s4058_s0 + $0x30] sm:$0x22]  ;;  %v2743_v53 = vld [vmem:[%s4058_s0 + $0x38] sm:$0x22] }
 0x1a1   :  { %v2174_v41 = vrot.slane %v2173_v61, 1  ;;  %v2181_v34 = vrot.slane %v2180_v46, 1  ;;  %v2201_v38 = vadd.f32 %v2200_v47, %v2199_v9  ;;  %v2208_v25 = vadd.f32 %v2207_v6, %v2206_v8  ;;  %v2744_v8 = vld [vmem:[%s4058_s0 + $0x40] sm:$0x22] }
 0x1a2   :  { %v2188_v12 = vrot.slane %v2187_v58, 1  ;;  %v2195_v50 = vrot.slane %v2194_v18, 1  ;;  %v2214_v31 = vrot.slane %v2213_v21, 2  ;;  %v2221_v51 = vrot.slane %v2220_v13, 2 }
 0x1a3   :  { %v2175_v23 = vadd.f32 %v2174_v41, %v2173_v61  ;;  %v2182_v3 = vadd.f32 %v2181_v34, %v2180_v46  ;;  %v2202_v55 = vrot.slane %v2201_v38, 1  ;;  %v2209_v33 = vrot.slane %v2208_v25, 1 }
 0x1a4   :  { %v2189_v57 = vadd.f32 %v2188_v12, %v2187_v58  ;;  %v2196_v45 = vadd.f32 %v2195_v50, %v2194_v18  ;;  %v2215_v42 = vadd.f32 %v2214_v31, %v2213_v21  ;;  %v2222_v35 = vadd.f32 %v2221_v51, %v2220_v13  ;;  %v2749_v58 = vld [vmem:[%s4058_s0 + $0x98] sm:$0x22] }
 0x1a5   :  { %v2203_v43 = vadd.f32 %v2202_v55, %v2201_v38  ;;  %v2210_v30 = vadd.f32 %v2209_v33, %v2208_v25  ;;  %v2231_v44 = vrot.slane %v2741_v5, %v2849_v48  ;;  %v2235_v20 = vrot.slane %v2741_v5, %v2851_v4 }
 0x1a6   :  { %v2216_v36 = vrot.slane %v2215_v42, 1  ;;  %v2223_v39 = vrot.slane %v2222_v35, 1  ;;  %v2239_v24 = vrot.slane %v2741_v5, %v2853_v49  ;;  %v2243_v60 = vrot.slane %v2741_v5, %v2858_v52 }
 0x1a7   :  { %v2248_v62 = vmul.f32 %v2231_v44, %v2175_v23  ;;  %v2249_v54 = vmul.f32 %v2235_v20, %v2182_v3  ;;  %v2252_v22 = vmul.f32 %v2231_v44, %v2203_v43  ;;  %v2253_v19 = vmul.f32 %v2235_v20, %v2210_v30 }
 0x1a8   :  { %v2217_v37 = vadd.f32 %v2216_v36, %v2215_v42  ;;  %v2224_v32 = vadd.f32 %v2223_v39, %v2222_v35  ;;  %v2250_v1 = vmul.f32 %v2239_v24, %v2189_v57  ;;  %v2251_v2 = vmul.f32 %v2243_v60, %v2196_v45 }
 0x1a9   :  { %v3892_v26 = vadd.f32 %v2248_v62, %v3813_v59  ;;  %v3895_v29 = vadd.f32 %v2249_v54, %v3816_v0  ;;  %v3898_v27 = vadd.f32 %v2252_v22, %v3819_v14  ;;  %v3901_v9 = vadd.f32 %v2253_v19, %v3822_v15  ;;  %v2745_v0 = vld [vmem:[%s4058_s0 + $0x48] sm:$0x22]  ;;  %v2746_v14 = vld [vmem:[%s4058_s0 + $0x80] sm:$0x22] }
 0x1aa   :  { %v2254_v28 = vmul.f32 %v2239_v24, %v2217_v37  ;;  %v2255_v10 = vmul.f32 %v2243_v60, %v2224_v32  ;;  %v3907_v7 = vadd.f32 %v2250_v1, %v3828_v17  ;;  %v3910_v59 = vadd.f32 %v2251_v2, %v3831_v16  ;;  %v2747_v15 = vld [vmem:[%s4058_s0 + $0x88] sm:$0x22]  ;;  %v2748_v17 = vld [vmem:[%s4058_s0 + $0x90] sm:$0x22] }
 0x1ab   :  { %v2272_v11 = vunpack.c.l.bf16 %v2742_v56  ;;  %v2273_v61 = vunpack.c.h.bf16 %v2742_v56  ;;  %v2274_v16 = vunpack.c.l.bf16 %v2743_v53  ;;  %v2275_v46 = vunpack.c.h.bf16 %v2743_v53 }
 0x1ac   :  { %v3925_v47 = vadd.f32 %v2254_v28, %v3846_v40  ;;  %v3928_v6 = vadd.f32 %v2255_v10, %v3849_v63  ;;  %v2276_v18 = vunpack.c.l.bf16 %v2744_v8  ;;  %v2277_v21 = vunpack.c.h.bf16 %v2744_v8 }
 0x1ad   :  { %v2278_v13 = vunpack.c.l.bf16 %v2745_v0  ;;  %v2279_v41 = vunpack.c.h.bf16 %v2745_v0  ;;  %v2280_v34 = vunpack.c.l.bf16 %v2746_v14  ;;  %v2281_v38 = vunpack.c.h.bf16 %v2746_v14 }
 0x1ae   :  { %v2282_v25 = vunpack.c.l.bf16 %v2747_v15  ;;  %v2283_v5 = vunpack.c.h.bf16 %v2747_v15  ;;  %v2284_v12 = vunpack.c.l.bf16 %v2748_v17  ;;  %v2285_v50 = vunpack.c.h.bf16 %v2748_v17 }
 0x1af   :  { %v2286_v31 = vunpack.c.l.bf16 %v2749_v58  ;;  %v2287_v40 = vunpack.c.h.bf16 %v2749_v58  ;;  %v2288_v51 = vsel %vm351_vm2, %v2272_v11, 0.0  ;;  %v2289_v63 = vsel %vm351_vm2, %v2276_v18, 0.0 }
 0x1b0   :  { %v2290_v23 = vadd.f32 %v2289_v63, %v2288_v51  ;;  %v2291_v3 = vsel %vm351_vm2, %v2273_v61, 0.0  ;;  %v2292_v55 = vsel %vm351_vm2, %v2277_v21, 0.0  ;;  %v2294_v33 = vsel %vm351_vm2, %v2274_v16, 0.0 }
 0x1b1   :  { %v2293_v57 = vadd.f32 %v2292_v55, %v2291_v3  ;;  %v2295_v45 = vsel %vm351_vm2, %v2278_v13, 0.0  ;;  %v2297_v42 = vsel %vm351_vm2, %v2275_v46, 0.0  ;;  %v2298_v35 = vsel %vm351_vm2, %v2279_v41, 0.0 }
 0x1b2   :  { %v2296_v43 = vadd.f32 %v2295_v45, %v2294_v33  ;;  %v2299_v30 = vadd.f32 %v2298_v35, %v2297_v42  ;;  %v2300_v44 = vsel %vm351_vm2, %v2280_v34, 0.0  ;;  %v2301_v20 = vsel %vm351_vm2, %v2284_v12, 0.0 }
 0x1b3   :  { %v2302_v36 = vadd.f32 %v2301_v20, %v2300_v44  ;;  %v2303_v39 = vsel %vm351_vm2, %v2281_v38, 0.0  ;;  %v2304_v24 = vsel %vm351_vm2, %v2285_v50, 0.0  ;;  %v2306_v60 = vsel %vm351_vm2, %v2282_v25, 0.0 }
 0x1b4   :  { %v2305_v62 = vadd.f32 %v2304_v24, %v2303_v39  ;;  %v2307_v54 = vsel %vm351_vm2, %v2286_v31, 0.0  ;;  %v2309_v22 = vsel %vm351_vm2, %v2283_v5, 0.0  ;;  %v2310_v19 = vsel %vm351_vm2, %v2287_v40, 0.0 }
 0x1b5   :  { %v2308_v37 = vadd.f32 %v2307_v54, %v2306_v60  ;;  %v2311_v32 = vadd.f32 %v2310_v19, %v2309_v22  ;;  %v2320_v1 = vrot.slane %v2290_v23, 2  ;;  %v2321_v2 = vrot.slane %v2293_v57, 2 }
 0x1b6   :  { %v2322_v56 = vrot.slane %v2296_v43, 2  ;;  %v2323_v53 = vrot.slane %v2299_v30, 2  ;;  %v2324_v8 = vrot.slane %v2302_v36, 2  ;;  %v2325_v28 = vrot.slane %v2305_v62, 2 }
 0x1b7   :  { %v2326_v10 = vrot.slane %v2308_v37, 2  ;;  %v2327_v0 = vrot.slane %v2311_v32, 2  ;;  %v2336_v14 = vsel %vm40_vm0, %v2320_v1, 0.0  ;;  %v2343_v15 = vsel %vm40_vm0, %v2321_v2, 0.0 }
 0x1b8   :  { %v2337_v17 = vrot.slane %v2336_v14, 4  ;;  %v2344_v11 = vrot.slane %v2343_v15, 4  ;;  %v2350_v61 = vsel %vm40_vm0, %v2322_v56, 0.0  ;;  %v2357_v16 = vsel %vm40_vm0, %v2323_v53, 0.0 }
 0x1b9   :  { %v2351_v46 = vrot.slane %v2350_v61, 4  ;;  %v2358_v58 = vrot.slane %v2357_v16, 4  ;;  %v2364_v18 = vsel %vm40_vm0, %v2324_v8, 0.0  ;;  %v2371_v21 = vsel %vm40_vm0, %v2325_v28, 0.0 }
 0x1ba   :  { %v2338_v13 = vadd.f32 %v2337_v17, %v2336_v14  ;;  %v2345_v41 = vadd.f32 %v2344_v11, %v2343_v15  ;;  %v2365_v34 = vrot.slane %v2364_v18, 4  ;;  %v2372_v38 = vrot.slane %v2371_v21, 4  ;;  %v2750_v62 = vld [vmem:[%s4060_s1 + $0x26] ss:$8 sm:$0xf] }
 0x1bb   :  { %v2352_v25 = vadd.f32 %v2351_v46, %v2350_v61  ;;  %v2359_v5 = vadd.f32 %v2358_v58, %v2357_v16  ;;  %v2378_v12 = vsel %vm40_vm0, %v2326_v10, 0.0  ;;  %v2385_v50 = vsel %vm40_vm0, %v2327_v0, 0.0 }
 0x1bc   :  { %v2339_v31 = vrot.slane %v2338_v13, 2  ;;  %v2346_v40 = vrot.slane %v2345_v41, 2  ;;  %v2366_v51 = vadd.f32 %v2365_v34, %v2364_v18  ;;  %v2373_v63 = vadd.f32 %v2372_v38, %v2371_v21 }
 0x1bd   :  { %v2353_v23 = vrot.slane %v2352_v25, 2  ;;  %v2360_v3 = vrot.slane %v2359_v5, 2  ;;  %v2379_v55 = vrot.slane %v2378_v12, 4  ;;  %v2386_v33 = vrot.slane %v2385_v50, 4 }
 0x1be   :  { %v2340_v57 = vadd.f32 %v2339_v31, %v2338_v13  ;;  %v2347_v45 = vadd.f32 %v2346_v40, %v2345_v41  ;;  %v2367_v42 = vrot.slane %v2366_v51, 2  ;;  %v2374_v35 = vrot.slane %v2373_v63, 2 }
 0x1bf   :  { %v2354_v43 = vadd.f32 %v2353_v23, %v2352_v25  ;;  %v2361_v30 = vadd.f32 %v2360_v3, %v2359_v5  ;;  %v2380_v44 = vadd.f32 %v2379_v55, %v2378_v12  ;;  %v2387_v20 = vadd.f32 %v2386_v33, %v2385_v50  ;;  %v2751_v5 = vld [vmem:[%s4058_s0 + $0x30] sm:$0x66]  ;;  %v2752_v12 = vld [vmem:[%s4058_s0 + $0x38] sm:$0x66] }
 0x1c0   :  { %v2341_v36 = vrot.slane %v2340_v57, 1  ;;  %v2348_v39 = vrot.slane %v2347_v45, 1  ;;  %v2368_v24 = vadd.f32 %v2367_v42, %v2366_v51  ;;  %v2375_v60 = vadd.f32 %v2374_v35, %v2373_v63  ;;  %v2753_v63 = vld [vmem:[%s4058_s0 + $0x40] sm:$0x66] }
 0x1c1   :  { %v2355_v54 = vrot.slane %v2354_v43, 1  ;;  %v2362_v22 = vrot.slane %v2361_v30, 1  ;;  %v2381_v19 = vrot.slane %v2380_v44, 2  ;;  %v2388_v37 = vrot.slane %v2387_v20, 2 }
 0x1c2   :  { %v2342_v32 = vadd.f32 %v2341_v36, %v2340_v57  ;;  %v2349_v1 = vadd.f32 %v2348_v39, %v2347_v45  ;;  %v2369_v2 = vrot.slane %v2368_v24, 1  ;;  %v2376_v56 = vrot.slane %v2375_v60, 1 }
 0x1c3   :  { %v2356_v53 = vadd.f32 %v2355_v54, %v2354_v43  ;;  %v2363_v8 = vadd.f32 %v2362_v22, %v2361_v30  ;;  %v2382_v28 = vadd.f32 %v2381_v19, %v2380_v44  ;;  %v2389_v10 = vadd.f32 %v2388_v37, %v2387_v20  ;;  %v2758_v43 = vld [vmem:[%s4058_s0 + $0x98] sm:$0x66] }
 0x1c4   :  { %v2370_v0 = vadd.f32 %v2369_v2, %v2368_v24  ;;  %v2377_v14 = vadd.f32 %v2376_v56, %v2375_v60  ;;  %v2398_v15 = vrot.slane %v2750_v62, %v2849_v48  ;;  %v2402_v17 = vrot.slane %v2750_v62, %v2851_v4 }
 0x1c5   :  { %v2383_v11 = vrot.slane %v2382_v28, 1  ;;  %v2390_v61 = vrot.slane %v2389_v10, 1  ;;  %v2406_v16 = vrot.slane %v2750_v62, %v2853_v49  ;;  %v2410_v46 = vrot.slane %v2750_v62, %v2858_v52 }
 0x1c6   :  { %v2415_v58 = vmul.f32 %v2398_v15, %v2342_v32  ;;  %v2416_v18 = vmul.f32 %v2402_v17, %v2349_v1  ;;  %v2419_v21 = vmul.f32 %v2398_v15, %v2370_v0  ;;  %v2420_v13 = vmul.f32 %v2402_v17, %v2377_v14 }
 0x1c7   :  { %v2384_v41 = vadd.f32 %v2383_v11, %v2382_v28  ;;  %v2391_v34 = vadd.f32 %v2390_v61, %v2389_v10  ;;  %v2417_v38 = vmul.f32 %v2406_v16, %v2356_v53  ;;  %v2418_v25 = vmul.f32 %v2410_v46, %v2363_v8 }
 0x1c8   :  { %v3971_v50 = vadd.f32 %v2415_v58, %v3892_v26  ;;  %v3974_v31 = vadd.f32 %v2416_v18, %v3895_v29  ;;  %v3977_v40 = vadd.f32 %v2419_v21, %v3898_v27  ;;  %v3980_v51 = vadd.f32 %v2420_v13, %v3901_v9  ;;  %v2754_v29 = vld [vmem:[%s4058_s0 + $0x48] sm:$0x66]  ;;  %v2755_v27 = vld [vmem:[%s4058_s0 + $0x80] sm:$0x66] }
 0x1c9   :  { %v2421_v23 = vmul.f32 %v2406_v16, %v2384_v41  ;;  %v2422_v3 = vmul.f32 %v2410_v46, %v2391_v34  ;;  %v3986_v55 = vadd.f32 %v2417_v38, %v3907_v7  ;;  %v3989_v26 = vadd.f32 %v2418_v25, %v3910_v59  ;;  %v2756_v9 = vld [vmem:[%s4058_s0 + $0x88] sm:$0x66]  ;;  %v2757_v7 = vld [vmem:[%s4058_s0 + $0x90] sm:$0x66] }
 0x1ca   :  { %v2439_v33 = vunpack.c.l.bf16 %v2751_v5  ;;  %v2440_v57 = vunpack.c.h.bf16 %v2751_v5  ;;  %v2441_v59 = vunpack.c.l.bf16 %v2752_v12  ;;  %v2442_v45 = vunpack.c.h.bf16 %v2752_v12 }
 0x1cb   :  { %v4004_v42 = vadd.f32 %v2421_v23, %v3925_v47  ;;  %v4007_v35 = vadd.f32 %v2422_v3, %v3928_v6  ;;  %v2443_v30 = vunpack.c.l.bf16 %v2753_v63  ;;  %v2444_v44 = vunpack.c.h.bf16 %v2753_v63 }
 0x1cc   :  { %v2445_v20 = vunpack.c.l.bf16 %v2754_v29  ;;  %v2446_v36 = vunpack.c.h.bf16 %v2754_v29  ;;  %v2447_v39 = vunpack.c.l.bf16 %v2755_v27  ;;  %v2448_v24 = vunpack.c.h.bf16 %v2755_v27 }
 0x1cd   :  { %v2449_v60 = vunpack.c.l.bf16 %v2756_v9  ;;  %v2450_v62 = vunpack.c.h.bf16 %v2756_v9  ;;  %v2451_v54 = vunpack.c.l.bf16 %v2757_v7  ;;  %v2452_v22 = vunpack.c.h.bf16 %v2757_v7 }
 0x1ce   :  { %v2453_v19 = vunpack.c.l.bf16 %v2758_v43  ;;  %v2454_v47 = vunpack.c.h.bf16 %v2758_v43  ;;  %v2455_v37 = vsel %vm519_vm3, %v2439_v33, 0.0  ;;  %v2456_v6 = vsel %vm519_vm3, %v2443_v30, 0.0 }
 0x1cf   :  { %v2457_v32 = vadd.f32 %v2456_v6, %v2455_v37  ;;  %v2458_v1 = vsel %vm519_vm3, %v2440_v57, 0.0  ;;  %v2459_v2 = vsel %vm519_vm3, %v2444_v44, 0.0  ;;  %v2461_v56 = vsel %vm519_vm3, %v2441_v59, 0.0 }
 0x1d0   :  { %v2460_v53 = vadd.f32 %v2459_v2, %v2458_v1  ;;  %v2462_v8 = vsel %vm519_vm3, %v2445_v20, 0.0  ;;  %v2464_v28 = vsel %vm519_vm3, %v2442_v45, 0.0  ;;  %v2465_v10 = vsel %vm519_vm3, %v2446_v36, 0.0 }
 0x1d1   :  { %v2463_v0 = vadd.f32 %v2462_v8, %v2461_v56  ;;  %v2466_v14 = vadd.f32 %v2465_v10, %v2464_v28  ;;  %v2467_v15 = vsel %vm519_vm3, %v2447_v39, 0.0  ;;  %v2468_v17 = vsel %vm519_vm3, %v2451_v54, 0.0 }
 0x1d2   :  { %v2469_v11 = vadd.f32 %v2468_v17, %v2467_v15  ;;  %v2470_v61 = vsel %vm519_vm3, %v2448_v24, 0.0  ;;  %v2471_v16 = vsel %vm519_vm3, %v2452_v22, 0.0  ;;  %v2473_v46 = vsel %vm519_vm3, %v2449_v60, 0.0 }
 0x1d3   :  { %v2472_v58 = vadd.f32 %v2471_v16, %v2470_v61  ;;  %v2474_v18 = vsel %vm519_vm3, %v2453_v19, 0.0  ;;  %v2476_v21 = vsel %vm519_vm3, %v2450_v62, 0.0  ;;  %v2477_v13 = vsel %vm519_vm3, %v2454_v47, 0.0 }
 0x1d4   :  { %v2475_v41 = vadd.f32 %v2474_v18, %v2473_v46  ;;  %v2478_v34 = vadd.f32 %v2477_v13, %v2476_v21  ;;  %v2487_v38 = vrot.slane %v2457_v32, 3  ;;  %v2488_v25 = vrot.slane %v2460_v53, 3 }
 0x1d5   :  { %v2489_v5 = vrot.slane %v2463_v0, 3  ;;  %v2490_v12 = vrot.slane %v2466_v14, 3  ;;  %v2491_v63 = vrot.slane %v2469_v11, 3  ;;  %v2492_v23 = vrot.slane %v2472_v58, 3 }
 0x1d6   :  { %v2493_v3 = vrot.slane %v2475_v41, 3  ;;  %v2494_v29 = vrot.slane %v2478_v34, 3  ;;  %v2503_v27 = vsel %vm40_vm0, %v2487_v38, 0.0  ;;  %v2510_v9 = vsel %vm40_vm0, %v2488_v25, 0.0 }
 0x1d7   :  { %v2504_v7 = vrot.slane %v2503_v27, 4  ;;  %v2511_v33 = vrot.slane %v2510_v9, 4  ;;  %v2517_v57 = vsel %vm40_vm0, %v2489_v5, 0.0  ;;  %v2524_v59 = vsel %vm40_vm0, %v2490_v12, 0.0 }
 0x1d8   :  { %v2518_v45 = vrot.slane %v2517_v57, 4  ;;  %v2525_v43 = vrot.slane %v2524_v59, 4  ;;  %v2531_v30 = vsel %vm40_vm0, %v2491_v63, 0.0  ;;  %v2538_v44 = vsel %vm40_vm0, %v2492_v23, 0.0 }
 0x1d9   :  { %v2505_v20 = vadd.f32 %v2504_v7, %v2503_v27  ;;  %v2512_v36 = vadd.f32 %v2511_v33, %v2510_v9  ;;  %v2532_v39 = vrot.slane %v2531_v30, 4  ;;  %v2539_v24 = vrot.slane %v2538_v44, 4  ;;  %v2759_v58 = vld [vmem:[%s4060_s1 + $0x27] ss:$8 sm:$0xf] }
 0x1da   :  { %v2519_v60 = vadd.f32 %v2518_v45, %v2517_v57  ;;  %v2526_v62 = vadd.f32 %v2525_v43, %v2524_v59  ;;  %v2545_v54 = vsel %vm40_vm0, %v2493_v3, 0.0  ;;  %v2552_v22 = vsel %vm40_vm0, %v2494_v29, 0.0 }
 0x1db   :  { %v2506_v19 = vrot.slane %v2505_v20, 2  ;;  %v2513_v47 = vrot.slane %v2512_v36, 2  ;;  %v2533_v37 = vadd.f32 %v2532_v39, %v2531_v30  ;;  %v2540_v6 = vadd.f32 %v2539_v24, %v2538_v44 }
 0x1dc   :  { %v2520_v32 = vrot.slane %v2519_v60, 2  ;;  %v2527_v1 = vrot.slane %v2526_v62, 2  ;;  %v2546_v2 = vrot.slane %v2545_v54, 4  ;;  %v2553_v56 = vrot.slane %v2552_v22, 4 }
 0x1dd   :  { %v2507_v53 = vadd.f32 %v2506_v19, %v2505_v20  ;;  %v2514_v8 = vadd.f32 %v2513_v47, %v2512_v36  ;;  %v2534_v28 = vrot.slane %v2533_v37, 2  ;;  %v2541_v10 = vrot.slane %v2540_v6, 2 }
 0x1de   :  { %v2521_v0 = vadd.f32 %v2520_v32, %v2519_v60  ;;  %v2528_v14 = vadd.f32 %v2527_v1, %v2526_v62  ;;  %v2547_v15 = vadd.f32 %v2546_v2, %v2545_v54  ;;  %v2554_v17 = vadd.f32 %v2553_v56, %v2552_v22 }
 0x1df   :  { %v2508_v11 = vrot.slane %v2507_v53, 1  ;;  %v2515_v61 = vrot.slane %v2514_v8, 1  ;;  %v2535_v16 = vadd.f32 %v2534_v28, %v2533_v37  ;;  %v2542_v46 = vadd.f32 %v2541_v10, %v2540_v6 }
 0x1e0   :  { %v2522_v18 = vrot.slane %v2521_v0, 1  ;;  %v2529_v21 = vrot.slane %v2528_v14, 1  ;;  %v2548_v13 = vrot.slane %v2547_v15, 2  ;;  %v2555_v41 = vrot.slane %v2554_v17, 2 }
 0x1e1   :  { %v2509_v34 = vadd.f32 %v2508_v11, %v2507_v53  ;;  %v2516_v38 = vadd.f32 %v2515_v61, %v2514_v8  ;;  %v2536_v25 = vrot.slane %v2535_v16, 1  ;;  %v2543_v5 = vrot.slane %v2542_v46, 1 }
 0x1e2   :  { %v2523_v12 = vadd.f32 %v2522_v18, %v2521_v0  ;;  %v2530_v63 = vadd.f32 %v2529_v21, %v2528_v14  ;;  %v2549_v23 = vadd.f32 %v2548_v13, %v2547_v15  ;;  %v2556_v3 = vadd.f32 %v2555_v41, %v2554_v17 }
 0x1e3   :  { %v2537_v29 = vadd.f32 %v2536_v25, %v2535_v16  ;;  %v2544_v27 = vadd.f32 %v2543_v5, %v2542_v46  ;;  %v2565_v9 = vrot.slane %v2759_v58, %v2849_v48  ;;  %v2569_v7 = vrot.slane %v2759_v58, %v2851_v4 }
 0x1e4   :  { %v2550_v33 = vrot.slane %v2549_v23, 1  ;;  %v2557_v57 = vrot.slane %v2556_v3, 1  ;;  %v2573_v59 = vrot.slane %v2759_v58, %v2853_v49  ;;  %v2577_v45 = vrot.slane %v2759_v58, %v2858_v52 }
 0x1e5   :  { %v2582_v43 = vmul.f32 %v2565_v9, %v2509_v34  ;;  %v2583_v30 = vmul.f32 %v2569_v7, %v2516_v38  ;;  %v2586_v44 = vmul.f32 %v2565_v9, %v2537_v29  ;;  %v2587_v20 = vmul.f32 %v2569_v7, %v2544_v27 }
 0x1e6   :  { %v2551_v36 = vadd.f32 %v2550_v33, %v2549_v23  ;;  %v2558_v39 = vadd.f32 %v2557_v57, %v2556_v3  ;;  %v2584_v24 = vmul.f32 %v2573_v59, %v2523_v12  ;;  %v2585_v60 = vmul.f32 %v2577_v45, %v2530_v63 }
 0x1e7   :  { %v2590_v62 = vadd.f32 %v2582_v43, %v3971_v50  ;;  %v2591_v48 = vadd.f32 %v2583_v30, %v3974_v31  ;;  %v2594_v4 = vadd.f32 %v2586_v44, %v3977_v40  ;;  %v2595_v54 = vadd.f32 %v2587_v20, %v3980_v51 }
 0x1e8   :  { %v2588_v22 = vmul.f32 %v2573_v59, %v2551_v36  ;;  %v2589_v49 = vmul.f32 %v2577_v45, %v2558_v39  ;;  %vm2607_vm4 = vcmask 1041409   ;;  %v2592_v47 = vadd.f32 %v2584_v24, %v3986_v55 }
 0x1e9   :  { %v2606_v19 = vrot.slane %v2594_v4, 7  ;;  %v2609_v52 = vrot.slane %v2595_v54, 7  ;;  %v2593_v37 = vadd.f32 %v2585_v60, %v3989_v26  ;;  %vm2643_vm5 = vcmask 1024  }
 0x1ea   :  { %v2596_v6 = vadd.f32 %v2588_v22, %v4004_v42  ;;  %v2597_v32 = vadd.f32 %v2589_v49, %v4007_v35  ;;  %v2760_v35 = vld [vmem:[#allocation2] ss:$0 sm:$0xff] }
 0x1eb   :  { %v2608_v50 = vsel %vm2607_vm4, %v2606_v19, %v2590_v62  ;;  %v2610_v1 = vsel %vm2607_vm4, %v2609_v52, %v2591_v48 }
 0x1ec   :  { %v2611_v31 = vrot.slane %v2596_v6, 7  ;;  %v2613_v2 = vrot.slane %v2597_v32, 7  ;;  %v2619_v40 = vsel %vm40_vm0, %v2608_v50, 0.0  ;;  %v2620_v51 = vsel %vm40_vm0, %v2610_v1, 0.0 }
 0x1ed   :  { %v2621_v56 = vadd.f32 %v2620_v51, %v2619_v40 }
 0x1ee   :  { %v2612_v53 = vsel %vm2607_vm4, %v2611_v31, %v2592_v47  ;;  %v2614_v8 = vsel %vm2607_vm4, %v2613_v2, %v2593_v37 }
 0x1ef   :  { %v2622_v28 = vsel %vm40_vm0, %v2612_v53, 0.0  ;;  %v2624_v55 = vsel %vm40_vm0, %v2614_v8, 0.0 }
 0x1f0   :  { %v2623_v26 = vadd.f32 %v2622_v28, %v2621_v56 }
 0x1f2   :  { %v2625_v10 = vadd.f32 %v2624_v55, %v2623_v26 }
 0x1f4   :  { %2626 = vadd.xlane.f32.xlu0 %v2625_v10 }
 0x281   :  { %v2627_v42 = vpop.xlane.xlu0 %2626 }
 0x282   :  { %v2628_v0 = vmul.f32 0.25, %v2627_v42 }
 0x284   :  { %v2636_v14 = vadd.f32 %v2760_v35, %v2628_v0 }
 0x286   :  { %v2637_v15 = vsub.f32 0.0, %v2636_v14 }
 0x288   :  { %v2638_v17 = vmul.f32 1.442695, %v2637_v15 }
 0x28a   :  { %2761 = vpow2.f32 %v2638_v17 }
 0x294   :  { %v2762_v11 = vpop.eup %2761 }
 0x295   :  { %v2640_v61 = vadd.f32 1.0, %v2762_v11 }
 0x297   :  { %2763 = vrcp.f32 %v2640_v61 }
 0x2a1   :  { %v2764_v16 = vpop.eup %2763 }
 0x2a2   :  { %2644 = vst.msk [vmem:[%s4061_s3] sm:$0x3] %vm2643_vm5, %v2764_v16 }

// kernel: dis_forward.8
= control target key start
LH: loop header
LB: loop body
LE: loop exit
PB: predicated region body
PF: predicated region fallthrough
CT: control target
= control target key end

     0   :  { %s12029_s12 = smov 0   ;;  %s12031_s13 = smov 0   ;;  %s15602_s0 = inlined_call_operand.vmem [shape: bf16[2,6,6,256], index: 0, kind: input, shape index: {}]   ;;  %s15603_s1 = inlined_call_operand.vmem [shape: bf16[16,256,512], index: 1, kind: input, shape index: {}]   ;;  %s15604_s2 = inlined_call_operand.vmem [shape: f32[1,512], index: 2, kind: input, shape index: {}]   ;;  %s15605_s3 = inlined_call_operand.vmem [shape: bf16[2,3,3,512], index: 3, kind: output, shape index: {}]  }
   0x1   :  { %s12033_s14 = smov 0   ;;  %s12035_s15 = smov 0  }
   0x2   :  { %s12037_s16 = smov 0  }
   0x3 LB: > { %s22_s17 = sadd.s32 1, %s11998_s14  ;;  %s25_s18 = sadd.s32 1, %s12002_s15  ;;  %s12006_s16 = sphi %s12037_s16, %s13_s16   ;;  %s12002_s15 = sphi %s12035_s15, %s15615_s15   ;;  %s11998_s14 = sphi %s12033_s14, %s15614_s14   ;;  %s11994_s13 = sphi %s12031_s13, %s15613_s13   ;;  %s11990_s12 = sphi %s12029_s12, %s15612_s12  }
   0x4   : > { %p23_p0 = scmp.ge.s32.totalorder %s22_s17, 3  ;;  %p8355_p1 = scmp.ge.s32.totalorder %s12006_s16, 1 }
   0x5   : > { %p149_p2 = scmp.lt.s32.totalorder %s12006_s16, 7 }
   0x6   : > { %s15617_s17 = smov (%p23_p0, %s22_s17), 0  ;;  %s15619_s18 = smov (!%p23_p0, %s25_s18), %s12002_s15 }
   0x7   : > { %p150_p3 = pnand %p8355_p1, %p149_p2  ;;  %p27_p4 = scmp.ge.s32.totalorder %s15619_s18, 2 }
   0x8   : > { %v10416_v0 = vld [vmem:[%s15603_s1 + $0x204] ss:$16 sps:$4 sm:$0xff] (!%p150_p3)   ;;  %v10418_v1 = vld [vmem:[%s15603_s1 + $0x20c] ss:$16 sps:$4 sm:$0xff] (!%p150_p3)   ;;  %v10420_v2 = vld [vmem:[%s15603_s1 + $0x200] ss:$16 sps:$4 sm:$0xff] (!%p150_p3)  }
   0x9   : > { %s15621_s18 = smov (%p27_p4, %s15619_s18), 0  ;;  %153 = sbr.rel (%p150_p3) target bundleno = 1341 (0x53d), region = 32 }
   0xa   : > { %657 = vmatprep.subr.bf16.mxu0 (!%p150_p3), %v10416_v0  ;;  %v10421_v3 = vld [vmem:[%s15603_s1 + $0x208] ss:$16 sps:$4 sm:$0xff] (!%p150_p3)   ;;  %698 = vmatprep.subr.bf16.mxu1 (!%p150_p3), %v10418_v1  ;;  %v10422_v4 = vld [vmem:[%s15603_s1 + $0x224] ss:$16 sps:$4 sm:$0xff] (!%p150_p3)   ;;  %v10424_v5 = vld [vmem:[%s15603_s1 + $0x22c] ss:$16 sps:$4 sm:$0xff] (!%p150_p3)  }
   0xb   : > { %658 = vmatpush1.bf16.msra.mxu0 (!%p150_p3), %v10420_v2  ;;  %699 = vmatpush1.bf16.msra.mxu1 (!%p150_p3), %v10421_v3  ;;  %v10426_v6 = vld [vmem:[%s15603_s1 + $0x220] ss:$16 sps:$4 sm:$0xff] (!%p150_p3)   ;;  %v10427_v7 = vld [vmem:[%s15603_s1 + $0x228] ss:$16 sps:$4 sm:$0xff] (!%p150_p3)   ;;  %v10428_v8 = vld [vmem:[%s15603_s1 + $0x244] ss:$16 sps:$4 sm:$0xff] (!%p150_p3)  }
   0xc   : > { %659 = vmatprep.subr.bf16.mxu0 (!%p150_p3), %v10422_v4  ;;  %700 = vmatprep.subr.bf16.mxu1 (!%p150_p3), %v10424_v5  ;;  %v10430_v9 = vld [vmem:[%s15603_s1 + $0x24c] ss:$16 sps:$4 sm:$0xff] (!%p150_p3)   ;;  %v10432_v10 = vld [vmem:[%s15603_s1 + $0x240] ss:$16 sps:$4 sm:$0xff] (!%p150_p3)   ;;  %v10433_v11 = vld [vmem:[%s15603_s1 + $0x248] ss:$16 sps:$4 sm:$0xff] (!%p150_p3)  }
   0xd   : > { %v10434_v12 = vld [vmem:[%s15603_s1 + $0x264] ss:$16 sps:$4 sm:$0xff] (!%p150_p3)   ;;  %v10436_v13 = vld [vmem:[%s15603_s1 + $0x26c] ss:$16 sps:$4 sm:$0xff] (!%p150_p3)   ;;  %v10438_v14 = vld [vmem:[%s15603_s1 + $0x260] ss:$16 sps:$4 sm:$0xff] (!%p150_p3)  }
   0xe   : > { %v10439_v15 = vld [vmem:[%s15603_s1 + $0x268] ss:$16 sps:$4 sm:$0xff] (!%p150_p3)   ;;  %v10440_v16 = vld [vmem:[%s15603_s1 + $0x284] ss:$16 sps:$4 sm:$0xff] (!%p150_p3)   ;;  %v10442_v17 = vld [vmem:[%s15603_s1 + $0x28c] ss:$16 sps:$4 sm:$0xff] (!%p150_p3)  }
   0xf   : > { %660 = vmatpush1.bf16.msra.mxu0 (!%p150_p3), %v10426_v6  ;;  %701 = vmatpush1.bf16.msra.mxu1 (!%p150_p3), %v10427_v7  ;;  %v10444_v18 = vld [vmem:[%s15603_s1 + $0x280] ss:$16 sps:$4 sm:$0xff] (!%p150_p3)   ;;  %v10445_v19 = vld [vmem:[%s15603_s1 + $0x288] ss:$16 sps:$4 sm:$0xff] (!%p150_p3)   ;;  %v10446_v20 = vld [vmem:[%s15603_s1 + $0x2a4] ss:$16 sps:$4 sm:$0xff] (!%p150_p3)  }
  0x10   : > { %661 = vmatprep.subr.bf16.mxu0 %v10428_v8  ;;  %702 = vmatprep.subr.bf16.mxu1 %v10430_v9  ;;  %v10448_v21 = vld [vmem:[%s15603_s1 + $0x2ac] ss:$16 sps:$4 sm:$0xff]   ;;  %v10450_v22 = vld [vmem:[%s15603_s1 + $0x2a0] ss:$16 sps:$4 sm:$0xff]   ;;  %v10451_v23 = vld [vmem:[%s15603_s1 + $0x2a8] ss:$16 sps:$4 sm:$0xff]  }
  0x11   : > { %v10452_v24 = vld [vmem:[%s15603_s1 + $0x2c4] ss:$16 sps:$4 sm:$0xff]   ;;  %v10454_v25 = vld [vmem:[%s15603_s1 + $0x2cc] ss:$16 sps:$4 sm:$0xff]   ;;  %v10456_v26 = vld [vmem:[%s15603_s1 + $0x2c0] ss:$16 sps:$4 sm:$0xff]  }
  0x12   : > { %v10457_v27 = vld [vmem:[%s15603_s1 + $0x2c8] ss:$16 sps:$4 sm:$0xff]   ;;  %v10458_v28 = vld [vmem:[%s15603_s1 + $0x2e4] ss:$16 sps:$4 sm:$0xff]   ;;  %p173_p5 = scmp.lt.s32.totalorder %s11994_s13, 1  ;;  %s10371_s25 = sshll.u32 %s11990_s12, 3 }
  0x13   : > { %662 = vmatpush1.bf16.msra.mxu0 %v10432_v10  ;;  %703 = vmatpush1.bf16.msra.mxu1 %v10433_v11  ;;  %v10460_v29 = vld [vmem:[%s15603_s1 + $0x2ec] ss:$16 sps:$4 sm:$0xff]   ;;  %v10462_v30 = vld [vmem:[%s15603_s1 + $0x2e0] ss:$16 sps:$4 sm:$0xff]   ;;  %v10463_v31 = vld [vmem:[%s15603_s1 + $0x2e8] ss:$16 sps:$4 sm:$0xff]  }
  0x14   : > { %663 = vmatprep.subr.bf16.mxu0 %v10434_v12  ;;  %704 = vmatprep.subr.bf16.mxu1 %v10436_v13  ;;  %v10464_v32 = vld [vmem:[%s15603_s1 + $0x304] ss:$16 sps:$4 sm:$0xff]   ;;  %s15623_s13 = smov (!%p173_p5, %s11994_s13), 1  ;;  %v10466_v33 = vld [vmem:[%s15603_s1 + $0x30c] ss:$16 sps:$4 sm:$0xff]   ;;  %vm7924_vm0 = vcmask 1041408  }
  0x15   : > { %v10468_v34 = vld [vmem:[%s15603_s1 + $0x300] ss:$16 sps:$4 sm:$0xff]   ;;  %v10469_v35 = vld [vmem:[%s15603_s1 + $0x308] ss:$16 sps:$4 sm:$0xff]   ;;  %v10470_v36 = vld [vmem:[%s15603_s1 + $0x324] ss:$16 sps:$4 sm:$0xff]  }
  0x16   : > { %s10373_s6 = smul.u32 48, %s15623_s13  ;;  %v10472_v37 = vld [vmem:[%s15603_s1 + $0x32c] ss:$16 sps:$4 sm:$0xff]   ;;  %v10474_v38 = vld [vmem:[%s15603_s1 + $0x320] ss:$16 sps:$4 sm:$0xff]   ;;  %vm7927_vm2 = vcmask 1043458  }
  0x17   : > { %664 = vmatpush1.bf16.msra.mxu0 %v10438_v14  ;;  %705 = vmatpush1.bf16.msra.mxu1 %v10439_v15  ;;  %v10475_v39 = vld [vmem:[%s15603_s1 + $0x328] ss:$16 sps:$4 sm:$0xff]   ;;  %v10476_v40 = vld [vmem:[%s15603_s1 + $0x344] ss:$16 sps:$4 sm:$0xff]   ;;  %v10478_v41 = vld [vmem:[%s15603_s1 + $0x34c] ss:$16 sps:$4 sm:$0xff]  }
  0x18   : > { %665 = vmatprep.subr.bf16.mxu0 %v10440_v16  ;;  %706 = vmatprep.subr.bf16.mxu1 %v10442_v17  ;;  %s177_s24 = scalar_lea.vmem %s15602_s0, %s10373_s6  ;;  %v10480_v42 = vld [vmem:[%s15603_s1 + $0x340] ss:$16 sps:$4 sm:$0xff]   ;;  %v10481_v43 = vld [vmem:[%s15603_s1 + $0x348] ss:$16 sps:$4 sm:$0xff]   ;;  %v10482_v44 = vld [vmem:[%s15603_s1 + $0x364] ss:$16 sps:$4 sm:$0xff]  }
  0x19   : > { %s12206_s5 = scalar_lea.vmem %s177_s24, %s10371_s25  ;;  %v10484_v45 = vld [vmem:[%s15603_s1 + $0x36c] ss:$16 sps:$4 sm:$0xff]   ;;  %v10486_v47 = vld [vmem:[%s15603_s1 + $0x360] ss:$16 sps:$4 sm:$0xff]   ;;  %v10487_v49 = vld [vmem:[%s15603_s1 + $0x368] ss:$16 sps:$4 sm:$0xff]  }
  0x1a   : > { %v186_v46 = vld [vmem:[%s12206_s5] sm:$0x77]  ;;  %v10490_v51 = vld [vmem:[%s15603_s1 + $0x38c] ss:$16 sps:$4 sm:$0xff]   ;;  %v10493_v56 = vld [vmem:[%s15603_s1 + $0x388] ss:$16 sps:$4 sm:$0xff]  }
  0x1b   : > { %666 = vmatpush1.bf16.msra.mxu0 %v10444_v18  ;;  %707 = vmatpush1.bf16.msra.mxu1 %v10445_v19  ;;  %v12218_v48 = vcombine.high %v186_v46, %v186_v46  ;;  %v10488_v50 = vld [vmem:[%s15603_s1 + $0x384] ss:$16 sps:$4 sm:$0xff]   ;;  %v10492_v54 = vld [vmem:[%s15603_s1 + $0x380] ss:$16 sps:$4 sm:$0xff]   ;;  %v10496_v58 = vld [vmem:[%s15603_s1 + $0x3ac] ss:$16 sps:$4 sm:$0xff]   ;;  %v12250_v61 = vcombine.low %v186_v46, %v186_v46 }
  0x1c   : > { %667 = vmatprep.subr.bf16.mxu0 %v10446_v20  ;;  %708 = vmatprep.subr.bf16.mxu1 %v10448_v21  ;;  %v10494_v57 = vld [vmem:[%s15603_s1 + $0x3a4] ss:$16 sps:$4 sm:$0xff]   ;;  %v10498_v60 = vld [vmem:[%s15603_s1 + $0x3a0] ss:$16 sps:$4 sm:$0xff]   ;;  %v10499_v62 = vld [vmem:[%s15603_s1 + $0x3a8] ss:$16 sps:$4 sm:$0xff]  }
  0x1d   : > { %v329_v52 = vshrl.u32 %v12218_v48, 16  ;;  %v331_v53 = vshll.u32 %v12218_v48, 16  ;;  %v10500_v63 = vld [vmem:[%s15603_s1 + $0x3c4] ss:$16 sps:$4 sm:$0xff]   ;;  %v10502_v0 = vld [vmem:[%s15603_s1 + $0x3cc] ss:$16 sps:$4 sm:$0xff]  }
  0x1e   : > { %v10504_v1 = vld [vmem:[%s15603_s1 + $0x3c0] ss:$16 sps:$4 sm:$0xff]   ;;  %v324_v2 = vshll.u32 %v12250_v61, 16  ;;  %v10505_v3 = vld [vmem:[%s15603_s1 + $0x3c8] ss:$16 sps:$4 sm:$0xff]   ;;  %v322_v7 = vshrl.u32 %v12250_v61, 16 }
  0x1f   : > { %668 = vmatpush1.bf16.msra.mxu0 %v10450_v22  ;;  %709 = vmatpush1.bf16.msra.mxu1 %v10451_v23  ;;  %v333_v55 = vrot.slane %v331_v53, 1  ;;  %v10506_v4 = vld [vmem:[%s15603_s1 + $0x3e4] ss:$16 sps:$4 sm:$0xff]   ;;  %v10508_v5 = vld [vmem:[%s15603_s1 + $0x3ec] ss:$16 sps:$4 sm:$0xff]   ;;  %s10374_s22 = smul.u32 24, %s15623_s13 }
  0x20   : > { %669 = vmatprep.subr.bf16.mxu0 %v10452_v24  ;;  %710 = vmatprep.subr.bf16.mxu1 %v10454_v25  ;;  %v10510_v6 = vld [vmem:[%s15603_s1 + $0x3e0] ss:$16 sps:$4 sm:$0xff]   ;;  %v326_v8 = vrot.slane %v324_v2, 1  ;;  %v10511_v9 = vld [vmem:[%s15603_s1 + $0x3e8] ss:$16 sps:$4 sm:$0xff]   ;;  %vm7931_vm6 = vcmask 1045508  }
  0x21   : > { %v334_v59 = vor.u32 %v333_v55, %v329_v52  ;;  %v10516_v10 = vld [vmem:[%s15603_s1 + $0x4] ss:$16 sps:$4 sm:$0xff]   ;;  %v10519_v11 = vld [vmem:[%s15603_s1 + $0xc] ss:$16 sps:$4 sm:$0xff]   ;;  %v10514_v13 = vld [vmem:[%s15603_s1] ss:$16 sps:$4 sm:$0xff]   ;;  %s15453_s24 = scalar_lea.vmem %s15605_s3, %s10374_s22 }
  0x22   : > { %v327_v12 = vor.u32 %v326_v8, %v322_v7  ;;  %v10517_v14 = vld [vmem:[%s15603_s1 + $0x8] ss:$16 sps:$4 sm:$0xff]   ;;  %v10522_v15 = vld [vmem:[%s15603_s1 + $0x24] ss:$16 sps:$4 sm:$0xff]   ;;  %v10525_v16 = vld [vmem:[%s15603_s1 + $0x2c] ss:$16 sps:$4 sm:$0xff]   ;;  %s7923_s26 = scalar_lea.vmem %s15453_s24, %s10371_s25 }
  0x23   : > { %670 = vmatpush1.bf16.msra.mxu0 %v10456_v26  ;;  %711 = vmatpush1.bf16.msra.mxu1 %v10457_v27  ;;  %v10520_v17 = vld [vmem:[%s15603_s1 + $0x20] ss:$16 sps:$4 sm:$0xff]   ;;  %v10523_v18 = vld [vmem:[%s15603_s1 + $0x28] ss:$16 sps:$4 sm:$0xff]   ;;  %v10528_v19 = vld [vmem:[%s15603_s1 + $0x44] ss:$16 sps:$4 sm:$0xff]  }
  0x24   : > { %671 = vmatprep.subr.bf16.mxu0 %v10458_v28  ;;  %712 = vmatprep.subr.bf16.mxu1 %v10460_v29  ;;  %v10531_v20 = vld [vmem:[%s15603_s1 + $0x4c] ss:$16 sps:$4 sm:$0xff]   ;;  %v10526_v21 = vld [vmem:[%s15603_s1 + $0x40] ss:$16 sps:$4 sm:$0xff]   ;;  %v10529_v22 = vld [vmem:[%s15603_s1 + $0x48] ss:$16 sps:$4 sm:$0xff]  }
  0x25   : > { %689 = vmatprep.mubr.bf16.mxu0 %v334_v59  ;;  %730 = vmatprep.mubr.bf16.mxu1 %v334_v59  ;;  %v10534_v23 = vld [vmem:[%s15603_s1 + $0x64] ss:$16 sps:$4 sm:$0xff]   ;;  %v10537_v24 = vld [vmem:[%s15603_s1 + $0x6c] ss:$16 sps:$4 sm:$0xff]   ;;  %v10532_v25 = vld [vmem:[%s15603_s1 + $0x60] ss:$16 sps:$4 sm:$0xff]  }
  0x26   : > { %v10535_v26 = vld [vmem:[%s15603_s1 + $0x68] ss:$16 sps:$4 sm:$0xff]   ;;  %v10540_v27 = vld [vmem:[%s15603_s1 + $0x84] ss:$16 sps:$4 sm:$0xff]   ;;  %v10543_v28 = vld [vmem:[%s15603_s1 + $0x8c] ss:$16 sps:$4 sm:$0xff]  }
  0x27   : > { %672 = vmatpush1.bf16.msra.mxu0 %v10462_v30  ;;  %713 = vmatpush1.bf16.msra.mxu1 %v10463_v31  ;;  %v10538_v29 = vld [vmem:[%s15603_s1 + $0x80] ss:$16 sps:$4 sm:$0xff]   ;;  %v10541_v30 = vld [vmem:[%s15603_s1 + $0x88] ss:$16 sps:$4 sm:$0xff]   ;;  %v10546_v31 = vld [vmem:[%s15603_s1 + $0xa4] ss:$16 sps:$4 sm:$0xff]  }
  0x28   : > { %673 = vmatprep.subr.bf16.mxu0 %v10464_v32  ;;  %714 = vmatprep.subr.bf16.mxu1 %v10466_v33  ;;  %v10549_v32 = vld [vmem:[%s15603_s1 + $0xac] ss:$16 sps:$4 sm:$0xff]   ;;  %v10544_v33 = vld [vmem:[%s15603_s1 + $0xa0] ss:$16 sps:$4 sm:$0xff]   ;;  %v10565_v46 = vld [vmem:[%s15603_s1 + $0x108] ss:$16 sps:$4 sm:$0xff]  }
  0x29   : > { %v10579_v55 = vld [vmem:[%s15603_s1 + $0x14c] ss:$16 sps:$4 sm:$0xff]   ;;  %v10595_v8 = vld [vmem:[%s15603_s1 + $0x1a8] ss:$16 sps:$4 sm:$0xff]   ;;  %vm7925_vm1 = vsmask.f32 1280 }
  0x2a   : > { %v10585_v59 = vld [vmem:[%s15603_s1 + $0x16c] ss:$16 sps:$4 sm:$0xff]   ;;  %vm7928_vm3 = vsmask.f32 3328  ;;  %vm15437_vm4 = vmand %vm7924_vm0, %vm7925_vm1  ;;  %vm7932_vm7 = vsmask.f32 5376 }
  0x2b   : > { %674 = vmatpush1.bf16.msra.mxu0 %v10468_v34  ;;  %715 = vmatpush1.bf16.msra.mxu1 %v10469_v35  ;;  %v10547_v34 = vld [vmem:[%s15603_s1 + $0xa8] ss:$16 sps:$4 sm:$0xff]   ;;  %v10552_v35 = vld [vmem:[%s15603_s1 + $0xc4] ss:$16 sps:$4 sm:$0xff]   ;;  %vm15441_vm5 = vmand %vm7927_vm2, %vm7928_vm3  ;;  %vm7935_vm10 = vcmask 1047558   ;;  %p10362_p6 = scmp.ne.s32.totalorder %s11990_s12, 2 }
  0x2c   : > { %675 = vmatprep.subr.bf16.mxu0 %v10470_v36  ;;  %716 = vmatprep.subr.bf16.mxu1 %v10472_v37  ;;  %v10555_v36 = vld [vmem:[%s15603_s1 + $0xcc] ss:$16 sps:$4 sm:$0xff]   ;;  %v10550_v37 = vld [vmem:[%s15603_s1 + $0xc0] ss:$16 sps:$4 sm:$0xff]   ;;  %vm7930_vm8 = vmor %vm15441_vm5, %vm15437_vm4  ;;  %vm7936_vm11 = vsmask.f32 7424 }
  0x2d   : > { %vm7933_vm9 = vmand %vm7931_vm6, %vm7932_vm7  ;;  %vm7973_vm15 = vcmask (!%p10362_p6), 1042432  }
  0x2e   : > { %vm7934_vm12 = vmor %vm7933_vm9, %vm7930_vm8 }
  0x2f   : > { %676 = vmatpush1.bf16.msra.mxu0 %v10474_v38  ;;  %717 = vmatpush1.bf16.msra.mxu1 %v10475_v39  ;;  %v10553_v38 = vld [vmem:[%s15603_s1 + $0xc8] ss:$16 sps:$4 sm:$0xff]   ;;  %v10558_v39 = vld [vmem:[%s15603_s1 + $0xe4] ss:$16 sps:$4 sm:$0xff]   ;;  %vm7937_vm13 = vmand %vm7935_vm10, %vm7936_vm11 }
  0x30   : > { %677 = vmatprep.subr.bf16.mxu0 %v10476_v40  ;;  %718 = vmatprep.subr.bf16.mxu1 %v10478_v41  ;;  %v10561_v40 = vld [vmem:[%s15603_s1 + $0xec] ss:$16 sps:$4 sm:$0xff]   ;;  %v10556_v41 = vld [vmem:[%s15603_s1 + $0xe0] ss:$16 sps:$4 sm:$0xff]   ;;  %vm15467_vm14 = vmor %vm7937_vm13, %vm7934_vm12 }
  0x33   : > { %678 = vmatpush1.bf16.msra.mxu0 %v10480_v42  ;;  %719 = vmatpush1.bf16.msra.mxu1 %v10481_v43  ;;  %v10559_v42 = vld [vmem:[%s15603_s1 + $0xe8] ss:$16 sps:$4 sm:$0xff]   ;;  %v10564_v43 = vld [vmem:[%s15603_s1 + $0x104] ss:$16 sps:$4 sm:$0xff]  }
  0x34   : > { %679 = vmatprep.subr.bf16.mxu0 %v10482_v44  ;;  %720 = vmatprep.subr.bf16.mxu1 %v10484_v45  ;;  %v10567_v44 = vld [vmem:[%s15603_s1 + $0x10c] ss:$16 sps:$4 sm:$0xff]   ;;  %v10562_v45 = vld [vmem:[%s15603_s1 + $0x100] ss:$16 sps:$4 sm:$0xff]  }
  0x37   : > { %680 = vmatpush1.bf16.msra.mxu0 %v10486_v47  ;;  %721 = vmatpush1.bf16.msra.mxu1 %v10487_v49  ;;  %v10570_v47 = vld [vmem:[%s15603_s1 + $0x124] ss:$16 sps:$4 sm:$0xff]   ;;  %v10573_v49 = vld [vmem:[%s15603_s1 + $0x12c] ss:$16 sps:$4 sm:$0xff]  }
  0x38   : > { %681 = vmatprep.subr.bf16.mxu0 %v10488_v50  ;;  %722 = vmatprep.subr.bf16.mxu1 %v10490_v51  ;;  %v10568_v50 = vld [vmem:[%s15603_s1 + $0x120] ss:$16 sps:$4 sm:$0xff]   ;;  %v10571_v51 = vld [vmem:[%s15603_s1 + $0x128] ss:$16 sps:$4 sm:$0xff]  }
  0x3b   : > { %682 = vmatpush1.bf16.msra.mxu0 %v10492_v54  ;;  %723 = vmatpush1.bf16.msra.mxu1 %v10493_v56  ;;  %v10576_v54 = vld [vmem:[%s15603_s1 + $0x144] ss:$16 sps:$4 sm:$0xff]   ;;  %v10574_v56 = vld [vmem:[%s15603_s1 + $0x140] ss:$16 sps:$4 sm:$0xff]  }
  0x3c   : > { %683 = vmatprep.subr.bf16.mxu0 %v10494_v57  ;;  %724 = vmatprep.subr.bf16.mxu1 %v10496_v58  ;;  %v10577_v57 = vld [vmem:[%s15603_s1 + $0x148] ss:$16 sps:$4 sm:$0xff]   ;;  %v10582_v58 = vld [vmem:[%s15603_s1 + $0x164] ss:$16 sps:$4 sm:$0xff]  }
  0x3f   : > { %684 = vmatpush1.bf16.msra.mxu0 %v10498_v60  ;;  %725 = vmatpush1.bf16.msra.mxu1 %v10499_v62  ;;  %v10580_v60 = vld [vmem:[%s15603_s1 + $0x160] ss:$16 sps:$4 sm:$0xff]   ;;  %v10583_v62 = vld [vmem:[%s15603_s1 + $0x168] ss:$16 sps:$4 sm:$0xff]  }
  0x40   : > { %685 = vmatprep.subr.bf16.mxu0 %v10500_v63  ;;  %726 = vmatprep.subr.bf16.mxu1 %v10502_v0  ;;  %v10588_v63 = vld [vmem:[%s15603_s1 + $0x184] ss:$16 sps:$4 sm:$0xff]   ;;  %v10591_v0 = vld [vmem:[%s15603_s1 + $0x18c] ss:$16 sps:$4 sm:$0xff]  }
  0x43   : > { %686 = vmatpush1.bf16.msra.mxu0 %v10504_v1  ;;  %727 = vmatpush1.bf16.msra.mxu1 %v10505_v3  ;;  %v10586_v1 = vld [vmem:[%s15603_s1 + $0x180] ss:$16 sps:$4 sm:$0xff]   ;;  %v10589_v3 = vld [vmem:[%s15603_s1 + $0x188] ss:$16 sps:$4 sm:$0xff]  }
  0x44   : > { %687 = vmatprep.subr.bf16.mxu0 %v10506_v4  ;;  %728 = vmatprep.subr.bf16.mxu1 %v10508_v5  ;;  %v10594_v4 = vld [vmem:[%s15603_s1 + $0x1a4] ss:$16 sps:$4 sm:$0xff]   ;;  %v10597_v5 = vld [vmem:[%s15603_s1 + $0x1ac] ss:$16 sps:$4 sm:$0xff]  }
  0x47   : > { %688 = vmatpush1.bf16.msra.mxu0 %v10510_v6  ;;  %729 = vmatpush1.bf16.msra.mxu1 %v10511_v9  ;;  %v10592_v6 = vld [vmem:[%s15603_s1 + $0x1a0] ss:$16 sps:$4 sm:$0xff]   ;;  %v10600_v9 = vld [vmem:[%s15603_s1 + $0x1c4] ss:$16 sps:$4 sm:$0xff]  }
  0x48   : > { %1061 = vmatprep.subr.bf16.mxu0 %v10516_v10  ;;  %1102 = vmatprep.subr.bf16.mxu1 %v10519_v11  ;;  %v10603_v10 = vld [vmem:[%s15603_s1 + $0x1cc] ss:$16 sps:$4 sm:$0xff]   ;;  %v10598_v11 = vld [vmem:[%s15603_s1 + $0x1c0] ss:$16 sps:$4 sm:$0xff]  }
  0x4a   : > { %690 = vmatmul.mubr.bf16.vlgmr.msra.gmra.mrb[0].mxu0 %v327_v12  ;;  %731 = vmatmul.mubr.bf16.vlgmr.msra.gmra.mrb[0].mxu1 %v327_v12  ;;  %v10601_v12 = vld [vmem:[%s15603_s1 + $0x1c8] ss:$16 sps:$4 sm:$0xff]  }
  0x4b   : > { %1062 = vmatpush1.bf16.msra.mxu0 %v10514_v13  ;;  %1103 = vmatpush1.bf16.msra.mxu1 %v10517_v14  ;;  %v10606_v13 = vld [vmem:[%s15603_s1 + $0x1e4] ss:$16 sps:$4 sm:$0xff]   ;;  %v10609_v14 = vld [vmem:[%s15603_s1 + $0x1ec] ss:$16 sps:$4 sm:$0xff]  }
  0x4c   : > { %1063 = vmatprep.subr.bf16.mxu0 %v10522_v15  ;;  %1104 = vmatprep.subr.bf16.mxu1 %v10525_v16  ;;  %v10604_v15 = vld [vmem:[%s15603_s1 + $0x1e0] ss:$16 sps:$4 sm:$0xff]   ;;  %v10607_v16 = vld [vmem:[%s15603_s1 + $0x1e8] ss:$16 sps:$4 sm:$0xff]  }
  0x4d   : > { %1093 = vmatprep.mubr.bf16.mxu0 %v12218_v48  ;;  %1134 = vmatprep.mubr.bf16.mxu1 %v12218_v48 }
  0x4f   : > { %1064 = vmatpush1.bf16.msra.mxu0 %v10520_v17  ;;  %1105 = vmatpush1.bf16.msra.mxu1 %v10523_v18  ;;  %v10612_v17 = vld [vmem:[%s15603_s1 + $0x404] ss:$16 sps:$4 sm:$0xff]   ;;  %v10615_v18 = vld [vmem:[%s15603_s1 + $0x40c] ss:$16 sps:$4 sm:$0xff]  }
  0x50   : > { %1065 = vmatprep.subr.bf16.mxu0 %v10528_v19  ;;  %1106 = vmatprep.subr.bf16.mxu1 %v10531_v20  ;;  %v10610_v19 = vld [vmem:[%s15603_s1 + $0x400] ss:$16 sps:$4 sm:$0xff]   ;;  %v10613_v20 = vld [vmem:[%s15603_s1 + $0x408] ss:$16 sps:$4 sm:$0xff]  }
  0x53   : > { %1066 = vmatpush1.bf16.msra.mxu0 %v10526_v21  ;;  %1107 = vmatpush1.bf16.msra.mxu1 %v10529_v22  ;;  %v10618_v21 = vld [vmem:[%s15603_s1 + $0x424] ss:$16 sps:$4 sm:$0xff]   ;;  %v10621_v22 = vld [vmem:[%s15603_s1 + $0x42c] ss:$16 sps:$4 sm:$0xff]  }
  0x54   : > { %1067 = vmatprep.subr.bf16.mxu0 %v10534_v23  ;;  %1108 = vmatprep.subr.bf16.mxu1 %v10537_v24  ;;  %v1209_v23 = vrot.slane %v12218_v48, 1  ;;  %v10616_v24 = vld [vmem:[%s15603_s1 + $0x420] ss:$16 sps:$4 sm:$0xff]   ;;  %v10717_v48 = vld [vmem:[%s15603_s1 + $0x62c] ss:$16 sps:$4 sm:$0xff]  }
  0x57   : > { %1068 = vmatpush1.bf16.msra.mxu0 %v10532_v25  ;;  %1109 = vmatpush1.bf16.msra.mxu1 %v10535_v26  ;;  %v10619_v25 = vld [vmem:[%s15603_s1 + $0x428] ss:$16 sps:$4 sm:$0xff]   ;;  %v10624_v26 = vld [vmem:[%s15603_s1 + $0x444] ss:$16 sps:$4 sm:$0xff]  }
  0x58   : > { %1069 = vmatprep.subr.bf16.mxu0 %v10540_v27  ;;  %1110 = vmatprep.subr.bf16.mxu1 %v10543_v28  ;;  %v10627_v27 = vld [vmem:[%s15603_s1 + $0x44c] ss:$16 sps:$4 sm:$0xff]   ;;  %v10622_v28 = vld [vmem:[%s15603_s1 + $0x440] ss:$16 sps:$4 sm:$0xff]  }
  0x5b   : > { %1070 = vmatpush1.bf16.msra.mxu0 %v10538_v29  ;;  %1111 = vmatpush1.bf16.msra.mxu1 %v10541_v30  ;;  %v10625_v29 = vld [vmem:[%s15603_s1 + $0x448] ss:$16 sps:$4 sm:$0xff]   ;;  %v10630_v30 = vld [vmem:[%s15603_s1 + $0x464] ss:$16 sps:$4 sm:$0xff]  }
  0x5c   : > { %1071 = vmatprep.subr.bf16.mxu0 %v10546_v31  ;;  %1112 = vmatprep.subr.bf16.mxu1 %v10549_v32  ;;  %v10633_v31 = vld [vmem:[%s15603_s1 + $0x46c] ss:$16 sps:$4 sm:$0xff]   ;;  %v10628_v32 = vld [vmem:[%s15603_s1 + $0x460] ss:$16 sps:$4 sm:$0xff]  }
  0x5f   : > { %1072 = vmatpush1.bf16.msra.mxu0 %v10544_v33  ;;  %1113 = vmatpush1.bf16.msra.mxu1 %v10547_v34  ;;  %v10631_v33 = vld [vmem:[%s15603_s1 + $0x468] ss:$16 sps:$4 sm:$0xff]   ;;  %v10636_v34 = vld [vmem:[%s15603_s1 + $0x484] ss:$16 sps:$4 sm:$0xff]  }
  0x60   : > { %1073 = vmatprep.subr.bf16.mxu0 %v10552_v35  ;;  %1114 = vmatprep.subr.bf16.mxu1 %v10555_v36  ;;  %v10639_v35 = vld [vmem:[%s15603_s1 + $0x48c] ss:$16 sps:$4 sm:$0xff]   ;;  %v10634_v36 = vld [vmem:[%s15603_s1 + $0x480] ss:$16 sps:$4 sm:$0xff]  }
  0x63   : > { %1074 = vmatpush1.bf16.msra.mxu0 %v10550_v37  ;;  %1115 = vmatpush1.bf16.msra.mxu1 %v10553_v38  ;;  %v10637_v37 = vld [vmem:[%s15603_s1 + $0x488] ss:$16 sps:$4 sm:$0xff]   ;;  %v10642_v38 = vld [vmem:[%s15603_s1 + $0x4a4] ss:$16 sps:$4 sm:$0xff]  }
  0x64   : > { %1075 = vmatprep.subr.bf16.mxu0 %v10558_v39  ;;  %1116 = vmatprep.subr.bf16.mxu1 %v10561_v40  ;;  %v10645_v39 = vld [vmem:[%s15603_s1 + $0x4ac] ss:$16 sps:$4 sm:$0xff]   ;;  %v10640_v40 = vld [vmem:[%s15603_s1 + $0x4a0] ss:$16 sps:$4 sm:$0xff]  }
  0x67   : > { %1076 = vmatpush1.bf16.msra.mxu0 %v10556_v41  ;;  %1117 = vmatpush1.bf16.msra.mxu1 %v10559_v42  ;;  %v10643_v41 = vld [vmem:[%s15603_s1 + $0x4a8] ss:$16 sps:$4 sm:$0xff]   ;;  %v10648_v42 = vld [vmem:[%s15603_s1 + $0x4c4] ss:$16 sps:$4 sm:$0xff]  }
  0x68   : > { %1077 = vmatprep.subr.bf16.mxu0 %v10564_v43  ;;  %1118 = vmatprep.subr.bf16.mxu1 %v10567_v44  ;;  %v10651_v43 = vld [vmem:[%s15603_s1 + $0x4cc] ss:$16 sps:$4 sm:$0xff]   ;;  %v10646_v44 = vld [vmem:[%s15603_s1 + $0x4c0] ss:$16 sps:$4 sm:$0xff]  }
  0x6b   : > { %1078 = vmatpush1.bf16.msra.mxu0 %v10562_v45  ;;  %1119 = vmatpush1.bf16.msra.mxu1 %v10565_v46  ;;  %v10649_v45 = vld [vmem:[%s15603_s1 + $0x4c8] ss:$16 sps:$4 sm:$0xff]   ;;  %v10654_v46 = vld [vmem:[%s15603_s1 + $0x4e4] ss:$16 sps:$4 sm:$0xff]  }
  0x6c   : > { %1079 = vmatprep.subr.bf16.mxu0 %v10570_v47  ;;  %1120 = vmatprep.subr.bf16.mxu1 %v10573_v49  ;;  %v10657_v47 = vld [vmem:[%s15603_s1 + $0x4ec] ss:$16 sps:$4 sm:$0xff]   ;;  %v10652_v49 = vld [vmem:[%s15603_s1 + $0x4e0] ss:$16 sps:$4 sm:$0xff]  }
  0x6f   : > { %1080 = vmatpush1.bf16.msra.mxu0 %v10568_v50  ;;  %1121 = vmatpush1.bf16.msra.mxu1 %v10571_v51  ;;  %v10655_v50 = vld [vmem:[%s15603_s1 + $0x4e8] ss:$16 sps:$4 sm:$0xff]   ;;  %v10660_v51 = vld [vmem:[%s15603_s1 + $0x504] ss:$16 sps:$4 sm:$0xff]  }
  0x70   : > { %1081 = vmatprep.subr.bf16.mxu0 %v10576_v54  ;;  %1122 = vmatprep.subr.bf16.mxu1 %v10579_v55  ;;  %v10663_v54 = vld [vmem:[%s15603_s1 + $0x50c] ss:$16 sps:$4 sm:$0xff]   ;;  %v10658_v55 = vld [vmem:[%s15603_s1 + $0x500] ss:$16 sps:$4 sm:$0xff]  }
  0x73   : > { %1082 = vmatpush1.bf16.msra.mxu0 %v10574_v56  ;;  %1123 = vmatpush1.bf16.msra.mxu1 %v10577_v57  ;;  %v10661_v56 = vld [vmem:[%s15603_s1 + $0x508] ss:$16 sps:$4 sm:$0xff]   ;;  %v10666_v57 = vld [vmem:[%s15603_s1 + $0x524] ss:$16 sps:$4 sm:$0xff]  }
  0x74   : > { %1083 = vmatprep.subr.bf16.mxu0 %v10582_v58  ;;  %1124 = vmatprep.subr.bf16.mxu1 %v10585_v59  ;;  %v10669_v58 = vld [vmem:[%s15603_s1 + $0x52c] ss:$16 sps:$4 sm:$0xff]   ;;  %v10664_v59 = vld [vmem:[%s15603_s1 + $0x520] ss:$16 sps:$4 sm:$0xff]  }
  0x77   : > { %1084 = vmatpush1.bf16.msra.mxu0 %v10580_v60  ;;  %1125 = vmatpush1.bf16.msra.mxu1 %v10583_v62  ;;  %v10667_v60 = vld [vmem:[%s15603_s1 + $0x528] ss:$16 sps:$4 sm:$0xff]   ;;  %v10672_v62 = vld [vmem:[%s15603_s1 + $0x544] ss:$16 sps:$4 sm:$0xff]  }
  0x78   : > { %1085 = vmatprep.subr.bf16.mxu0 %v10588_v63  ;;  %1126 = vmatprep.subr.bf16.mxu1 %v10591_v0  ;;  %v10675_v63 = vld [vmem:[%s15603_s1 + $0x54c] ss:$16 sps:$4 sm:$0xff]   ;;  %v10670_v0 = vld [vmem:[%s15603_s1 + $0x540] ss:$16 sps:$4 sm:$0xff]  }
  0x7b   : > { %1086 = vmatpush1.bf16.msra.mxu0 %v10586_v1  ;;  %1127 = vmatpush1.bf16.msra.mxu1 %v10589_v3  ;;  %v10673_v1 = vld [vmem:[%s15603_s1 + $0x548] ss:$16 sps:$4 sm:$0xff]   ;;  %v10678_v3 = vld [vmem:[%s15603_s1 + $0x564] ss:$16 sps:$4 sm:$0xff]  }
  0x7c   : > { %1087 = vmatprep.subr.bf16.mxu0 %v10594_v4  ;;  %1128 = vmatprep.subr.bf16.mxu1 %v10597_v5  ;;  %v10681_v4 = vld [vmem:[%s15603_s1 + $0x56c] ss:$16 sps:$4 sm:$0xff]   ;;  %v10676_v5 = vld [vmem:[%s15603_s1 + $0x560] ss:$16 sps:$4 sm:$0xff]  }
  0x7f   : > { %1088 = vmatpush1.bf16.msra.mxu0 %v10592_v6  ;;  %1129 = vmatpush1.bf16.msra.mxu1 %v10595_v8  ;;  %v10679_v6 = vld [vmem:[%s15603_s1 + $0x568] ss:$16 sps:$4 sm:$0xff]   ;;  %v10684_v8 = vld [vmem:[%s15603_s1 + $0x584] ss:$16 sps:$4 sm:$0xff]  }
  0x80   : > { %1089 = vmatprep.subr.bf16.mxu0 %v10600_v9  ;;  %1130 = vmatprep.subr.bf16.mxu1 %v10603_v10  ;;  %v10687_v9 = vld [vmem:[%s15603_s1 + $0x58c] ss:$16 sps:$4 sm:$0xff]   ;;  %v10682_v10 = vld [vmem:[%s15603_s1 + $0x580] ss:$16 sps:$4 sm:$0xff]  }
  0x83   : > { %1090 = vmatpush1.bf16.msra.mxu0 %v10598_v11  ;;  %1131 = vmatpush1.bf16.msra.mxu1 %v10601_v12  ;;  %v10685_v11 = vld [vmem:[%s15603_s1 + $0x588] ss:$16 sps:$4 sm:$0xff]   ;;  %v10690_v12 = vld [vmem:[%s15603_s1 + $0x5a4] ss:$16 sps:$4 sm:$0xff]  }
  0x84   : > { %1091 = vmatprep.subr.bf16.mxu0 %v10606_v13  ;;  %1132 = vmatprep.subr.bf16.mxu1 %v10609_v14  ;;  %v10693_v13 = vld [vmem:[%s15603_s1 + $0x5ac] ss:$16 sps:$4 sm:$0xff]   ;;  %v10688_v14 = vld [vmem:[%s15603_s1 + $0x5a0] ss:$16 sps:$4 sm:$0xff]  }
  0x87   : > { %1092 = vmatpush1.bf16.msra.mxu0 %v10604_v15  ;;  %1133 = vmatpush1.bf16.msra.mxu1 %v10607_v16  ;;  %v10691_v15 = vld [vmem:[%s15603_s1 + $0x5a8] ss:$16 sps:$4 sm:$0xff]   ;;  %v10696_v16 = vld [vmem:[%s15603_s1 + $0x5c4] ss:$16 sps:$4 sm:$0xff]  }
  0x88   : > { %1532 = vmatprep.subr.bf16.mxu0 %v10612_v17  ;;  %1573 = vmatprep.subr.bf16.mxu1 %v10615_v18  ;;  %v10699_v17 = vld [vmem:[%s15603_s1 + $0x5cc] ss:$16 sps:$4 sm:$0xff]   ;;  %v10694_v18 = vld [vmem:[%s15603_s1 + $0x5c0] ss:$16 sps:$4 sm:$0xff]  }
  0x8a   : > { %1094 = vmatmul.mubr.bf16.vlgmr.msra.gmra.mrb[4].mxu0 %v12250_v61  ;;  %1135 = vmatmul.mubr.bf16.vlgmr.msra.gmra.mrb[4].mxu1 %v12250_v61 }
  0x8b   : > { %1533 = vmatpush1.bf16.msra.mxu0 %v10610_v19  ;;  %1574 = vmatpush1.bf16.msra.mxu1 %v10613_v20  ;;  %v10697_v19 = vld [vmem:[%s15603_s1 + $0x5c8] ss:$16 sps:$4 sm:$0xff]   ;;  %v10702_v20 = vld [vmem:[%s15603_s1 + $0x5e4] ss:$16 sps:$4 sm:$0xff]  }
  0x8c   : > { %1534 = vmatprep.subr.bf16.mxu0 %v10618_v21  ;;  %1575 = vmatprep.subr.bf16.mxu1 %v10621_v22  ;;  %v10705_v21 = vld [vmem:[%s15603_s1 + $0x5ec] ss:$16 sps:$4 sm:$0xff]   ;;  %v10700_v22 = vld [vmem:[%s15603_s1 + $0x5e0] ss:$16 sps:$4 sm:$0xff]  }
  0x8d   : > { %1564 = vmatprep.mubr.bf16.mxu0 %v1209_v23  ;;  %1605 = vmatprep.mubr.bf16.mxu1 %v1209_v23  ;;  %v10703_v23 = vld [vmem:[%s15603_s1 + $0x5e8] ss:$16 sps:$4 sm:$0xff]  }
  0x8f   : > { %1535 = vmatpush1.bf16.msra.mxu0 %v10616_v24  ;;  %1576 = vmatpush1.bf16.msra.mxu1 %v10619_v25  ;;  %v10708_v24 = vld [vmem:[%s15603_s1 + $0x604] ss:$16 sps:$4 sm:$0xff]   ;;  %v10711_v25 = vld [vmem:[%s15603_s1 + $0x60c] ss:$16 sps:$4 sm:$0xff]  }
  0x90   : > { %1536 = vmatprep.subr.bf16.mxu0 %v10624_v26  ;;  %1577 = vmatprep.subr.bf16.mxu1 %v10627_v27  ;;  %v1686_v26 = vrot.slane %v329_v52, 1  ;;  %v1687_v27 = vrot.slane %v331_v53, 2  ;;  %v10714_v52 = vld [vmem:[%s15603_s1 + $0x624] ss:$16 sps:$4 sm:$0xff]  }
  0x92   : > { %v1688_v53 = vor.u32 %v1687_v27, %v1686_v26  ;;  %v10793_v26 = vld [vmem:[%s15603_s1 + $0x7c8] ss:$16 sps:$4 sm:$0xff]   ;;  %v10798_v27 = vld [vmem:[%s15603_s1 + $0x7e4] ss:$16 sps:$4 sm:$0xff]  }
  0x93   : > { %1537 = vmatpush1.bf16.msra.mxu0 %v10622_v28  ;;  %1578 = vmatpush1.bf16.msra.mxu1 %v10625_v29  ;;  %v1208_v28 = vrot.slane %v12250_v61, 1  ;;  %v10706_v29 = vld [vmem:[%s15603_s1 + $0x600] ss:$16 sps:$4 sm:$0xff]   ;;  %v10807_v61 = vld [vmem:[%s15603_s1 + $0x80c] ss:$16 sps:$4 sm:$0xff]  }
  0x94   : > { %1538 = vmatprep.subr.bf16.mxu0 %v10630_v30  ;;  %1579 = vmatprep.subr.bf16.mxu1 %v10633_v31  ;;  %v10709_v30 = vld [vmem:[%s15603_s1 + $0x608] ss:$16 sps:$4 sm:$0xff]   ;;  %v10712_v31 = vld [vmem:[%s15603_s1 + $0x620] ss:$16 sps:$4 sm:$0xff]  }
  0x97   : > { %1539 = vmatpush1.bf16.msra.mxu0 %v10628_v32  ;;  %1580 = vmatpush1.bf16.msra.mxu1 %v10631_v33  ;;  %v10715_v32 = vld [vmem:[%s15603_s1 + $0x628] ss:$16 sps:$4 sm:$0xff]   ;;  %v10720_v33 = vld [vmem:[%s15603_s1 + $0x644] ss:$16 sps:$4 sm:$0xff]  }
  0x98   : > { %1540 = vmatprep.subr.bf16.mxu0 %v10636_v34  ;;  %1581 = vmatprep.subr.bf16.mxu1 %v10639_v35  ;;  %v10723_v34 = vld [vmem:[%s15603_s1 + $0x64c] ss:$16 sps:$4 sm:$0xff]   ;;  %v10718_v35 = vld [vmem:[%s15603_s1 + $0x640] ss:$16 sps:$4 sm:$0xff]  }
  0x9b   : > { %1541 = vmatpush1.bf16.msra.mxu0 %v10634_v36  ;;  %1582 = vmatpush1.bf16.msra.mxu1 %v10637_v37  ;;  %v10721_v36 = vld [vmem:[%s15603_s1 + $0x648] ss:$16 sps:$4 sm:$0xff]   ;;  %v10726_v37 = vld [vmem:[%s15603_s1 + $0x664] ss:$16 sps:$4 sm:$0xff]  }
  0x9c   : > { %1542 = vmatprep.subr.bf16.mxu0 %v10642_v38  ;;  %1583 = vmatprep.subr.bf16.mxu1 %v10645_v39  ;;  %v10729_v38 = vld [vmem:[%s15603_s1 + $0x66c] ss:$16 sps:$4 sm:$0xff]   ;;  %v10724_v39 = vld [vmem:[%s15603_s1 + $0x660] ss:$16 sps:$4 sm:$0xff]  }
  0x9f   : > { %1543 = vmatpush1.bf16.msra.mxu0 %v10640_v40  ;;  %1584 = vmatpush1.bf16.msra.mxu1 %v10643_v41  ;;  %v10727_v40 = vld [vmem:[%s15603_s1 + $0x668] ss:$16 sps:$4 sm:$0xff]   ;;  %v10732_v41 = vld [vmem:[%s15603_s1 + $0x684] ss:$16 sps:$4 sm:$0xff]  }
  0xa0   : > { %1544 = vmatprep.subr.bf16.mxu0 %v10648_v42  ;;  %1585 = vmatprep.subr.bf16.mxu1 %v10651_v43  ;;  %v10735_v42 = vld [vmem:[%s15603_s1 + $0x68c] ss:$16 sps:$4 sm:$0xff]   ;;  %v10730_v43 = vld [vmem:[%s15603_s1 + $0x680] ss:$16 sps:$4 sm:$0xff]  }
  0xa3   : > { %1545 = vmatpush1.bf16.msra.mxu0 %v10646_v44  ;;  %1586 = vmatpush1.bf16.msra.mxu1 %v10649_v45  ;;  %v10733_v44 = vld [vmem:[%s15603_s1 + $0x688] ss:$16 sps:$4 sm:$0xff]   ;;  %v10738_v45 = vld [vmem:[%s15603_s1 + $0x6a4] ss:$16 sps:$4 sm:$0xff]  }
  0xa4   : > { %1546 = vmatprep.subr.bf16.mxu0 %v10654_v46  ;;  %1587 = vmatprep.subr.bf16.mxu1 %v10657_v47  ;;  %v10741_v46 = vld [vmem:[%s15603_s1 + $0x6ac] ss:$16 sps:$4 sm:$0xff]   ;;  %v10736_v47 = vld [vmem:[%s15603_s1 + $0x6a0] ss:$16 sps:$4 sm:$0xff]  }
  0xa7   : > { %1547 = vmatpush1.bf16.msra.mxu0 %v10652_v49  ;;  %1588 = vmatpush1.bf16.msra.mxu1 %v10655_v50  ;;  %v10739_v49 = vld [vmem:[%s15603_s1 + $0x6a8] ss:$16 sps:$4 sm:$0xff]   ;;  %v10744_v50 = vld [vmem:[%s15603_s1 + $0x6c4] ss:$16 sps:$4 sm:$0xff]  }
  0xa8   : > { %1548 = vmatprep.subr.bf16.mxu0 %v10660_v51  ;;  %1589 = vmatprep.subr.bf16.mxu1 %v10663_v54  ;;  %v10747_v51 = vld [vmem:[%s15603_s1 + $0x6cc] ss:$16 sps:$4 sm:$0xff]   ;;  %v10742_v54 = vld [vmem:[%s15603_s1 + $0x6c0] ss:$16 sps:$4 sm:$0xff]  }
  0xab   : > { %1549 = vmatpush1.bf16.msra.mxu0 %v10658_v55  ;;  %1590 = vmatpush1.bf16.msra.mxu1 %v10661_v56  ;;  %v10745_v55 = vld [vmem:[%s15603_s1 + $0x6c8] ss:$16 sps:$4 sm:$0xff]   ;;  %v10750_v56 = vld [vmem:[%s15603_s1 + $0x6e4] ss:$16 sps:$4 sm:$0xff]  }
  0xac   : > { %1550 = vmatprep.subr.bf16.mxu0 %v10666_v57  ;;  %1591 = vmatprep.subr.bf16.mxu1 %v10669_v58  ;;  %v10753_v57 = vld [vmem:[%s15603_s1 + $0x6ec] ss:$16 sps:$4 sm:$0xff]   ;;  %v10748_v58 = vld [vmem:[%s15603_s1 + $0x6e0] ss:$16 sps:$4 sm:$0xff]  }
  0xaf   : > { %1551 = vmatpush1.bf16.msra.mxu0 %v10664_v59  ;;  %1592 = vmatpush1.bf16.msra.mxu1 %v10667_v60  ;;  %v10751_v59 = vld [vmem:[%s15603_s1 + $0x6e8] ss:$16 sps:$4 sm:$0xff]   ;;  %v10756_v60 = vld [vmem:[%s15603_s1 + $0x704] ss:$16 sps:$4 sm:$0xff]  }
  0xb0   : > { %1552 = vmatprep.subr.bf16.mxu0 %v10672_v62  ;;  %1593 = vmatprep.subr.bf16.mxu1 %v10675_v63  ;;  %v10759_v62 = vld [vmem:[%s15603_s1 + $0x70c] ss:$16 sps:$4 sm:$0xff]   ;;  %v10754_v63 = vld [vmem:[%s15603_s1 + $0x700] ss:$16 sps:$4 sm:$0xff]  }
  0xb3   : > { %1553 = vmatpush1.bf16.msra.mxu0 %v10670_v0  ;;  %1594 = vmatpush1.bf16.msra.mxu1 %v10673_v1  ;;  %v10757_v0 = vld [vmem:[%s15603_s1 + $0x708] ss:$16 sps:$4 sm:$0xff]   ;;  %v10762_v1 = vld [vmem:[%s15603_s1 + $0x724] ss:$16 sps:$4 sm:$0xff]  }
  0xb4   : > { %1554 = vmatprep.subr.bf16.mxu0 %v10678_v3  ;;  %1595 = vmatprep.subr.bf16.mxu1 %v10681_v4  ;;  %v10765_v3 = vld [vmem:[%s15603_s1 + $0x72c] ss:$16 sps:$4 sm:$0xff]   ;;  %v10760_v4 = vld [vmem:[%s15603_s1 + $0x720] ss:$16 sps:$4 sm:$0xff]  }
  0xb7   : > { %1555 = vmatpush1.bf16.msra.mxu0 %v10676_v5  ;;  %1596 = vmatpush1.bf16.msra.mxu1 %v10679_v6  ;;  %v10763_v5 = vld [vmem:[%s15603_s1 + $0x728] ss:$16 sps:$4 sm:$0xff]   ;;  %v10768_v6 = vld [vmem:[%s15603_s1 + $0x744] ss:$16 sps:$4 sm:$0xff]  }
  0xb8   : > { %1556 = vmatprep.subr.bf16.mxu0 %v10684_v8  ;;  %1597 = vmatprep.subr.bf16.mxu1 %v10687_v9  ;;  %v10771_v8 = vld [vmem:[%s15603_s1 + $0x74c] ss:$16 sps:$4 sm:$0xff]   ;;  %v10766_v9 = vld [vmem:[%s15603_s1 + $0x740] ss:$16 sps:$4 sm:$0xff]  }
  0xbb   : > { %1557 = vmatpush1.bf16.msra.mxu0 %v10682_v10  ;;  %1598 = vmatpush1.bf16.msra.mxu1 %v10685_v11  ;;  %v10769_v10 = vld [vmem:[%s15603_s1 + $0x748] ss:$16 sps:$4 sm:$0xff]   ;;  %v10774_v11 = vld [vmem:[%s15603_s1 + $0x764] ss:$16 sps:$4 sm:$0xff]  }
  0xbc   : > { %1558 = vmatprep.subr.bf16.mxu0 %v10690_v12  ;;  %1599 = vmatprep.subr.bf16.mxu1 %v10693_v13  ;;  %v10777_v12 = vld [vmem:[%s15603_s1 + $0x76c] ss:$16 sps:$4 sm:$0xff]   ;;  %v10772_v13 = vld [vmem:[%s15603_s1 + $0x760] ss:$16 sps:$4 sm:$0xff]  }
  0xbf   : > { %1559 = vmatpush1.bf16.msra.mxu0 %v10688_v14  ;;  %1600 = vmatpush1.bf16.msra.mxu1 %v10691_v15  ;;  %v10775_v14 = vld [vmem:[%s15603_s1 + $0x768] ss:$16 sps:$4 sm:$0xff]   ;;  %v10780_v15 = vld [vmem:[%s15603_s1 + $0x784] ss:$16 sps:$4 sm:$0xff]  }
  0xc0   : > { %1560 = vmatprep.subr.bf16.mxu0 %v10696_v16  ;;  %1601 = vmatprep.subr.bf16.mxu1 %v10699_v17  ;;  %v10783_v16 = vld [vmem:[%s15603_s1 + $0x78c] ss:$16 sps:$4 sm:$0xff]   ;;  %v10778_v17 = vld [vmem:[%s15603_s1 + $0x780] ss:$16 sps:$4 sm:$0xff]  }
  0xc3   : > { %1561 = vmatpush1.bf16.msra.mxu0 %v10694_v18  ;;  %1602 = vmatpush1.bf16.msra.mxu1 %v10697_v19  ;;  %v10781_v18 = vld [vmem:[%s15603_s1 + $0x788] ss:$16 sps:$4 sm:$0xff]   ;;  %v10786_v19 = vld [vmem:[%s15603_s1 + $0x7a4] ss:$16 sps:$4 sm:$0xff]  }
  0xc4   : > { %1562 = vmatprep.subr.bf16.mxu0 %v10702_v20  ;;  %1603 = vmatprep.subr.bf16.mxu1 %v10705_v21  ;;  %v10789_v20 = vld [vmem:[%s15603_s1 + $0x7ac] ss:$16 sps:$4 sm:$0xff]   ;;  %v10784_v21 = vld [vmem:[%s15603_s1 + $0x7a0] ss:$16 sps:$4 sm:$0xff]  }
  0xc7   : > { %1563 = vmatpush1.bf16.msra.mxu0 %v10700_v22  ;;  %1604 = vmatpush1.bf16.msra.mxu1 %v10703_v23  ;;  %v10787_v22 = vld [vmem:[%s15603_s1 + $0x7a8] ss:$16 sps:$4 sm:$0xff]   ;;  %v10792_v23 = vld [vmem:[%s15603_s1 + $0x7c4] ss:$16 sps:$4 sm:$0xff]  }
  0xc8   : > { %2011 = vmatprep.subr.bf16.mxu0 %v10708_v24  ;;  %2052 = vmatprep.subr.bf16.mxu1 %v10711_v25  ;;  %v10795_v24 = vld [vmem:[%s15603_s1 + $0x7cc] ss:$16 sps:$4 sm:$0xff]   ;;  %v10790_v25 = vld [vmem:[%s15603_s1 + $0x7c0] ss:$16 sps:$4 sm:$0xff]  }
  0xca   : > { %1565 = vmatmul.mubr.bf16.vlgmr.msra.gmra.mrb[8].mxu0 %v1208_v28  ;;  %1606 = vmatmul.mubr.bf16.vlgmr.msra.gmra.mrb[8].mxu1 %v1208_v28  ;;  %v10801_v28 = vld [vmem:[%s15603_s1 + $0x7ec] ss:$16 sps:$4 sm:$0xff]  }
  0xcb   : > { %2012 = vmatpush1.bf16.msra.mxu0 %v10706_v29  ;;  %2053 = vmatpush1.bf16.msra.mxu1 %v10709_v30  ;;  %v1683_v29 = vrot.slane %v322_v7, 1  ;;  %v1684_v30 = vrot.slane %v324_v2, 2  ;;  %v12882_v7 = vld [vmem:[%s12206_s5 + $0x8] sm:$0x77] }
  0xcc   : > { %2013 = vmatprep.subr.bf16.mxu0 %v10714_v52  ;;  %2054 = vmatprep.subr.bf16.mxu1 %v10717_v48  ;;  %v10796_v52 = vld [vmem:[%s15603_s1 + $0x7e0] ss:$16 sps:$4 sm:$0xff]   ;;  %v10799_v48 = vld [vmem:[%s15603_s1 + $0x7e8] ss:$16 sps:$4 sm:$0xff]  }
  0xcd   : > { %2043 = vmatprep.mubr.bf16.mxu0 %v1688_v53  ;;  %2084 = vmatprep.mubr.bf16.mxu1 %v1688_v53  ;;  %v10804_v53 = vld [vmem:[%s15603_s1 + $0x804] ss:$16 sps:$4 sm:$0xff]   ;;  %v1685_v2 = vor.u32 %v1684_v30, %v1683_v29  ;;  %v10879_v29 = vld [vmem:[%s15603_s1 + $0x98c] ss:$16 sps:$4 sm:$0xff]   ;;  %v10874_v30 = vld [vmem:[%s15603_s1 + $0x980] ss:$16 sps:$4 sm:$0xff]  }
  0xcf   : > { %2014 = vmatpush1.bf16.msra.mxu0 %v10712_v31  ;;  %2055 = vmatpush1.bf16.msra.mxu1 %v10715_v32  ;;  %v10802_v31 = vld [vmem:[%s15603_s1 + $0x800] ss:$16 sps:$4 sm:$0xff]   ;;  %v10805_v32 = vld [vmem:[%s15603_s1 + $0x808] ss:$16 sps:$4 sm:$0xff]  }
  0xd0   : > { %2015 = vmatprep.subr.bf16.mxu0 %v10720_v33  ;;  %2056 = vmatprep.subr.bf16.mxu1 %v10723_v34  ;;  %v10810_v33 = vld [vmem:[%s15603_s1 + $0x824] ss:$16 sps:$4 sm:$0xff]   ;;  %v10813_v34 = vld [vmem:[%s15603_s1 + $0x82c] ss:$16 sps:$4 sm:$0xff]  }
  0xd3   : > { %2016 = vmatpush1.bf16.msra.mxu0 %v10718_v35  ;;  %2057 = vmatpush1.bf16.msra.mxu1 %v10721_v36  ;;  %v12898_v35 = vcombine.high %v12882_v7, %v12882_v7  ;;  %v10808_v36 = vld [vmem:[%s15603_s1 + $0x820] ss:$16 sps:$4 sm:$0xff]  }
  0xd4   : > { %2017 = vmatprep.subr.bf16.mxu0 %v10726_v37  ;;  %2058 = vmatprep.subr.bf16.mxu1 %v10729_v38  ;;  %v10811_v37 = vld [vmem:[%s15603_s1 + $0x828] ss:$16 sps:$4 sm:$0xff]   ;;  %v10816_v38 = vld [vmem:[%s15603_s1 + $0x844] ss:$16 sps:$4 sm:$0xff]  }
  0xd7   : > { %2018 = vmatpush1.bf16.msra.mxu0 %v10724_v39  ;;  %2059 = vmatpush1.bf16.msra.mxu1 %v10727_v40  ;;  %v10819_v39 = vld [vmem:[%s15603_s1 + $0x84c] ss:$16 sps:$4 sm:$0xff]   ;;  %v10814_v40 = vld [vmem:[%s15603_s1 + $0x840] ss:$16 sps:$4 sm:$0xff]  }
  0xd8   : > { %2019 = vmatprep.subr.bf16.mxu0 %v10732_v41  ;;  %2060 = vmatprep.subr.bf16.mxu1 %v10735_v42  ;;  %v10817_v41 = vld [vmem:[%s15603_s1 + $0x848] ss:$16 sps:$4 sm:$0xff]   ;;  %v10822_v42 = vld [vmem:[%s15603_s1 + $0x864] ss:$16 sps:$4 sm:$0xff]  }
  0xdb   : > { %2020 = vmatpush1.bf16.msra.mxu0 %v10730_v43  ;;  %2061 = vmatpush1.bf16.msra.mxu1 %v10733_v44  ;;  %v10825_v43 = vld [vmem:[%s15603_s1 + $0x86c] ss:$16 sps:$4 sm:$0xff]   ;;  %v10820_v44 = vld [vmem:[%s15603_s1 + $0x860] ss:$16 sps:$4 sm:$0xff]  }
  0xdc   : > { %2021 = vmatprep.subr.bf16.mxu0 %v10738_v45  ;;  %2062 = vmatprep.subr.bf16.mxu1 %v10741_v46  ;;  %v10823_v45 = vld [vmem:[%s15603_s1 + $0x868] ss:$16 sps:$4 sm:$0xff]   ;;  %v10828_v46 = vld [vmem:[%s15603_s1 + $0x884] ss:$16 sps:$4 sm:$0xff]  }
  0xdf   : > { %2022 = vmatpush1.bf16.msra.mxu0 %v10736_v47  ;;  %2063 = vmatpush1.bf16.msra.mxu1 %v10739_v49  ;;  %v10831_v47 = vld [vmem:[%s15603_s1 + $0x88c] ss:$16 sps:$4 sm:$0xff]   ;;  %v10826_v49 = vld [vmem:[%s15603_s1 + $0x880] ss:$16 sps:$4 sm:$0xff]  }
  0xe0   : > { %2023 = vmatprep.subr.bf16.mxu0 %v10744_v50  ;;  %2064 = vmatprep.subr.bf16.mxu1 %v10747_v51  ;;  %v10829_v50 = vld [vmem:[%s15603_s1 + $0x888] ss:$16 sps:$4 sm:$0xff]   ;;  %v10834_v51 = vld [vmem:[%s15603_s1 + $0x8a4] ss:$16 sps:$4 sm:$0xff]  }
  0xe3   : > { %2024 = vmatpush1.bf16.msra.mxu0 %v10742_v54  ;;  %2065 = vmatpush1.bf16.msra.mxu1 %v10745_v55  ;;  %v10837_v54 = vld [vmem:[%s15603_s1 + $0x8ac] ss:$16 sps:$4 sm:$0xff]   ;;  %v10832_v55 = vld [vmem:[%s15603_s1 + $0x8a0] ss:$16 sps:$4 sm:$0xff]  }
  0xe4   : > { %2025 = vmatprep.subr.bf16.mxu0 %v10750_v56  ;;  %2066 = vmatprep.subr.bf16.mxu1 %v10753_v57  ;;  %v10835_v56 = vld [vmem:[%s15603_s1 + $0x8a8] ss:$16 sps:$4 sm:$0xff]   ;;  %v10840_v57 = vld [vmem:[%s15603_s1 + $0x8c4] ss:$16 sps:$4 sm:$0xff]  }
  0xe7   : > { %2026 = vmatpush1.bf16.msra.mxu0 %v10748_v58  ;;  %2067 = vmatpush1.bf16.msra.mxu1 %v10751_v59  ;;  %v10843_v58 = vld [vmem:[%s15603_s1 + $0x8cc] ss:$16 sps:$4 sm:$0xff]  }
  0xe8   : > { %2027 = vmatprep.subr.bf16.mxu0 %v10756_v60  ;;  %2068 = vmatprep.subr.bf16.mxu1 %v10759_v62  ;;  %v10838_v62 = vld [vmem:[%s15603_s1 + $0x8c0] ss:$16 sps:$4 sm:$0xff]  }
  0xeb   : > { %2028 = vmatpush1.bf16.msra.mxu0 %v10754_v63  ;;  %2069 = vmatpush1.bf16.msra.mxu1 %v10757_v0  ;;  %v10841_v63 = vld [vmem:[%s15603_s1 + $0x8c8] ss:$16 sps:$4 sm:$0xff]  }
  0xec   : > { %2029 = vmatprep.subr.bf16.mxu0 %v10762_v1  ;;  %2070 = vmatprep.subr.bf16.mxu1 %v10765_v3 }
  0xef   : > { %2030 = vmatpush1.bf16.msra.mxu0 %v10760_v4  ;;  %2071 = vmatpush1.bf16.msra.mxu1 %v10763_v5 }
  0xf0   : > { %2031 = vmatprep.subr.bf16.mxu0 %v10768_v6  ;;  %2072 = vmatprep.subr.bf16.mxu1 %v10771_v8  ;;  %v10846_v8 = vld [vmem:[%s15603_s1 + $0x8e4] ss:$16 sps:$4 sm:$0xff]  }
  0xf3   : > { %2032 = vmatpush1.bf16.msra.mxu0 %v10766_v9  ;;  %2073 = vmatpush1.bf16.msra.mxu1 %v10769_v10  ;;  %v10849_v9 = vld [vmem:[%s15603_s1 + $0x8ec] ss:$16 sps:$4 sm:$0xff]   ;;  %v10844_v10 = vld [vmem:[%s15603_s1 + $0x8e0] ss:$16 sps:$4 sm:$0xff]  }
  0xf4   : > { %2033 = vmatprep.subr.bf16.mxu0 %v10774_v11  ;;  %2074 = vmatprep.subr.bf16.mxu1 %v10777_v12  ;;  %v10847_v11 = vld [vmem:[%s15603_s1 + $0x8e8] ss:$16 sps:$4 sm:$0xff]   ;;  %v10852_v12 = vld [vmem:[%s15603_s1 + $0x904] ss:$16 sps:$4 sm:$0xff]  }
  0xf7   : > { %2034 = vmatpush1.bf16.msra.mxu0 %v10772_v13  ;;  %2075 = vmatpush1.bf16.msra.mxu1 %v10775_v14  ;;  %v10855_v13 = vld [vmem:[%s15603_s1 + $0x90c] ss:$16 sps:$4 sm:$0xff]   ;;  %v10850_v14 = vld [vmem:[%s15603_s1 + $0x900] ss:$16 sps:$4 sm:$0xff]  }
  0xf8   : > { %2035 = vmatprep.subr.bf16.mxu0 %v10780_v15  ;;  %2076 = vmatprep.subr.bf16.mxu1 %v10783_v16  ;;  %v10853_v15 = vld [vmem:[%s15603_s1 + $0x908] ss:$16 sps:$4 sm:$0xff]   ;;  %v10858_v16 = vld [vmem:[%s15603_s1 + $0x924] ss:$16 sps:$4 sm:$0xff]  }
  0xfb   : > { %2036 = vmatpush1.bf16.msra.mxu0 %v10778_v17  ;;  %2077 = vmatpush1.bf16.msra.mxu1 %v10781_v18  ;;  %v10861_v17 = vld [vmem:[%s15603_s1 + $0x92c] ss:$16 sps:$4 sm:$0xff]   ;;  %v10856_v18 = vld [vmem:[%s15603_s1 + $0x920] ss:$16 sps:$4 sm:$0xff]  }
  0xfc   : > { %2037 = vmatprep.subr.bf16.mxu0 %v10786_v19  ;;  %2078 = vmatprep.subr.bf16.mxu1 %v10789_v20  ;;  %v10859_v19 = vld [vmem:[%s15603_s1 + $0x928] ss:$16 sps:$4 sm:$0xff]   ;;  %v10864_v20 = vld [vmem:[%s15603_s1 + $0x944] ss:$16 sps:$4 sm:$0xff]  }
  0xff   : > { %2038 = vmatpush1.bf16.msra.mxu0 %v10784_v21  ;;  %2079 = vmatpush1.bf16.msra.mxu1 %v10787_v22  ;;  %v10867_v21 = vld [vmem:[%s15603_s1 + $0x94c] ss:$16 sps:$4 sm:$0xff]   ;;  %v10862_v22 = vld [vmem:[%s15603_s1 + $0x940] ss:$16 sps:$4 sm:$0xff]  }
 0x100   : > { %2039 = vmatprep.subr.bf16.mxu0 %v10792_v23  ;;  %2080 = vmatprep.subr.bf16.mxu1 %v10795_v24  ;;  %v10865_v23 = vld [vmem:[%s15603_s1 + $0x948] ss:$16 sps:$4 sm:$0xff]   ;;  %v10870_v24 = vld [vmem:[%s15603_s1 + $0x964] ss:$16 sps:$4 sm:$0xff]  }
 0x103   : > { %2040 = vmatpush1.bf16.msra.mxu0 %v10790_v25  ;;  %2081 = vmatpush1.bf16.msra.mxu1 %v10793_v26  ;;  %v10873_v25 = vld [vmem:[%s15603_s1 + $0x96c] ss:$16 sps:$4 sm:$0xff]   ;;  %v10868_v26 = vld [vmem:[%s15603_s1 + $0x960] ss:$16 sps:$4 sm:$0xff]  }
 0x104   : > { %2041 = vmatprep.subr.bf16.mxu0 %v10798_v27  ;;  %2082 = vmatprep.subr.bf16.mxu1 %v10801_v28  ;;  %v10871_v27 = vld [vmem:[%s15603_s1 + $0x968] ss:$16 sps:$4 sm:$0xff]   ;;  %v10876_v28 = vld [vmem:[%s15603_s1 + $0x984] ss:$16 sps:$4 sm:$0xff]  }
 0x107   : > { %2042 = vmatpush1.bf16.msra.mxu0 %v10796_v52  ;;  %2083 = vmatpush1.bf16.msra.mxu1 %v10799_v48  ;;  %v10877_v52 = vld [vmem:[%s15603_s1 + $0x988] ss:$16 sps:$4 sm:$0xff]   ;;  %v10882_v48 = vld [vmem:[%s15603_s1 + $0x9a4] ss:$16 sps:$4 sm:$0xff]  }
 0x108   : > { %2494 = vmatprep.subr.bf16.mxu0 %v10804_v53  ;;  %2535 = vmatprep.subr.bf16.mxu1 %v10807_v61  ;;  %v10885_v53 = vld [vmem:[%s15603_s1 + $0x9ac] ss:$16 sps:$4 sm:$0xff]   ;;  %v10880_v61 = vld [vmem:[%s15603_s1 + $0x9a0] ss:$16 sps:$4 sm:$0xff]  }
 0x10a   : > { %2044 = vmatmul.mubr.bf16.vlgmr.msra.gmra.mrb[12].mxu0 %v1685_v2  ;;  %2085 = vmatmul.mubr.bf16.vlgmr.msra.gmra.mrb[12].mxu1 %v1685_v2  ;;  %v10883_v2 = vld [vmem:[%s15603_s1 + $0x9a8] ss:$16 sps:$4 sm:$0xff]  }
 0x10b   : > { %2495 = vmatpush1.bf16.msra.mxu0 %v10802_v31  ;;  %2536 = vmatpush1.bf16.msra.mxu1 %v10805_v32  ;;  %v10888_v31 = vld [vmem:[%s15603_s1 + $0x9c4] ss:$16 sps:$4 sm:$0xff]   ;;  %v10891_v32 = vld [vmem:[%s15603_s1 + $0x9cc] ss:$16 sps:$4 sm:$0xff]  }
 0x10c   : > { %2496 = vmatprep.subr.bf16.mxu0 %v10810_v33  ;;  %2537 = vmatprep.subr.bf16.mxu1 %v10813_v34  ;;  %v10886_v33 = vld [vmem:[%s15603_s1 + $0x9c0] ss:$16 sps:$4 sm:$0xff]   ;;  %v10889_v34 = vld [vmem:[%s15603_s1 + $0x9c8] ss:$16 sps:$4 sm:$0xff]  }
 0x10d   : > { %2526 = vmatprep.mubr.bf16.mxu0 %v12898_v35  ;;  %2567 = vmatprep.mubr.bf16.mxu1 %v12898_v35 }
 0x10f   : > { %2497 = vmatpush1.bf16.msra.mxu0 %v10808_v36  ;;  %2538 = vmatpush1.bf16.msra.mxu1 %v10811_v37  ;;  %v10894_v36 = vld [vmem:[%s15603_s1 + $0x9e4] ss:$16 sps:$4 sm:$0xff]   ;;  %v10897_v37 = vld [vmem:[%s15603_s1 + $0x9ec] ss:$16 sps:$4 sm:$0xff]  }
 0x110   : > { %2498 = vmatprep.subr.bf16.mxu0 %v10816_v38  ;;  %2539 = vmatprep.subr.bf16.mxu1 %v10819_v39  ;;  %v2655_v38 = vshll.u32 %v12898_v35, 16  ;;  %v10892_v39 = vld [vmem:[%s15603_s1 + $0x9e0] ss:$16 sps:$4 sm:$0xff]  }
 0x113   : > { %2499 = vmatpush1.bf16.msra.mxu0 %v10814_v40  ;;  %2540 = vmatpush1.bf16.msra.mxu1 %v10817_v41  ;;  %v10895_v40 = vld [vmem:[%s15603_s1 + $0x9e8] ss:$16 sps:$4 sm:$0xff]   ;;  %v10902_v41 = vld [vmem:[%s15603_s1 + $0xa04] ss:$16 sps:$4 sm:$0xff]  }
 0x114   : > { %2500 = vmatprep.subr.bf16.mxu0 %v10822_v42  ;;  %2541 = vmatprep.subr.bf16.mxu1 %v10825_v43  ;;  %v10905_v42 = vld [vmem:[%s15603_s1 + $0xa0c] ss:$16 sps:$4 sm:$0xff]   ;;  %v10900_v43 = vld [vmem:[%s15603_s1 + $0xa00] ss:$16 sps:$4 sm:$0xff]  }
 0x117   : > { %2501 = vmatpush1.bf16.msra.mxu0 %v10820_v44  ;;  %2542 = vmatpush1.bf16.msra.mxu1 %v10823_v45  ;;  %v10903_v44 = vld [vmem:[%s15603_s1 + $0xa08] ss:$16 sps:$4 sm:$0xff]   ;;  %v2653_v45 = vshrl.u32 %v12898_v35, 16 }
 0x118   : > { %2502 = vmatprep.subr.bf16.mxu0 %v10828_v46  ;;  %2543 = vmatprep.subr.bf16.mxu1 %v10831_v47  ;;  %v2657_v46 = vrot.slane %v2655_v38, 1  ;;  %v13102_v47 = vcombine.low %v12882_v7, %v12882_v7  ;;  %v10906_v7 = vld [vmem:[%s15603_s1 + $0xa20] ss:$16 sps:$4 sm:$0xff]  }
 0x11b   : > { %2503 = vmatpush1.bf16.msra.mxu0 %v10826_v49  ;;  %2544 = vmatpush1.bf16.msra.mxu1 %v10829_v50  ;;  %v10908_v49 = vld [vmem:[%s15603_s1 + $0xa24] ss:$16 sps:$4 sm:$0xff]   ;;  %v10911_v50 = vld [vmem:[%s15603_s1 + $0xa2c] ss:$16 sps:$4 sm:$0xff]  }
 0x11c   : > { %2504 = vmatprep.subr.bf16.mxu0 %v10834_v51  ;;  %2545 = vmatprep.subr.bf16.mxu1 %v10837_v54  ;;  %v2658_v51 = vor.u32 %v2657_v46, %v2653_v45  ;;  %v10909_v54 = vld [vmem:[%s15603_s1 + $0xa28] ss:$16 sps:$4 sm:$0xff]   ;;  %v10972_v46 = vld [vmem:[%s15603_s1 + $0xb80] ss:$16 sps:$4 sm:$0xff]  }
 0x11d   : > { %v12962_v59 = vpop.f32.mrb[0].mxu0  ;;  %v12964_v60 = vpop.f32.mrb[0].mxu1 }
 0x11e   : > { %v12972_v0 = vpop.f32.mrb[1].mxu0  ;;  %v12974_v1 = vpop.f32.mrb[1].mxu1 }
 0x11f   : > { %v695_v3 = vpop.f32.mrb[2].mxu0  ;;  %v736_v4 = vpop.f32.mrb[2].mxu1  ;;  %2505 = vmatpush1.bf16.msra.mxu0 %v10832_v55  ;;  %2546 = vmatpush1.bf16.msra.mxu1 %v10835_v56  ;;  %v10914_v55 = vld [vmem:[%s15603_s1 + $0xa44] ss:$16 sps:$4 sm:$0xff]   ;;  %v10917_v56 = vld [vmem:[%s15603_s1 + $0xa4c] ss:$16 sps:$4 sm:$0xff]  }
 0x120   : > { %v696_v5 = vpop.f32.mrb[3].mxu0  ;;  %v737_v6 = vpop.f32.mrb[3].mxu1  ;;  %2506 = vmatprep.subr.bf16.mxu0 %v10840_v57  ;;  %2547 = vmatprep.subr.bf16.mxu1 %v10843_v58  ;;  %v10912_v57 = vld [vmem:[%s15603_s1 + $0xa40] ss:$16 sps:$4 sm:$0xff]   ;;  %v10915_v58 = vld [vmem:[%s15603_s1 + $0xa48] ss:$16 sps:$4 sm:$0xff]  }
 0x121   : > { %v10918_v3 = vld [vmem:[%s15603_s1 + $0xa60] ss:$16 sps:$4 sm:$0xff]   ;;  %v10921_v4 = vld [vmem:[%s15603_s1 + $0xa68] ss:$16 sps:$4 sm:$0xff]   ;;  %v10926_v5 = vld [vmem:[%s15603_s1 + $0xa84] ss:$16 sps:$4 sm:$0xff]  }
 0x122   : > { %v10929_v6 = vld [vmem:[%s15603_s1 + $0xa8c] ss:$16 sps:$4 sm:$0xff]  }
 0x123   : > { %2507 = vmatpush1.bf16.msra.mxu0 %v10838_v62  ;;  %2548 = vmatpush1.bf16.msra.mxu1 %v10841_v63  ;;  %v10920_v62 = vld [vmem:[%s15603_s1 + $0xa64] ss:$16 sps:$4 sm:$0xff]   ;;  %v10923_v63 = vld [vmem:[%s15603_s1 + $0xa6c] ss:$16 sps:$4 sm:$0xff]  }
 0x124   : > { %2508 = vmatprep.subr.bf16.mxu0 %v10846_v8  ;;  %2549 = vmatprep.subr.bf16.mxu1 %v10849_v9  ;;  %v10924_v8 = vld [vmem:[%s15603_s1 + $0xa80] ss:$16 sps:$4 sm:$0xff]   ;;  %v10927_v9 = vld [vmem:[%s15603_s1 + $0xa88] ss:$16 sps:$4 sm:$0xff]  }
 0x127   : > { %2509 = vmatpush1.bf16.msra.mxu0 %v10844_v10  ;;  %2550 = vmatpush1.bf16.msra.mxu1 %v10847_v11  ;;  %v10932_v10 = vld [vmem:[%s15603_s1 + $0xaa4] ss:$16 sps:$4 sm:$0xff]   ;;  %v10935_v11 = vld [vmem:[%s15603_s1 + $0xaac] ss:$16 sps:$4 sm:$0xff]  }
 0x128   : > { %2510 = vmatprep.subr.bf16.mxu0 %v10852_v12  ;;  %2551 = vmatprep.subr.bf16.mxu1 %v10855_v13  ;;  %v10930_v12 = vld [vmem:[%s15603_s1 + $0xaa0] ss:$16 sps:$4 sm:$0xff]   ;;  %v10933_v13 = vld [vmem:[%s15603_s1 + $0xaa8] ss:$16 sps:$4 sm:$0xff]  }
 0x12b   : > { %2511 = vmatpush1.bf16.msra.mxu0 %v10850_v14  ;;  %2552 = vmatpush1.bf16.msra.mxu1 %v10853_v15  ;;  %v10938_v14 = vld [vmem:[%s15603_s1 + $0xac4] ss:$16 sps:$4 sm:$0xff]   ;;  %v10941_v15 = vld [vmem:[%s15603_s1 + $0xacc] ss:$16 sps:$4 sm:$0xff]  }
 0x12c   : > { %2512 = vmatprep.subr.bf16.mxu0 %v10858_v16  ;;  %2553 = vmatprep.subr.bf16.mxu1 %v10861_v17 }
 0x12f   : > { %2513 = vmatpush1.bf16.msra.mxu0 %v10856_v18  ;;  %2554 = vmatpush1.bf16.msra.mxu1 %v10859_v19  ;;  %v10936_v18 = vld [vmem:[%s15603_s1 + $0xac0] ss:$16 sps:$4 sm:$0xff]   ;;  %v10939_v19 = vld [vmem:[%s15603_s1 + $0xac8] ss:$16 sps:$4 sm:$0xff]  }
 0x130   : > { %2514 = vmatprep.subr.bf16.mxu0 %v10864_v20  ;;  %2555 = vmatprep.subr.bf16.mxu1 %v10867_v21 }
 0x133   : > { %2515 = vmatpush1.bf16.msra.mxu0 %v10862_v22  ;;  %2556 = vmatpush1.bf16.msra.mxu1 %v10865_v23 }
 0x134   : > { %2516 = vmatprep.subr.bf16.mxu0 %v10870_v24  ;;  %2557 = vmatprep.subr.bf16.mxu1 %v10873_v25 }
 0x137   : > { %2517 = vmatpush1.bf16.msra.mxu0 %v10868_v26  ;;  %2558 = vmatpush1.bf16.msra.mxu1 %v10871_v27 }
 0x138   : > { %2518 = vmatprep.subr.bf16.mxu0 %v10876_v28  ;;  %2559 = vmatprep.subr.bf16.mxu1 %v10879_v29 }
 0x13b   : > { %2519 = vmatpush1.bf16.msra.mxu0 %v10874_v30  ;;  %2560 = vmatpush1.bf16.msra.mxu1 %v10877_v52  ;;  %v10950_v30 = vld [vmem:[%s15603_s1 + $0xb04] ss:$16 sps:$4 sm:$0xff]   ;;  %v10953_v52 = vld [vmem:[%s15603_s1 + $0xb0c] ss:$16 sps:$4 sm:$0xff]  }
 0x13c   : > { %2520 = vmatprep.subr.bf16.mxu0 %v10882_v48  ;;  %2561 = vmatprep.subr.bf16.mxu1 %v10885_v53  ;;  %v10948_v48 = vld [vmem:[%s15603_s1 + $0xb00] ss:$16 sps:$4 sm:$0xff]   ;;  %v10951_v53 = vld [vmem:[%s15603_s1 + $0xb08] ss:$16 sps:$4 sm:$0xff]  }
 0x13f   : > { %2521 = vmatpush1.bf16.msra.mxu0 %v10880_v61  ;;  %2562 = vmatpush1.bf16.msra.mxu1 %v10883_v2  ;;  %v10956_v61 = vld [vmem:[%s15603_s1 + $0xb24] ss:$16 sps:$4 sm:$0xff]   ;;  %v10959_v2 = vld [vmem:[%s15603_s1 + $0xb2c] ss:$16 sps:$4 sm:$0xff]  }
 0x140   : > { %2522 = vmatprep.subr.bf16.mxu0 %v10888_v31  ;;  %2563 = vmatprep.subr.bf16.mxu1 %v10891_v32  ;;  %v10954_v31 = vld [vmem:[%s15603_s1 + $0xb20] ss:$16 sps:$4 sm:$0xff]   ;;  %v10957_v32 = vld [vmem:[%s15603_s1 + $0xb28] ss:$16 sps:$4 sm:$0xff]  }
 0x143   : > { %2523 = vmatpush1.bf16.msra.mxu0 %v10886_v33  ;;  %2564 = vmatpush1.bf16.msra.mxu1 %v10889_v34  ;;  %v10962_v33 = vld [vmem:[%s15603_s1 + $0xb44] ss:$16 sps:$4 sm:$0xff]   ;;  %v10965_v34 = vld [vmem:[%s15603_s1 + $0xb4c] ss:$16 sps:$4 sm:$0xff]  }
 0x144   : > { %2524 = vmatprep.subr.bf16.mxu0 %v10894_v36  ;;  %2565 = vmatprep.subr.bf16.mxu1 %v10897_v37  ;;  %v10960_v36 = vld [vmem:[%s15603_s1 + $0xb40] ss:$16 sps:$4 sm:$0xff]   ;;  %v10963_v37 = vld [vmem:[%s15603_s1 + $0xb48] ss:$16 sps:$4 sm:$0xff]  }
 0x147   : > { %2525 = vmatpush1.bf16.msra.mxu0 %v10892_v39  ;;  %2566 = vmatpush1.bf16.msra.mxu1 %v10895_v40  ;;  %v10968_v39 = vld [vmem:[%s15603_s1 + $0xb64] ss:$16 sps:$4 sm:$0xff]   ;;  %v10971_v40 = vld [vmem:[%s15603_s1 + $0xb6c] ss:$16 sps:$4 sm:$0xff]  }
 0x148   : > { %2981 = vmatprep.subr.bf16.mxu0 %v10902_v41  ;;  %3022 = vmatprep.subr.bf16.mxu1 %v10905_v42  ;;  %v10966_v41 = vld [vmem:[%s15603_s1 + $0xb60] ss:$16 sps:$4 sm:$0xff]   ;;  %v10969_v42 = vld [vmem:[%s15603_s1 + $0xb68] ss:$16 sps:$4 sm:$0xff]  }
 0x14a   : > { %2527 = vmatmul.mubr.bf16.vlgmr.msra.gmra.mrb[16].mxu0 %v13102_v47  ;;  %2568 = vmatmul.mubr.bf16.vlgmr.msra.gmra.mrb[16].mxu1 %v13102_v47 }
 0x14b   : > { %2982 = vmatpush1.bf16.msra.mxu0 %v10900_v43  ;;  %3023 = vmatpush1.bf16.msra.mxu1 %v10903_v44  ;;  %v10974_v43 = vld [vmem:[%s15603_s1 + $0xb84] ss:$16 sps:$4 sm:$0xff]   ;;  %v10977_v44 = vld [vmem:[%s15603_s1 + $0xb8c] ss:$16 sps:$4 sm:$0xff]  }
 0x14c   : > { %2983 = vmatprep.subr.bf16.mxu0 %v10908_v49  ;;  %3024 = vmatprep.subr.bf16.mxu1 %v10911_v50  ;;  %v10975_v49 = vld [vmem:[%s15603_s1 + $0xb88] ss:$16 sps:$4 sm:$0xff]   ;;  %v10980_v50 = vld [vmem:[%s15603_s1 + $0xba4] ss:$16 sps:$4 sm:$0xff]  }
 0x14d   : > { %3013 = vmatprep.mubr.bf16.mxu0 %v2658_v51  ;;  %3054 = vmatprep.mubr.bf16.mxu1 %v2658_v51  ;;  %v10983_v51 = vld [vmem:[%s15603_s1 + $0xbac] ss:$16 sps:$4 sm:$0xff]  }
 0x14f   : > { %2984 = vmatpush1.bf16.msra.mxu0 %v10906_v7  ;;  %3025 = vmatpush1.bf16.msra.mxu1 %v10909_v54  ;;  %v10978_v7 = vld [vmem:[%s15603_s1 + $0xba0] ss:$16 sps:$4 sm:$0xff]   ;;  %v10981_v54 = vld [vmem:[%s15603_s1 + $0xba8] ss:$16 sps:$4 sm:$0xff]  }
 0x150   : > { %2985 = vmatprep.subr.bf16.mxu0 %v10914_v55  ;;  %3026 = vmatprep.subr.bf16.mxu1 %v10917_v56  ;;  %v10986_v55 = vld [vmem:[%s15603_s1 + $0xbc4] ss:$16 sps:$4 sm:$0xff]   ;;  %v10989_v56 = vld [vmem:[%s15603_s1 + $0xbcc] ss:$16 sps:$4 sm:$0xff]  }
 0x153   : > { %2986 = vmatpush1.bf16.msra.mxu0 %v10912_v57  ;;  %3027 = vmatpush1.bf16.msra.mxu1 %v10915_v58  ;;  %v2648_v57 = vshll.u32 %v13102_v47, 16  ;;  %v10984_v58 = vld [vmem:[%s15603_s1 + $0xbc0] ss:$16 sps:$4 sm:$0xff]  }
 0x154   : > { %2987 = vmatprep.subr.bf16.mxu0 %v10920_v62  ;;  %3028 = vmatprep.subr.bf16.mxu1 %v10923_v63  ;;  %v10987_v62 = vld [vmem:[%s15603_s1 + $0xbc8] ss:$16 sps:$4 sm:$0xff]   ;;  %v10992_v63 = vld [vmem:[%s15603_s1 + $0xbe4] ss:$16 sps:$4 sm:$0xff]  }
 0x157   : > { %2988 = vmatpush1.bf16.msra.mxu0 %v10918_v3  ;;  %3029 = vmatpush1.bf16.msra.mxu1 %v10921_v4  ;;  %v10995_v3 = vld [vmem:[%s15603_s1 + $0xbec] ss:$16 sps:$4 sm:$0xff]   ;;  %v2646_v4 = vshrl.u32 %v13102_v47, 16 }
 0x158   : > { %2989 = vmatprep.subr.bf16.mxu0 %v10926_v5  ;;  %3030 = vmatprep.subr.bf16.mxu1 %v10929_v6  ;;  %v2650_v5 = vrot.slane %v2648_v57, 1  ;;  %v10990_v6 = vld [vmem:[%s15603_s1 + $0xbe0] ss:$16 sps:$4 sm:$0xff]  }
 0x15b   : > { %2990 = vmatpush1.bf16.msra.mxu0 %v10924_v8  ;;  %3031 = vmatpush1.bf16.msra.mxu1 %v10927_v9  ;;  %v10993_v8 = vld [vmem:[%s15603_s1 + $0xbe8] ss:$16 sps:$4 sm:$0xff]   ;;  %v10998_v9 = vld [vmem:[%s15603_s1 + $0xc04] ss:$16 sps:$4 sm:$0xff]  }
 0x15c   : > { %2991 = vmatprep.subr.bf16.mxu0 %v10932_v10  ;;  %3032 = vmatprep.subr.bf16.mxu1 %v10935_v11  ;;  %v11001_v10 = vld [vmem:[%s15603_s1 + $0xc0c] ss:$16 sps:$4 sm:$0xff]   ;;  %v10996_v11 = vld [vmem:[%s15603_s1 + $0xc00] ss:$16 sps:$4 sm:$0xff]  }
 0x15d   : > { %v1095_v16 = vpop.f32.mrb[4].mxu0  ;;  %v1136_v17 = vpop.f32.mrb[4].mxu1 }
 0x15e   : > { %v13181_v20 = vadd.f32 %v1095_v16, %v12962_v59  ;;  %v13184_v21 = vadd.f32 %v1136_v17, %v12964_v60  ;;  %v1097_v22 = vpop.f32.mrb[5].mxu0  ;;  %v1138_v23 = vpop.f32.mrb[5].mxu1  ;;  %v10944_v59 = vld [vmem:[%s15603_s1 + $0xae4] ss:$16 sps:$4 sm:$0xff]   ;;  %v10947_v60 = vld [vmem:[%s15603_s1 + $0xaec] ss:$16 sps:$4 sm:$0xff]  }
 0x15f   : > { %v13187_v24 = vadd.f32 %v1097_v22, %v12972_v0  ;;  %v13190_v25 = vadd.f32 %v1138_v23, %v12974_v1  ;;  %v1099_v26 = vpop.f32.mrb[6].mxu0  ;;  %v1140_v27 = vpop.f32.mrb[6].mxu1  ;;  %2992 = vmatpush1.bf16.msra.mxu0 %v10930_v12  ;;  %3033 = vmatpush1.bf16.msra.mxu1 %v10933_v13  ;;  %v10942_v0 = vld [vmem:[%s15603_s1 + $0xae0] ss:$16 sps:$4 sm:$0xff]   ;;  %v10945_v1 = vld [vmem:[%s15603_s1 + $0xae8] ss:$16 sps:$4 sm:$0xff]   ;;  %v2651_v13 = vor.u32 %v2650_v5, %v2646_v4 }
 0x160   : > { %v1100_v28 = vpop.f32.mrb[7].mxu0  ;;  %v1141_v29 = vpop.f32.mrb[7].mxu1  ;;  %2993 = vmatprep.subr.bf16.mxu0 %v10938_v14  ;;  %3034 = vmatprep.subr.bf16.mxu1 %v10941_v15  ;;  %v10999_v12 = vld [vmem:[%s15603_s1 + $0xc08] ss:$16 sps:$4 sm:$0xff]   ;;  %v11004_v14 = vld [vmem:[%s15603_s1 + $0xc24] ss:$16 sps:$4 sm:$0xff]  }
 0x161   : > { %v11007_v15 = vld [vmem:[%s15603_s1 + $0xc2c] ss:$16 sps:$4 sm:$0xff]   ;;  %v3133_v16 = vrot.slane %v12898_v35, 1  ;;  %v11002_v17 = vld [vmem:[%s15603_s1 + $0xc20] ss:$16 sps:$4 sm:$0xff]  }
 0x162   : > { %v11013_v22 = vld [vmem:[%s15603_s1 + $0xc4c] ss:$16 sps:$4 sm:$0xff]   ;;  %v11008_v23 = vld [vmem:[%s15603_s1 + $0xc40] ss:$16 sps:$4 sm:$0xff]   ;;  %v11011_v26 = vld [vmem:[%s15603_s1 + $0xc48] ss:$16 sps:$4 sm:$0xff]  }
 0x163   : > { %2994 = vmatpush1.bf16.msra.mxu0 %v10936_v18  ;;  %3035 = vmatpush1.bf16.msra.mxu1 %v10939_v19  ;;  %v11005_v18 = vld [vmem:[%s15603_s1 + $0xc28] ss:$16 sps:$4 sm:$0xff]   ;;  %v11010_v19 = vld [vmem:[%s15603_s1 + $0xc44] ss:$16 sps:$4 sm:$0xff]   ;;  %v11019_v28 = vld [vmem:[%s15603_s1 + $0xc6c] ss:$16 sps:$4 sm:$0xff]  }
 0x164   : > { %2995 = vmatprep.subr.bf16.mxu0 %v10944_v59  ;;  %3036 = vmatprep.subr.bf16.mxu1 %v10947_v60  ;;  %v11016_v27 = vld [vmem:[%s15603_s1 + $0xc64] ss:$16 sps:$4 sm:$0xff]   ;;  %v11014_v29 = vld [vmem:[%s15603_s1 + $0xc60] ss:$16 sps:$4 sm:$0xff]   ;;  %v11017_v59 = vld [vmem:[%s15603_s1 + $0xc68] ss:$16 sps:$4 sm:$0xff]  }
 0x165   : > { %v11022_v60 = vld [vmem:[%s15603_s1 + $0xc84] ss:$16 sps:$4 sm:$0xff]   ;;  %v11061_v5 = vld [vmem:[%s15603_s1 + $0xd4c] ss:$16 sps:$4 sm:$0xff]  }
 0x167   : > { %2996 = vmatpush1.bf16.msra.mxu0 %v10942_v0  ;;  %3037 = vmatpush1.bf16.msra.mxu1 %v10945_v1  ;;  %v11025_v0 = vld [vmem:[%s15603_s1 + $0xc8c] ss:$16 sps:$4 sm:$0xff]   ;;  %v11020_v1 = vld [vmem:[%s15603_s1 + $0xc80] ss:$16 sps:$4 sm:$0xff]  }
 0x168   : > { %2997 = vmatprep.subr.bf16.mxu0 %v10950_v30  ;;  %3038 = vmatprep.subr.bf16.mxu1 %v10953_v52  ;;  %v11023_v30 = vld [vmem:[%s15603_s1 + $0xc88] ss:$16 sps:$4 sm:$0xff]   ;;  %v11028_v52 = vld [vmem:[%s15603_s1 + $0xca4] ss:$16 sps:$4 sm:$0xff]  }
 0x16b   : > { %2998 = vmatpush1.bf16.msra.mxu0 %v10948_v48  ;;  %3039 = vmatpush1.bf16.msra.mxu1 %v10951_v53  ;;  %v11031_v48 = vld [vmem:[%s15603_s1 + $0xcac] ss:$16 sps:$4 sm:$0xff]   ;;  %v11026_v53 = vld [vmem:[%s15603_s1 + $0xca0] ss:$16 sps:$4 sm:$0xff]  }
 0x16c   : > { %2999 = vmatprep.subr.bf16.mxu0 %v10956_v61  ;;  %3040 = vmatprep.subr.bf16.mxu1 %v10959_v2  ;;  %v11029_v61 = vld [vmem:[%s15603_s1 + $0xca8] ss:$16 sps:$4 sm:$0xff]   ;;  %v11034_v2 = vld [vmem:[%s15603_s1 + $0xcc4] ss:$16 sps:$4 sm:$0xff]  }
 0x16f   : > { %3000 = vmatpush1.bf16.msra.mxu0 %v10954_v31  ;;  %3041 = vmatpush1.bf16.msra.mxu1 %v10957_v32  ;;  %v11037_v31 = vld [vmem:[%s15603_s1 + $0xccc] ss:$16 sps:$4 sm:$0xff]  }
 0x170   : > { %3001 = vmatprep.subr.bf16.mxu0 %v10962_v33  ;;  %3042 = vmatprep.subr.bf16.mxu1 %v10965_v34  ;;  %v11032_v34 = vld [vmem:[%s15603_s1 + $0xcc0] ss:$16 sps:$4 sm:$0xff]  }
 0x173   : > { %3002 = vmatpush1.bf16.msra.mxu0 %v10960_v36  ;;  %3043 = vmatpush1.bf16.msra.mxu1 %v10963_v37  ;;  %v11035_v36 = vld [vmem:[%s15603_s1 + $0xcc8] ss:$16 sps:$4 sm:$0xff]  }
 0x174   : > { %3003 = vmatprep.subr.bf16.mxu0 %v10968_v39  ;;  %3044 = vmatprep.subr.bf16.mxu1 %v10971_v40 }
 0x177   : > { %3004 = vmatpush1.bf16.msra.mxu0 %v10966_v41  ;;  %3045 = vmatpush1.bf16.msra.mxu1 %v10969_v42 }
 0x178   : > { %3005 = vmatprep.subr.bf16.mxu0 %v10974_v43  ;;  %3046 = vmatprep.subr.bf16.mxu1 %v10977_v44 }
 0x17b   : > { %3006 = vmatpush1.bf16.msra.mxu0 %v10972_v46  ;;  %3047 = vmatpush1.bf16.msra.mxu1 %v10975_v49 }
 0x17c   : > { %3007 = vmatprep.subr.bf16.mxu0 %v10980_v50  ;;  %3048 = vmatprep.subr.bf16.mxu1 %v10983_v51  ;;  %v11046_v51 = vld [vmem:[%s15603_s1 + $0xd04] ss:$16 sps:$4 sm:$0xff]  }
 0x17f   : > { %3008 = vmatpush1.bf16.msra.mxu0 %v10978_v7  ;;  %3049 = vmatpush1.bf16.msra.mxu1 %v10981_v54  ;;  %v11049_v7 = vld [vmem:[%s15603_s1 + $0xd0c] ss:$16 sps:$4 sm:$0xff]   ;;  %v11044_v54 = vld [vmem:[%s15603_s1 + $0xd00] ss:$16 sps:$4 sm:$0xff]  }
 0x180   : > { %3009 = vmatprep.subr.bf16.mxu0 %v10986_v55  ;;  %3050 = vmatprep.subr.bf16.mxu1 %v10989_v56  ;;  %v11047_v55 = vld [vmem:[%s15603_s1 + $0xd08] ss:$16 sps:$4 sm:$0xff]   ;;  %v11052_v56 = vld [vmem:[%s15603_s1 + $0xd24] ss:$16 sps:$4 sm:$0xff]  }
 0x183   : > { %3010 = vmatpush1.bf16.msra.mxu0 %v10984_v58  ;;  %3051 = vmatpush1.bf16.msra.mxu1 %v10987_v62  ;;  %v11055_v58 = vld [vmem:[%s15603_s1 + $0xd2c] ss:$16 sps:$4 sm:$0xff]   ;;  %v11050_v62 = vld [vmem:[%s15603_s1 + $0xd20] ss:$16 sps:$4 sm:$0xff]  }
 0x184   : > { %3011 = vmatprep.subr.bf16.mxu0 %v10992_v63  ;;  %3052 = vmatprep.subr.bf16.mxu1 %v10995_v3  ;;  %v11053_v63 = vld [vmem:[%s15603_s1 + $0xd28] ss:$16 sps:$4 sm:$0xff]   ;;  %v11058_v3 = vld [vmem:[%s15603_s1 + $0xd44] ss:$16 sps:$4 sm:$0xff]  }
 0x187   : > { %3012 = vmatpush1.bf16.msra.mxu0 %v10990_v6  ;;  %3053 = vmatpush1.bf16.msra.mxu1 %v10993_v8  ;;  %v11056_v6 = vld [vmem:[%s15603_s1 + $0xd40] ss:$16 sps:$4 sm:$0xff]   ;;  %v11059_v8 = vld [vmem:[%s15603_s1 + $0xd48] ss:$16 sps:$4 sm:$0xff]  }
 0x188   : > { %3456 = vmatprep.subr.bf16.mxu0 %v10998_v9  ;;  %3497 = vmatprep.subr.bf16.mxu1 %v11001_v10  ;;  %v11064_v9 = vld [vmem:[%s15603_s1 + $0xd64] ss:$16 sps:$4 sm:$0xff]   ;;  %v11067_v10 = vld [vmem:[%s15603_s1 + $0xd6c] ss:$16 sps:$4 sm:$0xff]  }
 0x18a   : > { %3014 = vmatmul.mubr.bf16.vlgmr.msra.gmra.mrb[20].mxu0 %v2651_v13  ;;  %3055 = vmatmul.mubr.bf16.vlgmr.msra.gmra.mrb[20].mxu1 %v2651_v13  ;;  %v11070_v13 = vld [vmem:[%s15603_s1 + $0xd84] ss:$16 sps:$4 sm:$0xff]  }
 0x18b   : > { %3457 = vmatpush1.bf16.msra.mxu0 %v10996_v11  ;;  %3498 = vmatpush1.bf16.msra.mxu1 %v10999_v12  ;;  %v11062_v11 = vld [vmem:[%s15603_s1 + $0xd60] ss:$16 sps:$4 sm:$0xff]   ;;  %v11065_v12 = vld [vmem:[%s15603_s1 + $0xd68] ss:$16 sps:$4 sm:$0xff]  }
 0x18c   : > { %3458 = vmatprep.subr.bf16.mxu0 %v11004_v14  ;;  %3499 = vmatprep.subr.bf16.mxu1 %v11007_v15  ;;  %v11073_v14 = vld [vmem:[%s15603_s1 + $0xd8c] ss:$16 sps:$4 sm:$0xff]   ;;  %v11068_v15 = vld [vmem:[%s15603_s1 + $0xd80] ss:$16 sps:$4 sm:$0xff]  }
 0x18d   : > { %3488 = vmatprep.mubr.bf16.mxu0 %v3133_v16  ;;  %3529 = vmatprep.mubr.bf16.mxu1 %v3133_v16  ;;  %v11071_v16 = vld [vmem:[%s15603_s1 + $0xd88] ss:$16 sps:$4 sm:$0xff]  }
 0x18f   : > { %3459 = vmatpush1.bf16.msra.mxu0 %v11002_v17  ;;  %3500 = vmatpush1.bf16.msra.mxu1 %v11005_v18  ;;  %v11076_v17 = vld [vmem:[%s15603_s1 + $0xda4] ss:$16 sps:$4 sm:$0xff]   ;;  %v11079_v18 = vld [vmem:[%s15603_s1 + $0xdac] ss:$16 sps:$4 sm:$0xff]  }
 0x190   : > { %3460 = vmatprep.subr.bf16.mxu0 %v11010_v19  ;;  %3501 = vmatprep.subr.bf16.mxu1 %v11013_v22  ;;  %v11074_v19 = vld [vmem:[%s15603_s1 + $0xda0] ss:$16 sps:$4 sm:$0xff]   ;;  %v11077_v22 = vld [vmem:[%s15603_s1 + $0xda8] ss:$16 sps:$4 sm:$0xff]  }
 0x193   : > { %3461 = vmatpush1.bf16.msra.mxu0 %v11008_v23  ;;  %3502 = vmatpush1.bf16.msra.mxu1 %v11011_v26  ;;  %v11082_v23 = vld [vmem:[%s15603_s1 + $0xdc4] ss:$16 sps:$4 sm:$0xff]   ;;  %v11085_v26 = vld [vmem:[%s15603_s1 + $0xdcc] ss:$16 sps:$4 sm:$0xff]  }
 0x194   : > { %3462 = vmatprep.subr.bf16.mxu0 %v11016_v27  ;;  %3503 = vmatprep.subr.bf16.mxu1 %v11019_v28  ;;  %v11080_v27 = vld [vmem:[%s15603_s1 + $0xdc0] ss:$16 sps:$4 sm:$0xff]   ;;  %v11083_v28 = vld [vmem:[%s15603_s1 + $0xdc8] ss:$16 sps:$4 sm:$0xff]  }
 0x197   : > { %3463 = vmatpush1.bf16.msra.mxu0 %v11014_v29  ;;  %3504 = vmatpush1.bf16.msra.mxu1 %v11017_v59  ;;  %v11088_v29 = vld [vmem:[%s15603_s1 + $0xde4] ss:$16 sps:$4 sm:$0xff]   ;;  %v11091_v59 = vld [vmem:[%s15603_s1 + $0xdec] ss:$16 sps:$4 sm:$0xff]  }
 0x198   : > { %3464 = vmatprep.subr.bf16.mxu0 %v11022_v60  ;;  %3505 = vmatprep.subr.bf16.mxu1 %v11025_v0  ;;  %v11086_v60 = vld [vmem:[%s15603_s1 + $0xde0] ss:$16 sps:$4 sm:$0xff]   ;;  %v11089_v0 = vld [vmem:[%s15603_s1 + $0xde8] ss:$16 sps:$4 sm:$0xff]  }
 0x19b   : > { %3465 = vmatpush1.bf16.msra.mxu0 %v11020_v1  ;;  %3506 = vmatpush1.bf16.msra.mxu1 %v11023_v30  ;;  %v11094_v1 = vld [vmem:[%s15603_s1 + $0xe04] ss:$16 sps:$4 sm:$0xff]   ;;  %v11097_v30 = vld [vmem:[%s15603_s1 + $0xe0c] ss:$16 sps:$4 sm:$0xff]  }
 0x19c   : > { %3466 = vmatprep.subr.bf16.mxu0 %v11028_v52  ;;  %3507 = vmatprep.subr.bf16.mxu1 %v11031_v48  ;;  %v11092_v52 = vld [vmem:[%s15603_s1 + $0xe00] ss:$16 sps:$4 sm:$0xff]   ;;  %v3610_v48 = vrot.slane %v2653_v45, 1  ;;  %v11103_v45 = vld [vmem:[%s15603_s1 + $0xe2c] ss:$16 sps:$4 sm:$0xff]  }
 0x19d   : > { %v1566_v32 = vpop.f32.mrb[8].mxu0  ;;  %v1607_v33 = vpop.f32.mrb[8].mxu1 }
 0x19e   : > { %v13392_v37 = vadd.f32 %v1566_v32, %v13181_v20  ;;  %v13395_v39 = vadd.f32 %v1607_v33, %v13184_v21  ;;  %v1568_v40 = vpop.f32.mrb[9].mxu0  ;;  %v1609_v41 = vpop.f32.mrb[9].mxu1  ;;  %v11040_v20 = vld [vmem:[%s15603_s1 + $0xce4] ss:$16 sps:$4 sm:$0xff]   ;;  %v11043_v21 = vld [vmem:[%s15603_s1 + $0xcec] ss:$16 sps:$4 sm:$0xff]  }
 0x19f   : > { %v13398_v42 = vadd.f32 %v1568_v40, %v13187_v24  ;;  %v13401_v43 = vadd.f32 %v1609_v41, %v13190_v25  ;;  %v1570_v44 = vpop.f32.mrb[10].mxu0  ;;  %v1611_v46 = vpop.f32.mrb[10].mxu1  ;;  %3467 = vmatpush1.bf16.msra.mxu0 %v11026_v53  ;;  %3508 = vmatpush1.bf16.msra.mxu1 %v11029_v61  ;;  %v11038_v24 = vld [vmem:[%s15603_s1 + $0xce0] ss:$16 sps:$4 sm:$0xff]   ;;  %v11041_v25 = vld [vmem:[%s15603_s1 + $0xce8] ss:$16 sps:$4 sm:$0xff]  }
 0x1a0   : > { %v1571_v49 = vpop.f32.mrb[11].mxu0  ;;  %v1612_v50 = vpop.f32.mrb[11].mxu1  ;;  %3468 = vmatprep.subr.bf16.mxu0 %v11034_v2  ;;  %3509 = vmatprep.subr.bf16.mxu1 %v11037_v31  ;;  %v3611_v53 = vrot.slane %v2655_v38, 2  ;;  %v3132_v61 = vrot.slane %v13102_v47, 1  ;;  %v11095_v2 = vld [vmem:[%s15603_s1 + $0xe08] ss:$16 sps:$4 sm:$0xff]  }
 0x1a1   : > { %v11100_v31 = vld [vmem:[%s15603_s1 + $0xe24] ss:$16 sps:$4 sm:$0xff]   ;;  %v11098_v38 = vld [vmem:[%s15603_s1 + $0xe20] ss:$16 sps:$4 sm:$0xff]   ;;  %v11101_v32 = vld [vmem:[%s15603_s1 + $0xe28] ss:$16 sps:$4 sm:$0xff]  }
 0x1a2   : > { %v3612_v35 = vor.u32 %v3611_v53, %v3610_v48  ;;  %v11106_v33 = vld [vmem:[%s15603_s1 + $0xe44] ss:$16 sps:$4 sm:$0xff]   ;;  %v11107_v40 = vld [vmem:[%s15603_s1 + $0xe48] ss:$16 sps:$4 sm:$0xff]   ;;  %v11115_v44 = vld [vmem:[%s15603_s1 + $0xe6c] ss:$16 sps:$4 sm:$0xff]  }
 0x1a3   : > { %3469 = vmatpush1.bf16.msra.mxu0 %v11032_v34  ;;  %3510 = vmatpush1.bf16.msra.mxu1 %v11035_v36  ;;  %v11109_v34 = vld [vmem:[%s15603_s1 + $0xe4c] ss:$16 sps:$4 sm:$0xff]   ;;  %v11104_v36 = vld [vmem:[%s15603_s1 + $0xe40] ss:$16 sps:$4 sm:$0xff]   ;;  %v11112_v41 = vld [vmem:[%s15603_s1 + $0xe64] ss:$16 sps:$4 sm:$0xff]  }
 0x1a4   : > { %3470 = vmatprep.subr.bf16.mxu0 %v11040_v20  ;;  %3511 = vmatprep.subr.bf16.mxu1 %v11043_v21  ;;  %v11110_v46 = vld [vmem:[%s15603_s1 + $0xe60] ss:$16 sps:$4 sm:$0xff]   ;;  %v11113_v49 = vld [vmem:[%s15603_s1 + $0xe68] ss:$16 sps:$4 sm:$0xff]   ;;  %v11118_v50 = vld [vmem:[%s15603_s1 + $0xe84] ss:$16 sps:$4 sm:$0xff]  }
 0x1a5   : > { %v11121_v20 = vld [vmem:[%s15603_s1 + $0xe8c] ss:$16 sps:$4 sm:$0xff]   ;;  %v11116_v21 = vld [vmem:[%s15603_s1 + $0xe80] ss:$16 sps:$4 sm:$0xff]   ;;  %v11166_v48 = vld [vmem:[%s15603_s1 + $0xf84] ss:$16 sps:$4 sm:$0xff]  }
 0x1a6   : > { %v11169_v53 = vld [vmem:[%s15603_s1 + $0xf8c] ss:$16 sps:$4 sm:$0xff]   ;;  %v11188_v47 = vld [vmem:[%s15603_s1 + $0x1000] ss:$16 sps:$4 sm:$0xff]  }
 0x1a7   : > { %3471 = vmatpush1.bf16.msra.mxu0 %v11038_v24  ;;  %3512 = vmatpush1.bf16.msra.mxu1 %v11041_v25  ;;  %v11119_v24 = vld [vmem:[%s15603_s1 + $0xe88] ss:$16 sps:$4 sm:$0xff]   ;;  %v11124_v25 = vld [vmem:[%s15603_s1 + $0xea4] ss:$16 sps:$4 sm:$0xff]  }
 0x1a8   : > { %3472 = vmatprep.subr.bf16.mxu0 %v11046_v51  ;;  %3513 = vmatprep.subr.bf16.mxu1 %v11049_v7  ;;  %v11127_v51 = vld [vmem:[%s15603_s1 + $0xeac] ss:$16 sps:$4 sm:$0xff]   ;;  %v11122_v7 = vld [vmem:[%s15603_s1 + $0xea0] ss:$16 sps:$4 sm:$0xff]  }
 0x1ab   : > { %3473 = vmatpush1.bf16.msra.mxu0 %v11044_v54  ;;  %3514 = vmatpush1.bf16.msra.mxu1 %v11047_v55  ;;  %v11125_v54 = vld [vmem:[%s15603_s1 + $0xea8] ss:$16 sps:$4 sm:$0xff]   ;;  %v11130_v55 = vld [vmem:[%s15603_s1 + $0xec4] ss:$16 sps:$4 sm:$0xff]  }
 0x1ac   : > { %3474 = vmatprep.subr.bf16.mxu0 %v11052_v56  ;;  %3515 = vmatprep.subr.bf16.mxu1 %v11055_v58  ;;  %v11133_v56 = vld [vmem:[%s15603_s1 + $0xecc] ss:$16 sps:$4 sm:$0xff]  }
 0x1af   : > { %3475 = vmatpush1.bf16.msra.mxu0 %v11050_v62  ;;  %3516 = vmatpush1.bf16.msra.mxu1 %v11053_v63  ;;  %v11128_v63 = vld [vmem:[%s15603_s1 + $0xec0] ss:$16 sps:$4 sm:$0xff]  }
 0x1b0   : > { %3476 = vmatprep.subr.bf16.mxu0 %v11058_v3  ;;  %3517 = vmatprep.subr.bf16.mxu1 %v11061_v5  ;;  %v11131_v3 = vld [vmem:[%s15603_s1 + $0xec8] ss:$16 sps:$4 sm:$0xff]  }
 0x1b3   : > { %3477 = vmatpush1.bf16.msra.mxu0 %v11056_v6  ;;  %3518 = vmatpush1.bf16.msra.mxu1 %v11059_v8 }
 0x1b4   : > { %3478 = vmatprep.subr.bf16.mxu0 %v11064_v9  ;;  %3519 = vmatprep.subr.bf16.mxu1 %v11067_v10 }
 0x1b7   : > { %3479 = vmatpush1.bf16.msra.mxu0 %v11062_v11  ;;  %3520 = vmatpush1.bf16.msra.mxu1 %v11065_v12 }
 0x1b8   : > { %3480 = vmatprep.subr.bf16.mxu0 %v11070_v13  ;;  %3521 = vmatprep.subr.bf16.mxu1 %v11073_v14 }
 0x1bb   : > { %3481 = vmatpush1.bf16.msra.mxu0 %v11068_v15  ;;  %3522 = vmatpush1.bf16.msra.mxu1 %v11071_v16  ;;  %v11142_v16 = vld [vmem:[%s15603_s1 + $0xf04] ss:$16 sps:$4 sm:$0xff]  }
 0x1bc   : > { %3482 = vmatprep.subr.bf16.mxu0 %v11076_v17  ;;  %3523 = vmatprep.subr.bf16.mxu1 %v11079_v18  ;;  %v11145_v17 = vld [vmem:[%s15603_s1 + $0xf0c] ss:$16 sps:$4 sm:$0xff]   ;;  %v11140_v18 = vld [vmem:[%s15603_s1 + $0xf00] ss:$16 sps:$4 sm:$0xff]  }
 0x1bf   : > { %3483 = vmatpush1.bf16.msra.mxu0 %v11074_v19  ;;  %3524 = vmatpush1.bf16.msra.mxu1 %v11077_v22  ;;  %v11143_v19 = vld [vmem:[%s15603_s1 + $0xf08] ss:$16 sps:$4 sm:$0xff]   ;;  %v11148_v22 = vld [vmem:[%s15603_s1 + $0xf24] ss:$16 sps:$4 sm:$0xff]  }
 0x1c0   : > { %3484 = vmatprep.subr.bf16.mxu0 %v11082_v23  ;;  %3525 = vmatprep.subr.bf16.mxu1 %v11085_v26  ;;  %v11151_v23 = vld [vmem:[%s15603_s1 + $0xf2c] ss:$16 sps:$4 sm:$0xff]   ;;  %v11146_v26 = vld [vmem:[%s15603_s1 + $0xf20] ss:$16 sps:$4 sm:$0xff]  }
 0x1c3   : > { %3485 = vmatpush1.bf16.msra.mxu0 %v11080_v27  ;;  %3526 = vmatpush1.bf16.msra.mxu1 %v11083_v28  ;;  %v11149_v27 = vld [vmem:[%s15603_s1 + $0xf28] ss:$16 sps:$4 sm:$0xff]   ;;  %v11154_v28 = vld [vmem:[%s15603_s1 + $0xf44] ss:$16 sps:$4 sm:$0xff]  }
 0x1c4   : > { %3486 = vmatprep.subr.bf16.mxu0 %v11088_v29  ;;  %3527 = vmatprep.subr.bf16.mxu1 %v11091_v59  ;;  %v11157_v29 = vld [vmem:[%s15603_s1 + $0xf4c] ss:$16 sps:$4 sm:$0xff]   ;;  %v11152_v59 = vld [vmem:[%s15603_s1 + $0xf40] ss:$16 sps:$4 sm:$0xff]  }
 0x1c7   : > { %3487 = vmatpush1.bf16.msra.mxu0 %v11086_v60  ;;  %3528 = vmatpush1.bf16.msra.mxu1 %v11089_v0  ;;  %v11155_v60 = vld [vmem:[%s15603_s1 + $0xf48] ss:$16 sps:$4 sm:$0xff]   ;;  %v11160_v0 = vld [vmem:[%s15603_s1 + $0xf64] ss:$16 sps:$4 sm:$0xff]  }
 0x1c8   : > { %3935 = vmatprep.subr.bf16.mxu0 %v11094_v1  ;;  %3976 = vmatprep.subr.bf16.mxu1 %v11097_v30  ;;  %v11163_v1 = vld [vmem:[%s15603_s1 + $0xf6c] ss:$16 sps:$4 sm:$0xff]   ;;  %v11158_v30 = vld [vmem:[%s15603_s1 + $0xf60] ss:$16 sps:$4 sm:$0xff]  }
 0x1ca   : > { %3489 = vmatmul.mubr.bf16.vlgmr.msra.gmra.mrb[24].mxu0 %v3132_v61  ;;  %3530 = vmatmul.mubr.bf16.vlgmr.msra.gmra.mrb[24].mxu1 %v3132_v61  ;;  %v11164_v61 = vld [vmem:[%s15603_s1 + $0xf80] ss:$16 sps:$4 sm:$0xff]  }
 0x1cb   : > { %3936 = vmatpush1.bf16.msra.mxu0 %v11092_v52  ;;  %3977 = vmatpush1.bf16.msra.mxu1 %v11095_v2  ;;  %v11161_v52 = vld [vmem:[%s15603_s1 + $0xf68] ss:$16 sps:$4 sm:$0xff]  }
 0x1cc   : > { %3937 = vmatprep.subr.bf16.mxu0 %v11100_v31  ;;  %3978 = vmatprep.subr.bf16.mxu1 %v11103_v45  ;;  %v11167_v2 = vld [vmem:[%s15603_s1 + $0xf88] ss:$16 sps:$4 sm:$0xff]   ;;  %v11172_v31 = vld [vmem:[%s15603_s1 + $0xfa4] ss:$16 sps:$4 sm:$0xff]   ;;  %v11175_v45 = vld [vmem:[%s15603_s1 + $0xfac] ss:$16 sps:$4 sm:$0xff]  }
 0x1cd   : > { %3967 = vmatprep.mubr.bf16.mxu0 %v3612_v35  ;;  %4008 = vmatprep.mubr.bf16.mxu1 %v3612_v35  ;;  %v11170_v35 = vld [vmem:[%s15603_s1 + $0xfa0] ss:$16 sps:$4 sm:$0xff]  }
 0x1cf   : > { %3938 = vmatpush1.bf16.msra.mxu0 %v11098_v38  ;;  %3979 = vmatpush1.bf16.msra.mxu1 %v11101_v32  ;;  %v11173_v38 = vld [vmem:[%s15603_s1 + $0xfa8] ss:$16 sps:$4 sm:$0xff]   ;;  %v11178_v32 = vld [vmem:[%s15603_s1 + $0xfc4] ss:$16 sps:$4 sm:$0xff]  }
 0x1d0   : > { %3939 = vmatprep.subr.bf16.mxu0 %v11106_v33  ;;  %3980 = vmatprep.subr.bf16.mxu1 %v11109_v34  ;;  %v11181_v33 = vld [vmem:[%s15603_s1 + $0xfcc] ss:$16 sps:$4 sm:$0xff]   ;;  %v11176_v34 = vld [vmem:[%s15603_s1 + $0xfc0] ss:$16 sps:$4 sm:$0xff]  }
 0x1d3   : > { %3940 = vmatpush1.bf16.msra.mxu0 %v11104_v36  ;;  %3981 = vmatpush1.bf16.msra.mxu1 %v11107_v40  ;;  %v11179_v36 = vld [vmem:[%s15603_s1 + $0xfc8] ss:$16 sps:$4 sm:$0xff]   ;;  %v11184_v40 = vld [vmem:[%s15603_s1 + $0xfe4] ss:$16 sps:$4 sm:$0xff]  }
 0x1d4   : > { %3941 = vmatprep.subr.bf16.mxu0 %v11112_v41  ;;  %3982 = vmatprep.subr.bf16.mxu1 %v11115_v44  ;;  %v11187_v41 = vld [vmem:[%s15603_s1 + $0xfec] ss:$16 sps:$4 sm:$0xff]   ;;  %v11182_v44 = vld [vmem:[%s15603_s1 + $0xfe0] ss:$16 sps:$4 sm:$0xff]  }
 0x1d7   : > { %3942 = vmatpush1.bf16.msra.mxu0 %v11110_v46  ;;  %3983 = vmatpush1.bf16.msra.mxu1 %v11113_v49  ;;  %v3607_v46 = vrot.slane %v2646_v4, 1  ;;  %v3608_v49 = vrot.slane %v2648_v57, 2  ;;  %v13731_v4 = vld [vmem:[%s12206_s5 + $0x10] sm:$0x77]  ;;  %v11191_v57 = vld [vmem:[%s15603_s1 + $0x1008] ss:$16 sps:$4 sm:$0xff]  }
 0x1d8   : > { %3943 = vmatprep.subr.bf16.mxu0 %v11118_v50  ;;  %3984 = vmatprep.subr.bf16.mxu1 %v11121_v20  ;;  %v11185_v50 = vld [vmem:[%s15603_s1 + $0xfe8] ss:$16 sps:$4 sm:$0xff]   ;;  %v11190_v20 = vld [vmem:[%s15603_s1 + $0x1004] ss:$16 sps:$4 sm:$0xff]  }
 0x1db   : > { %3944 = vmatpush1.bf16.msra.mxu0 %v11116_v21  ;;  %3985 = vmatpush1.bf16.msra.mxu1 %v11119_v24  ;;  %v11193_v21 = vld [vmem:[%s15603_s1 + $0x100c] ss:$16 sps:$4 sm:$0xff]   ;;  %v3609_v24 = vor.u32 %v3608_v49, %v3607_v46  ;;  %v11254_v46 = vld [vmem:[%s15603_s1 + $0x1160] ss:$16 sps:$4 sm:$0xff]   ;;  %v11257_v49 = vld [vmem:[%s15603_s1 + $0x1168] ss:$16 sps:$4 sm:$0xff]  }
 0x1dc   : > { %3945 = vmatprep.subr.bf16.mxu0 %v11124_v25  ;;  %3986 = vmatprep.subr.bf16.mxu1 %v11127_v51  ;;  %v11196_v25 = vld [vmem:[%s15603_s1 + $0x1024] ss:$16 sps:$4 sm:$0xff]   ;;  %v11199_v51 = vld [vmem:[%s15603_s1 + $0x102c] ss:$16 sps:$4 sm:$0xff]  }
 0x1dd   : > { %v2045_v58 = vpop.f32.mrb[12].mxu0  ;;  %v2086_v62 = vpop.f32.mrb[12].mxu1 }
 0x1de   : > { %v13601_v5 = vadd.f32 %v2045_v58, %v13392_v37  ;;  %v13604_v6 = vadd.f32 %v2086_v62, %v13395_v39  ;;  %v2047_v8 = vpop.f32.mrb[13].mxu0  ;;  %v2088_v9 = vpop.f32.mrb[13].mxu1  ;;  %v11136_v37 = vld [vmem:[%s15603_s1 + $0xee4] ss:$16 sps:$4 sm:$0xff]   ;;  %v11139_v39 = vld [vmem:[%s15603_s1 + $0xeec] ss:$16 sps:$4 sm:$0xff]  }
 0x1df   : > { %v13607_v10 = vadd.f32 %v2047_v8, %v13398_v42  ;;  %v13610_v11 = vadd.f32 %v2088_v9, %v13401_v43  ;;  %v2049_v12 = vpop.f32.mrb[14].mxu0  ;;  %v2090_v13 = vpop.f32.mrb[14].mxu1  ;;  %3946 = vmatpush1.bf16.msra.mxu0 %v11122_v7  ;;  %3987 = vmatpush1.bf16.msra.mxu1 %v11125_v54  ;;  %v11134_v42 = vld [vmem:[%s15603_s1 + $0xee0] ss:$16 sps:$4 sm:$0xff]   ;;  %v11137_v43 = vld [vmem:[%s15603_s1 + $0xee8] ss:$16 sps:$4 sm:$0xff]   ;;  %v13747_v7 = vcombine.high %v13731_v4, %v13731_v4 }
 0x1e0   : > { %v2050_v14 = vpop.f32.mrb[15].mxu0  ;;  %v2091_v15 = vpop.f32.mrb[15].mxu1  ;;  %3947 = vmatprep.subr.bf16.mxu0 %v11130_v55  ;;  %3988 = vmatprep.subr.bf16.mxu1 %v11133_v56  ;;  %v11194_v54 = vld [vmem:[%s15603_s1 + $0x1020] ss:$16 sps:$4 sm:$0xff]   ;;  %v11197_v55 = vld [vmem:[%s15603_s1 + $0x1028] ss:$16 sps:$4 sm:$0xff]  }
 0x1e1   : > { %v11202_v56 = vld [vmem:[%s15603_s1 + $0x1044] ss:$16 sps:$4 sm:$0xff]   ;;  %v11205_v58 = vld [vmem:[%s15603_s1 + $0x104c] ss:$16 sps:$4 sm:$0xff]   ;;  %v11200_v62 = vld [vmem:[%s15603_s1 + $0x1040] ss:$16 sps:$4 sm:$0xff]  }
 0x1e2   : > { %v11211_v8 = vld [vmem:[%s15603_s1 + $0x106c] ss:$16 sps:$4 sm:$0xff]   ;;  %v11206_v9 = vld [vmem:[%s15603_s1 + $0x1060] ss:$16 sps:$4 sm:$0xff]   ;;  %v11209_v12 = vld [vmem:[%s15603_s1 + $0x1068] ss:$16 sps:$4 sm:$0xff]  }
 0x1e3   : > { %3948 = vmatpush1.bf16.msra.mxu0 %v11128_v63  ;;  %3989 = vmatpush1.bf16.msra.mxu1 %v11131_v3  ;;  %v11203_v63 = vld [vmem:[%s15603_s1 + $0x1048] ss:$16 sps:$4 sm:$0xff]   ;;  %v11208_v3 = vld [vmem:[%s15603_s1 + $0x1064] ss:$16 sps:$4 sm:$0xff]   ;;  %v11217_v14 = vld [vmem:[%s15603_s1 + $0x108c] ss:$16 sps:$4 sm:$0xff]  }
 0x1e4   : > { %3949 = vmatprep.subr.bf16.mxu0 %v11136_v37  ;;  %3990 = vmatprep.subr.bf16.mxu1 %v11139_v39  ;;  %v11214_v13 = vld [vmem:[%s15603_s1 + $0x1084] ss:$16 sps:$4 sm:$0xff]   ;;  %v11212_v15 = vld [vmem:[%s15603_s1 + $0x1080] ss:$16 sps:$4 sm:$0xff]   ;;  %v11215_v37 = vld [vmem:[%s15603_s1 + $0x1088] ss:$16 sps:$4 sm:$0xff]  }
 0x1e5   : > { %v11220_v39 = vld [vmem:[%s15603_s1 + $0x10a4] ss:$16 sps:$4 sm:$0xff]  }
 0x1e7   : > { %3950 = vmatpush1.bf16.msra.mxu0 %v11134_v42  ;;  %3991 = vmatpush1.bf16.msra.mxu1 %v11137_v43  ;;  %v11223_v42 = vld [vmem:[%s15603_s1 + $0x10ac] ss:$16 sps:$4 sm:$0xff]   ;;  %v11218_v43 = vld [vmem:[%s15603_s1 + $0x10a0] ss:$16 sps:$4 sm:$0xff]  }
 0x1e8   : > { %3951 = vmatprep.subr.bf16.mxu0 %v11142_v16  ;;  %3992 = vmatprep.subr.bf16.mxu1 %v11145_v17  ;;  %v11221_v16 = vld [vmem:[%s15603_s1 + $0x10a8] ss:$16 sps:$4 sm:$0xff]   ;;  %v11226_v17 = vld [vmem:[%s15603_s1 + $0x10c4] ss:$16 sps:$4 sm:$0xff]  }
 0x1eb   : > { %3952 = vmatpush1.bf16.msra.mxu0 %v11140_v18  ;;  %3993 = vmatpush1.bf16.msra.mxu1 %v11143_v19  ;;  %v11229_v18 = vld [vmem:[%s15603_s1 + $0x10cc] ss:$16 sps:$4 sm:$0xff]  }
 0x1ec   : > { %3953 = vmatprep.subr.bf16.mxu0 %v11148_v22  ;;  %3994 = vmatprep.subr.bf16.mxu1 %v11151_v23  ;;  %v11224_v23 = vld [vmem:[%s15603_s1 + $0x10c0] ss:$16 sps:$4 sm:$0xff]  }
 0x1ef   : > { %3954 = vmatpush1.bf16.msra.mxu0 %v11146_v26  ;;  %3995 = vmatpush1.bf16.msra.mxu1 %v11149_v27  ;;  %v11227_v26 = vld [vmem:[%s15603_s1 + $0x10c8] ss:$16 sps:$4 sm:$0xff]  }
 0x1f0   : > { %3955 = vmatprep.subr.bf16.mxu0 %v11154_v28  ;;  %3996 = vmatprep.subr.bf16.mxu1 %v11157_v29 }
 0x1f3   : > { %3956 = vmatpush1.bf16.msra.mxu0 %v11152_v59  ;;  %3997 = vmatpush1.bf16.msra.mxu1 %v11155_v60 }
 0x1f4   : > { %3957 = vmatprep.subr.bf16.mxu0 %v11160_v0  ;;  %3998 = vmatprep.subr.bf16.mxu1 %v11163_v1 }
 0x1f7   : > { %3958 = vmatpush1.bf16.msra.mxu0 %v11158_v30  ;;  %3999 = vmatpush1.bf16.msra.mxu1 %v11161_v52 }
 0x1f8   : > { %3959 = vmatprep.subr.bf16.mxu0 %v11166_v48  ;;  %4000 = vmatprep.subr.bf16.mxu1 %v11169_v53  ;;  %v11238_v53 = vld [vmem:[%s15603_s1 + $0x1104] ss:$16 sps:$4 sm:$0xff]  }
 0x1fb   : > { %3960 = vmatpush1.bf16.msra.mxu0 %v11164_v61  ;;  %4001 = vmatpush1.bf16.msra.mxu1 %v11167_v2  ;;  %v11241_v61 = vld [vmem:[%s15603_s1 + $0x110c] ss:$16 sps:$4 sm:$0xff]   ;;  %v11236_v2 = vld [vmem:[%s15603_s1 + $0x1100] ss:$16 sps:$4 sm:$0xff]  }
 0x1fc   : > { %3961 = vmatprep.subr.bf16.mxu0 %v11172_v31  ;;  %4002 = vmatprep.subr.bf16.mxu1 %v11175_v45  ;;  %v11239_v31 = vld [vmem:[%s15603_s1 + $0x1108] ss:$16 sps:$4 sm:$0xff]   ;;  %v11244_v45 = vld [vmem:[%s15603_s1 + $0x1124] ss:$16 sps:$4 sm:$0xff]  }
 0x1ff   : > { %3962 = vmatpush1.bf16.msra.mxu0 %v11170_v35  ;;  %4003 = vmatpush1.bf16.msra.mxu1 %v11173_v38  ;;  %v11247_v35 = vld [vmem:[%s15603_s1 + $0x112c] ss:$16 sps:$4 sm:$0xff]   ;;  %v11242_v38 = vld [vmem:[%s15603_s1 + $0x1120] ss:$16 sps:$4 sm:$0xff]  }
 0x200   : > { %3963 = vmatprep.subr.bf16.mxu0 %v11178_v32  ;;  %4004 = vmatprep.subr.bf16.mxu1 %v11181_v33  ;;  %v11245_v32 = vld [vmem:[%s15603_s1 + $0x1128] ss:$16 sps:$4 sm:$0xff]   ;;  %v11250_v33 = vld [vmem:[%s15603_s1 + $0x1144] ss:$16 sps:$4 sm:$0xff]  }
 0x203   : > { %3964 = vmatpush1.bf16.msra.mxu0 %v11176_v34  ;;  %4005 = vmatpush1.bf16.msra.mxu1 %v11179_v36  ;;  %v11253_v34 = vld [vmem:[%s15603_s1 + $0x114c] ss:$16 sps:$4 sm:$0xff]   ;;  %v11248_v36 = vld [vmem:[%s15603_s1 + $0x1140] ss:$16 sps:$4 sm:$0xff]  }
 0x204   : > { %3965 = vmatprep.subr.bf16.mxu0 %v11184_v40  ;;  %4006 = vmatprep.subr.bf16.mxu1 %v11187_v41  ;;  %v11251_v40 = vld [vmem:[%s15603_s1 + $0x1148] ss:$16 sps:$4 sm:$0xff]   ;;  %v11256_v41 = vld [vmem:[%s15603_s1 + $0x1164] ss:$16 sps:$4 sm:$0xff]  }
 0x207   : > { %3966 = vmatpush1.bf16.msra.mxu0 %v11182_v44  ;;  %4007 = vmatpush1.bf16.msra.mxu1 %v11185_v50  ;;  %v11259_v44 = vld [vmem:[%s15603_s1 + $0x116c] ss:$16 sps:$4 sm:$0xff]   ;;  %v11262_v50 = vld [vmem:[%s15603_s1 + $0x1184] ss:$16 sps:$4 sm:$0xff]  }
 0x208   : > { %4418 = vmatprep.subr.bf16.mxu0 %v11190_v20  ;;  %4459 = vmatprep.subr.bf16.mxu1 %v11193_v21  ;;  %v11265_v20 = vld [vmem:[%s15603_s1 + $0x118c] ss:$16 sps:$4 sm:$0xff]   ;;  %v11260_v21 = vld [vmem:[%s15603_s1 + $0x1180] ss:$16 sps:$4 sm:$0xff]  }
 0x20a   : > { %3968 = vmatmul.mubr.bf16.vlgmr.msra.gmra.mrb[28].mxu0 %v3609_v24  ;;  %4009 = vmatmul.mubr.bf16.vlgmr.msra.gmra.mrb[28].mxu1 %v3609_v24  ;;  %v11271_v24 = vld [vmem:[%s15603_s1 + $0x11ac] ss:$16 sps:$4 sm:$0xff]  }
 0x20b   : > { %4419 = vmatpush1.bf16.msra.mxu0 %v11188_v47  ;;  %4460 = vmatpush1.bf16.msra.mxu1 %v11191_v57  ;;  %v11263_v47 = vld [vmem:[%s15603_s1 + $0x1188] ss:$16 sps:$4 sm:$0xff]   ;;  %v11268_v57 = vld [vmem:[%s15603_s1 + $0x11a4] ss:$16 sps:$4 sm:$0xff]  }
 0x20c   : > { %4420 = vmatprep.subr.bf16.mxu0 %v11196_v25  ;;  %4461 = vmatprep.subr.bf16.mxu1 %v11199_v51  ;;  %v11266_v25 = vld [vmem:[%s15603_s1 + $0x11a0] ss:$16 sps:$4 sm:$0xff]   ;;  %v11269_v51 = vld [vmem:[%s15603_s1 + $0x11a8] ss:$16 sps:$4 sm:$0xff]  }
 0x20d   : > { %4450 = vmatprep.mubr.bf16.mxu0 %v13747_v7  ;;  %4491 = vmatprep.mubr.bf16.mxu1 %v13747_v7 }
 0x20f   : > { %4421 = vmatpush1.bf16.msra.mxu0 %v11194_v54  ;;  %4462 = vmatpush1.bf16.msra.mxu1 %v11197_v55  ;;  %v11274_v54 = vld [vmem:[%s15603_s1 + $0x11c4] ss:$16 sps:$4 sm:$0xff]   ;;  %v11277_v55 = vld [vmem:[%s15603_s1 + $0x11cc] ss:$16 sps:$4 sm:$0xff]  }
 0x210   : > { %4422 = vmatprep.subr.bf16.mxu0 %v11202_v56  ;;  %4463 = vmatprep.subr.bf16.mxu1 %v11205_v58  ;;  %v11272_v56 = vld [vmem:[%s15603_s1 + $0x11c0] ss:$16 sps:$4 sm:$0xff]   ;;  %v11275_v58 = vld [vmem:[%s15603_s1 + $0x11c8] ss:$16 sps:$4 sm:$0xff]  }
 0x213   : > { %4423 = vmatpush1.bf16.msra.mxu0 %v11200_v62  ;;  %4464 = vmatpush1.bf16.msra.mxu1 %v11203_v63  ;;  %v11280_v62 = vld [vmem:[%s15603_s1 + $0x11e4] ss:$16 sps:$4 sm:$0xff]   ;;  %v11283_v63 = vld [vmem:[%s15603_s1 + $0x11ec] ss:$16 sps:$4 sm:$0xff]  }
 0x214   : > { %4424 = vmatprep.subr.bf16.mxu0 %v11208_v3  ;;  %4465 = vmatprep.subr.bf16.mxu1 %v11211_v8  ;;  %v4579_v3 = vshll.u32 %v13747_v7, 16  ;;  %v11278_v8 = vld [vmem:[%s15603_s1 + $0x11e0] ss:$16 sps:$4 sm:$0xff]  }
 0x217   : > { %4425 = vmatpush1.bf16.msra.mxu0 %v11206_v9  ;;  %4466 = vmatpush1.bf16.msra.mxu1 %v11209_v12  ;;  %v11281_v9 = vld [vmem:[%s15603_s1 + $0x11e8] ss:$16 sps:$4 sm:$0xff]   ;;  %v11288_v12 = vld [vmem:[%s15603_s1 + $0x1204] ss:$16 sps:$4 sm:$0xff]  }
 0x218   : > { %4426 = vmatprep.subr.bf16.mxu0 %v11214_v13  ;;  %4467 = vmatprep.subr.bf16.mxu1 %v11217_v14  ;;  %v11291_v13 = vld [vmem:[%s15603_s1 + $0x120c] ss:$16 sps:$4 sm:$0xff]   ;;  %v11286_v14 = vld [vmem:[%s15603_s1 + $0x1200] ss:$16 sps:$4 sm:$0xff]  }
 0x21b   : > { %4427 = vmatpush1.bf16.msra.mxu0 %v11212_v15  ;;  %4468 = vmatpush1.bf16.msra.mxu1 %v11215_v37  ;;  %v11289_v15 = vld [vmem:[%s15603_s1 + $0x1208] ss:$16 sps:$4 sm:$0xff]   ;;  %v4577_v37 = vshrl.u32 %v13747_v7, 16 }
 0x21c   : > { %4428 = vmatprep.subr.bf16.mxu0 %v11220_v39  ;;  %4469 = vmatprep.subr.bf16.mxu1 %v11223_v42  ;;  %v4581_v39 = vrot.slane %v4579_v3, 1  ;;  %v13955_v42 = vcombine.low %v13731_v4, %v13731_v4  ;;  %v11292_v4 = vld [vmem:[%s15603_s1 + $0x1220] ss:$16 sps:$4 sm:$0xff]  }
 0x21d   : > { %v2528_v19 = vpop.f32.mrb[16].mxu0  ;;  %v2569_v22 = vpop.f32.mrb[16].mxu1 }
 0x21e   : > { %v13818_v27 = vadd.f32 %v2528_v19, %v13601_v5  ;;  %v13821_v28 = vadd.f32 %v2569_v22, %v13604_v6  ;;  %v2530_v29 = vpop.f32.mrb[17].mxu0  ;;  %v2571_v59 = vpop.f32.mrb[17].mxu1  ;;  %v11232_v5 = vld [vmem:[%s15603_s1 + $0x10e4] ss:$16 sps:$4 sm:$0xff]   ;;  %v11235_v6 = vld [vmem:[%s15603_s1 + $0x10ec] ss:$16 sps:$4 sm:$0xff]  }
 0x21f   : > { %v13824_v60 = vadd.f32 %v2530_v29, %v13607_v10  ;;  %v13827_v0 = vadd.f32 %v2571_v59, %v13610_v11  ;;  %v2532_v1 = vpop.f32.mrb[18].mxu0  ;;  %v2573_v30 = vpop.f32.mrb[18].mxu1  ;;  %4429 = vmatpush1.bf16.msra.mxu0 %v11218_v43  ;;  %4470 = vmatpush1.bf16.msra.mxu1 %v11221_v16  ;;  %v11230_v10 = vld [vmem:[%s15603_s1 + $0x10e0] ss:$16 sps:$4 sm:$0xff]   ;;  %v11233_v11 = vld [vmem:[%s15603_s1 + $0x10e8] ss:$16 sps:$4 sm:$0xff]  }
 0x220   : > { %v2533_v52 = vpop.f32.mrb[19].mxu0  ;;  %v2574_v48 = vpop.f32.mrb[19].mxu1  ;;  %4430 = vmatprep.subr.bf16.mxu0 %v11226_v17  ;;  %4471 = vmatprep.subr.bf16.mxu1 %v11229_v18  ;;  %v11294_v43 = vld [vmem:[%s15603_s1 + $0x1224] ss:$16 sps:$4 sm:$0xff]   ;;  %v11297_v16 = vld [vmem:[%s15603_s1 + $0x122c] ss:$16 sps:$4 sm:$0xff]   ;;  %v4582_v17 = vor.u32 %v4581_v39, %v4577_v37 }
 0x221   : > { %v11295_v18 = vld [vmem:[%s15603_s1 + $0x1228] ss:$16 sps:$4 sm:$0xff]   ;;  %v11300_v19 = vld [vmem:[%s15603_s1 + $0x1244] ss:$16 sps:$4 sm:$0xff]   ;;  %v11303_v22 = vld [vmem:[%s15603_s1 + $0x124c] ss:$16 sps:$4 sm:$0xff]  }
 0x222   : > { %v11306_v29 = vld [vmem:[%s15603_s1 + $0x1264] ss:$16 sps:$4 sm:$0xff]   ;;  %v11309_v59 = vld [vmem:[%s15603_s1 + $0x126c] ss:$16 sps:$4 sm:$0xff]   ;;  %v11304_v1 = vld [vmem:[%s15603_s1 + $0x1260] ss:$16 sps:$4 sm:$0xff]  }
 0x223   : > { %4431 = vmatpush1.bf16.msra.mxu0 %v11224_v23  ;;  %4472 = vmatpush1.bf16.msra.mxu1 %v11227_v26  ;;  %v11298_v23 = vld [vmem:[%s15603_s1 + $0x1240] ss:$16 sps:$4 sm:$0xff]   ;;  %v11301_v26 = vld [vmem:[%s15603_s1 + $0x1248] ss:$16 sps:$4 sm:$0xff]   ;;  %v11312_v52 = vld [vmem:[%s15603_s1 + $0x1284] ss:$16 sps:$4 sm:$0xff]  }
 0x224   : > { %4432 = vmatprep.subr.bf16.mxu0 %v11232_v5  ;;  %4473 = vmatprep.subr.bf16.mxu1 %v11235_v6  ;;  %v11307_v30 = vld [vmem:[%s15603_s1 + $0x1268] ss:$16 sps:$4 sm:$0xff]   ;;  %v11315_v48 = vld [vmem:[%s15603_s1 + $0x128c] ss:$16 sps:$4 sm:$0xff]   ;;  %v11310_v5 = vld [vmem:[%s15603_s1 + $0x1280] ss:$16 sps:$4 sm:$0xff]  }
 0x225   : > { %v11313_v6 = vld [vmem:[%s15603_s1 + $0x1288] ss:$16 sps:$4 sm:$0xff]   ;;  %v11358_v39 = vld [vmem:[%s15603_s1 + $0x1380] ss:$16 sps:$4 sm:$0xff]  }
 0x227   : > { %4433 = vmatpush1.bf16.msra.mxu0 %v11230_v10  ;;  %4474 = vmatpush1.bf16.msra.mxu1 %v11233_v11  ;;  %v11318_v10 = vld [vmem:[%s15603_s1 + $0x12a4] ss:$16 sps:$4 sm:$0xff]   ;;  %v11321_v11 = vld [vmem:[%s15603_s1 + $0x12ac] ss:$16 sps:$4 sm:$0xff]  }
 0x228   : > { %4434 = vmatprep.subr.bf16.mxu0 %v11238_v53  ;;  %4475 = vmatprep.subr.bf16.mxu1 %v11241_v61  ;;  %v11316_v53 = vld [vmem:[%s15603_s1 + $0x12a0] ss:$16 sps:$4 sm:$0xff]   ;;  %v11319_v61 = vld [vmem:[%s15603_s1 + $0x12a8] ss:$16 sps:$4 sm:$0xff]  }
 0x22b   : > { %4435 = vmatpush1.bf16.msra.mxu0 %v11236_v2  ;;  %4476 = vmatpush1.bf16.msra.mxu1 %v11239_v31  ;;  %v11324_v2 = vld [vmem:[%s15603_s1 + $0x12c4] ss:$16 sps:$4 sm:$0xff]   ;;  %v11327_v31 = vld [vmem:[%s15603_s1 + $0x12cc] ss:$16 sps:$4 sm:$0xff]  }
 0x22c   : > { %4436 = vmatprep.subr.bf16.mxu0 %v11244_v45  ;;  %4477 = vmatprep.subr.bf16.mxu1 %v11247_v35 }
 0x22f   : > { %4437 = vmatpush1.bf16.msra.mxu0 %v11242_v38  ;;  %4478 = vmatpush1.bf16.msra.mxu1 %v11245_v32 }
 0x230   : > { %4438 = vmatprep.subr.bf16.mxu0 %v11250_v33  ;;  %4479 = vmatprep.subr.bf16.mxu1 %v11253_v34 }
 0x233   : > { %4439 = vmatpush1.bf16.msra.mxu0 %v11248_v36  ;;  %4480 = vmatpush1.bf16.msra.mxu1 %v11251_v40 }
 0x234   : > { %4440 = vmatprep.subr.bf16.mxu0 %v11256_v41  ;;  %4481 = vmatprep.subr.bf16.mxu1 %v11259_v44 }
 0x237   : > { %4441 = vmatpush1.bf16.msra.mxu0 %v11254_v46  ;;  %4482 = vmatpush1.bf16.msra.mxu1 %v11257_v49 }
 0x238   : > { %4442 = vmatprep.subr.bf16.mxu0 %v11262_v50  ;;  %4483 = vmatprep.subr.bf16.mxu1 %v11265_v20  ;;  %v11328_v50 = vld [vmem:[%s15603_s1 + $0x12e0] ss:$16 sps:$4 sm:$0xff]   ;;  %v11331_v20 = vld [vmem:[%s15603_s1 + $0x12e8] ss:$16 sps:$4 sm:$0xff]  }
 0x23b   : > { %4443 = vmatpush1.bf16.msra.mxu0 %v11260_v21  ;;  %4484 = vmatpush1.bf16.msra.mxu1 %v11263_v47  ;;  %v11336_v21 = vld [vmem:[%s15603_s1 + $0x1304] ss:$16 sps:$4 sm:$0xff]   ;;  %v11339_v47 = vld [vmem:[%s15603_s1 + $0x130c] ss:$16 sps:$4 sm:$0xff]  }
 0x23c   : > { %4444 = vmatprep.subr.bf16.mxu0 %v11268_v57  ;;  %4485 = vmatprep.subr.bf16.mxu1 %v11271_v24  ;;  %v11334_v57 = vld [vmem:[%s15603_s1 + $0x1300] ss:$16 sps:$4 sm:$0xff]   ;;  %v11337_v24 = vld [vmem:[%s15603_s1 + $0x1308] ss:$16 sps:$4 sm:$0xff]  }
 0x23f   : > { %4445 = vmatpush1.bf16.msra.mxu0 %v11266_v25  ;;  %4486 = vmatpush1.bf16.msra.mxu1 %v11269_v51  ;;  %v11342_v25 = vld [vmem:[%s15603_s1 + $0x1324] ss:$16 sps:$4 sm:$0xff]   ;;  %v11345_v51 = vld [vmem:[%s15603_s1 + $0x132c] ss:$16 sps:$4 sm:$0xff]  }
 0x240   : > { %4446 = vmatprep.subr.bf16.mxu0 %v11274_v54  ;;  %4487 = vmatprep.subr.bf16.mxu1 %v11277_v55  ;;  %v11340_v54 = vld [vmem:[%s15603_s1 + $0x1320] ss:$16 sps:$4 sm:$0xff]   ;;  %v11343_v55 = vld [vmem:[%s15603_s1 + $0x1328] ss:$16 sps:$4 sm:$0xff]  }
 0x243   : > { %4447 = vmatpush1.bf16.msra.mxu0 %v11272_v56  ;;  %4488 = vmatpush1.bf16.msra.mxu1 %v11275_v58  ;;  %v11348_v56 = vld [vmem:[%s15603_s1 + $0x1344] ss:$16 sps:$4 sm:$0xff]   ;;  %v11351_v58 = vld [vmem:[%s15603_s1 + $0x134c] ss:$16 sps:$4 sm:$0xff]  }
 0x244   : > { %4448 = vmatprep.subr.bf16.mxu0 %v11280_v62  ;;  %4489 = vmatprep.subr.bf16.mxu1 %v11283_v63  ;;  %v11346_v62 = vld [vmem:[%s15603_s1 + $0x1340] ss:$16 sps:$4 sm:$0xff]   ;;  %v11349_v63 = vld [vmem:[%s15603_s1 + $0x1348] ss:$16 sps:$4 sm:$0xff]  }
 0x247   : > { %4449 = vmatpush1.bf16.msra.mxu0 %v11278_v8  ;;  %4490 = vmatpush1.bf16.msra.mxu1 %v11281_v9  ;;  %v11354_v8 = vld [vmem:[%s15603_s1 + $0x1364] ss:$16 sps:$4 sm:$0xff]   ;;  %v11357_v9 = vld [vmem:[%s15603_s1 + $0x136c] ss:$16 sps:$4 sm:$0xff]  }
 0x248   : > { %4905 = vmatprep.subr.bf16.mxu0 %v11288_v12  ;;  %4946 = vmatprep.subr.bf16.mxu1 %v11291_v13  ;;  %v11352_v12 = vld [vmem:[%s15603_s1 + $0x1360] ss:$16 sps:$4 sm:$0xff]   ;;  %v11355_v13 = vld [vmem:[%s15603_s1 + $0x1368] ss:$16 sps:$4 sm:$0xff]  }
 0x24a   : > { %4451 = vmatmul.mubr.bf16.vlgmr.msra.gmra.mrb[32].mxu0 %v13955_v42  ;;  %4492 = vmatmul.mubr.bf16.vlgmr.msra.gmra.mrb[32].mxu1 %v13955_v42 }
 0x24b   : > { %4906 = vmatpush1.bf16.msra.mxu0 %v11286_v14  ;;  %4947 = vmatpush1.bf16.msra.mxu1 %v11289_v15  ;;  %v11360_v14 = vld [vmem:[%s15603_s1 + $0x1384] ss:$16 sps:$4 sm:$0xff]   ;;  %v11363_v15 = vld [vmem:[%s15603_s1 + $0x138c] ss:$16 sps:$4 sm:$0xff]  }
 0x24c   : > { %4907 = vmatprep.subr.bf16.mxu0 %v11294_v43  ;;  %4948 = vmatprep.subr.bf16.mxu1 %v11297_v16  ;;  %v11361_v43 = vld [vmem:[%s15603_s1 + $0x1388] ss:$16 sps:$4 sm:$0xff]   ;;  %v11366_v16 = vld [vmem:[%s15603_s1 + $0x13a4] ss:$16 sps:$4 sm:$0xff]  }
 0x24d   : > { %4937 = vmatprep.mubr.bf16.mxu0 %v4582_v17  ;;  %4978 = vmatprep.mubr.bf16.mxu1 %v4582_v17  ;;  %v11369_v17 = vld [vmem:[%s15603_s1 + $0x13ac] ss:$16 sps:$4 sm:$0xff]  }
 0x24f   : > { %4908 = vmatpush1.bf16.msra.mxu0 %v11292_v4  ;;  %4949 = vmatpush1.bf16.msra.mxu1 %v11295_v18  ;;  %v11364_v4 = vld [vmem:[%s15603_s1 + $0x13a0] ss:$16 sps:$4 sm:$0xff]   ;;  %v11367_v18 = vld [vmem:[%s15603_s1 + $0x13a8] ss:$16 sps:$4 sm:$0xff]  }
 0x250   : > { %4909 = vmatprep.subr.bf16.mxu0 %v11300_v19  ;;  %4950 = vmatprep.subr.bf16.mxu1 %v11303_v22  ;;  %v11372_v19 = vld [vmem:[%s15603_s1 + $0x13c4] ss:$16 sps:$4 sm:$0xff]   ;;  %v11375_v22 = vld [vmem:[%s15603_s1 + $0x13cc] ss:$16 sps:$4 sm:$0xff]  }
 0x253   : > { %4910 = vmatpush1.bf16.msra.mxu0 %v11298_v23  ;;  %4951 = vmatpush1.bf16.msra.mxu1 %v11301_v26  ;;  %v4572_v23 = vshll.u32 %v13955_v42, 16  ;;  %v11370_v26 = vld [vmem:[%s15603_s1 + $0x13c0] ss:$16 sps:$4 sm:$0xff]  }
 0x254   : > { %4911 = vmatprep.subr.bf16.mxu0 %v11306_v29  ;;  %4952 = vmatprep.subr.bf16.mxu1 %v11309_v59  ;;  %v11373_v29 = vld [vmem:[%s15603_s1 + $0x13c8] ss:$16 sps:$4 sm:$0xff]   ;;  %v11378_v59 = vld [vmem:[%s15603_s1 + $0x13e4] ss:$16 sps:$4 sm:$0xff]  }
 0x257   : > { %4912 = vmatpush1.bf16.msra.mxu0 %v11304_v1  ;;  %4953 = vmatpush1.bf16.msra.mxu1 %v11307_v30  ;;  %v11381_v1 = vld [vmem:[%s15603_s1 + $0x13ec] ss:$16 sps:$4 sm:$0xff]   ;;  %v4570_v30 = vshrl.u32 %v13955_v42, 16 }
 0x258   : > { %4913 = vmatprep.subr.bf16.mxu0 %v11312_v52  ;;  %4954 = vmatprep.subr.bf16.mxu1 %v11315_v48  ;;  %v4574_v52 = vrot.slane %v4572_v23, 1  ;;  %v11376_v48 = vld [vmem:[%s15603_s1 + $0x13e0] ss:$16 sps:$4 sm:$0xff]  }
 0x25b   : > { %4914 = vmatpush1.bf16.msra.mxu0 %v11310_v5  ;;  %4955 = vmatpush1.bf16.msra.mxu1 %v11313_v6  ;;  %v11379_v5 = vld [vmem:[%s15603_s1 + $0x13e8] ss:$16 sps:$4 sm:$0xff]   ;;  %v11384_v6 = vld [vmem:[%s15603_s1 + $0x1404] ss:$16 sps:$4 sm:$0xff]  }
 0x25c   : > { %4915 = vmatprep.subr.bf16.mxu0 %v11318_v10  ;;  %4956 = vmatprep.subr.bf16.mxu1 %v11321_v11  ;;  %v11387_v10 = vld [vmem:[%s15603_s1 + $0x140c] ss:$16 sps:$4 sm:$0xff]   ;;  %v4575_v11 = vor.u32 %v4574_v52, %v4570_v30 }
 0x25d   : > { %v3015_v45 = vpop.f32.mrb[20].mxu0  ;;  %v3056_v35 = vpop.f32.mrb[20].mxu1  ;;  %v11447_v52 = vld [vmem:[%s15603_s1 + $0x154c] ss:$16 sps:$4 sm:$0xff]  }
 0x25e   : > { %v14028_v38 = vadd.f32 %v3015_v45, %v13818_v27  ;;  %v14031_v32 = vadd.f32 %v3056_v35, %v13821_v28  ;;  %v3017_v33 = vpop.f32.mrb[21].mxu0  ;;  %v3058_v34 = vpop.f32.mrb[21].mxu1  ;;  %v11322_v27 = vld [vmem:[%s15603_s1 + $0x12c0] ss:$16 sps:$4 sm:$0xff]   ;;  %v11325_v28 = vld [vmem:[%s15603_s1 + $0x12c8] ss:$16 sps:$4 sm:$0xff]  }
 0x25f   : > { %v14034_v36 = vadd.f32 %v3017_v33, %v13824_v60  ;;  %v14037_v40 = vadd.f32 %v3058_v34, %v13827_v0  ;;  %v3019_v41 = vpop.f32.mrb[22].mxu0  ;;  %v3060_v44 = vpop.f32.mrb[22].mxu1  ;;  %4916 = vmatpush1.bf16.msra.mxu0 %v11316_v53  ;;  %4957 = vmatpush1.bf16.msra.mxu1 %v11319_v61  ;;  %v11330_v60 = vld [vmem:[%s15603_s1 + $0x12e4] ss:$16 sps:$4 sm:$0xff]   ;;  %v11333_v0 = vld [vmem:[%s15603_s1 + $0x12ec] ss:$16 sps:$4 sm:$0xff]  }
 0x260   : > { %v3020_v46 = vpop.f32.mrb[23].mxu0  ;;  %v3061_v49 = vpop.f32.mrb[23].mxu1  ;;  %4917 = vmatprep.subr.bf16.mxu0 %v11324_v2  ;;  %4958 = vmatprep.subr.bf16.mxu1 %v11327_v31  ;;  %v11382_v53 = vld [vmem:[%s15603_s1 + $0x1400] ss:$16 sps:$4 sm:$0xff]   ;;  %v11385_v61 = vld [vmem:[%s15603_s1 + $0x1408] ss:$16 sps:$4 sm:$0xff]  }
 0x261   : > { %v11390_v2 = vld [vmem:[%s15603_s1 + $0x1424] ss:$16 sps:$4 sm:$0xff]   ;;  %v11393_v31 = vld [vmem:[%s15603_s1 + $0x142c] ss:$16 sps:$4 sm:$0xff]   ;;  %v5057_v45 = vrot.slane %v13747_v7, 1 }
 0x262   : > { %v11388_v35 = vld [vmem:[%s15603_s1 + $0x1420] ss:$16 sps:$4 sm:$0xff]   ;;  %v11391_v33 = vld [vmem:[%s15603_s1 + $0x1428] ss:$16 sps:$4 sm:$0xff]   ;;  %v11396_v34 = vld [vmem:[%s15603_s1 + $0x1444] ss:$16 sps:$4 sm:$0xff]  }
 0x263   : > { %4918 = vmatpush1.bf16.msra.mxu0 %v11322_v27  ;;  %4959 = vmatpush1.bf16.msra.mxu1 %v11325_v28  ;;  %v11399_v41 = vld [vmem:[%s15603_s1 + $0x144c] ss:$16 sps:$4 sm:$0xff]   ;;  %v11394_v44 = vld [vmem:[%s15603_s1 + $0x1440] ss:$16 sps:$4 sm:$0xff]   ;;  %v11397_v27 = vld [vmem:[%s15603_s1 + $0x1448] ss:$16 sps:$4 sm:$0xff]  }
 0x264   : > { %4919 = vmatprep.subr.bf16.mxu0 %v11330_v60  ;;  %4960 = vmatprep.subr.bf16.mxu1 %v11333_v0  ;;  %v11402_v28 = vld [vmem:[%s15603_s1 + $0x1464] ss:$16 sps:$4 sm:$0xff]   ;;  %v11405_v46 = vld [vmem:[%s15603_s1 + $0x146c] ss:$16 sps:$4 sm:$0xff]   ;;  %v11400_v49 = vld [vmem:[%s15603_s1 + $0x1460] ss:$16 sps:$4 sm:$0xff]  }
 0x265   : > { %v11403_v60 = vld [vmem:[%s15603_s1 + $0x1468] ss:$16 sps:$4 sm:$0xff]   ;;  %v11408_v0 = vld [vmem:[%s15603_s1 + $0x1484] ss:$16 sps:$4 sm:$0xff]   ;;  %v11489_v7 = vld [vmem:[%s15603_s1 + $0x162c] ss:$16 sps:$4 sm:$0xff]  }
 0x267   : > { %4920 = vmatpush1.bf16.msra.mxu0 %v11328_v50  ;;  %4961 = vmatpush1.bf16.msra.mxu1 %v11331_v20  ;;  %v11411_v50 = vld [vmem:[%s15603_s1 + $0x148c] ss:$16 sps:$4 sm:$0xff]   ;;  %v11406_v20 = vld [vmem:[%s15603_s1 + $0x1480] ss:$16 sps:$4 sm:$0xff]  }
 0x268   : > { %4921 = vmatprep.subr.bf16.mxu0 %v11336_v21  ;;  %4962 = vmatprep.subr.bf16.mxu1 %v11339_v47  ;;  %v11409_v21 = vld [vmem:[%s15603_s1 + $0x1488] ss:$16 sps:$4 sm:$0xff]   ;;  %v11414_v47 = vld [vmem:[%s15603_s1 + $0x14a4] ss:$16 sps:$4 sm:$0xff]  }
 0x26b   : > { %4922 = vmatpush1.bf16.msra.mxu0 %v11334_v57  ;;  %4963 = vmatpush1.bf16.msra.mxu1 %v11337_v24  ;;  %v11417_v57 = vld [vmem:[%s15603_s1 + $0x14ac] ss:$16 sps:$4 sm:$0xff]   ;;  %v11412_v24 = vld [vmem:[%s15603_s1 + $0x14a0] ss:$16 sps:$4 sm:$0xff]  }
 0x26c   : > { %4923 = vmatprep.subr.bf16.mxu0 %v11342_v25  ;;  %4964 = vmatprep.subr.bf16.mxu1 %v11345_v51  ;;  %v11415_v25 = vld [vmem:[%s15603_s1 + $0x14a8] ss:$16 sps:$4 sm:$0xff]   ;;  %v11420_v51 = vld [vmem:[%s15603_s1 + $0x14c4] ss:$16 sps:$4 sm:$0xff]  }
 0x26f   : > { %4924 = vmatpush1.bf16.msra.mxu0 %v11340_v54  ;;  %4965 = vmatpush1.bf16.msra.mxu1 %v11343_v55  ;;  %v11423_v54 = vld [vmem:[%s15603_s1 + $0x14cc] ss:$16 sps:$4 sm:$0xff]  }
 0x270   : > { %4925 = vmatprep.subr.bf16.mxu0 %v11348_v56  ;;  %4966 = vmatprep.subr.bf16.mxu1 %v11351_v58 }
 0x273   : > { %4926 = vmatpush1.bf16.msra.mxu0 %v11346_v62  ;;  %4967 = vmatpush1.bf16.msra.mxu1 %v11349_v63 }
 0x274   : > { %4927 = vmatprep.subr.bf16.mxu0 %v11354_v8  ;;  %4968 = vmatprep.subr.bf16.mxu1 %v11357_v9 }
 0x277   : > { %4928 = vmatpush1.bf16.msra.mxu0 %v11352_v12  ;;  %4969 = vmatpush1.bf16.msra.mxu1 %v11355_v13 }
 0x278   : > { %4929 = vmatprep.subr.bf16.mxu0 %v11360_v14  ;;  %4970 = vmatprep.subr.bf16.mxu1 %v11363_v15 }
 0x27b   : > { %4930 = vmatpush1.bf16.msra.mxu0 %v11358_v39  ;;  %4971 = vmatpush1.bf16.msra.mxu1 %v11361_v43  ;;  %v11424_v43 = vld [vmem:[%s15603_s1 + $0x14e0] ss:$16 sps:$4 sm:$0xff]  }
 0x27c   : > { %4931 = vmatprep.subr.bf16.mxu0 %v11366_v16  ;;  %4972 = vmatprep.subr.bf16.mxu1 %v11369_v17  ;;  %v11427_v16 = vld [vmem:[%s15603_s1 + $0x14e8] ss:$16 sps:$4 sm:$0xff]   ;;  %v11432_v17 = vld [vmem:[%s15603_s1 + $0x1504] ss:$16 sps:$4 sm:$0xff]  }
 0x27f   : > { %4932 = vmatpush1.bf16.msra.mxu0 %v11364_v4  ;;  %4973 = vmatpush1.bf16.msra.mxu1 %v11367_v18  ;;  %v11435_v4 = vld [vmem:[%s15603_s1 + $0x150c] ss:$16 sps:$4 sm:$0xff]   ;;  %v11430_v18 = vld [vmem:[%s15603_s1 + $0x1500] ss:$16 sps:$4 sm:$0xff]  }
 0x280   : > { %4933 = vmatprep.subr.bf16.mxu0 %v11372_v19  ;;  %4974 = vmatprep.subr.bf16.mxu1 %v11375_v22  ;;  %v11433_v19 = vld [vmem:[%s15603_s1 + $0x1508] ss:$16 sps:$4 sm:$0xff]   ;;  %v11438_v22 = vld [vmem:[%s15603_s1 + $0x1524] ss:$16 sps:$4 sm:$0xff]  }
 0x283   : > { %4934 = vmatpush1.bf16.msra.mxu0 %v11370_v26  ;;  %4975 = vmatpush1.bf16.msra.mxu1 %v11373_v29  ;;  %v11441_v26 = vld [vmem:[%s15603_s1 + $0x152c] ss:$16 sps:$4 sm:$0xff]   ;;  %v11436_v29 = vld [vmem:[%s15603_s1 + $0x1520] ss:$16 sps:$4 sm:$0xff]  }
 0x284   : > { %4935 = vmatprep.subr.bf16.mxu0 %v11378_v59  ;;  %4976 = vmatprep.subr.bf16.mxu1 %v11381_v1  ;;  %v11439_v59 = vld [vmem:[%s15603_s1 + $0x1528] ss:$16 sps:$4 sm:$0xff]   ;;  %v11444_v1 = vld [vmem:[%s15603_s1 + $0x1544] ss:$16 sps:$4 sm:$0xff]  }
 0x287   : > { %4936 = vmatpush1.bf16.msra.mxu0 %v11376_v48  ;;  %4977 = vmatpush1.bf16.msra.mxu1 %v11379_v5  ;;  %v11442_v48 = vld [vmem:[%s15603_s1 + $0x1540] ss:$16 sps:$4 sm:$0xff]   ;;  %v11445_v5 = vld [vmem:[%s15603_s1 + $0x1548] ss:$16 sps:$4 sm:$0xff]  }
 0x288   : > { %5380 = vmatprep.subr.bf16.mxu0 %v11384_v6  ;;  %5421 = vmatprep.subr.bf16.mxu1 %v11387_v10  ;;  %v11450_v6 = vld [vmem:[%s15603_s1 + $0x1564] ss:$16 sps:$4 sm:$0xff]   ;;  %v11453_v10 = vld [vmem:[%s15603_s1 + $0x156c] ss:$16 sps:$4 sm:$0xff]  }
 0x28a   : > { %4938 = vmatmul.mubr.bf16.vlgmr.msra.gmra.mrb[36].mxu0 %v4575_v11  ;;  %4979 = vmatmul.mubr.bf16.vlgmr.msra.gmra.mrb[36].mxu1 %v4575_v11  ;;  %v11448_v11 = vld [vmem:[%s15603_s1 + $0x1560] ss:$16 sps:$4 sm:$0xff]  }
 0x28b   : > { %5381 = vmatpush1.bf16.msra.mxu0 %v11382_v53  ;;  %5422 = vmatpush1.bf16.msra.mxu1 %v11385_v61  ;;  %v11451_v53 = vld [vmem:[%s15603_s1 + $0x1568] ss:$16 sps:$4 sm:$0xff]   ;;  %v11456_v61 = vld [vmem:[%s15603_s1 + $0x1584] ss:$16 sps:$4 sm:$0xff]  }
 0x28c   : > { %5382 = vmatprep.subr.bf16.mxu0 %v11390_v2  ;;  %5423 = vmatprep.subr.bf16.mxu1 %v11393_v31  ;;  %v11459_v2 = vld [vmem:[%s15603_s1 + $0x158c] ss:$16 sps:$4 sm:$0xff]   ;;  %v11454_v31 = vld [vmem:[%s15603_s1 + $0x1580] ss:$16 sps:$4 sm:$0xff]  }
 0x28d   : > { %5412 = vmatprep.mubr.bf16.mxu0 %v5057_v45  ;;  %5453 = vmatprep.mubr.bf16.mxu1 %v5057_v45  ;;  %v11457_v45 = vld [vmem:[%s15603_s1 + $0x1588] ss:$16 sps:$4 sm:$0xff]  }
 0x28f   : > { %5383 = vmatpush1.bf16.msra.mxu0 %v11388_v35  ;;  %5424 = vmatpush1.bf16.msra.mxu1 %v11391_v33  ;;  %v11462_v35 = vld [vmem:[%s15603_s1 + $0x15a4] ss:$16 sps:$4 sm:$0xff]   ;;  %v11465_v33 = vld [vmem:[%s15603_s1 + $0x15ac] ss:$16 sps:$4 sm:$0xff]  }
 0x290   : > { %5384 = vmatprep.subr.bf16.mxu0 %v11396_v34  ;;  %5425 = vmatprep.subr.bf16.mxu1 %v11399_v41  ;;  %v11460_v34 = vld [vmem:[%s15603_s1 + $0x15a0] ss:$16 sps:$4 sm:$0xff]   ;;  %v11463_v41 = vld [vmem:[%s15603_s1 + $0x15a8] ss:$16 sps:$4 sm:$0xff]  }
 0x293   : > { %5385 = vmatpush1.bf16.msra.mxu0 %v11394_v44  ;;  %5426 = vmatpush1.bf16.msra.mxu1 %v11397_v27  ;;  %v11468_v44 = vld [vmem:[%s15603_s1 + $0x15c4] ss:$16 sps:$4 sm:$0xff]   ;;  %v11471_v27 = vld [vmem:[%s15603_s1 + $0x15cc] ss:$16 sps:$4 sm:$0xff]  }
 0x294   : > { %5386 = vmatprep.subr.bf16.mxu0 %v11402_v28  ;;  %5427 = vmatprep.subr.bf16.mxu1 %v11405_v46  ;;  %v11466_v28 = vld [vmem:[%s15603_s1 + $0x15c0] ss:$16 sps:$4 sm:$0xff]   ;;  %v11469_v46 = vld [vmem:[%s15603_s1 + $0x15c8] ss:$16 sps:$4 sm:$0xff]  }
 0x297   : > { %5387 = vmatpush1.bf16.msra.mxu0 %v11400_v49  ;;  %5428 = vmatpush1.bf16.msra.mxu1 %v11403_v60  ;;  %v11474_v49 = vld [vmem:[%s15603_s1 + $0x15e4] ss:$16 sps:$4 sm:$0xff]   ;;  %v11477_v60 = vld [vmem:[%s15603_s1 + $0x15ec] ss:$16 sps:$4 sm:$0xff]  }
 0x298   : > { %5388 = vmatprep.subr.bf16.mxu0 %v11408_v0  ;;  %5429 = vmatprep.subr.bf16.mxu1 %v11411_v50  ;;  %v11472_v0 = vld [vmem:[%s15603_s1 + $0x15e0] ss:$16 sps:$4 sm:$0xff]   ;;  %v11475_v50 = vld [vmem:[%s15603_s1 + $0x15e8] ss:$16 sps:$4 sm:$0xff]  }
 0x29b   : > { %5389 = vmatpush1.bf16.msra.mxu0 %v11406_v20  ;;  %5430 = vmatpush1.bf16.msra.mxu1 %v11409_v21  ;;  %v11480_v20 = vld [vmem:[%s15603_s1 + $0x1604] ss:$16 sps:$4 sm:$0xff]   ;;  %v11483_v21 = vld [vmem:[%s15603_s1 + $0x160c] ss:$16 sps:$4 sm:$0xff]  }
 0x29c   : > { %5390 = vmatprep.subr.bf16.mxu0 %v11414_v47  ;;  %5431 = vmatprep.subr.bf16.mxu1 %v11417_v57  ;;  %v5534_v47 = vrot.slane %v4577_v37, 1  ;;  %v5535_v57 = vrot.slane %v4579_v3, 2  ;;  %v11486_v37 = vld [vmem:[%s15603_s1 + $0x1624] ss:$16 sps:$4 sm:$0xff]  }
 0x29d   : > { %v3490_v55 = vpop.f32.mrb[24].mxu0  ;;  %v3531_v56 = vpop.f32.mrb[24].mxu1 }
 0x29e   : > { %v14239_v58 = vadd.f32 %v3490_v55, %v14028_v38  ;;  %v14242_v62 = vadd.f32 %v3531_v56, %v14031_v32  ;;  %v3492_v63 = vpop.f32.mrb[25].mxu0  ;;  %v3533_v8 = vpop.f32.mrb[25].mxu1  ;;  %v11418_v38 = vld [vmem:[%s15603_s1 + $0x14c0] ss:$16 sps:$4 sm:$0xff]   ;;  %v11421_v32 = vld [vmem:[%s15603_s1 + $0x14c8] ss:$16 sps:$4 sm:$0xff]   ;;  %v5536_v3 = vor.u32 %v5535_v57, %v5534_v47 }
 0x29f   : > { %v14245_v9 = vadd.f32 %v3492_v63, %v14034_v36  ;;  %v14248_v12 = vadd.f32 %v3533_v8, %v14037_v40  ;;  %v3494_v13 = vpop.f32.mrb[26].mxu0  ;;  %v3535_v14 = vpop.f32.mrb[26].mxu1  ;;  %5391 = vmatpush1.bf16.msra.mxu0 %v11412_v24  ;;  %5432 = vmatpush1.bf16.msra.mxu1 %v11415_v25  ;;  %v11426_v36 = vld [vmem:[%s15603_s1 + $0x14e4] ss:$16 sps:$4 sm:$0xff]   ;;  %v11429_v40 = vld [vmem:[%s15603_s1 + $0x14ec] ss:$16 sps:$4 sm:$0xff]  }
 0x2a0   : > { %v3495_v15 = vpop.f32.mrb[27].mxu0  ;;  %v3536_v39 = vpop.f32.mrb[27].mxu1  ;;  %5392 = vmatprep.subr.bf16.mxu0 %v11420_v51  ;;  %5433 = vmatprep.subr.bf16.mxu1 %v11423_v54  ;;  %v5056_v24 = vrot.slane %v13955_v42, 1  ;;  %v11478_v25 = vld [vmem:[%s15603_s1 + $0x1600] ss:$16 sps:$4 sm:$0xff]  }
 0x2a1   : > { %v11481_v51 = vld [vmem:[%s15603_s1 + $0x1608] ss:$16 sps:$4 sm:$0xff]   ;;  %v11484_v54 = vld [vmem:[%s15603_s1 + $0x1620] ss:$16 sps:$4 sm:$0xff]   ;;  %v11492_v56 = vld [vmem:[%s15603_s1 + $0x1644] ss:$16 sps:$4 sm:$0xff]  }
 0x2a2   : > { %v11487_v55 = vld [vmem:[%s15603_s1 + $0x1628] ss:$16 sps:$4 sm:$0xff]   ;;  %v11495_v63 = vld [vmem:[%s15603_s1 + $0x164c] ss:$16 sps:$4 sm:$0xff]   ;;  %v11490_v8 = vld [vmem:[%s15603_s1 + $0x1640] ss:$16 sps:$4 sm:$0xff]  }
 0x2a3   : > { %5393 = vmatpush1.bf16.msra.mxu0 %v11418_v38  ;;  %5434 = vmatpush1.bf16.msra.mxu1 %v11421_v32  ;;  %v11493_v13 = vld [vmem:[%s15603_s1 + $0x1648] ss:$16 sps:$4 sm:$0xff]   ;;  %v11498_v14 = vld [vmem:[%s15603_s1 + $0x1664] ss:$16 sps:$4 sm:$0xff]   ;;  %v11501_v38 = vld [vmem:[%s15603_s1 + $0x166c] ss:$16 sps:$4 sm:$0xff]  }
 0x2a4   : > { %5394 = vmatprep.subr.bf16.mxu0 %v11426_v36  ;;  %5435 = vmatprep.subr.bf16.mxu1 %v11429_v40  ;;  %v11496_v32 = vld [vmem:[%s15603_s1 + $0x1660] ss:$16 sps:$4 sm:$0xff]   ;;  %v11499_v15 = vld [vmem:[%s15603_s1 + $0x1668] ss:$16 sps:$4 sm:$0xff]   ;;  %v11504_v39 = vld [vmem:[%s15603_s1 + $0x1684] ss:$16 sps:$4 sm:$0xff]  }
 0x2a5   : > { %v11507_v36 = vld [vmem:[%s15603_s1 + $0x168c] ss:$16 sps:$4 sm:$0xff]   ;;  %v11502_v40 = vld [vmem:[%s15603_s1 + $0x1680] ss:$16 sps:$4 sm:$0xff]   ;;  %v11547_v47 = vld [vmem:[%s15603_s1 + $0x1768] ss:$16 sps:$4 sm:$0xff]  }
 0x2a6   : > { %v11552_v57 = vld [vmem:[%s15603_s1 + $0x1784] ss:$16 sps:$4 sm:$0xff]   ;;  %v11579_v42 = vld [vmem:[%s15603_s1 + $0x180c] ss:$16 sps:$4 sm:$0xff]  }
 0x2a7   : > { %5395 = vmatpush1.bf16.msra.mxu0 %v11424_v43  ;;  %5436 = vmatpush1.bf16.msra.mxu1 %v11427_v16  ;;  %v11505_v43 = vld [vmem:[%s15603_s1 + $0x1688] ss:$16 sps:$4 sm:$0xff]   ;;  %v11510_v16 = vld [vmem:[%s15603_s1 + $0x16a4] ss:$16 sps:$4 sm:$0xff]  }
 0x2a8   : > { %5396 = vmatprep.subr.bf16.mxu0 %v11432_v17  ;;  %5437 = vmatprep.subr.bf16.mxu1 %v11435_v4  ;;  %v11513_v17 = vld [vmem:[%s15603_s1 + $0x16ac] ss:$16 sps:$4 sm:$0xff]   ;;  %v11508_v4 = vld [vmem:[%s15603_s1 + $0x16a0] ss:$16 sps:$4 sm:$0xff]  }
 0x2ab   : > { %5397 = vmatpush1.bf16.msra.mxu0 %v11430_v18  ;;  %5438 = vmatpush1.bf16.msra.mxu1 %v11433_v19  ;;  %v11511_v18 = vld [vmem:[%s15603_s1 + $0x16a8] ss:$16 sps:$4 sm:$0xff]   ;;  %v11516_v19 = vld [vmem:[%s15603_s1 + $0x16c4] ss:$16 sps:$4 sm:$0xff]  }
 0x2ac   : > { %5398 = vmatprep.subr.bf16.mxu0 %v11438_v22  ;;  %5439 = vmatprep.subr.bf16.mxu1 %v11441_v26  ;;  %v11519_v22 = vld [vmem:[%s15603_s1 + $0x16cc] ss:$16 sps:$4 sm:$0xff]  }
 0x2af   : > { %5399 = vmatpush1.bf16.msra.mxu0 %v11436_v29  ;;  %5440 = vmatpush1.bf16.msra.mxu1 %v11439_v59 }
 0x2b0   : > { %5400 = vmatprep.subr.bf16.mxu0 %v11444_v1  ;;  %5441 = vmatprep.subr.bf16.mxu1 %v11447_v52 }
 0x2b3   : > { %5401 = vmatpush1.bf16.msra.mxu0 %v11442_v48  ;;  %5442 = vmatpush1.bf16.msra.mxu1 %v11445_v5 }
 0x2b4   : > { %5402 = vmatprep.subr.bf16.mxu0 %v11450_v6  ;;  %5443 = vmatprep.subr.bf16.mxu1 %v11453_v10 }
 0x2b7   : > { %5403 = vmatpush1.bf16.msra.mxu0 %v11448_v11  ;;  %5444 = vmatpush1.bf16.msra.mxu1 %v11451_v53 }
 0x2b8   : > { %5404 = vmatprep.subr.bf16.mxu0 %v11456_v61  ;;  %5445 = vmatprep.subr.bf16.mxu1 %v11459_v2  ;;  %v11520_v2 = vld [vmem:[%s15603_s1 + $0x16e0] ss:$16 sps:$4 sm:$0xff]  }
 0x2bb   : > { %5405 = vmatpush1.bf16.msra.mxu0 %v11454_v31  ;;  %5446 = vmatpush1.bf16.msra.mxu1 %v11457_v45  ;;  %v11523_v31 = vld [vmem:[%s15603_s1 + $0x16e8] ss:$16 sps:$4 sm:$0xff]   ;;  %v11528_v45 = vld [vmem:[%s15603_s1 + $0x1704] ss:$16 sps:$4 sm:$0xff]  }
 0x2bc   : > { %5406 = vmatprep.subr.bf16.mxu0 %v11462_v35  ;;  %5447 = vmatprep.subr.bf16.mxu1 %v11465_v33  ;;  %v11531_v35 = vld [vmem:[%s15603_s1 + $0x170c] ss:$16 sps:$4 sm:$0xff]   ;;  %v11526_v33 = vld [vmem:[%s15603_s1 + $0x1700] ss:$16 sps:$4 sm:$0xff]  }
 0x2bf   : > { %5407 = vmatpush1.bf16.msra.mxu0 %v11460_v34  ;;  %5448 = vmatpush1.bf16.msra.mxu1 %v11463_v41  ;;  %v11529_v34 = vld [vmem:[%s15603_s1 + $0x1708] ss:$16 sps:$4 sm:$0xff]   ;;  %v11534_v41 = vld [vmem:[%s15603_s1 + $0x1724] ss:$16 sps:$4 sm:$0xff]  }
 0x2c0   : > { %5408 = vmatprep.subr.bf16.mxu0 %v11468_v44  ;;  %5449 = vmatprep.subr.bf16.mxu1 %v11471_v27  ;;  %v11537_v44 = vld [vmem:[%s15603_s1 + $0x172c] ss:$16 sps:$4 sm:$0xff]   ;;  %v11532_v27 = vld [vmem:[%s15603_s1 + $0x1720] ss:$16 sps:$4 sm:$0xff]  }
 0x2c3   : > { %5409 = vmatpush1.bf16.msra.mxu0 %v11466_v28  ;;  %5450 = vmatpush1.bf16.msra.mxu1 %v11469_v46  ;;  %v11535_v28 = vld [vmem:[%s15603_s1 + $0x1728] ss:$16 sps:$4 sm:$0xff]   ;;  %v11540_v46 = vld [vmem:[%s15603_s1 + $0x1744] ss:$16 sps:$4 sm:$0xff]  }
 0x2c4   : > { %5410 = vmatprep.subr.bf16.mxu0 %v11474_v49  ;;  %5451 = vmatprep.subr.bf16.mxu1 %v11477_v60  ;;  %v11543_v49 = vld [vmem:[%s15603_s1 + $0x174c] ss:$16 sps:$4 sm:$0xff]   ;;  %v11538_v60 = vld [vmem:[%s15603_s1 + $0x1740] ss:$16 sps:$4 sm:$0xff]  }
 0x2c7   : > { %5411 = vmatpush1.bf16.msra.mxu0 %v11472_v0  ;;  %5452 = vmatpush1.bf16.msra.mxu1 %v11475_v50  ;;  %v11541_v0 = vld [vmem:[%s15603_s1 + $0x1748] ss:$16 sps:$4 sm:$0xff]   ;;  %v11546_v50 = vld [vmem:[%s15603_s1 + $0x1764] ss:$16 sps:$4 sm:$0xff]  }
 0x2c8   : > { %5859 = vmatprep.subr.bf16.mxu0 %v11480_v20  ;;  %5900 = vmatprep.subr.bf16.mxu1 %v11483_v21  ;;  %v11549_v20 = vld [vmem:[%s15603_s1 + $0x176c] ss:$16 sps:$4 sm:$0xff]   ;;  %v11544_v21 = vld [vmem:[%s15603_s1 + $0x1760] ss:$16 sps:$4 sm:$0xff]  }
 0x2ca   : > { %5413 = vmatmul.mubr.bf16.vlgmr.msra.gmra.mrb[40].mxu0 %v5056_v24  ;;  %5454 = vmatmul.mubr.bf16.vlgmr.msra.gmra.mrb[40].mxu1 %v5056_v24  ;;  %v11555_v24 = vld [vmem:[%s15603_s1 + $0x178c] ss:$16 sps:$4 sm:$0xff]  }
 0x2cb   : > { %5860 = vmatpush1.bf16.msra.mxu0 %v11478_v25  ;;  %5901 = vmatpush1.bf16.msra.mxu1 %v11481_v51  ;;  %v11550_v25 = vld [vmem:[%s15603_s1 + $0x1780] ss:$16 sps:$4 sm:$0xff]   ;;  %v11553_v51 = vld [vmem:[%s15603_s1 + $0x1788] ss:$16 sps:$4 sm:$0xff]  }
 0x2cc   : > { %5861 = vmatprep.subr.bf16.mxu0 %v11486_v37  ;;  %5902 = vmatprep.subr.bf16.mxu1 %v11489_v7  ;;  %v11558_v37 = vld [vmem:[%s15603_s1 + $0x17a4] ss:$16 sps:$4 sm:$0xff]   ;;  %v11561_v7 = vld [vmem:[%s15603_s1 + $0x17ac] ss:$16 sps:$4 sm:$0xff]  }
 0x2cd   : > { %5891 = vmatprep.mubr.bf16.mxu0 %v5536_v3  ;;  %5932 = vmatprep.mubr.bf16.mxu1 %v5536_v3  ;;  %v11556_v3 = vld [vmem:[%s15603_s1 + $0x17a0] ss:$16 sps:$4 sm:$0xff]  }
 0x2cf   : > { %5862 = vmatpush1.bf16.msra.mxu0 %v11484_v54  ;;  %5903 = vmatpush1.bf16.msra.mxu1 %v11487_v55  ;;  %v11559_v54 = vld [vmem:[%s15603_s1 + $0x17a8] ss:$16 sps:$4 sm:$0xff]   ;;  %v11564_v55 = vld [vmem:[%s15603_s1 + $0x17c4] ss:$16 sps:$4 sm:$0xff]  }
 0x2d0   : > { %5863 = vmatprep.subr.bf16.mxu0 %v11492_v56  ;;  %5904 = vmatprep.subr.bf16.mxu1 %v11495_v63  ;;  %v11567_v56 = vld [vmem:[%s15603_s1 + $0x17cc] ss:$16 sps:$4 sm:$0xff]   ;;  %v11562_v63 = vld [vmem:[%s15603_s1 + $0x17c0] ss:$16 sps:$4 sm:$0xff]  }
 0x2d3   : > { %5864 = vmatpush1.bf16.msra.mxu0 %v11490_v8  ;;  %5905 = vmatpush1.bf16.msra.mxu1 %v11493_v13  ;;  %v11565_v8 = vld [vmem:[%s15603_s1 + $0x17c8] ss:$16 sps:$4 sm:$0xff]   ;;  %v11570_v13 = vld [vmem:[%s15603_s1 + $0x17e4] ss:$16 sps:$4 sm:$0xff]  }
 0x2d4   : > { %5865 = vmatprep.subr.bf16.mxu0 %v11498_v14  ;;  %5906 = vmatprep.subr.bf16.mxu1 %v11501_v38  ;;  %v11573_v14 = vld [vmem:[%s15603_s1 + $0x17ec] ss:$16 sps:$4 sm:$0xff]   ;;  %v5531_v38 = vrot.slane %v4570_v30, 1 }
 0x2d5   : > { %v14584_v30 = vld [vmem:[%s12206_s5 + $0x18] sm:$0x77] }
 0x2d7   : > { %5866 = vmatpush1.bf16.msra.mxu0 %v11496_v32  ;;  %5907 = vmatpush1.bf16.msra.mxu1 %v11499_v15  ;;  %v5532_v32 = vrot.slane %v4572_v23, 2  ;;  %v11568_v15 = vld [vmem:[%s15603_s1 + $0x17e0] ss:$16 sps:$4 sm:$0xff]  }
 0x2d8   : > { %5867 = vmatprep.subr.bf16.mxu0 %v11504_v39  ;;  %5908 = vmatprep.subr.bf16.mxu1 %v11507_v36  ;;  %v11571_v39 = vld [vmem:[%s15603_s1 + $0x17e8] ss:$16 sps:$4 sm:$0xff]   ;;  %v11576_v36 = vld [vmem:[%s15603_s1 + $0x1804] ss:$16 sps:$4 sm:$0xff]  }
 0x2d9   : > { %v5533_v23 = vor.u32 %v5532_v32, %v5531_v38  ;;  %v11645_v38 = vld [vmem:[%s15603_s1 + $0x196c] ss:$16 sps:$4 sm:$0xff]   ;;  %v11640_v32 = vld [vmem:[%s15603_s1 + $0x1960] ss:$16 sps:$4 sm:$0xff]  }
 0x2db   : > { %5868 = vmatpush1.bf16.msra.mxu0 %v11502_v40  ;;  %5909 = vmatpush1.bf16.msra.mxu1 %v11505_v43  ;;  %v11574_v40 = vld [vmem:[%s15603_s1 + $0x1800] ss:$16 sps:$4 sm:$0xff]   ;;  %v11577_v43 = vld [vmem:[%s15603_s1 + $0x1808] ss:$16 sps:$4 sm:$0xff]  }
 0x2dc   : > { %5869 = vmatprep.subr.bf16.mxu0 %v11510_v16  ;;  %5910 = vmatprep.subr.bf16.mxu1 %v11513_v17  ;;  %v11582_v16 = vld [vmem:[%s15603_s1 + $0x1824] ss:$16 sps:$4 sm:$0xff]   ;;  %v11585_v17 = vld [vmem:[%s15603_s1 + $0x182c] ss:$16 sps:$4 sm:$0xff]  }
 0x2dd   : > { %v3969_v26 = vpop.f32.mrb[28].mxu0  ;;  %v4010_v29 = vpop.f32.mrb[28].mxu1 }
 0x2de   : > { %v14448_v59 = vadd.f32 %v3969_v26, %v14239_v58  ;;  %v14451_v1 = vadd.f32 %v4010_v29, %v14242_v62  ;;  %v3971_v52 = vpop.f32.mrb[29].mxu0  ;;  %v4012_v48 = vpop.f32.mrb[29].mxu1  ;;  %v11514_v58 = vld [vmem:[%s15603_s1 + $0x16c0] ss:$16 sps:$4 sm:$0xff]   ;;  %v11517_v62 = vld [vmem:[%s15603_s1 + $0x16c8] ss:$16 sps:$4 sm:$0xff]  }
 0x2df   : > { %v14454_v5 = vadd.f32 %v3971_v52, %v14245_v9  ;;  %v14457_v6 = vadd.f32 %v4012_v48, %v14248_v12  ;;  %v3973_v10 = vpop.f32.mrb[30].mxu0  ;;  %v4014_v11 = vpop.f32.mrb[30].mxu1  ;;  %5870 = vmatpush1.bf16.msra.mxu0 %v11508_v4  ;;  %5911 = vmatpush1.bf16.msra.mxu1 %v11511_v18  ;;  %v11522_v9 = vld [vmem:[%s15603_s1 + $0x16e4] ss:$16 sps:$4 sm:$0xff]   ;;  %v11525_v12 = vld [vmem:[%s15603_s1 + $0x16ec] ss:$16 sps:$4 sm:$0xff]   ;;  %v14600_v4 = vcombine.high %v14584_v30, %v14584_v30 }
 0x2e0   : > { %v3974_v53 = vpop.f32.mrb[31].mxu0  ;;  %v4015_v61 = vpop.f32.mrb[31].mxu1  ;;  %5871 = vmatprep.subr.bf16.mxu0 %v11516_v19  ;;  %5912 = vmatprep.subr.bf16.mxu1 %v11519_v22  ;;  %v11580_v18 = vld [vmem:[%s15603_s1 + $0x1820] ss:$16 sps:$4 sm:$0xff]   ;;  %v11583_v19 = vld [vmem:[%s15603_s1 + $0x1828] ss:$16 sps:$4 sm:$0xff]  }
 0x2e1   : > { %v11588_v22 = vld [vmem:[%s15603_s1 + $0x1844] ss:$16 sps:$4 sm:$0xff]   ;;  %v11591_v26 = vld [vmem:[%s15603_s1 + $0x184c] ss:$16 sps:$4 sm:$0xff]   ;;  %v11586_v29 = vld [vmem:[%s15603_s1 + $0x1840] ss:$16 sps:$4 sm:$0xff]  }
 0x2e2   : > { %v11589_v52 = vld [vmem:[%s15603_s1 + $0x1848] ss:$16 sps:$4 sm:$0xff]   ;;  %v11594_v48 = vld [vmem:[%s15603_s1 + $0x1864] ss:$16 sps:$4 sm:$0xff]   ;;  %v11597_v10 = vld [vmem:[%s15603_s1 + $0x186c] ss:$16 sps:$4 sm:$0xff]  }
 0x2e3   : > { %5872 = vmatpush1.bf16.msra.mxu0 %v11514_v58  ;;  %5913 = vmatpush1.bf16.msra.mxu1 %v11517_v62  ;;  %v11592_v11 = vld [vmem:[%s15603_s1 + $0x1860] ss:$16 sps:$4 sm:$0xff]   ;;  %v11595_v58 = vld [vmem:[%s15603_s1 + $0x1868] ss:$16 sps:$4 sm:$0xff]   ;;  %v11600_v62 = vld [vmem:[%s15603_s1 + $0x1884] ss:$16 sps:$4 sm:$0xff]  }
 0x2e4   : > { %5873 = vmatprep.subr.bf16.mxu0 %v11522_v9  ;;  %5914 = vmatprep.subr.bf16.mxu1 %v11525_v12  ;;  %v11603_v53 = vld [vmem:[%s15603_s1 + $0x188c] ss:$16 sps:$4 sm:$0xff]   ;;  %v11598_v61 = vld [vmem:[%s15603_s1 + $0x1880] ss:$16 sps:$4 sm:$0xff]   ;;  %v11601_v9 = vld [vmem:[%s15603_s1 + $0x1888] ss:$16 sps:$4 sm:$0xff]  }
 0x2e5   : > { %v11606_v12 = vld [vmem:[%s15603_s1 + $0x18a4] ss:$16 sps:$4 sm:$0xff]  }
 0x2e7   : > { %5874 = vmatpush1.bf16.msra.mxu0 %v11520_v2  ;;  %5915 = vmatpush1.bf16.msra.mxu1 %v11523_v31  ;;  %v11609_v2 = vld [vmem:[%s15603_s1 + $0x18ac] ss:$16 sps:$4 sm:$0xff]   ;;  %v11604_v31 = vld [vmem:[%s15603_s1 + $0x18a0] ss:$16 sps:$4 sm:$0xff]  }
 0x2e8   : > { %5875 = vmatprep.subr.bf16.mxu0 %v11528_v45  ;;  %5916 = vmatprep.subr.bf16.mxu1 %v11531_v35  ;;  %v11607_v45 = vld [vmem:[%s15603_s1 + $0x18a8] ss:$16 sps:$4 sm:$0xff]   ;;  %v11612_v35 = vld [vmem:[%s15603_s1 + $0x18c4] ss:$16 sps:$4 sm:$0xff]  }
 0x2eb   : > { %5876 = vmatpush1.bf16.msra.mxu0 %v11526_v33  ;;  %5917 = vmatpush1.bf16.msra.mxu1 %v11529_v34  ;;  %v11615_v33 = vld [vmem:[%s15603_s1 + $0x18cc] ss:$16 sps:$4 sm:$0xff]  }
 0x2ec   : > { %5877 = vmatprep.subr.bf16.mxu0 %v11534_v41  ;;  %5918 = vmatprep.subr.bf16.mxu1 %v11537_v44 }
 0x2ef   : > { %5878 = vmatpush1.bf16.msra.mxu0 %v11532_v27  ;;  %5919 = vmatpush1.bf16.msra.mxu1 %v11535_v28 }
 0x2f0   : > { %5879 = vmatprep.subr.bf16.mxu0 %v11540_v46  ;;  %5920 = vmatprep.subr.bf16.mxu1 %v11543_v49 }
 0x2f3   : > { %5880 = vmatpush1.bf16.msra.mxu0 %v11538_v60  ;;  %5921 = vmatpush1.bf16.msra.mxu1 %v11541_v0 }
 0x2f4   : > { %5881 = vmatprep.subr.bf16.mxu0 %v11546_v50  ;;  %5922 = vmatprep.subr.bf16.mxu1 %v11549_v20 }
 0x2f7   : > { %5882 = vmatpush1.bf16.msra.mxu0 %v11544_v21  ;;  %5923 = vmatpush1.bf16.msra.mxu1 %v11547_v47  ;;  %v11616_v47 = vld [vmem:[%s15603_s1 + $0x18e0] ss:$16 sps:$4 sm:$0xff]  }
 0x2f8   : > { %5883 = vmatprep.subr.bf16.mxu0 %v11552_v57  ;;  %5924 = vmatprep.subr.bf16.mxu1 %v11555_v24  ;;  %v11619_v57 = vld [vmem:[%s15603_s1 + $0x18e8] ss:$16 sps:$4 sm:$0xff]   ;;  %v11624_v24 = vld [vmem:[%s15603_s1 + $0x1904] ss:$16 sps:$4 sm:$0xff]  }
 0x2fb   : > { %5884 = vmatpush1.bf16.msra.mxu0 %v11550_v25  ;;  %5925 = vmatpush1.bf16.msra.mxu1 %v11553_v51  ;;  %v11627_v25 = vld [vmem:[%s15603_s1 + $0x190c] ss:$16 sps:$4 sm:$0xff]   ;;  %v11622_v51 = vld [vmem:[%s15603_s1 + $0x1900] ss:$16 sps:$4 sm:$0xff]  }
 0x2fc   : > { %5885 = vmatprep.subr.bf16.mxu0 %v11558_v37  ;;  %5926 = vmatprep.subr.bf16.mxu1 %v11561_v7  ;;  %v11625_v37 = vld [vmem:[%s15603_s1 + $0x1908] ss:$16 sps:$4 sm:$0xff]   ;;  %v11630_v7 = vld [vmem:[%s15603_s1 + $0x1924] ss:$16 sps:$4 sm:$0xff]  }
 0x2ff   : > { %5886 = vmatpush1.bf16.msra.mxu0 %v11556_v3  ;;  %5927 = vmatpush1.bf16.msra.mxu1 %v11559_v54  ;;  %v11633_v3 = vld [vmem:[%s15603_s1 + $0x192c] ss:$16 sps:$4 sm:$0xff]   ;;  %v11628_v54 = vld [vmem:[%s15603_s1 + $0x1920] ss:$16 sps:$4 sm:$0xff]  }
 0x300   : > { %5887 = vmatprep.subr.bf16.mxu0 %v11564_v55  ;;  %5928 = vmatprep.subr.bf16.mxu1 %v11567_v56  ;;  %v11631_v55 = vld [vmem:[%s15603_s1 + $0x1928] ss:$16 sps:$4 sm:$0xff]   ;;  %v11636_v56 = vld [vmem:[%s15603_s1 + $0x1944] ss:$16 sps:$4 sm:$0xff]  }
 0x303   : > { %5888 = vmatpush1.bf16.msra.mxu0 %v11562_v63  ;;  %5929 = vmatpush1.bf16.msra.mxu1 %v11565_v8  ;;  %v11639_v63 = vld [vmem:[%s15603_s1 + $0x194c] ss:$16 sps:$4 sm:$0xff]   ;;  %v11634_v8 = vld [vmem:[%s15603_s1 + $0x1940] ss:$16 sps:$4 sm:$0xff]  }
 0x304   : > { %5889 = vmatprep.subr.bf16.mxu0 %v11570_v13  ;;  %5930 = vmatprep.subr.bf16.mxu1 %v11573_v14  ;;  %v11637_v13 = vld [vmem:[%s15603_s1 + $0x1948] ss:$16 sps:$4 sm:$0xff]   ;;  %v11642_v14 = vld [vmem:[%s15603_s1 + $0x1964] ss:$16 sps:$4 sm:$0xff]  }
 0x307   : > { %5890 = vmatpush1.bf16.msra.mxu0 %v11568_v15  ;;  %5931 = vmatpush1.bf16.msra.mxu1 %v11571_v39  ;;  %v11643_v15 = vld [vmem:[%s15603_s1 + $0x1968] ss:$16 sps:$4 sm:$0xff]   ;;  %v11648_v39 = vld [vmem:[%s15603_s1 + $0x1984] ss:$16 sps:$4 sm:$0xff]  }
 0x308   : > { %6342 = vmatprep.subr.bf16.mxu0 %v11576_v36  ;;  %6383 = vmatprep.subr.bf16.mxu1 %v11579_v42  ;;  %v11651_v36 = vld [vmem:[%s15603_s1 + $0x198c] ss:$16 sps:$4 sm:$0xff]   ;;  %v11646_v42 = vld [vmem:[%s15603_s1 + $0x1980] ss:$16 sps:$4 sm:$0xff]  }
 0x30a   : > { %5892 = vmatmul.mubr.bf16.vlgmr.msra.gmra.mrb[44].mxu0 %v5533_v23  ;;  %5933 = vmatmul.mubr.bf16.vlgmr.msra.gmra.mrb[44].mxu1 %v5533_v23  ;;  %v11649_v23 = vld [vmem:[%s15603_s1 + $0x1988] ss:$16 sps:$4 sm:$0xff]  }
 0x30b   : > { %6343 = vmatpush1.bf16.msra.mxu0 %v11574_v40  ;;  %6384 = vmatpush1.bf16.msra.mxu1 %v11577_v43  ;;  %v11654_v40 = vld [vmem:[%s15603_s1 + $0x19a4] ss:$16 sps:$4 sm:$0xff]   ;;  %v11657_v43 = vld [vmem:[%s15603_s1 + $0x19ac] ss:$16 sps:$4 sm:$0xff]  }
 0x30c   : > { %6344 = vmatprep.subr.bf16.mxu0 %v11582_v16  ;;  %6385 = vmatprep.subr.bf16.mxu1 %v11585_v17  ;;  %v11652_v16 = vld [vmem:[%s15603_s1 + $0x19a0] ss:$16 sps:$4 sm:$0xff]   ;;  %v11655_v17 = vld [vmem:[%s15603_s1 + $0x19a8] ss:$16 sps:$4 sm:$0xff]  }
 0x30d   : > { %6374 = vmatprep.mubr.bf16.mxu0 %v14600_v4  ;;  %6415 = vmatprep.mubr.bf16.mxu1 %v14600_v4 }
 0x30f   : > { %6345 = vmatpush1.bf16.msra.mxu0 %v11580_v18  ;;  %6386 = vmatpush1.bf16.msra.mxu1 %v11583_v19  ;;  %v11660_v18 = vld [vmem:[%s15603_s1 + $0x19c4] ss:$16 sps:$4 sm:$0xff]   ;;  %v11663_v19 = vld [vmem:[%s15603_s1 + $0x19cc] ss:$16 sps:$4 sm:$0xff]  }
 0x310   : > { %6346 = vmatprep.subr.bf16.mxu0 %v11588_v22  ;;  %6387 = vmatprep.subr.bf16.mxu1 %v11591_v26  ;;  %v11658_v22 = vld [vmem:[%s15603_s1 + $0x19c0] ss:$16 sps:$4 sm:$0xff]   ;;  %v11661_v26 = vld [vmem:[%s15603_s1 + $0x19c8] ss:$16 sps:$4 sm:$0xff]  }
 0x313   : > { %6347 = vmatpush1.bf16.msra.mxu0 %v11586_v29  ;;  %6388 = vmatpush1.bf16.msra.mxu1 %v11589_v52  ;;  %v11666_v29 = vld [vmem:[%s15603_s1 + $0x19e4] ss:$16 sps:$4 sm:$0xff]   ;;  %v11669_v52 = vld [vmem:[%s15603_s1 + $0x19ec] ss:$16 sps:$4 sm:$0xff]  }
 0x314   : > { %6348 = vmatprep.subr.bf16.mxu0 %v11594_v48  ;;  %6389 = vmatprep.subr.bf16.mxu1 %v11597_v10  ;;  %v6503_v48 = vshll.u32 %v14600_v4, 16  ;;  %v11664_v10 = vld [vmem:[%s15603_s1 + $0x19e0] ss:$16 sps:$4 sm:$0xff]  }
 0x317   : > { %6349 = vmatpush1.bf16.msra.mxu0 %v11592_v11  ;;  %6390 = vmatpush1.bf16.msra.mxu1 %v11595_v58  ;;  %v11667_v11 = vld [vmem:[%s15603_s1 + $0x19e8] ss:$16 sps:$4 sm:$0xff]   ;;  %v11674_v58 = vld [vmem:[%s15603_s1 + $0x1a04] ss:$16 sps:$4 sm:$0xff]  }
 0x318   : > { %6350 = vmatprep.subr.bf16.mxu0 %v11600_v62  ;;  %6391 = vmatprep.subr.bf16.mxu1 %v11603_v53  ;;  %v11677_v62 = vld [vmem:[%s15603_s1 + $0x1a0c] ss:$16 sps:$4 sm:$0xff]   ;;  %v6501_v53 = vshrl.u32 %v14600_v4, 16 }
 0x31b   : > { %6351 = vmatpush1.bf16.msra.mxu0 %v11598_v61  ;;  %6392 = vmatpush1.bf16.msra.mxu1 %v11601_v9  ;;  %v6505_v61 = vrot.slane %v6503_v48, 1  ;;  %v14802_v9 = vcombine.low %v14584_v30, %v14584_v30  ;;  %v11683_v30 = vld [vmem:[%s15603_s1 + $0x1a2c] ss:$16 sps:$4 sm:$0xff]  }
 0x31c   : > { %6352 = vmatprep.subr.bf16.mxu0 %v11606_v12  ;;  %6393 = vmatprep.subr.bf16.mxu1 %v11609_v2  ;;  %v11672_v12 = vld [vmem:[%s15603_s1 + $0x1a00] ss:$16 sps:$4 sm:$0xff]   ;;  %v11675_v2 = vld [vmem:[%s15603_s1 + $0x1a08] ss:$16 sps:$4 sm:$0xff]  }
 0x31d   : > { %v4452_v34 = vpop.f32.mrb[32].mxu0  ;;  %v4493_v41 = vpop.f32.mrb[32].mxu1 }
 0x31e   : > { %v14665_v44 = vadd.f32 %v4452_v34, %v14448_v59  ;;  %v14668_v27 = vadd.f32 %v4493_v41, %v14451_v1  ;;  %v4454_v28 = vpop.f32.mrb[33].mxu0  ;;  %v4495_v46 = vpop.f32.mrb[33].mxu1  ;;  %v11610_v59 = vld [vmem:[%s15603_s1 + $0x18c0] ss:$16 sps:$4 sm:$0xff]   ;;  %v11613_v1 = vld [vmem:[%s15603_s1 + $0x18c8] ss:$16 sps:$4 sm:$0xff]  }
 0x31f   : > { %v14671_v49 = vadd.f32 %v4454_v28, %v14454_v5  ;;  %v14674_v60 = vadd.f32 %v4495_v46, %v14457_v6  ;;  %v4456_v0 = vpop.f32.mrb[34].mxu0  ;;  %v4497_v50 = vpop.f32.mrb[34].mxu1  ;;  %6353 = vmatpush1.bf16.msra.mxu0 %v11604_v31  ;;  %6394 = vmatpush1.bf16.msra.mxu1 %v11607_v45  ;;  %v11618_v5 = vld [vmem:[%s15603_s1 + $0x18e4] ss:$16 sps:$4 sm:$0xff]   ;;  %v11621_v6 = vld [vmem:[%s15603_s1 + $0x18ec] ss:$16 sps:$4 sm:$0xff]   ;;  %v6506_v45 = vor.u32 %v6505_v61, %v6501_v53 }
 0x320   : > { %v4457_v20 = vpop.f32.mrb[35].mxu0  ;;  %v4498_v21 = vpop.f32.mrb[35].mxu1  ;;  %6354 = vmatprep.subr.bf16.mxu0 %v11612_v35  ;;  %6395 = vmatprep.subr.bf16.mxu1 %v11615_v33  ;;  %v11680_v31 = vld [vmem:[%s15603_s1 + $0x1a24] ss:$16 sps:$4 sm:$0xff]   ;;  %v11678_v35 = vld [vmem:[%s15603_s1 + $0x1a20] ss:$16 sps:$4 sm:$0xff]  }
 0x321   : > { %v11681_v33 = vld [vmem:[%s15603_s1 + $0x1a28] ss:$16 sps:$4 sm:$0xff]   ;;  %v11686_v34 = vld [vmem:[%s15603_s1 + $0x1a44] ss:$16 sps:$4 sm:$0xff]   ;;  %v11689_v41 = vld [vmem:[%s15603_s1 + $0x1a4c] ss:$16 sps:$4 sm:$0xff]  }
 0x322   : > { %v11684_v28 = vld [vmem:[%s15603_s1 + $0x1a40] ss:$16 sps:$4 sm:$0xff]   ;;  %v11687_v46 = vld [vmem:[%s15603_s1 + $0x1a48] ss:$16 sps:$4 sm:$0xff]   ;;  %v11692_v0 = vld [vmem:[%s15603_s1 + $0x1a64] ss:$16 sps:$4 sm:$0xff]  }
 0x323   : > { %6355 = vmatpush1.bf16.msra.mxu0 %v11610_v59  ;;  %6396 = vmatpush1.bf16.msra.mxu1 %v11613_v1  ;;  %v11695_v50 = vld [vmem:[%s15603_s1 + $0x1a6c] ss:$16 sps:$4 sm:$0xff]   ;;  %v11690_v59 = vld [vmem:[%s15603_s1 + $0x1a60] ss:$16 sps:$4 sm:$0xff]   ;;  %v11693_v1 = vld [vmem:[%s15603_s1 + $0x1a68] ss:$16 sps:$4 sm:$0xff]  }
 0x324   : > { %6356 = vmatprep.subr.bf16.mxu0 %v11618_v5  ;;  %6397 = vmatprep.subr.bf16.mxu1 %v11621_v6  ;;  %v11698_v20 = vld [vmem:[%s15603_s1 + $0x1a84] ss:$16 sps:$4 sm:$0xff]   ;;  %v11701_v21 = vld [vmem:[%s15603_s1 + $0x1a8c] ss:$16 sps:$4 sm:$0xff]   ;;  %v11696_v5 = vld [vmem:[%s15603_s1 + $0x1a80] ss:$16 sps:$4 sm:$0xff]  }
 0x325   : > { %v11699_v6 = vld [vmem:[%s15603_s1 + $0x1a88] ss:$16 sps:$4 sm:$0xff]   ;;  %v11746_v61 = vld [vmem:[%s15603_s1 + $0x1b84] ss:$16 sps:$4 sm:$0xff]  }
 0x327   : > { %6357 = vmatpush1.bf16.msra.mxu0 %v11616_v47  ;;  %6398 = vmatpush1.bf16.msra.mxu1 %v11619_v57  ;;  %v11704_v47 = vld [vmem:[%s15603_s1 + $0x1aa4] ss:$16 sps:$4 sm:$0xff]   ;;  %v11707_v57 = vld [vmem:[%s15603_s1 + $0x1aac] ss:$16 sps:$4 sm:$0xff]  }
 0x328   : > { %6358 = vmatprep.subr.bf16.mxu0 %v11624_v24  ;;  %6399 = vmatprep.subr.bf16.mxu1 %v11627_v25  ;;  %v11702_v24 = vld [vmem:[%s15603_s1 + $0x1aa0] ss:$16 sps:$4 sm:$0xff]   ;;  %v11705_v25 = vld [vmem:[%s15603_s1 + $0x1aa8] ss:$16 sps:$4 sm:$0xff]  }
 0x32b   : > { %6359 = vmatpush1.bf16.msra.mxu0 %v11622_v51  ;;  %6400 = vmatpush1.bf16.msra.mxu1 %v11625_v37  ;;  %v11710_v51 = vld [vmem:[%s15603_s1 + $0x1ac4] ss:$16 sps:$4 sm:$0xff]   ;;  %v11713_v37 = vld [vmem:[%s15603_s1 + $0x1acc] ss:$16 sps:$4 sm:$0xff]  }
 0x32c   : > { %6360 = vmatprep.subr.bf16.mxu0 %v11630_v7  ;;  %6401 = vmatprep.subr.bf16.mxu1 %v11633_v3 }
 0x32f   : > { %6361 = vmatpush1.bf16.msra.mxu0 %v11628_v54  ;;  %6402 = vmatpush1.bf16.msra.mxu1 %v11631_v55 }
 0x330   : > { %6362 = vmatprep.subr.bf16.mxu0 %v11636_v56  ;;  %6403 = vmatprep.subr.bf16.mxu1 %v11639_v63 }
 0x333   : > { %6363 = vmatpush1.bf16.msra.mxu0 %v11634_v8  ;;  %6404 = vmatpush1.bf16.msra.mxu1 %v11637_v13 }
 0x334   : > { %6364 = vmatprep.subr.bf16.mxu0 %v11642_v14  ;;  %6405 = vmatprep.subr.bf16.mxu1 %v11645_v38 }
 0x337   : > { %6365 = vmatpush1.bf16.msra.mxu0 %v11640_v32  ;;  %6406 = vmatpush1.bf16.msra.mxu1 %v11643_v15 }
 0x338   : > { %6366 = vmatprep.subr.bf16.mxu0 %v11648_v39  ;;  %6407 = vmatprep.subr.bf16.mxu1 %v11651_v36  ;;  %v11714_v39 = vld [vmem:[%s15603_s1 + $0x1ae0] ss:$16 sps:$4 sm:$0xff]   ;;  %v11717_v36 = vld [vmem:[%s15603_s1 + $0x1ae8] ss:$16 sps:$4 sm:$0xff]  }
 0x33b   : > { %6367 = vmatpush1.bf16.msra.mxu0 %v11646_v42  ;;  %6408 = vmatpush1.bf16.msra.mxu1 %v11649_v23  ;;  %v11722_v42 = vld [vmem:[%s15603_s1 + $0x1b04] ss:$16 sps:$4 sm:$0xff]   ;;  %v11725_v23 = vld [vmem:[%s15603_s1 + $0x1b0c] ss:$16 sps:$4 sm:$0xff]  }
 0x33c   : > { %6368 = vmatprep.subr.bf16.mxu0 %v11654_v40  ;;  %6409 = vmatprep.subr.bf16.mxu1 %v11657_v43  ;;  %v11720_v40 = vld [vmem:[%s15603_s1 + $0x1b00] ss:$16 sps:$4 sm:$0xff]   ;;  %v11723_v43 = vld [vmem:[%s15603_s1 + $0x1b08] ss:$16 sps:$4 sm:$0xff]  }
 0x33f   : > { %6369 = vmatpush1.bf16.msra.mxu0 %v11652_v16  ;;  %6410 = vmatpush1.bf16.msra.mxu1 %v11655_v17  ;;  %v11728_v16 = vld [vmem:[%s15603_s1 + $0x1b24] ss:$16 sps:$4 sm:$0xff]   ;;  %v11731_v17 = vld [vmem:[%s15603_s1 + $0x1b2c] ss:$16 sps:$4 sm:$0xff]  }
 0x340   : > { %6370 = vmatprep.subr.bf16.mxu0 %v11660_v18  ;;  %6411 = vmatprep.subr.bf16.mxu1 %v11663_v19  ;;  %v11726_v18 = vld [vmem:[%s15603_s1 + $0x1b20] ss:$16 sps:$4 sm:$0xff]   ;;  %v11729_v19 = vld [vmem:[%s15603_s1 + $0x1b28] ss:$16 sps:$4 sm:$0xff]  }
 0x343   : > { %6371 = vmatpush1.bf16.msra.mxu0 %v11658_v22  ;;  %6412 = vmatpush1.bf16.msra.mxu1 %v11661_v26  ;;  %v11734_v22 = vld [vmem:[%s15603_s1 + $0x1b44] ss:$16 sps:$4 sm:$0xff]   ;;  %v11737_v26 = vld [vmem:[%s15603_s1 + $0x1b4c] ss:$16 sps:$4 sm:$0xff]  }
 0x344   : > { %6372 = vmatprep.subr.bf16.mxu0 %v11666_v29  ;;  %6413 = vmatprep.subr.bf16.mxu1 %v11669_v52  ;;  %v11732_v29 = vld [vmem:[%s15603_s1 + $0x1b40] ss:$16 sps:$4 sm:$0xff]   ;;  %v11735_v52 = vld [vmem:[%s15603_s1 + $0x1b48] ss:$16 sps:$4 sm:$0xff]  }
 0x347   : > { %6373 = vmatpush1.bf16.msra.mxu0 %v11664_v10  ;;  %6414 = vmatpush1.bf16.msra.mxu1 %v11667_v11  ;;  %v11740_v10 = vld [vmem:[%s15603_s1 + $0x1b64] ss:$16 sps:$4 sm:$0xff]   ;;  %v11743_v11 = vld [vmem:[%s15603_s1 + $0x1b6c] ss:$16 sps:$4 sm:$0xff]  }
 0x348   : > { %6829 = vmatprep.subr.bf16.mxu0 %v11674_v58  ;;  %6870 = vmatprep.subr.bf16.mxu1 %v11677_v62  ;;  %v11738_v58 = vld [vmem:[%s15603_s1 + $0x1b60] ss:$16 sps:$4 sm:$0xff]   ;;  %v11741_v62 = vld [vmem:[%s15603_s1 + $0x1b68] ss:$16 sps:$4 sm:$0xff]  }
 0x34a   : > { %6375 = vmatmul.mubr.bf16.vlgmr.msra.gmra.mrb[48].mxu0 %v14802_v9  ;;  %6416 = vmatmul.mubr.bf16.vlgmr.msra.gmra.mrb[48].mxu1 %v14802_v9 }
 0x34b   : > { %6830 = vmatpush1.bf16.msra.mxu0 %v11672_v12  ;;  %6871 = vmatpush1.bf16.msra.mxu1 %v11675_v2  ;;  %v11749_v12 = vld [vmem:[%s15603_s1 + $0x1b8c] ss:$16 sps:$4 sm:$0xff]   ;;  %v11744_v2 = vld [vmem:[%s15603_s1 + $0x1b80] ss:$16 sps:$4 sm:$0xff]  }
 0x34c   : > { %6831 = vmatprep.subr.bf16.mxu0 %v11680_v31  ;;  %6872 = vmatprep.subr.bf16.mxu1 %v11683_v30  ;;  %v11747_v31 = vld [vmem:[%s15603_s1 + $0x1b88] ss:$16 sps:$4 sm:$0xff]   ;;  %v11752_v30 = vld [vmem:[%s15603_s1 + $0x1ba4] ss:$16 sps:$4 sm:$0xff]  }
 0x34d   : > { %6861 = vmatprep.mubr.bf16.mxu0 %v6506_v45  ;;  %6902 = vmatprep.mubr.bf16.mxu1 %v6506_v45  ;;  %v11755_v45 = vld [vmem:[%s15603_s1 + $0x1bac] ss:$16 sps:$4 sm:$0xff]  }
 0x34f   : > { %6832 = vmatpush1.bf16.msra.mxu0 %v11678_v35  ;;  %6873 = vmatpush1.bf16.msra.mxu1 %v11681_v33  ;;  %v11750_v35 = vld [vmem:[%s15603_s1 + $0x1ba0] ss:$16 sps:$4 sm:$0xff]   ;;  %v11753_v33 = vld [vmem:[%s15603_s1 + $0x1ba8] ss:$16 sps:$4 sm:$0xff]  }
 0x350   : > { %6833 = vmatprep.subr.bf16.mxu0 %v11686_v34  ;;  %6874 = vmatprep.subr.bf16.mxu1 %v11689_v41  ;;  %v11758_v34 = vld [vmem:[%s15603_s1 + $0x1bc4] ss:$16 sps:$4 sm:$0xff]   ;;  %v11761_v41 = vld [vmem:[%s15603_s1 + $0x1bcc] ss:$16 sps:$4 sm:$0xff]  }
 0x353   : > { %6834 = vmatpush1.bf16.msra.mxu0 %v11684_v28  ;;  %6875 = vmatpush1.bf16.msra.mxu1 %v11687_v46  ;;  %v6496_v28 = vshll.u32 %v14802_v9, 16  ;;  %v11756_v46 = vld [vmem:[%s15603_s1 + $0x1bc0] ss:$16 sps:$4 sm:$0xff]  }
 0x354   : > { %6835 = vmatprep.subr.bf16.mxu0 %v11692_v0  ;;  %6876 = vmatprep.subr.bf16.mxu1 %v11695_v50  ;;  %v11759_v0 = vld [vmem:[%s15603_s1 + $0x1bc8] ss:$16 sps:$4 sm:$0xff]   ;;  %v11764_v50 = vld [vmem:[%s15603_s1 + $0x1be4] ss:$16 sps:$4 sm:$0xff]  }
 0x357   : > { %6836 = vmatpush1.bf16.msra.mxu0 %v11690_v59  ;;  %6877 = vmatpush1.bf16.msra.mxu1 %v11693_v1  ;;  %v11767_v59 = vld [vmem:[%s15603_s1 + $0x1bec] ss:$16 sps:$4 sm:$0xff]   ;;  %v6494_v1 = vshrl.u32 %v14802_v9, 16 }
 0x358   : > { %6837 = vmatprep.subr.bf16.mxu0 %v11698_v20  ;;  %6878 = vmatprep.subr.bf16.mxu1 %v11701_v21  ;;  %v6498_v20 = vrot.slane %v6496_v28, 1  ;;  %v11762_v21 = vld [vmem:[%s15603_s1 + $0x1be0] ss:$16 sps:$4 sm:$0xff]  }
 0x35b   : > { %6838 = vmatpush1.bf16.msra.mxu0 %v11696_v5  ;;  %6879 = vmatpush1.bf16.msra.mxu1 %v11699_v6  ;;  %v11765_v5 = vld [vmem:[%s15603_s1 + $0x1be8] ss:$16 sps:$4 sm:$0xff]   ;;  %v11770_v6 = vld [vmem:[%s15603_s1 + $0x1c04] ss:$16 sps:$4 sm:$0xff]  }
 0x35c   : > { %6839 = vmatprep.subr.bf16.mxu0 %v11704_v47  ;;  %6880 = vmatprep.subr.bf16.mxu1 %v11707_v57  ;;  %v11773_v47 = vld [vmem:[%s15603_s1 + $0x1c0c] ss:$16 sps:$4 sm:$0xff]   ;;  %v6499_v57 = vor.u32 %v6498_v20, %v6494_v1 }
 0x35d   : > { %v4939_v7 = vpop.f32.mrb[36].mxu0  ;;  %v4980_v3 = vpop.f32.mrb[36].mxu1  ;;  %v11833_v20 = vld [vmem:[%s15603_s1 + $0x1d4c] ss:$16 sps:$4 sm:$0xff]  }
 0x35e   : > { %v14881_v54 = vadd.f32 %v4939_v7, %v14665_v44  ;;  %v14884_v55 = vadd.f32 %v4980_v3, %v14668_v27  ;;  %v4941_v56 = vpop.f32.mrb[37].mxu0  ;;  %v4982_v63 = vpop.f32.mrb[37].mxu1  ;;  %v11708_v44 = vld [vmem:[%s15603_s1 + $0x1ac0] ss:$16 sps:$4 sm:$0xff]   ;;  %v11711_v27 = vld [vmem:[%s15603_s1 + $0x1ac8] ss:$16 sps:$4 sm:$0xff]  }
 0x35f   : > { %v14887_v8 = vadd.f32 %v4941_v56, %v14671_v49  ;;  %v14890_v13 = vadd.f32 %v4982_v63, %v14674_v60  ;;  %v4943_v14 = vpop.f32.mrb[38].mxu0  ;;  %v4984_v38 = vpop.f32.mrb[38].mxu1  ;;  %6840 = vmatpush1.bf16.msra.mxu0 %v11702_v24  ;;  %6881 = vmatpush1.bf16.msra.mxu1 %v11705_v25  ;;  %v11716_v49 = vld [vmem:[%s15603_s1 + $0x1ae4] ss:$16 sps:$4 sm:$0xff]   ;;  %v11719_v60 = vld [vmem:[%s15603_s1 + $0x1aec] ss:$16 sps:$4 sm:$0xff]  }
 0x360   : > { %v4944_v32 = vpop.f32.mrb[39].mxu0  ;;  %v4985_v15 = vpop.f32.mrb[39].mxu1  ;;  %6841 = vmatprep.subr.bf16.mxu0 %v11710_v51  ;;  %6882 = vmatprep.subr.bf16.mxu1 %v11713_v37  ;;  %v11768_v24 = vld [vmem:[%s15603_s1 + $0x1c00] ss:$16 sps:$4 sm:$0xff]   ;;  %v11771_v25 = vld [vmem:[%s15603_s1 + $0x1c08] ss:$16 sps:$4 sm:$0xff]  }
 0x361   : > { %v11776_v51 = vld [vmem:[%s15603_s1 + $0x1c24] ss:$16 sps:$4 sm:$0xff]   ;;  %v11779_v37 = vld [vmem:[%s15603_s1 + $0x1c2c] ss:$16 sps:$4 sm:$0xff]   ;;  %v6981_v7 = vrot.slane %v14600_v4, 1 }
 0x362   : > { %v11774_v3 = vld [vmem:[%s15603_s1 + $0x1c20] ss:$16 sps:$4 sm:$0xff]   ;;  %v11777_v56 = vld [vmem:[%s15603_s1 + $0x1c28] ss:$16 sps:$4 sm:$0xff]   ;;  %v11782_v63 = vld [vmem:[%s15603_s1 + $0x1c44] ss:$16 sps:$4 sm:$0xff]  }
 0x363   : > { %6842 = vmatpush1.bf16.msra.mxu0 %v11708_v44  ;;  %6883 = vmatpush1.bf16.msra.mxu1 %v11711_v27  ;;  %v11785_v14 = vld [vmem:[%s15603_s1 + $0x1c4c] ss:$16 sps:$4 sm:$0xff]   ;;  %v11780_v38 = vld [vmem:[%s15603_s1 + $0x1c40] ss:$16 sps:$4 sm:$0xff]   ;;  %v11783_v44 = vld [vmem:[%s15603_s1 + $0x1c48] ss:$16 sps:$4 sm:$0xff]  }
 0x364   : > { %6843 = vmatprep.subr.bf16.mxu0 %v11716_v49  ;;  %6884 = vmatprep.subr.bf16.mxu1 %v11719_v60  ;;  %v11788_v27 = vld [vmem:[%s15603_s1 + $0x1c64] ss:$16 sps:$4 sm:$0xff]   ;;  %v11791_v32 = vld [vmem:[%s15603_s1 + $0x1c6c] ss:$16 sps:$4 sm:$0xff]   ;;  %v11786_v15 = vld [vmem:[%s15603_s1 + $0x1c60] ss:$16 sps:$4 sm:$0xff]  }
 0x365   : > { %v11789_v49 = vld [vmem:[%s15603_s1 + $0x1c68] ss:$16 sps:$4 sm:$0xff]   ;;  %v11794_v60 = vld [vmem:[%s15603_s1 + $0x1c84] ss:$16 sps:$4 sm:$0xff]   ;;  %v11875_v4 = vld [vmem:[%s15603_s1 + $0x1e2c] ss:$16 sps:$4 sm:$0xff]  }
 0x367   : > { %6844 = vmatpush1.bf16.msra.mxu0 %v11714_v39  ;;  %6885 = vmatpush1.bf16.msra.mxu1 %v11717_v36  ;;  %v11797_v39 = vld [vmem:[%s15603_s1 + $0x1c8c] ss:$16 sps:$4 sm:$0xff]   ;;  %v11792_v36 = vld [vmem:[%s15603_s1 + $0x1c80] ss:$16 sps:$4 sm:$0xff]  }
 0x368   : > { %6845 = vmatprep.subr.bf16.mxu0 %v11722_v42  ;;  %6886 = vmatprep.subr.bf16.mxu1 %v11725_v23  ;;  %v11795_v42 = vld [vmem:[%s15603_s1 + $0x1c88] ss:$16 sps:$4 sm:$0xff]   ;;  %v11800_v23 = vld [vmem:[%s15603_s1 + $0x1ca4] ss:$16 sps:$4 sm:$0xff]  }
 0x36b   : > { %6846 = vmatpush1.bf16.msra.mxu0 %v11720_v40  ;;  %6887 = vmatpush1.bf16.msra.mxu1 %v11723_v43  ;;  %v11803_v40 = vld [vmem:[%s15603_s1 + $0x1cac] ss:$16 sps:$4 sm:$0xff]   ;;  %v11798_v43 = vld [vmem:[%s15603_s1 + $0x1ca0] ss:$16 sps:$4 sm:$0xff]  }
 0x36c   : > { %6847 = vmatprep.subr.bf16.mxu0 %v11728_v16  ;;  %6888 = vmatprep.subr.bf16.mxu1 %v11731_v17  ;;  %v11801_v16 = vld [vmem:[%s15603_s1 + $0x1ca8] ss:$16 sps:$4 sm:$0xff]   ;;  %v11806_v17 = vld [vmem:[%s15603_s1 + $0x1cc4] ss:$16 sps:$4 sm:$0xff]  }
 0x36f   : > { %6848 = vmatpush1.bf16.msra.mxu0 %v11726_v18  ;;  %6889 = vmatpush1.bf16.msra.mxu1 %v11729_v19  ;;  %v11809_v18 = vld [vmem:[%s15603_s1 + $0x1ccc] ss:$16 sps:$4 sm:$0xff]  }
 0x370   : > { %6849 = vmatprep.subr.bf16.mxu0 %v11734_v22  ;;  %6890 = vmatprep.subr.bf16.mxu1 %v11737_v26 }
 0x373   : > { %6850 = vmatpush1.bf16.msra.mxu0 %v11732_v29  ;;  %6891 = vmatpush1.bf16.msra.mxu1 %v11735_v52 }
 0x374   : > { %6851 = vmatprep.subr.bf16.mxu0 %v11740_v10  ;;  %6892 = vmatprep.subr.bf16.mxu1 %v11743_v11 }
 0x377   : > { %6852 = vmatpush1.bf16.msra.mxu0 %v11738_v58  ;;  %6893 = vmatpush1.bf16.msra.mxu1 %v11741_v62 }
 0x378   : > { %6853 = vmatprep.subr.bf16.mxu0 %v11746_v61  ;;  %6894 = vmatprep.subr.bf16.mxu1 %v11749_v12 }
 0x37b   : > { %6854 = vmatpush1.bf16.msra.mxu0 %v11744_v2  ;;  %6895 = vmatpush1.bf16.msra.mxu1 %v11747_v31  ;;  %v11810_v31 = vld [vmem:[%s15603_s1 + $0x1ce0] ss:$16 sps:$4 sm:$0xff]  }
 0x37c   : > { %6855 = vmatprep.subr.bf16.mxu0 %v11752_v30  ;;  %6896 = vmatprep.subr.bf16.mxu1 %v11755_v45  ;;  %v11813_v30 = vld [vmem:[%s15603_s1 + $0x1ce8] ss:$16 sps:$4 sm:$0xff]   ;;  %v11818_v45 = vld [vmem:[%s15603_s1 + $0x1d04] ss:$16 sps:$4 sm:$0xff]  }
 0x37f   : > { %6856 = vmatpush1.bf16.msra.mxu0 %v11750_v35  ;;  %6897 = vmatpush1.bf16.msra.mxu1 %v11753_v33  ;;  %v11821_v35 = vld [vmem:[%s15603_s1 + $0x1d0c] ss:$16 sps:$4 sm:$0xff]   ;;  %v11816_v33 = vld [vmem:[%s15603_s1 + $0x1d00] ss:$16 sps:$4 sm:$0xff]  }
 0x380   : > { %6857 = vmatprep.subr.bf16.mxu0 %v11758_v34  ;;  %6898 = vmatprep.subr.bf16.mxu1 %v11761_v41  ;;  %v11819_v34 = vld [vmem:[%s15603_s1 + $0x1d08] ss:$16 sps:$4 sm:$0xff]   ;;  %v11824_v41 = vld [vmem:[%s15603_s1 + $0x1d24] ss:$16 sps:$4 sm:$0xff]  }
 0x383   : > { %6858 = vmatpush1.bf16.msra.mxu0 %v11756_v46  ;;  %6899 = vmatpush1.bf16.msra.mxu1 %v11759_v0  ;;  %v11827_v46 = vld [vmem:[%s15603_s1 + $0x1d2c] ss:$16 sps:$4 sm:$0xff]   ;;  %v11822_v0 = vld [vmem:[%s15603_s1 + $0x1d20] ss:$16 sps:$4 sm:$0xff]  }
 0x384   : > { %6859 = vmatprep.subr.bf16.mxu0 %v11764_v50  ;;  %6900 = vmatprep.subr.bf16.mxu1 %v11767_v59  ;;  %v11825_v50 = vld [vmem:[%s15603_s1 + $0x1d28] ss:$16 sps:$4 sm:$0xff]   ;;  %v11830_v59 = vld [vmem:[%s15603_s1 + $0x1d44] ss:$16 sps:$4 sm:$0xff]  }
 0x387   : > { %6860 = vmatpush1.bf16.msra.mxu0 %v11762_v21  ;;  %6901 = vmatpush1.bf16.msra.mxu1 %v11765_v5  ;;  %v11828_v21 = vld [vmem:[%s15603_s1 + $0x1d40] ss:$16 sps:$4 sm:$0xff]   ;;  %v11831_v5 = vld [vmem:[%s15603_s1 + $0x1d48] ss:$16 sps:$4 sm:$0xff]  }
 0x388   : > { %7304 = vmatprep.subr.bf16.mxu0 %v11770_v6  ;;  %7345 = vmatprep.subr.bf16.mxu1 %v11773_v47  ;;  %v11836_v6 = vld [vmem:[%s15603_s1 + $0x1d64] ss:$16 sps:$4 sm:$0xff]   ;;  %v11839_v47 = vld [vmem:[%s15603_s1 + $0x1d6c] ss:$16 sps:$4 sm:$0xff]  }
 0x38a   : > { %6862 = vmatmul.mubr.bf16.vlgmr.msra.gmra.mrb[52].mxu0 %v6499_v57  ;;  %6903 = vmatmul.mubr.bf16.vlgmr.msra.gmra.mrb[52].mxu1 %v6499_v57  ;;  %v11834_v57 = vld [vmem:[%s15603_s1 + $0x1d60] ss:$16 sps:$4 sm:$0xff]  }
 0x38b   : > { %7305 = vmatpush1.bf16.msra.mxu0 %v11768_v24  ;;  %7346 = vmatpush1.bf16.msra.mxu1 %v11771_v25  ;;  %v11837_v24 = vld [vmem:[%s15603_s1 + $0x1d68] ss:$16 sps:$4 sm:$0xff]   ;;  %v11842_v25 = vld [vmem:[%s15603_s1 + $0x1d84] ss:$16 sps:$4 sm:$0xff]  }
 0x38c   : > { %7306 = vmatprep.subr.bf16.mxu0 %v11776_v51  ;;  %7347 = vmatprep.subr.bf16.mxu1 %v11779_v37  ;;  %v11845_v51 = vld [vmem:[%s15603_s1 + $0x1d8c] ss:$16 sps:$4 sm:$0xff]   ;;  %v11840_v37 = vld [vmem:[%s15603_s1 + $0x1d80] ss:$16 sps:$4 sm:$0xff]  }
 0x38d   : > { %7336 = vmatprep.mubr.bf16.mxu0 %v6981_v7  ;;  %7377 = vmatprep.mubr.bf16.mxu1 %v6981_v7  ;;  %v11843_v7 = vld [vmem:[%s15603_s1 + $0x1d88] ss:$16 sps:$4 sm:$0xff]  }
 0x38f   : > { %7307 = vmatpush1.bf16.msra.mxu0 %v11774_v3  ;;  %7348 = vmatpush1.bf16.msra.mxu1 %v11777_v56  ;;  %v11848_v3 = vld [vmem:[%s15603_s1 + $0x1da4] ss:$16 sps:$4 sm:$0xff]   ;;  %v11851_v56 = vld [vmem:[%s15603_s1 + $0x1dac] ss:$16 sps:$4 sm:$0xff]  }
 0x390   : > { %7308 = vmatprep.subr.bf16.mxu0 %v11782_v63  ;;  %7349 = vmatprep.subr.bf16.mxu1 %v11785_v14  ;;  %v11846_v63 = vld [vmem:[%s15603_s1 + $0x1da0] ss:$16 sps:$4 sm:$0xff]   ;;  %v11849_v14 = vld [vmem:[%s15603_s1 + $0x1da8] ss:$16 sps:$4 sm:$0xff]  }
 0x393   : > { %7309 = vmatpush1.bf16.msra.mxu0 %v11780_v38  ;;  %7350 = vmatpush1.bf16.msra.mxu1 %v11783_v44  ;;  %v11854_v38 = vld [vmem:[%s15603_s1 + $0x1dc4] ss:$16 sps:$4 sm:$0xff]   ;;  %v11857_v44 = vld [vmem:[%s15603_s1 + $0x1dcc] ss:$16 sps:$4 sm:$0xff]  }
 0x394   : > { %7310 = vmatprep.subr.bf16.mxu0 %v11788_v27  ;;  %7351 = vmatprep.subr.bf16.mxu1 %v11791_v32  ;;  %v11852_v27 = vld [vmem:[%s15603_s1 + $0x1dc0] ss:$16 sps:$4 sm:$0xff]   ;;  %v11855_v32 = vld [vmem:[%s15603_s1 + $0x1dc8] ss:$16 sps:$4 sm:$0xff]  }
 0x397   : > { %7311 = vmatpush1.bf16.msra.mxu0 %v11786_v15  ;;  %7352 = vmatpush1.bf16.msra.mxu1 %v11789_v49  ;;  %v11860_v15 = vld [vmem:[%s15603_s1 + $0x1de4] ss:$16 sps:$4 sm:$0xff]   ;;  %v11863_v49 = vld [vmem:[%s15603_s1 + $0x1dec] ss:$16 sps:$4 sm:$0xff]  }
 0x398   : > { %7312 = vmatprep.subr.bf16.mxu0 %v11794_v60  ;;  %7353 = vmatprep.subr.bf16.mxu1 %v11797_v39  ;;  %v11858_v60 = vld [vmem:[%s15603_s1 + $0x1de0] ss:$16 sps:$4 sm:$0xff]   ;;  %v11861_v39 = vld [vmem:[%s15603_s1 + $0x1de8] ss:$16 sps:$4 sm:$0xff]  }
 0x39b   : > { %7313 = vmatpush1.bf16.msra.mxu0 %v11792_v36  ;;  %7354 = vmatpush1.bf16.msra.mxu1 %v11795_v42  ;;  %v11866_v36 = vld [vmem:[%s15603_s1 + $0x1e04] ss:$16 sps:$4 sm:$0xff]   ;;  %v11869_v42 = vld [vmem:[%s15603_s1 + $0x1e0c] ss:$16 sps:$4 sm:$0xff]  }
 0x39c   : > { %7314 = vmatprep.subr.bf16.mxu0 %v11800_v23  ;;  %7355 = vmatprep.subr.bf16.mxu1 %v11803_v40  ;;  %v7458_v23 = vrot.slane %v6501_v53, 1  ;;  %v7459_v40 = vrot.slane %v6503_v48, 2  ;;  %v11872_v53 = vld [vmem:[%s15603_s1 + $0x1e24] ss:$16 sps:$4 sm:$0xff]  }
 0x39d   : > { %v5414_v19 = vpop.f32.mrb[40].mxu0  ;;  %v5455_v22 = vpop.f32.mrb[40].mxu1 }
 0x39e   : > { %v15092_v26 = vadd.f32 %v5414_v19, %v14881_v54  ;;  %v15095_v29 = vadd.f32 %v5455_v22, %v14884_v55  ;;  %v5416_v52 = vpop.f32.mrb[41].mxu0  ;;  %v5457_v10 = vpop.f32.mrb[41].mxu1  ;;  %v11804_v54 = vld [vmem:[%s15603_s1 + $0x1cc0] ss:$16 sps:$4 sm:$0xff]   ;;  %v11807_v55 = vld [vmem:[%s15603_s1 + $0x1cc8] ss:$16 sps:$4 sm:$0xff]   ;;  %v7460_v48 = vor.u32 %v7459_v40, %v7458_v23 }
 0x39f   : > { %v15098_v11 = vadd.f32 %v5416_v52, %v14887_v8  ;;  %v15101_v58 = vadd.f32 %v5457_v10, %v14890_v13  ;;  %v5418_v62 = vpop.f32.mrb[42].mxu0  ;;  %v5459_v61 = vpop.f32.mrb[42].mxu1  ;;  %7315 = vmatpush1.bf16.msra.mxu0 %v11798_v43  ;;  %7356 = vmatpush1.bf16.msra.mxu1 %v11801_v16  ;;  %v11812_v8 = vld [vmem:[%s15603_s1 + $0x1ce4] ss:$16 sps:$4 sm:$0xff]   ;;  %v11815_v13 = vld [vmem:[%s15603_s1 + $0x1cec] ss:$16 sps:$4 sm:$0xff]  }
 0x3a0   : > { %v5419_v12 = vpop.f32.mrb[43].mxu0  ;;  %v5460_v2 = vpop.f32.mrb[43].mxu1  ;;  %7316 = vmatprep.subr.bf16.mxu0 %v11806_v17  ;;  %7357 = vmatprep.subr.bf16.mxu1 %v11809_v18  ;;  %v6980_v43 = vrot.slane %v14802_v9, 1  ;;  %v11864_v16 = vld [vmem:[%s15603_s1 + $0x1e00] ss:$16 sps:$4 sm:$0xff]  }
 0x3a1   : > { %v11867_v17 = vld [vmem:[%s15603_s1 + $0x1e08] ss:$16 sps:$4 sm:$0xff]   ;;  %v11870_v18 = vld [vmem:[%s15603_s1 + $0x1e20] ss:$16 sps:$4 sm:$0xff]   ;;  %v11878_v22 = vld [vmem:[%s15603_s1 + $0x1e44] ss:$16 sps:$4 sm:$0xff]  }
 0x3a2   : > { %v11873_v19 = vld [vmem:[%s15603_s1 + $0x1e28] ss:$16 sps:$4 sm:$0xff]   ;;  %v11881_v52 = vld [vmem:[%s15603_s1 + $0x1e4c] ss:$16 sps:$4 sm:$0xff]   ;;  %v11876_v10 = vld [vmem:[%s15603_s1 + $0x1e40] ss:$16 sps:$4 sm:$0xff]  }
 0x3a3   : > { %7317 = vmatpush1.bf16.msra.mxu0 %v11804_v54  ;;  %7358 = vmatpush1.bf16.msra.mxu1 %v11807_v55  ;;  %v11879_v62 = vld [vmem:[%s15603_s1 + $0x1e48] ss:$16 sps:$4 sm:$0xff]   ;;  %v11884_v61 = vld [vmem:[%s15603_s1 + $0x1e64] ss:$16 sps:$4 sm:$0xff]   ;;  %v11887_v54 = vld [vmem:[%s15603_s1 + $0x1e6c] ss:$16 sps:$4 sm:$0xff]  }
 0x3a4   : > { %7318 = vmatprep.subr.bf16.mxu0 %v11812_v8  ;;  %7359 = vmatprep.subr.bf16.mxu1 %v11815_v13  ;;  %v11882_v55 = vld [vmem:[%s15603_s1 + $0x1e60] ss:$16 sps:$4 sm:$0xff]   ;;  %v11885_v12 = vld [vmem:[%s15603_s1 + $0x1e68] ss:$16 sps:$4 sm:$0xff]   ;;  %v11890_v2 = vld [vmem:[%s15603_s1 + $0x1e84] ss:$16 sps:$4 sm:$0xff]  }
 0x3a5   : > { %v11893_v8 = vld [vmem:[%s15603_s1 + $0x1e8c] ss:$16 sps:$4 sm:$0xff]   ;;  %v11888_v13 = vld [vmem:[%s15603_s1 + $0x1e80] ss:$16 sps:$4 sm:$0xff]   ;;  %v11933_v23 = vld [vmem:[%s15603_s1 + $0x1f68] ss:$16 sps:$4 sm:$0xff]  }
 0x3a6   : > { %v11938_v40 = vld [vmem:[%s15603_s1 + $0x1f84] ss:$16 sps:$4 sm:$0xff]  }
 0x3a7   : > { %7319 = vmatpush1.bf16.msra.mxu0 %v11810_v31  ;;  %7360 = vmatpush1.bf16.msra.mxu1 %v11813_v30  ;;  %v11891_v31 = vld [vmem:[%s15603_s1 + $0x1e88] ss:$16 sps:$4 sm:$0xff]   ;;  %v11896_v30 = vld [vmem:[%s15603_s1 + $0x1ea4] ss:$16 sps:$4 sm:$0xff]  }
 0x3a8   : > { %7320 = vmatprep.subr.bf16.mxu0 %v11818_v45  ;;  %7361 = vmatprep.subr.bf16.mxu1 %v11821_v35  ;;  %v11899_v45 = vld [vmem:[%s15603_s1 + $0x1eac] ss:$16 sps:$4 sm:$0xff]   ;;  %v11894_v35 = vld [vmem:[%s15603_s1 + $0x1ea0] ss:$16 sps:$4 sm:$0xff]  }
 0x3ab   : > { %7321 = vmatpush1.bf16.msra.mxu0 %v11816_v33  ;;  %7362 = vmatpush1.bf16.msra.mxu1 %v11819_v34  ;;  %v11897_v33 = vld [vmem:[%s15603_s1 + $0x1ea8] ss:$16 sps:$4 sm:$0xff]   ;;  %v11902_v34 = vld [vmem:[%s15603_s1 + $0x1ec4] ss:$16 sps:$4 sm:$0xff]  }
 0x3ac   : > { %7322 = vmatprep.subr.bf16.mxu0 %v11824_v41  ;;  %7363 = vmatprep.subr.bf16.mxu1 %v11827_v46  ;;  %v11905_v41 = vld [vmem:[%s15603_s1 + $0x1ecc] ss:$16 sps:$4 sm:$0xff]  }
 0x3af   : > { %7323 = vmatpush1.bf16.msra.mxu0 %v11822_v0  ;;  %7364 = vmatpush1.bf16.msra.mxu1 %v11825_v50 }
 0x3b0   : > { %7324 = vmatprep.subr.bf16.mxu0 %v11830_v59  ;;  %7365 = vmatprep.subr.bf16.mxu1 %v11833_v20 }
 0x3b3   : > { %7325 = vmatpush1.bf16.msra.mxu0 %v11828_v21  ;;  %7366 = vmatpush1.bf16.msra.mxu1 %v11831_v5 }
 0x3b4   : > { %7326 = vmatprep.subr.bf16.mxu0 %v11836_v6  ;;  %7367 = vmatprep.subr.bf16.mxu1 %v11839_v47 }
 0x3b7   : > { %7327 = vmatpush1.bf16.msra.mxu0 %v11834_v57  ;;  %7368 = vmatpush1.bf16.msra.mxu1 %v11837_v24 }
 0x3b8   : > { %7328 = vmatprep.subr.bf16.mxu0 %v11842_v25  ;;  %7369 = vmatprep.subr.bf16.mxu1 %v11845_v51  ;;  %v11906_v51 = vld [vmem:[%s15603_s1 + $0x1ee0] ss:$16 sps:$4 sm:$0xff]  }
 0x3bb   : > { %7329 = vmatpush1.bf16.msra.mxu0 %v11840_v37  ;;  %7370 = vmatpush1.bf16.msra.mxu1 %v11843_v7  ;;  %v11909_v37 = vld [vmem:[%s15603_s1 + $0x1ee8] ss:$16 sps:$4 sm:$0xff]   ;;  %v11914_v7 = vld [vmem:[%s15603_s1 + $0x1f04] ss:$16 sps:$4 sm:$0xff]  }
 0x3bc   : > { %7330 = vmatprep.subr.bf16.mxu0 %v11848_v3  ;;  %7371 = vmatprep.subr.bf16.mxu1 %v11851_v56  ;;  %v11917_v3 = vld [vmem:[%s15603_s1 + $0x1f0c] ss:$16 sps:$4 sm:$0xff]   ;;  %v11912_v56 = vld [vmem:[%s15603_s1 + $0x1f00] ss:$16 sps:$4 sm:$0xff]  }
 0x3bf   : > { %7331 = vmatpush1.bf16.msra.mxu0 %v11846_v63  ;;  %7372 = vmatpush1.bf16.msra.mxu1 %v11849_v14  ;;  %v11915_v63 = vld [vmem:[%s15603_s1 + $0x1f08] ss:$16 sps:$4 sm:$0xff]   ;;  %v11920_v14 = vld [vmem:[%s15603_s1 + $0x1f24] ss:$16 sps:$4 sm:$0xff]  }
 0x3c0   : > { %7332 = vmatprep.subr.bf16.mxu0 %v11854_v38  ;;  %7373 = vmatprep.subr.bf16.mxu1 %v11857_v44  ;;  %v11923_v38 = vld [vmem:[%s15603_s1 + $0x1f2c] ss:$16 sps:$4 sm:$0xff]   ;;  %v11918_v44 = vld [vmem:[%s15603_s1 + $0x1f20] ss:$16 sps:$4 sm:$0xff]  }
 0x3c3   : > { %7333 = vmatpush1.bf16.msra.mxu0 %v11852_v27  ;;  %7374 = vmatpush1.bf16.msra.mxu1 %v11855_v32  ;;  %v11921_v27 = vld [vmem:[%s15603_s1 + $0x1f28] ss:$16 sps:$4 sm:$0xff]   ;;  %v11926_v32 = vld [vmem:[%s15603_s1 + $0x1f44] ss:$16 sps:$4 sm:$0xff]  }
 0x3c4   : > { %7334 = vmatprep.subr.bf16.mxu0 %v11860_v15  ;;  %7375 = vmatprep.subr.bf16.mxu1 %v11863_v49  ;;  %v11929_v15 = vld [vmem:[%s15603_s1 + $0x1f4c] ss:$16 sps:$4 sm:$0xff]   ;;  %v11924_v49 = vld [vmem:[%s15603_s1 + $0x1f40] ss:$16 sps:$4 sm:$0xff]  }
 0x3c7   : > { %7335 = vmatpush1.bf16.msra.mxu0 %v11858_v60  ;;  %7376 = vmatpush1.bf16.msra.mxu1 %v11861_v39  ;;  %v11927_v60 = vld [vmem:[%s15603_s1 + $0x1f48] ss:$16 sps:$4 sm:$0xff]   ;;  %v11932_v39 = vld [vmem:[%s15603_s1 + $0x1f64] ss:$16 sps:$4 sm:$0xff]  }
 0x3c8   : > { %7783 = vmatprep.subr.bf16.mxu0 %v11866_v36  ;;  %7824 = vmatprep.subr.bf16.mxu1 %v11869_v42  ;;  %v11935_v36 = vld [vmem:[%s15603_s1 + $0x1f6c] ss:$16 sps:$4 sm:$0xff]   ;;  %v11930_v42 = vld [vmem:[%s15603_s1 + $0x1f60] ss:$16 sps:$4 sm:$0xff]  }
 0x3ca   : > { %7337 = vmatmul.mubr.bf16.vlgmr.msra.gmra.mrb[56].mxu0 %v6980_v43  ;;  %7378 = vmatmul.mubr.bf16.vlgmr.msra.gmra.mrb[56].mxu1 %v6980_v43  ;;  %v11941_v43 = vld [vmem:[%s15603_s1 + $0x1f8c] ss:$16 sps:$4 sm:$0xff]  }
 0x3cb   : > { %7784 = vmatpush1.bf16.msra.mxu0 %v11864_v16  ;;  %7825 = vmatpush1.bf16.msra.mxu1 %v11867_v17  ;;  %v11936_v16 = vld [vmem:[%s15603_s1 + $0x1f80] ss:$16 sps:$4 sm:$0xff]   ;;  %v11939_v17 = vld [vmem:[%s15603_s1 + $0x1f88] ss:$16 sps:$4 sm:$0xff]  }
 0x3cc   : > { %7785 = vmatprep.subr.bf16.mxu0 %v11872_v53  ;;  %7826 = vmatprep.subr.bf16.mxu1 %v11875_v4  ;;  %v11944_v53 = vld [vmem:[%s15603_s1 + $0x1fa4] ss:$16 sps:$4 sm:$0xff]   ;;  %v11947_v4 = vld [vmem:[%s15603_s1 + $0x1fac] ss:$16 sps:$4 sm:$0xff]  }
 0x3cd   : > { %7815 = vmatprep.mubr.bf16.mxu0 %v7460_v48  ;;  %7856 = vmatprep.mubr.bf16.mxu1 %v7460_v48  ;;  %v11942_v48 = vld [vmem:[%s15603_s1 + $0x1fa0] ss:$16 sps:$4 sm:$0xff]  }
 0x3cf   : > { %7786 = vmatpush1.bf16.msra.mxu0 %v11870_v18  ;;  %7827 = vmatpush1.bf16.msra.mxu1 %v11873_v19  ;;  %v11945_v18 = vld [vmem:[%s15603_s1 + $0x1fa8] ss:$16 sps:$4 sm:$0xff]   ;;  %v11950_v19 = vld [vmem:[%s15603_s1 + $0x1fc4] ss:$16 sps:$4 sm:$0xff]  }
 0x3d0   : > { %7787 = vmatprep.subr.bf16.mxu0 %v11878_v22  ;;  %7828 = vmatprep.subr.bf16.mxu1 %v11881_v52  ;;  %v11953_v22 = vld [vmem:[%s15603_s1 + $0x1fcc] ss:$16 sps:$4 sm:$0xff]   ;;  %v11948_v52 = vld [vmem:[%s15603_s1 + $0x1fc0] ss:$16 sps:$4 sm:$0xff]  }
 0x3d3   : > { %7788 = vmatpush1.bf16.msra.mxu0 %v11876_v10  ;;  %7829 = vmatpush1.bf16.msra.mxu1 %v11879_v62  ;;  %v11951_v10 = vld [vmem:[%s15603_s1 + $0x1fc8] ss:$16 sps:$4 sm:$0xff]   ;;  %v11956_v62 = vld [vmem:[%s15603_s1 + $0x1fe4] ss:$16 sps:$4 sm:$0xff]  }
 0x3d4   : > { %7789 = vmatprep.subr.bf16.mxu0 %v11884_v61  ;;  %7830 = vmatprep.subr.bf16.mxu1 %v11887_v54  ;;  %v11959_v61 = vld [vmem:[%s15603_s1 + $0x1fec] ss:$16 sps:$4 sm:$0xff]   ;;  %v7455_v54 = vrot.slane %v6494_v1, 1 }
 0x3d7   : > { %7790 = vmatpush1.bf16.msra.mxu0 %v11882_v55  ;;  %7831 = vmatpush1.bf16.msra.mxu1 %v11885_v12  ;;  %v7456_v55 = vrot.slane %v6496_v28, 2  ;;  %v11954_v12 = vld [vmem:[%s15603_s1 + $0x1fe0] ss:$16 sps:$4 sm:$0xff]  }
 0x3d8   : > { %7791 = vmatprep.subr.bf16.mxu0 %v11890_v2  ;;  %7832 = vmatprep.subr.bf16.mxu1 %v11893_v8  ;;  %v11957_v2 = vld [vmem:[%s15603_s1 + $0x1fe8] ss:$16 sps:$4 sm:$0xff]  }
 0x3d9   : > { %v7457_v8 = vor.u32 %v7456_v55, %v7455_v54 }
 0x3db   : > { %7792 = vmatpush1.bf16.msra.mxu0 %v11888_v13  ;;  %7833 = vmatpush1.bf16.msra.mxu1 %v11891_v31 }
 0x3dc   : > { %7793 = vmatprep.subr.bf16.mxu0 %v11896_v30  ;;  %7834 = vmatprep.subr.bf16.mxu1 %v11899_v45 }
 0x3dd   : > { %v5893_v46 = vpop.f32.mrb[44].mxu0  ;;  %v5934_v0 = vpop.f32.mrb[44].mxu1 }
 0x3de   : > { %v15301_v50 = vadd.f32 %v5893_v46, %v15092_v26  ;;  %v15304_v59 = vadd.f32 %v5934_v0, %v15095_v29  ;;  %v5895_v20 = vpop.f32.mrb[45].mxu0  ;;  %v5936_v21 = vpop.f32.mrb[45].mxu1  ;;  %v11900_v26 = vld [vmem:[%s15603_s1 + $0x1ec0] ss:$16 sps:$4 sm:$0xff]   ;;  %v11903_v29 = vld [vmem:[%s15603_s1 + $0x1ec8] ss:$16 sps:$4 sm:$0xff]  }
 0x3df   : > { %v15307_v5 = vadd.f32 %v5895_v20, %v15098_v11  ;;  %v15310_v6 = vadd.f32 %v5936_v21, %v15101_v58  ;;  %v5897_v47 = vpop.f32.mrb[46].mxu0  ;;  %v5938_v57 = vpop.f32.mrb[46].mxu1  ;;  %7794 = vmatpush1.bf16.msra.mxu0 %v11894_v35  ;;  %7835 = vmatpush1.bf16.msra.mxu1 %v11897_v33  ;;  %v11908_v11 = vld [vmem:[%s15603_s1 + $0x1ee4] ss:$16 sps:$4 sm:$0xff]   ;;  %v11911_v58 = vld [vmem:[%s15603_s1 + $0x1eec] ss:$16 sps:$4 sm:$0xff]  }
 0x3e0   : > { %v5898_v24 = vpop.f32.mrb[47].mxu0  ;;  %v5939_v25 = vpop.f32.mrb[47].mxu1  ;;  %7795 = vmatprep.subr.bf16.mxu0 %v11902_v34  ;;  %7836 = vmatprep.subr.bf16.mxu1 %v11905_v41 }
 0x3e3   : > { %7796 = vmatpush1.bf16.msra.mxu0 %v11900_v26  ;;  %7837 = vmatpush1.bf16.msra.mxu1 %v11903_v29 }
 0x3e4   : > { %7797 = vmatprep.subr.bf16.mxu0 %v11908_v11  ;;  %7838 = vmatprep.subr.bf16.mxu1 %v11911_v58 }
 0x3e7   : > { %7798 = vmatpush1.bf16.msra.mxu0 %v11906_v51  ;;  %7839 = vmatpush1.bf16.msra.mxu1 %v11909_v37 }
 0x3e8   : > { %7799 = vmatprep.subr.bf16.mxu0 %v11914_v7  ;;  %7840 = vmatprep.subr.bf16.mxu1 %v11917_v3 }
 0x3eb   : > { %7800 = vmatpush1.bf16.msra.mxu0 %v11912_v56  ;;  %7841 = vmatpush1.bf16.msra.mxu1 %v11915_v63 }
 0x3ec   : > { %7801 = vmatprep.subr.bf16.mxu0 %v11920_v14  ;;  %7842 = vmatprep.subr.bf16.mxu1 %v11923_v38 }
 0x3ef   : > { %7802 = vmatpush1.bf16.msra.mxu0 %v11918_v44  ;;  %7843 = vmatpush1.bf16.msra.mxu1 %v11921_v27  ;;  %v7871_v27 = vlaneseq }
 0x3f0   : > { %7803 = vmatprep.subr.bf16.mxu0 %v11926_v32  ;;  %7844 = vmatprep.subr.bf16.mxu1 %v11929_v15 }
 0x3f1   : > { %v7872_v32 = vshrl.u32 %v7871_v27, 7 }
 0x3f3   : > { %7804 = vmatpush1.bf16.msra.mxu0 %v11924_v49  ;;  %7845 = vmatpush1.bf16.msra.mxu1 %v11927_v60  ;;  %v7873_v15 = vsub.s32 0, %v7872_v32  ;;  %v7881_v49 = vsub.s32 2, %v7872_v32  ;;  %v7869_v60 = vld [vmem:[%s15604_s2] sm:$0xf] }
 0x3f4   : > { %7805 = vmatprep.subr.bf16.mxu0 %v11932_v39  ;;  %7846 = vmatprep.subr.bf16.mxu1 %v11935_v36  ;;  %v7877_v39 = vsub.s32 1, %v7872_v32  ;;  %v12008_v36 = vmov 1983009808  }
 0x3f7   : > { %7806 = vmatpush1.bf16.msra.mxu0 %v11930_v42  ;;  %7847 = vmatpush1.bf16.msra.mxu1 %v11933_v23  ;;  %v7906_v42 = vunpack.c.l.s4 %v12008_v36  ;;  %v7885_v23 = vsub.s32 3, %v7872_v32 }
 0x3f8   : > { %7807 = vmatprep.subr.bf16.mxu0 %v11938_v40  ;;  %7848 = vmatprep.subr.bf16.mxu1 %v11941_v43 }
 0x3fb   : > { %7808 = vmatpush1.bf16.msra.mxu0 %v11936_v16  ;;  %7849 = vmatpush1.bf16.msra.mxu1 %v11939_v17  ;;  %v7874_v16 = vrot.slane %v7869_v60, %v7873_v15  ;;  %v7882_v17 = vrot.slane %v7869_v60, %v7881_v49 }
 0x3fc   : > { %7809 = vmatprep.subr.bf16.mxu0 %v11944_v53  ;;  %7850 = vmatprep.subr.bf16.mxu1 %v11947_v4 }
 0x3ff   : > { %7810 = vmatpush1.bf16.msra.mxu0 %v11942_v48  ;;  %7851 = vmatpush1.bf16.msra.mxu1 %v11945_v18  ;;  %v7878_v48 = vrot.slane %v7869_v60, %v7877_v39  ;;  %v7907_v18 = vunpack.c.0.s8 %v7906_v42 }
 0x400   : > { %7811 = vmatprep.subr.bf16.mxu0 %v11950_v19  ;;  %7852 = vmatprep.subr.bf16.mxu1 %v11953_v22  ;;  %v7886_v19 = vrot.slane %v7869_v60, %v7885_v23 }
 0x403   : > { %7812 = vmatpush1.bf16.msra.mxu0 %v11948_v52  ;;  %7853 = vmatpush1.bf16.msra.mxu1 %v11951_v10 }
 0x404   : > { %7813 = vmatprep.subr.bf16.mxu0 %v11956_v62  ;;  %7854 = vmatprep.subr.bf16.mxu1 %v11959_v61 }
 0x407   : > { %7814 = vmatpush1.bf16.msra.mxu0 %v11954_v12  ;;  %7855 = vmatpush1.bf16.msra.mxu1 %v11957_v2 }
 0x40a   : > { %7816 = vmatmul.mubr.bf16.vlgmr.msra.gmra.mrb[60].mxu0 %v7457_v8  ;;  %7857 = vmatmul.mubr.bf16.vlgmr.msra.gmra.mrb[60].mxu1 %v7457_v8 }
 0x41d   : > { %v6376_v1 = vpop.f32.mrb[48].mxu0  ;;  %v6417_v9 = vpop.f32.mrb[48].mxu1 }
 0x41e   : > { %v6424_v28 = vadd.f32 %v6376_v1, %v15301_v50  ;;  %v6426_v13 = vadd.f32 %v6417_v9, %v15304_v59  ;;  %v6378_v31 = vpop.f32.mrb[49].mxu0  ;;  %v6419_v30 = vpop.f32.mrb[49].mxu1 }
 0x41f   : > { %v6425_v45 = vadd.f32 %v6378_v31, %v15307_v5  ;;  %v6427_v35 = vadd.f32 %v6419_v30, %v15310_v6  ;;  %v6380_v33 = vpop.f32.mrb[50].mxu0  ;;  %v6421_v34 = vpop.f32.mrb[50].mxu1 }
 0x420   : > { %v6381_v41 = vpop.f32.mrb[51].mxu0  ;;  %v6422_v46 = vpop.f32.mrb[51].mxu1 }
 0x421   : > { %v7939_v41 = vld [vmem:[%s7923_s26] sm:$0xff] }
 0x45d   : > { %v6863_v0 = vpop.f32.mrb[52].mxu0  ;;  %v6904_v20 = vpop.f32.mrb[52].mxu1 }
 0x45e   : > { %v6911_v21 = vadd.f32 %v6863_v0, %v6424_v28  ;;  %v6913_v47 = vadd.f32 %v6904_v20, %v6426_v13  ;;  %v6865_v57 = vpop.f32.mrb[53].mxu0  ;;  %v6906_v26 = vpop.f32.mrb[53].mxu1  ;;  %v15455_v13 = vsub.s32 %v7907_v18, %v7872_v32 }
 0x45f   : > { %v6912_v29 = vadd.f32 %v6865_v57, %v6425_v45  ;;  %v6914_v50 = vadd.f32 %v6906_v26, %v6427_v35  ;;  %v6867_v24 = vpop.f32.mrb[54].mxu0  ;;  %v6908_v59 = vpop.f32.mrb[54].mxu1 }
 0x460   : > { %v6868_v25 = vpop.f32.mrb[55].mxu0  ;;  %v6909_v11 = vpop.f32.mrb[55].mxu1 }
 0x49d   : > { %v7338_v58 = vpop.f32.mrb[56].mxu0  ;;  %v7379_v5 = vpop.f32.mrb[56].mxu1 }
 0x49e   : > { %v7386_v51 = vadd.f32 %v7338_v58, %v6911_v21  ;;  %v7388_v6 = vadd.f32 %v7379_v5, %v6913_v47  ;;  %v7340_v37 = vpop.f32.mrb[57].mxu0  ;;  %v7381_v7 = vpop.f32.mrb[57].mxu1 }
 0x49f   : > { %v7387_v3 = vadd.f32 %v7340_v37, %v6912_v29  ;;  %v7389_v56 = vadd.f32 %v7381_v7, %v6914_v50  ;;  %v7342_v63 = vpop.f32.mrb[58].mxu0  ;;  %v7383_v14 = vpop.f32.mrb[58].mxu1 }
 0x4a0   : > { %v7343_v38 = vpop.f32.mrb[59].mxu0  ;;  %v7384_v44 = vpop.f32.mrb[59].mxu1 }
 0x4dd   : > { %v7817_v53 = vpop.f32.mrb[60].mxu0  ;;  %v7858_v4 = vpop.f32.mrb[60].mxu1 }
 0x4de   : > { %v7865_v22 = vadd.f32 %v7817_v53, %v7386_v51  ;;  %v7867_v52 = vadd.f32 %v7858_v4, %v7388_v6  ;;  %v7819_v10 = vpop.f32.mrb[61].mxu0  ;;  %v7860_v62 = vpop.f32.mrb[61].mxu1 }
 0x4df   : > { %v7866_v61 = vadd.f32 %v7819_v10, %v7387_v3  ;;  %v7868_v54 = vadd.f32 %v7860_v62, %v7389_v56  ;;  %v7821_v55 = vpop.f32.mrb[62].mxu0  ;;  %v7862_v12 = vpop.f32.mrb[62].mxu1 }
 0x4e0   : > { %v7891_v2 = vadd.f32 %v7874_v16, %v7865_v22  ;;  %v7893_v8 = vadd.f32 %v7882_v17, %v7867_v52  ;;  %v7822_v1 = vpop.f32.mrb[63].mxu0  ;;  %v7863_v9 = vpop.f32.mrb[63].mxu1 }
 0x4e1   : > { %v7892_v28 = vadd.f32 %v7878_v48, %v7866_v61  ;;  %v7894_v31 = vadd.f32 %v7886_v19, %v7868_v54 }
 0x4e3   : > { %v10358_v30 = vpack.c.bf16 %v7892_v28, %v7891_v2  ;;  %v10359_v45 = vpack.c.bf16 %v7894_v31, %v7893_v8 }
 0x4e4   : > { %7945 = sbr.rel (%p10362_p6) target bundleno = 1341 (0x53d), region = 36 }
 0x4e5   : > { %v7911_v35 = vrot.slane %v10358_v30, %v15455_v13  ;;  %v7918_v33 = vrot.slane %v10359_v45, %v15455_v13 }
 0x4e7   : > { %v7919_v46 = vcombine.low %v7911_v35, %v7918_v33 }
 0x4e9   : > { %v7940_v0 = vsel %vm15467_vm14, %v7919_v46, %v7939_v41 }
 0x4ea   : > { %7941 = vst [vmem:[%s7923_s26] sm:$0xff] %v7940_v0 }
 0x4f1   : > { %v15475_v20 = vld [vmem:[%s15453_s24] sm:$0xff]  ;;  %v15478_v21 = vld [vmem:[%s15453_s24 + $0x8] sm:$0xff]  ;;  %v15481_v47 = vld [vmem:[%s15453_s24 + $0x10] sm:$0xff] }
 0x4f2   : > { %v15484_v57 = vunpack.c.l.bf16 %v15475_v20  ;;  %v15487_v26 = vunpack.c.h.bf16 %v15475_v20  ;;  %v15490_v29 = vunpack.c.l.bf16 %v15478_v21  ;;  %v15493_v50 = vunpack.c.h.bf16 %v15478_v21 }
 0x4f3   : > { %v15496_v24 = vunpack.c.l.bf16 %v15481_v47  ;;  %v15499_v59 = vunpack.c.h.bf16 %v15481_v47 }
 0x4f4   : > { %v7961_v25 = vcombine.high %v15484_v57, %v15484_v57  ;;  %v7962_v11 = vcombine.high %v15487_v26, %v15487_v26  ;;  %v7963_v58 = vcombine.high %v15490_v29, %v15490_v29  ;;  %v7964_v5 = vcombine.high %v15493_v50, %v15493_v50 }
 0x4f5   : > { %v7965_v51 = vcombine.high %v15496_v24, %v15496_v24  ;;  %v7966_v6 = vcombine.high %v15499_v59, %v15499_v59  ;;  %v7974_v37 = vsel %vm7973_vm15, %v15484_v57, 0.0  ;;  %v7975_v7 = vsel %vm7973_vm15, %v15490_v29, 0.0 }
 0x4f6   : > { %v7976_v3 = vadd.f32 %v7975_v7, %v7974_v37  ;;  %v7977_v56 = vsel %vm7973_vm15, %v15496_v24, 0.0  ;;  %v7979_v63 = vsel %vm7973_vm15, %v7961_v25, 0.0  ;;  %v7980_v14 = vsel %vm7973_vm15, %v7963_v58, 0.0 }
 0x4f7   : > { %v7981_v38 = vadd.f32 %v7980_v14, %v7979_v63  ;;  %v7982_v44 = vsel %vm7973_vm15, %v7965_v51, 0.0  ;;  %v7984_v27 = vsel %vm7973_vm15, %v15487_v26, 0.0  ;;  %v7985_v32 = vsel %vm7973_vm15, %v15493_v50, 0.0 }
 0x4f8   : > { %v7978_v15 = vadd.f32 %v7977_v56, %v7976_v3  ;;  %v7986_v49 = vadd.f32 %v7985_v32, %v7984_v27  ;;  %v7987_v60 = vsel %vm7973_vm15, %v15499_v59, 0.0  ;;  %v7989_v39 = vsel %vm7973_vm15, %v7962_v11, 0.0 }
 0x4f9   : > { %v7983_v36 = vadd.f32 %v7982_v44, %v7981_v38  ;;  %v7990_v42 = vsel %vm7973_vm15, %v7964_v5, 0.0  ;;  %v7992_v23 = vsel %vm7973_vm15, %v7966_v6, 0.0  ;;  %v8026_v17 = vmul.f32 %v15484_v57, %v15484_v57 }
 0x4fa   : > { %v7988_v40 = vadd.f32 %v7987_v60, %v7986_v49  ;;  %v7991_v43 = vadd.f32 %v7990_v42, %v7989_v39  ;;  %v7994_v16 = vsel %vm7973_vm15, %v7978_v15, 0.0  ;;  %v8028_v48 = vmul.f32 %v15490_v29, %v15490_v29 }
 0x4fb   : > { %v7995_v53 = vrot.slane %v7994_v16, 4  ;;  %v8001_v4 = vsel %vm7973_vm15, %v7983_v36, 0.0  ;;  %v8030_v52 = vmul.f32 %v15496_v24, %v15496_v24  ;;  %v8027_v61 = vmul.f32 %v15487_v26, %v15487_v26 }
 0x4fc   : > { %v7993_v18 = vadd.f32 %v7992_v23, %v7991_v43  ;;  %v8002_v19 = vrot.slane %v8001_v4, 4  ;;  %v8008_v22 = vsel %vm7973_vm15, %v7988_v40, 0.0  ;;  %v8029_v12 = vmul.f32 %v15493_v50, %v15493_v50 }
 0x4fd   : > { %v7996_v10 = vadd.f32 %v7995_v53, %v7994_v16  ;;  %v8009_v62 = vrot.slane %v8008_v22, 4  ;;  %v8038_v2 = vcombine.high %v8026_v17, %v8026_v17  ;;  %v8040_v28 = vcombine.high %v8028_v48, %v8028_v48 }
 0x4fe   : > { %v8003_v54 = vadd.f32 %v8002_v19, %v8001_v4  ;;  %v8015_v55 = vsel %vm7973_vm15, %v7993_v18, 0.0  ;;  %v8031_v30 = vmul.f32 %v15499_v59, %v15499_v59  ;;  %v8042_v45 = vcombine.high %v8030_v52, %v8030_v52 }
 0x4ff   : > { %v7997_v8 = vrot.slane %v7996_v10, 2  ;;  %v8010_v1 = vadd.f32 %v8009_v62, %v8008_v22  ;;  %v8016_v9 = vrot.slane %v8015_v55, 4  ;;  %v8050_v35 = vsel %vm7973_vm15, %v8026_v17, 0.0 }
 0x500   : > { %v8004_v31 = vrot.slane %v8003_v54, 2  ;;  %v8039_v41 = vcombine.high %v8027_v61, %v8027_v61  ;;  %v8051_v46 = vsel %vm7973_vm15, %v8028_v48, 0.0  ;;  %v8041_v25 = vcombine.high %v8029_v12, %v8029_v12 }
 0x501   : > { %v8017_v33 = vadd.f32 %v8016_v9, %v8015_v55  ;;  %v7998_v0 = vadd.f32 %v7997_v8, %v7996_v10  ;;  %v8052_v11 = vadd.f32 %v8051_v46, %v8050_v35  ;;  %v8055_v58 = vsel %vm7973_vm15, %v8038_v2, 0.0 }
 0x502   : > { %v8005_v5 = vadd.f32 %v8004_v31, %v8003_v54  ;;  %v8011_v51 = vrot.slane %v8010_v1, 2  ;;  %v8053_v6 = vsel %vm7973_vm15, %v8030_v52, 0.0  ;;  %v8056_v37 = vsel %vm7973_vm15, %v8040_v28, 0.0 }
 0x503   : > { %v8018_v7 = vrot.slane %v8017_v33, 2  ;;  %v8043_v3 = vcombine.high %v8031_v30, %v8031_v30  ;;  %v8057_v56 = vadd.f32 %v8056_v37, %v8055_v58  ;;  %v8058_v63 = vsel %vm7973_vm15, %v8042_v45, 0.0 }
 0x504   : > { %v8060_v14 = vsel %vm7973_vm15, %v8027_v61, 0.0  ;;  %v8054_v38 = vadd.f32 %v8053_v6, %v8052_v11  ;;  %v8061_v27 = vsel %vm7973_vm15, %v8029_v12, 0.0  ;;  %v8063_v32 = vsel %vm7973_vm15, %v8031_v30, 0.0 }
 0x505   : > { %v8059_v44 = vadd.f32 %v8058_v63, %v8057_v56  ;;  %v7999_v15 = vrot.slane %v7998_v0, 1  ;;  %v8006_v49 = vrot.slane %v8005_v5, 1  ;;  %v8012_v60 = vadd.f32 %v8011_v51, %v8010_v1 }
 0x506   : > { %v8062_v39 = vadd.f32 %v8061_v27, %v8060_v14  ;;  %v8019_v36 = vadd.f32 %v8018_v7, %v8017_v33  ;;  %v8065_v42 = vsel %vm7973_vm15, %v8039_v41, 0.0  ;;  %v8066_v23 = vsel %vm7973_vm15, %v8041_v25, 0.0 }
 0x507   : > { %v8068_v40 = vsel %vm7973_vm15, %v8043_v3, 0.0  ;;  %v8067_v16 = vadd.f32 %v8066_v23, %v8065_v42  ;;  %v8070_v17 = vsel %vm7973_vm15, %v8054_v38, 0.0  ;;  %v8077_v53 = vsel %vm7973_vm15, %v8059_v44, 0.0 }
 0x508   : > { %v8064_v43 = vadd.f32 %v8063_v32, %v8062_v39  ;;  %v8013_v4 = vrot.slane %v8012_v60, 1  ;;  %v8071_v18 = vrot.slane %v8070_v17, 4  ;;  %v8078_v19 = vrot.slane %v8077_v53, 4 }
 0x509   : > { %v8069_v48 = vadd.f32 %v8068_v40, %v8067_v16  ;;  %v8000_v22 = vadd.f32 %v7999_v15, %v7998_v0  ;;  %v8007_v52 = vadd.f32 %v8006_v49, %v8005_v5  ;;  %v8020_v10 = vrot.slane %v8019_v36, 1 }
 0x50a   : > { %v8084_v62 = vsel %vm7973_vm15, %v8064_v43, 0.0  ;;  %v8072_v61 = vadd.f32 %v8071_v18, %v8070_v17  ;;  %v8079_v54 = vadd.f32 %v8078_v19, %v8077_v53  ;;  %v8014_v8 = vadd.f32 %v8013_v4, %v8012_v60 }
 0x50b   : > { %v8085_v55 = vrot.slane %v8084_v62, 4  ;;  %v8091_v12 = vsel %vm7973_vm15, %v8069_v48, 0.0  ;;  %v8021_v31 = vadd.f32 %v8020_v10, %v8019_v36  ;;  %v8022_v30 = vmul.f32 0.11111111, %v8000_v22 }
 0x50c   : > { %v8092_v2 = vrot.slane %v8091_v12, 4  ;;  %v8073_v1 = vrot.slane %v8072_v61, 2  ;;  %v8080_v9 = vrot.slane %v8079_v54, 2  ;;  %v8023_v35 = vmul.f32 0.11111111, %v8007_v52 }
 0x50d   : > { %v8086_v28 = vadd.f32 %v8085_v55, %v8084_v62  ;;  %v8024_v25 = vmul.f32 0.11111111, %v8014_v8  ;;  %v8025_v51 = vmul.f32 0.11111111, %v8021_v31  ;;  %v8102_v37 = vmul.f32 %v8022_v30, %v8022_v30 }
 0x50e   : > { %v8093_v45 = vadd.f32 %v8092_v2, %v8091_v12  ;;  %v8074_v33 = vadd.f32 %v8073_v1, %v8072_v61  ;;  %v8081_v41 = vadd.f32 %v8080_v9, %v8079_v54  ;;  %v8103_v63 = vmul.f32 %v8023_v35, %v8023_v35 }
 0x50f   : > { %v8087_v46 = vrot.slane %v8086_v28, 2  ;;  %v8104_v32 = vmul.f32 %v8024_v25, %v8024_v25  ;;  %v8105_v49 = vmul.f32 %v8025_v51, %v8025_v51  ;;  %v8118_v22 = vcombine.low %v8022_v30, %v8023_v35 }
 0x510   : > { %v8094_v0 = vrot.slane %v8093_v45, 2  ;;  %v8075_v11 = vrot.slane %v8074_v33, 1  ;;  %v8082_v58 = vrot.slane %v8081_v41, 1  ;;  %v8119_v52 = vcombine.low %v8024_v25, %v8025_v51 }
 0x511   : > { %v8088_v5 = vadd.f32 %v8087_v46, %v8086_v28  ;;  %v8122_v62 = vsub.f32 %v15484_v57, %v8118_v22  ;;  %v8124_v61 = vsub.f32 %v15490_v29, %v8118_v22  ;;  %v8126_v54 = vsub.f32 %v15496_v24, %v8118_v22 }
 0x512   : > { %v8095_v6 = vadd.f32 %v8094_v0, %v8093_v45  ;;  %v8076_v7 = vadd.f32 %v8075_v11, %v8074_v33  ;;  %v8083_v3 = vadd.f32 %v8082_v58, %v8081_v41  ;;  %v8123_v2 = vsub.f32 %v15487_v26, %v8119_v52 }
 0x513   : > { %v8089_v56 = vrot.slane %v8088_v5, 1  ;;  %v8125_v8 = vsub.f32 %v15493_v50, %v8119_v52  ;;  %v8127_v1 = vsub.f32 %v15499_v59, %v8119_v52 }
 0x514   : > { %v8096_v14 = vrot.slane %v8095_v6, 1  ;;  %v8098_v44 = vmul.f32 0.11111111, %v8076_v7  ;;  %v8099_v27 = vmul.f32 0.11111111, %v8083_v3 }
 0x515   : > { %v8090_v38 = vadd.f32 %v8089_v56, %v8088_v5 }
 0x516   : > { %v8097_v15 = vadd.f32 %v8096_v14, %v8095_v6  ;;  %v8106_v39 = vsub.f32 %v8098_v44, %v8102_v37  ;;  %v8107_v36 = vsub.f32 %v8099_v27, %v8103_v63 }
 0x517   : > { %v8100_v60 = vmul.f32 0.11111111, %v8090_v38 }
 0x518   : > { %v8101_v42 = vmul.f32 0.11111111, %v8097_v15  ;;  %v8110_v40 = vmax.f32 %v8106_v39, 0.0  ;;  %v8111_v43 = vmax.f32 %v8107_v36, 0.0 }
 0x519   : > { %v8108_v23 = vsub.f32 %v8100_v60, %v8104_v32 }
 0x51a   : > { %v8109_v16 = vsub.f32 %v8101_v42, %v8105_v49  ;;  %v8128_v53 = vadd.f32 1e-05, %v8110_v40  ;;  %v8129_v4 = vadd.f32 1e-05, %v8111_v43 }
 0x51b   : > { %v8112_v17 = vmax.f32 %v8108_v23, 0.0 }
 0x51c   : > { %v8113_v48 = vmax.f32 %v8109_v16, 0.0  ;;  %11960 = vrsqrt.f32 %v8128_v53 }
 0x51d   : > { %v8130_v18 = vadd.f32 1e-05, %v8112_v17  ;;  %11962 = vrsqrt.f32 %v8129_v4 }
 0x51e   : > { %v8131_v19 = vadd.f32 1e-05, %v8113_v48 }
 0x51f   : > { %11964 = vrsqrt.f32 %v8130_v18 }
 0x520   : > { %11966 = vrsqrt.f32 %v8131_v19 }
 0x526   : > { %v11961_v10 = vpop.eup %11960 }
 0x527   : > { %v11963_v55 = vpop.eup %11962 }
 0x528   : > { %v8140_v9 = vcombine.low %v11961_v10, %v11963_v55 }
 0x529   : > { %v11965_v12 = vpop.eup %11964 }
 0x52a   : > { %v11967_v28 = vpop.eup %11966  ;;  %v8144_v30 = vmul.f32 %v8140_v9, %v8122_v62  ;;  %v8146_v45 = vmul.f32 %v8140_v9, %v8124_v61  ;;  %v8148_v35 = vmul.f32 %v8140_v9, %v8126_v54 }
 0x52b   : > { %v8141_v31 = vcombine.low %v11965_v12, %v11967_v28 }
 0x52c   : > { %vm8150_vm0 = vcmp.ge.f32.partialorder %v8144_v30, 0.0  ;;  %vm8152_vm1 = vcmp.ge.f32.partialorder %v8146_v45, 0.0  ;;  %vm8154_vm2 = vcmp.ge.f32.partialorder %v8148_v35, 0.0  ;;  %v8156_v29 = vmul.f32 0.2, %v8144_v30 }
 0x52d   : > { %v8145_v33 = vmul.f32 %v8141_v31, %v8123_v2  ;;  %v8147_v57 = vmul.f32 %v8141_v31, %v8125_v8  ;;  %v8149_v41 = vmul.f32 %v8141_v31, %v8127_v1  ;;  %v8158_v24 = vmul.f32 0.2, %v8146_v45 }
 0x52e   : > { %v8160_v59 = vmul.f32 0.2, %v8148_v35  ;;  %v8162_v0 = vsel %vm8150_vm0, %v8144_v30, %v8156_v29 }
 0x52f   : > { %vm8151_vm3 = vcmp.ge.f32.partialorder %v8145_v33, 0.0  ;;  %vm8153_vm4 = vcmp.ge.f32.partialorder %v8147_v57, 0.0  ;;  %vm8155_vm5 = vcmp.ge.f32.partialorder %v8149_v41, 0.0  ;;  %v8157_v26 = vmul.f32 0.2, %v8145_v33 }
 0x530   : > { %v8159_v50 = vmul.f32 0.2, %v8147_v57  ;;  %v8161_v46 = vmul.f32 0.2, %v8149_v41  ;;  %v8164_v11 = vsel %vm8152_vm1, %v8146_v45, %v8158_v24  ;;  %v8174_v58 = vcombine.high %v8162_v0, %v8162_v0 }
 0x531   : > { %v8163_v25 = vsel %vm8151_vm3, %v8145_v33, %v8157_v26  ;;  %v8166_v51 = vsel %vm8154_vm2, %v8148_v35, %v8160_v59  ;;  %v8176_v7 = vcombine.high %v8164_v11, %v8164_v11 }
 0x532   : > { %v8165_v5 = vsel %vm8153_vm4, %v8147_v57, %v8159_v50  ;;  %v8167_v6 = vsel %vm8155_vm5, %v8149_v41, %v8161_v46  ;;  %v8175_v37 = vcombine.high %v8163_v25, %v8163_v25  ;;  %v8178_v56 = vcombine.high %v8166_v51, %v8166_v51 }
 0x533   : > { %v8177_v3 = vcombine.high %v8165_v5, %v8165_v5  ;;  %v8179_v63 = vcombine.high %v8167_v6, %v8167_v6  ;;  %v10363_v14 = vpack.c.bf16 %v8174_v58, %v8162_v0  ;;  %v10365_v44 = vpack.c.bf16 %v8176_v7, %v8164_v11 }
 0x534   : > { %v10364_v38 = vpack.c.bf16 %v8175_v37, %v8163_v25  ;;  %v10367_v32 = vpack.c.bf16 %v8178_v56, %v8166_v51 }
 0x535   : > { %v10366_v27 = vpack.c.bf16 %v8177_v3, %v8165_v5  ;;  %v10368_v15 = vpack.c.bf16 %v8179_v63, %v8167_v6  ;;  %v8218_v49 = vrot.slane %v10363_v14, %v15455_v13  ;;  %v8235_v39 = vrot.slane %v10365_v44, %v15455_v13 }
 0x536   : > { %v8225_v60 = vrot.slane %v10364_v38, %v15455_v13  ;;  %v8252_v42 = vrot.slane %v10367_v32, %v15455_v13 }
 0x537   : > { %v8242_v36 = vrot.slane %v10366_v27, %v15455_v13  ;;  %v8259_v23 = vrot.slane %v10368_v15, %v15455_v13 }
 0x538   : > { %v8226_v40 = vcombine.low %v8218_v49, %v8225_v60 }
 0x539   : > { %v8243_v43 = vcombine.low %v8235_v39, %v8242_v36  ;;  %v8260_v16 = vcombine.low %v8252_v42, %v8259_v23 }
 0x53a   : > { %v8264_v17 = vsel %vm15467_vm14, %v8226_v40, %v15475_v20 }
 0x53b   : > { %8265 = vst [vmem:[%s15453_s24] sm:$0xff] %v8264_v17  ;;  %v8267_v53 = vsel %vm15467_vm14, %v8243_v43, %v15478_v21  ;;  %v8270_v4 = vsel %vm15467_vm14, %v8260_v16, %v15481_v47 }
 0x53c   : > { %8268 = vst [vmem:[%s15453_s24 + $0x8] sm:$0xff] %v8267_v53  ;;  %8271 = vst [vmem:[%s15453_s24 + $0x10] sm:$0xff] %v8270_v4 }
 0x53d PF: > { %s13_s16 = sadd.s32 1, %s12006_s16   ;;  %s15612_s12 = smov %s11998_s14 }
 0x53e   : > { %p10_p7 = scmp.ge.s32.totalorder %s13_s16, 8   ;;  %s15613_s13 = smov %s12002_s15 }
 0x53f   : > { %s15614_s14 = smov %s15617_s17  ;;  %s15615_s15 = smov %s15621_s18 }
 0x540   :  { %12 = sbr.rel (!%p10_p7) target bundleno = 3 (0x3), region = 86 }

</bundles_post_ra>
